<compile_context>
chip_gen: v7x
topology: tpu7x:2x2x1
jax: 0.10.0
libtpu: 0.0.40
codegen_flags: <defaults>
</compile_context>

<pallas_src>
import numpy as np
import jax
import jax.numpy as jnp
from jax import lax
from jax.experimental import pallas as pl
from jax.experimental.pallas import tpu as pltpu


# ----------------------------- static helpers ------------------------------

def _round_up(x, m):
    return ((x + m - 1) // m) * m


def _pad2(a, rows, cols):
    a = np.asarray(a, np.float32)
    out = np.zeros((rows, cols), np.float32)
    out[:a.shape[0], :a.shape[1]] = a
    return out


def _build_deconv_ops(w, bias, h_in, w_in, stride, pad, k_in_pad):
    """Fused ConvTranspose matrix for one layer.

    E_cat[(iw,ci), kh*Np + (ow,co)] = w[ci, co, kh, ow - stride*iw + pad];
    every kh block is zero padded to Np = round_up(W_out*C_out, 128) lanes so
    per-kh slices of (X @ E_cat) are 128-lane aligned.  Also returns the
    per-output-row contribution table {(kh, ih) : oh = ih*stride - pad + kh}.
    """
    c_in, c_out, k, _ = w.shape
    assert w_in * c_in <= k_in_pad
    h_out = (h_in - 1) * stride - 2 * pad + k
    w_out = (w_in - 1) * stride - 2 * pad + k
    n_out = w_out * c_out
    n_pad = _round_up(n_out, 128)
    e = np.zeros((k_in_pad, k * n_pad), np.float32)
    for kh in range(k):
        for iw in range(w_in):
            for ow in range(w_out):
                kw = ow - stride * iw + pad
                if 0 <= kw < k:
                    e[iw * c_in:(iw + 1) * c_in,
                      kh * n_pad + ow * c_out:kh * n_pad + (ow + 1) * c_out] \
                        = w[:, :, kh, kw]
    bf = np.zeros((1, n_pad), np.float32)
    bf[0, :n_out] = np.tile(np.asarray(bias, np.float32), w_out)
    contrib = []
    for oh in range(h_out):
        lst = []
        for kh in range(k):
            t = oh + pad - kh
            if t % stride == 0 and 0 <= t // stride < h_in:
                lst.append((kh, t // stride))
        contrib.append(lst)
    cfg = dict(h_in=h_in, w_in=w_in, h_out=h_out, w_out=w_out, c_in=c_in,
               c_out=c_out, k=k, n_out=n_out, n_pad=n_pad,
               k_in_pad=k_in_pad, contrib=contrib)
    return cfg, e, bf


def _bn_mats(c_out, w_out, n_pad, count):
    """(W*C,)->channel pooling (1/count folded in) and channel->(W*C,) unpool."""
    pool = np.zeros((n_pad, c_out), np.float32)
    unpool = np.zeros((c_out, n_pad), np.float32)
    for wp in range(w_out):
        for ch in range(c_out):
            pool[wp * c_out + ch, ch] = 1.0 / count
            unpool[ch, wp * c_out + ch] = 1.0
    return pool, unpool


def _row_mask(h, pb, batch):
    """1.0 on rows belonging to real batch elements, 0.0 on padded rows."""
    m = np.zeros((h * pb, 1), np.float32)
    for ih in range(h):
        m[ih * pb:ih * pb + batch, 0] = 1.0
    return m


def _convT_as_matrix(w, h_in, w_in, stride, pad):
    """Dense NCHW-flat ConvTranspose matrix (pure-JAX reference only)."""
    c_in, c_out, kh, kw = w.shape
    h_out = (h_in - 1) * stride - 2 * pad + kh
    w_out = (w_in - 1) * stride - 2 * pad + kw
    m = np.zeros((c_in * h_in * w_in, c_out * h_out * w_out), dtype=np.float32)
    for ci in range(c_in):
        for ih in range(h_in):
            for iw in range(w_in):
                row = (ci * h_in + ih) * w_in + iw
                for dkh in range(kh):
                    oh = ih * stride - pad + dkh
                    if oh < 0 or oh >= h_out:
                        continue
                    for dkw in range(kw):
                        ow = iw * stride - pad + dkw
                        if ow < 0 or ow >= w_out:
                            continue
                        cols = (np.arange(c_out) * h_out + oh) * w_out + ow
                        m[row, cols] += w[ci, :, dkh, dkw]
    return m, h_out, w_out


# ------------------------------- Pallas kernel ------------------------------

def _make_kernel(cfgs, pb):
    c1, c2, c3 = cfgs
    f32 = jnp.float32

    def kernel(z_ref, w1_ref, b1_ref, w2_ref, b2_ref, w3_ref, b3_ref,
               e1_ref, bf1_ref, p1_ref, u1_ref, g1_ref, bt1_ref, m1_ref,
               e2_ref, bf2_ref, p2_ref, u2_ref, g2_ref, bt2_ref, m2_ref,
               e3_ref, bf3_ref,
               out_ref,
               x0_ref, act1_ref, act2_ref):

        def mm(a, w_ref):
            w = w_ref[...]
            # cast only MXU inputs (bf16 option); accumulation stays f32
            return jnp.dot(a.astype(w.dtype), w, preferred_element_type=f32)

        # ----------------------------- FC stack -----------------------------
        h = jnp.maximum(mm(z_ref[...], w1_ref) + b1_ref[...], 0.0)
        h = jnp.maximum(mm(h, w2_ref) + b2_ref[...], 0.0)
        h = mm(h, w3_ref) + b3_ref[...]                 # (PB, 3*256), 1 matmul
        # bridge: three 128-aligned 256-lane slices -> (ih, b)-row layout
        kp = c1['k_in_pad']
        for ih in range(c1['h_in']):
            x0_ref[pl.ds(ih * pb, pb), :] = h[:, ih * kp:(ih + 1) * kp]

        # ------------------- ConvTranspose as ONE matmul --------------------
        def deconv_rows(x, e_ref, cfg):
            contrib = mm(x, e_ref)                      # (H_in*PB, kH*Np)
            npd = cfg['n_pad']
            rows = []
            for lst in cfg['contrib']:                  # one entry per oh
                acc = None
                for kh, ih in lst:
                    piece = contrib[ih * pb:(ih + 1) * pb,
                                    kh * npd:(kh + 1) * npd]
                    acc = piece if acc is None else acc + piece
                if acc is None:                         # unreachable here
                    acc = jnp.zeros((pb, npd), f32)
                rows.append(acc)
            return rows

        def batchnorm(y, p_ref, u_ref, g_ref, bt_ref, m_ref):
            # training-mode batch stats (biased var); padded batch rows are
            # masked out of the sums; 1/(real count) is folded into pool.
            ym = y * m_ref[...]
            mean = mm(jnp.sum(ym, axis=0, keepdims=True), p_ref)       # (1, C)
            mean_sq = mm(jnp.sum(ym * y, axis=0, keepdims=True), p_ref)
            var = mean_sq - mean * mean
            scale = g_ref[...] * lax.rsqrt(var + 1e-5)                 # (1, C)
            shift = bt_ref[...] - mean * scale                         # (1, C)
            scale_f = mm(scale, u_ref)                                 # (1, Np)
            shift_f = mm(shift, u_ref)                                 # (1, Np)
            return y * scale_f + shift_f

        # ---- deconv 1: 3x3 -> 7x7, bias+ReLU fused into single row store ----
        rows = deconv_rows(x0_ref[...], e1_ref, c1)
        bb = jnp.broadcast_to(bf1_ref[...], (pb, c1['n_pad']))
        for oh, r in enumerate(rows):
            act1_ref[pl.ds(oh * pb, pb), :] = jnp.maximum(r + bb, 0.0)
        y = batchnorm(act1_ref[...], p1_ref, u1_ref, g1_ref, bt1_ref, m1_ref)

        # ---- deconv 2: 7x7 -> 14x14, bias+ReLU fused into single row store --
        rows = deconv_rows(y, e2_ref, c2)
        bb = jnp.broadcast_to(bf2_ref[...], (pb, c2['n_pad']))
        for oh, r in enumerate(rows):
            act2_ref[pl.ds(oh * pb, pb), :] = jnp.maximum(r + bb, 0.0)
        y = batchnorm(act2_ref[...], p2_ref, u2_ref, g2_ref, bt2_ref, m2_ref)

        # ---- deconv 3: 14x14 -> 28x28, bias+tanh fused into single store ----
        rows = deconv_rows(y, e3_ref, c3)
        bb = jnp.broadcast_to(bf3_ref[...], (pb, c3['n_pad']))
        for oh, r in enumerate(rows):
            out_ref[pl.ds(oh * pb, pb), :] = jnp.tanh(r + bb)

    return kernel


# ------------------------ parameters & operand packing ----------------------

def init_params(key):
    keys = jax.random.split(key, 12)

    def rnd(k, shape, scale=0.05):
        return (scale * jax.random.normal(k, shape)).astype(jnp.float32)

    return {
        'w1': rnd(keys[0], (10, 100)),  'b1': rnd(keys[1], (1, 100)),
        'w2': rnd(keys[2], (100, 300)), 'b2': rnd(keys[3], (1, 300)),
        'w3': rnd(keys[4], (300, 576)), 'b3': rnd(keys[5], (1, 576)),
        'ct_w': [np.asarray(rnd(keys[6], (64, 32, 5, 5))),
                 np.asarray(rnd(keys[7], (32, 16, 4, 4))),
                 np.asarray(rnd(keys[8], (16, 1, 4, 4)))],
        'ct_b': [np.asarray(rnd(keys[9], (32,))),
                 np.asarray(rnd(keys[10], (16,))),
                 np.asarray(rnd(keys[11], (1,)))],
        'gamma': [np.ones((1, 32), np.float32), np.ones((1, 16), np.float32)],
        'beta':  [np.zeros((1, 32), np.float32), np.zeros((1, 16), np.float32)],
    }


def prepare_ops(params, batch, mxu_dtype=jnp.float32):
    """Pack weights into MXU/lane friendly layouts (all lane dims % 128 == 0).

    mxu_dtype=jnp.bfloat16 stores only the big matmul weights in bf16 (v6e/v7x
    fast path); biases, BN pool/unpool/gamma/beta and masks stay f32.
    """
    pb = _round_up(batch, 8)                 # batch padded to 8 sublanes

    # FC stack, zero padded to 128-lane multiples: 100->128, 300->384.
    w1 = _pad2(params['w1'], 10, 128)
    b1 = _pad2(params['b1'], 1, 128)
    w2 = _pad2(params['w2'], 128, 384)
    b2 = _pad2(params['b2'], 1, 384)

    # Linear(300,576): ONE matmul into three 256-lane padded per-spatial-row
    # blocks, columns permuted to (w, c) lane order for the deconv stack.
    fc_blk = _round_up(3 * 64, 128)          # 256
    w3 = np.asarray(params['w3'], np.float32).reshape(300, 64, 3, 3)  # (k,c,h,w)
    b3 = np.asarray(params['b3'], np.float32).reshape(1, 64, 3, 3)
    w3c = np.zeros((384, 3 * fc_blk), np.float32)
    b3c = np.zeros((1, 3 * fc_blk), np.float32)
    for hh in range(3):
        w3c[:300, hh * fc_blk:hh * fc_blk + 192] = \
            w3[:, :, hh, :].transpose(0, 2, 1).reshape(300, 192)
        b3c[0, hh * fc_blk:hh * fc_blk + 192] = \
            b3[0, :, hh, :].T.reshape(192)

    cfgs, es, bfs, pools, unpools, masks = [], [], [], [], [], []
    h_sp = w_sp = 3
    k_in_pad = fc_blk
    for i in range(3):
        w = np.asarray(params['ct_w'][i], np.float32)
        bias = np.asarray(params['ct_b'][i], np.float32)
        cfg, e, bf = _build_deconv_ops(w, bias, h_sp, w_sp, 2, 1, k_in_pad)
        cfgs.append(cfg)
        es.append(jnp.asarray(e, dtype=mxu_dtype))
        bfs.append(jnp.asarray(bf))
        if i < 2:
            count = float(batch * cfg['h_out'] * cfg['w_out'])
            pool, unpool = _bn_mats(cfg['c_out'], cfg['w_out'],
                                    cfg['n_pad'], count)
            pools.append(jnp.asarray(pool))
            unpools.append(jnp.asarray(unpool))
            masks.append(jnp.asarray(_row_mask(cfg['h_out'], pb, batch)))
        h_sp, w_sp = cfg['h_out'], cfg['w_out']
        k_in_pad = cfg['n_pad']

    return dict(
        batch=batch, pb=pb, cfgs=cfgs,
        w1=jnp.asarray(w1, dtype=mxu_dtype), b1=jnp.asarray(b1),
        w2=jnp.asarray(w2, dtype=mxu_dtype), b2=jnp.asarray(b2),
        w3c=jnp.asarray(w3c, dtype=mxu_dtype), b3c=jnp.asarray(b3c),
        e=es, bf=bfs, pool=pools, unpool=unpools, mask=masks,
        gamma=[jnp.asarray(np.asarray(g, np.float32)) for g in params['gamma']],
        beta=[jnp.asarray(np.asarray(b_, np.float32)) for b_ in params['beta']])


# ------------------------------- forward pass -------------------------------

def decoder_forward(ops, z):
    b = z.shape[0]
    assert b == ops['batch']
    pb = ops['pb']
    cfgs = ops['cfgs']
    c1, c2, c3 = cfgs

    z_p = jnp.pad(z.astype(jnp.float32), ((0, pb - b), (0, 0)))

    kernel = _make_kernel(cfgs, pb)
    inputs = [z_p,
              ops['w1'], ops['b1'], ops['w2'], ops['b2'],
              ops['w3c'], ops['b3c'],
              ops['e'][0], ops['bf'][0], ops['pool'][0], ops['unpool'][0],
              ops['gamma'][0], ops['beta'][0], ops['mask'][0],
              ops['e'][1], ops['bf'][1], ops['pool'][1], ops['unpool'][1],
              ops['gamma'][1], ops['beta'][1], ops['mask'][1],
              ops['e'][2], ops['bf'][2]]

    scratch = [
        pltpu.VMEM((c1['h_in'] * pb, c1['k_in_pad']), jnp.float32),   # FC bridge
        pltpu.VMEM((c1['h_out'] * pb, c1['n_pad']), jnp.float32),     # act1
        pltpu.VMEM((c2['h_out'] * pb, c2['n_pad']), jnp.float32),     # act2
    ]

    out2d = pl.pallas_call(
        kernel,
        out_shape=jax.ShapeDtypeStruct((c3['h_out'] * pb, c3['n_pad']),
                                       jnp.float32),
        in_specs=[pl.BlockSpec(memory_space=pltpu.MemorySpace.VMEM)]
        * len(inputs),
        out_specs=pl.BlockSpec(memory_space=pltpu.MemorySpace.VMEM),
        scratch_shapes=scratch,
        compiler_params=pltpu.CompilerParams(
            vmem_limit_bytes=32 * 1024 * 1024),
    )(*inputs)

    h3, w3o = c3['h_out'], c3['w_out']
    # rows are (oh, padded-b)-major, lanes padded to 128 -> crop to NCHW
    out = out2d.reshape(h3, pb, c3['n_pad'])[:, :b, :w3o]     # (28, B, 28)
    return out.transpose(1, 0, 2).reshape(b, 1, h3, w3o)


# ------------------------- pure-JAX reference (check) ------------------------

def decoder_reference(params, z):
    b = z.shape[0]
    h = jnp.maximum(z @ params['w1'] + params['b1'], 0.0)
    h = jnp.maximum(h @ params['w2'] + params['b2'], 0.0)
    x = h @ params['w3'] + params['b3']                     # (B, 576) NCHW-flat
    h_sp = w_sp = 3
    for i in range(3):
        ct_w, ct_b = params['ct_w'][i], params['ct_b'][i]
        m, h_sp, w_sp = _convT_as_matrix(ct_w, h_sp, w_sp, 2, 1)
        c_out, hw = ct_w.shape[1], h_sp * w_sp
        bflat = jnp.asarray(np.repeat(ct_b, hw)[None, :])
        y = x @ jnp.asarray(m) + bflat
        if i < 2:
            y = jnp.maximum(y, 0.0)
            y3 = y.reshape(b, c_out, hw)
            mean = jnp.mean(y3, axis=(0, 2), keepdims=True)
            var = jnp.mean(y3 * y3, axis=(0, 2), keepdims=True) - mean * mean
            y3 = (y3 - mean) * lax.rsqrt(var + 1e-5)
            gamma = jnp.asarray(params['gamma'][i]).reshape(1, c_out, 1)
            beta = jnp.asarray(params['beta'][i]).reshape(1, c_out, 1)
            x = (y3 * gamma + beta).reshape(b, c_out * hw)
        else:
            x = jnp.tanh(y)
    return x.reshape(b, 1, h_sp, w_sp)


if __name__ == "__main__":
    key = jax.random.PRNGKey(0)
    pkey, zkey = jax.random.split(key)
    params = init_params(pkey)
    z = jax.random.normal(zkey, (2, 10), dtype=jnp.float32)

    ref = decoder_reference(params, z)

    # f32 weights: matches the reference tightly.
    ops = prepare_ops(params, batch=2)
    out = jax.block_until_ready(decoder_forward(ops, z))
    assert out.shape == (2, 1, 28, 28), out.shape
    assert bool(jnp.all(jnp.isfinite(out)))
    assert bool(jnp.allclose(out, ref, rtol=1e-3, atol=1e-3)), \
        float(jnp.max(jnp.abs(out - ref)))

    # bf16 MXU weights (v6e/v7x fast path): f32 accumulation, loose sanity check.
    ops_bf = prepare_ops(params, batch=2, mxu_dtype=jnp.bfloat16)
    out_bf = jax.block_until_ready(decoder_forward(ops_bf, z))
    assert out_bf.shape == (2, 1, 28, 28), out_bf.shape
    assert bool(jnp.all(jnp.isfinite(out_bf)))
    assert bool(jnp.allclose(out_bf, ref, rtol=0.0, atol=1e-1)), \
        float(jnp.max(jnp.abs(out_bf - ref)))

    print("KERNEL_OK")
</pallas_src>

<mosaic_0001>
module attributes {stable_mosaic.version = 11 : i64} {
  func.func @kernel(%arg0: memref<8x10xf32, #tpu.memory_space<vmem>>, %arg1: memref<10x128xf32, #tpu.memory_space<vmem>>, %arg2: memref<1x128xf32, #tpu.memory_space<vmem>>, %arg3: memref<128x384xf32, #tpu.memory_space<vmem>>, %arg4: memref<1x384xf32, #tpu.memory_space<vmem>>, %arg5: memref<384x768xf32, #tpu.memory_space<vmem>>, %arg6: memref<1x768xf32, #tpu.memory_space<vmem>>, %arg7: memref<256x1280xf32, #tpu.memory_space<vmem>>, %arg8: memref<1x256xf32, #tpu.memory_space<vmem>>, %arg9: memref<256x32xf32, #tpu.memory_space<vmem>>, %arg10: memref<32x256xf32, #tpu.memory_space<vmem>>, %arg11: memref<1x32xf32, #tpu.memory_space<vmem>>, %arg12: memref<1x32xf32, #tpu.memory_space<vmem>>, %arg13: memref<56x1xf32, #tpu.memory_space<vmem>>, %arg14: memref<256x1024xf32, #tpu.memory_space<vmem>>, %arg15: memref<1x256xf32, #tpu.memory_space<vmem>>, %arg16: memref<256x16xf32, #tpu.memory_space<vmem>>, %arg17: memref<16x256xf32, #tpu.memory_space<vmem>>, %arg18: memref<1x16xf32, #tpu.memory_space<vmem>>, %arg19: memref<1x16xf32, #tpu.memory_space<vmem>>, %arg20: memref<112x1xf32, #tpu.memory_space<vmem>>, %arg21: memref<256x512xf32, #tpu.memory_space<vmem>>, %arg22: memref<1x128xf32, #tpu.memory_space<vmem>>, %arg23: memref<224x128xf32, #tpu.memory_space<vmem>>, %arg24: memref<24x256xf32, #tpu.memory_space<vmem>>, %arg25: memref<56x256xf32, #tpu.memory_space<vmem>>, %arg26: memref<112x256xf32, #tpu.memory_space<vmem>>) attributes {dimension_semantics = [], scalar_prefetch = 0 : i64, scratch_operands = 3 : i64, tpu.core_type = #tpu.core_type<tc>} {
    %c0 = arith.constant 0 : index
    %c0_0 = arith.constant 0 : index
    %0 = vector.load %arg0[%c0, %c0_0] : memref<8x10xf32, #tpu.memory_space<vmem>>, vector<8x10xf32>
    %c0_1 = arith.constant 0 : index
    %c0_2 = arith.constant 0 : index
    %1 = vector.load %arg1[%c0_1, %c0_2] : memref<10x128xf32, #tpu.memory_space<vmem>>, vector<10x128xf32>
    %cst = arith.constant dense<0.000000e+00> : vector<8x128xf32>
    %2 = tpu.matmul %0, %1, %cst {dimension_numbers = #tpu.dot_dimension_numbers<[1], [0], [0], [1], [0, 0, 1, 1], [], []>} : vector<8x10xf32>, vector<10x128xf32>, vector<8x128xf32> -> vector<8x128xf32>
    %c0_3 = arith.constant 0 : index
    %c0_4 = arith.constant 0 : index
    %3 = vector.load %arg2[%c0_3, %c0_4] : memref<1x128xf32, #tpu.memory_space<vmem>>, vector<1x128xf32>
    %4 = vector.broadcast %3 : vector<1x128xf32> to vector<8x128xf32>
    %5 = arith.addf %2, %4 : vector<8x128xf32>
    %cst_5 = arith.constant 0.000000e+00 : f32
    %6 = vector.broadcast %cst_5 : f32 to vector<8x128xf32>
    %7 = arith.maximumf %5, %6 : vector<8x128xf32>
    %c0_6 = arith.constant 0 : index
    %c0_7 = arith.constant 0 : index
    %8 = vector.load %arg3[%c0_6, %c0_7] : memref<128x384xf32, #tpu.memory_space<vmem>>, vector<128x384xf32>
    %cst_8 = arith.constant dense<0.000000e+00> : vector<8x384xf32>
    %9 = tpu.matmul %7, %8, %cst_8 {dimension_numbers = #tpu.dot_dimension_numbers<[1], [0], [0], [1], [0, 0, 1, 1], [], []>} : vector<8x128xf32>, vector<128x384xf32>, vector<8x384xf32> -> vector<8x384xf32>
    %c0_9 = arith.constant 0 : index
    %c0_10 = arith.constant 0 : index
    %10 = vector.load %arg4[%c0_9, %c0_10] : memref<1x384xf32, #tpu.memory_space<vmem>>, vector<1x384xf32>
    %11 = vector.broadcast %10 : vector<1x384xf32> to vector<8x384xf32>
    %12 = arith.addf %9, %11 : vector<8x384xf32>
    %cst_11 = arith.constant 0.000000e+00 : f32
    %13 = vector.broadcast %cst_11 : f32 to vector<8x384xf32>
    %14 = arith.maximumf %12, %13 : vector<8x384xf32>
    %c0_12 = arith.constant 0 : index
    %c0_13 = arith.constant 0 : index
    %15 = vector.load %arg5[%c0_12, %c0_13] : memref<384x768xf32, #tpu.memory_space<vmem>>, vector<384x768xf32>
    %cst_14 = arith.constant dense<0.000000e+00> : vector<8x768xf32>
    %16 = tpu.matmul %14, %15, %cst_14 {dimension_numbers = #tpu.dot_dimension_numbers<[1], [0], [0], [1], [0, 0, 1, 1], [], []>} : vector<8x384xf32>, vector<384x768xf32>, vector<8x768xf32> -> vector<8x768xf32>
    %c0_15 = arith.constant 0 : index
    %c0_16 = arith.constant 0 : index
    %17 = vector.load %arg6[%c0_15, %c0_16] : memref<1x768xf32, #tpu.memory_space<vmem>>, vector<1x768xf32>
    %18 = vector.broadcast %17 : vector<1x768xf32> to vector<8x768xf32>
    %19 = arith.addf %16, %18 : vector<8x768xf32>
    %20 = vector.extract_strided_slice %19 {offsets = [0, 0], sizes = [8, 256], strides = [1, 1]} : vector<8x768xf32> to vector<8x256xf32>
    %c0_17 = arith.constant 0 : index
    %c0_18 = arith.constant 0 : index
    %21 = vector.load %arg24[%c0_17, %c0_18] : memref<24x256xf32, #tpu.memory_space<vmem>>, vector<8x256xf32>
    tpu.vector_store %arg24[%c0_17, %c0_18], %20 {strides = array<i32>} : memref<24x256xf32, #tpu.memory_space<vmem>>, vector<8x256xf32>,
    %22 = vector.extract_strided_slice %19 {offsets = [0, 256], sizes = [8, 256], strides = [1, 1]} : vector<8x768xf32> to vector<8x256xf32>
    %c8 = arith.constant 8 : index
    %c0_19 = arith.constant 0 : index
    %23 = vector.load %arg24[%c8, %c0_19] : memref<24x256xf32, #tpu.memory_space<vmem>>, vector<8x256xf32>
    tpu.vector_store %arg24[%c8, %c0_19], %22 {strides = array<i32>} : memref<24x256xf32, #tpu.memory_space<vmem>>, vector<8x256xf32>,
    %24 = vector.extract_strided_slice %19 {offsets = [0, 512], sizes = [8, 256], strides = [1, 1]} : vector<8x768xf32> to vector<8x256xf32>
    %c16 = arith.constant 16 : index
    %c0_20 = arith.constant 0 : index
    %25 = vector.load %arg24[%c16, %c0_20] : memref<24x256xf32, #tpu.memory_space<vmem>>, vector<8x256xf32>
    tpu.vector_store %arg24[%c16, %c0_20], %24 {strides = array<i32>} : memref<24x256xf32, #tpu.memory_space<vmem>>, vector<8x256xf32>,
    %c0_21 = arith.constant 0 : index
    %c0_22 = arith.constant 0 : index
    %26 = vector.load %arg24[%c0_21, %c0_22] : memref<24x256xf32, #tpu.memory_space<vmem>>, vector<24x256xf32>
    %c0_23 = arith.constant 0 : index
    %c0_24 = arith.constant 0 : index
    %27 = vector.load %arg7[%c0_23, %c0_24] : memref<256x1280xf32, #tpu.memory_space<vmem>>, vector<256x1280xf32>
    %cst_25 = arith.constant dense<0.000000e+00> : vector<24x1280xf32>
    %28 = tpu.matmul %26, %27, %cst_25 {dimension_numbers = #tpu.dot_dimension_numbers<[1], [0], [0], [1], [0, 0, 1, 1], [], []>} : vector<24x256xf32>, vector<256x1280xf32>, vector<24x1280xf32> -> vector<24x1280xf32>
    %29 = vector.extract_strided_slice %28 {offsets = [0, 256], sizes = [8, 256], strides = [1, 1]} : vector<24x1280xf32> to vector<8x256xf32>
    %30 = vector.extract_strided_slice %28 {offsets = [8, 0], sizes = [8, 256], strides = [1, 1]} : vector<24x1280xf32> to vector<8x256xf32>
    %31 = vector.extract_strided_slice %28 {offsets = [0, 512], sizes = [8, 256], strides = [1, 1]} : vector<24x1280xf32> to vector<8x256xf32>
    %32 = arith.addf %30, %31 : vector<8x256xf32>
    %33 = vector.extract_strided_slice %28 {offsets = [8, 256], sizes = [8, 256], strides = [1, 1]} : vector<24x1280xf32> to vector<8x256xf32>
    %34 = vector.extract_strided_slice %28 {offsets = [0, 768], sizes = [8, 256], strides = [1, 1]} : vector<24x1280xf32> to vector<8x256xf32>
    %35 = arith.addf %33, %34 : vector<8x256xf32>
    %36 = vector.extract_strided_slice %28 {offsets = [16, 0], sizes = [8, 256], strides = [1, 1]} : vector<24x1280xf32> to vector<8x256xf32>
    %37 = vector.extract_strided_slice %28 {offsets = [8, 512], sizes = [8, 256], strides = [1, 1]} : vector<24x1280xf32> to vector<8x256xf32>
    %38 = arith.addf %36, %37 : vector<8x256xf32>
    %39 = vector.extract_strided_slice %28 {offsets = [0, 1024], sizes = [8, 256], strides = [1, 1]} : vector<24x1280xf32> to vector<8x256xf32>
    %40 = arith.addf %38, %39 : vector<8x256xf32>
    %41 = vector.extract_strided_slice %28 {offsets = [16, 256], sizes = [8, 256], strides = [1, 1]} : vector<24x1280xf32> to vector<8x256xf32>
    %42 = vector.extract_strided_slice %28 {offsets = [8, 768], sizes = [8, 256], strides = [1, 1]} : vector<24x1280xf32> to vector<8x256xf32>
    %43 = arith.addf %41, %42 : vector<8x256xf32>
    %44 = vector.extract_strided_slice %28 {offsets = [16, 512], sizes = [8, 256], strides = [1, 1]} : vector<24x1280xf32> to vector<8x256xf32>
    %45 = vector.extract_strided_slice %28 {offsets = [8, 1024], sizes = [8, 256], strides = [1, 1]} : vector<24x1280xf32> to vector<8x256xf32>
    %46 = arith.addf %44, %45 : vector<8x256xf32>
    %47 = vector.extract_strided_slice %28 {offsets = [16, 768], sizes = [8, 256], strides = [1, 1]} : vector<24x1280xf32> to vector<8x256xf32>
    %c0_26 = arith.constant 0 : index
    %c0_27 = arith.constant 0 : index
    %48 = vector.load %arg8[%c0_26, %c0_27] : memref<1x256xf32, #tpu.memory_space<vmem>>, vector<1x256xf32>
    %49 = vector.shape_cast %48 : vector<1x256xf32> to vector<1x256xf32>
    %50 = vector.broadcast %49 : vector<1x256xf32> to vector<8x256xf32>
    %51 = arith.addf %29, %50 : vector<8x256xf32>
    %cst_28 = arith.constant 0.000000e+00 : f32
    %52 = vector.broadcast %cst_28 : f32 to vector<8x256xf32>
    %53 = arith.maximumf %51, %52 : vector<8x256xf32>
    %c0_29 = arith.constant 0 : index
    %c0_30 = arith.constant 0 : index
    %54 = vector.load %arg25[%c0_29, %c0_30] : memref<56x256xf32, #tpu.memory_space<vmem>>, vector<8x256xf32>
    tpu.vector_store %arg25[%c0_29, %c0_30], %53 {strides = array<i32>} : memref<56x256xf32, #tpu.memory_space<vmem>>, vector<8x256xf32>,
    %55 = arith.addf %32, %50 : vector<8x256xf32>
    %cst_31 = arith.constant 0.000000e+00 : f32
    %56 = vector.broadcast %cst_31 : f32 to vector<8x256xf32>
    %57 = arith.maximumf %55, %56 : vector<8x256xf32>
    %c8_32 = arith.constant 8 : index
    %c0_33 = arith.constant 0 : index
    %58 = vector.load %arg25[%c8_32, %c0_33] : memref<56x256xf32, #tpu.memory_space<vmem>>, vector<8x256xf32>
    tpu.vector_store %arg25[%c8_32, %c0_33], %57 {strides = array<i32>} : memref<56x256xf32, #tpu.memory_space<vmem>>, vector<8x256xf32>,
    %59 = arith.addf %35, %50 : vector<8x256xf32>
    %cst_34 = arith.constant 0.000000e+00 : f32
    %60 = vector.broadcast %cst_34 : f32 to vector<8x256xf32>
    %61 = arith.maximumf %59, %60 : vector<8x256xf32>
    %c16_35 = arith.constant 16 : index
    %c0_36 = arith.constant 0 : index
    %62 = vector.load %arg25[%c16_35, %c0_36] : memref<56x256xf32, #tpu.memory_space<vmem>>, vector<8x256xf32>
    tpu.vector_store %arg25[%c16_35, %c0_36], %61 {strides = array<i32>} : memref<56x256xf32, #tpu.memory_space<vmem>>, vector<8x256xf32>,
    %63 = arith.addf %40, %50 : vector<8x256xf32>
    %cst_37 = arith.constant 0.000000e+00 : f32
    %64 = vector.broadcast %cst_37 : f32 to vector<8x256xf32>
    %65 = arith.maximumf %63, %64 : vector<8x256xf32>
    %c24 = arith.constant 24 : index
    %c0_38 = arith.constant 0 : index
    %66 = vector.load %arg25[%c24, %c0_38] : memref<56x256xf32, #tpu.memory_space<vmem>>, vector<8x256xf32>
    tpu.vector_store %arg25[%c24, %c0_38], %65 {strides = array<i32>} : memref<56x256xf32, #tpu.memory_space<vmem>>, vector<8x256xf32>,
    %67 = arith.addf %43, %50 : vector<8x256xf32>
    %cst_39 = arith.constant 0.000000e+00 : f32
    %68 = vector.broadcast %cst_39 : f32 to vector<8x256xf32>
    %69 = arith.maximumf %67, %68 : vector<8x256xf32>
    %c32 = arith.constant 32 : index
    %c0_40 = arith.constant 0 : index
    %70 = vector.load %arg25[%c32, %c0_40] : memref<56x256xf32, #tpu.memory_space<vmem>>, vector<8x256xf32>
    tpu.vector_store %arg25[%c32, %c0_40], %69 {strides = array<i32>} : memref<56x256xf32, #tpu.memory_space<vmem>>, vector<8x256xf32>,
    %71 = arith.addf %46, %50 : vector<8x256xf32>
    %cst_41 = arith.constant 0.000000e+00 : f32
    %72 = vector.broadcast %cst_41 : f32 to vector<8x256xf32>
    %73 = arith.maximumf %71, %72 : vector<8x256xf32>
    %c40 = arith.constant 40 : index
    %c0_42 = arith.constant 0 : index
    %74 = vector.load %arg25[%c40, %c0_42] : memref<56x256xf32, #tpu.memory_space<vmem>>, vector<8x256xf32>
    tpu.vector_store %arg25[%c40, %c0_42], %73 {strides = array<i32>} : memref<56x256xf32, #tpu.memory_space<vmem>>, vector<8x256xf32>,
    %75 = arith.addf %47, %50 : vector<8x256xf32>
    %cst_43 = arith.constant 0.000000e+00 : f32
    %76 = vector.broadcast %cst_43 : f32 to vector<8x256xf32>
    %77 = arith.maximumf %75, %76 : vector<8x256xf32>
    %c48 = arith.constant 48 : index
    %c0_44 = arith.constant 0 : index
    %78 = vector.load %arg25[%c48, %c0_44] : memref<56x256xf32, #tpu.memory_space<vmem>>, vector<8x256xf32>
    tpu.vector_store %arg25[%c48, %c0_44], %77 {strides = array<i32>} : memref<56x256xf32, #tpu.memory_space<vmem>>, vector<8x256xf32>,
    %c0_45 = arith.constant 0 : index
    %c0_46 = arith.constant 0 : index
    %79 = vector.load %arg25[%c0_45, %c0_46] : memref<56x256xf32, #tpu.memory_space<vmem>>, vector<56x256xf32>
    %c0_47 = arith.constant 0 : index
    %c0_48 = arith.constant 0 : index
    %80 = vector.load %arg13[%c0_47, %c0_48] : memref<56x1xf32, #tpu.memory_space<vmem>>, vector<56x1xf32>
    %81 = vector.broadcast %80 : vector<56x1xf32> to vector<56x256xf32>
    %82 = arith.mulf %79, %81 : vector<56x256xf32>
    %cst_49 = arith.constant dense<0.000000e+00> : vector<256xf32>
    %83 = vector.multi_reduction <add>, %82, %cst_49 [0] : vector<56x256xf32> to vector<256xf32>
    %84 = vector.shape_cast %83 : vector<256xf32> to vector<1x256xf32>
    %c0_50 = arith.constant 0 : index
    %c0_51 = arith.constant 0 : index
    %85 = vector.load %arg9[%c0_50, %c0_51] : memref<256x32xf32, #tpu.memory_space<vmem>>, vector<256x32xf32>
    %cst_52 = arith.constant dense<0.000000e+00> : vector<1x32xf32>
    %86 = tpu.matmul %84, %85, %cst_52 {dimension_numbers = #tpu.dot_dimension_numbers<[1], [0], [0], [1], [0, 0, 1, 1], [], []>} : vector<1x256xf32>, vector<256x32xf32>, vector<1x32xf32> -> vector<1x32xf32>
    %87 = arith.mulf %82, %79 : vector<56x256xf32>
    %cst_53 = arith.constant dense<0.000000e+00> : vector<256xf32>
    %88 = vector.multi_reduction <add>, %87, %cst_53 [0] : vector<56x256xf32> to vector<256xf32>
    %89 = vector.shape_cast %88 : vector<256xf32> to vector<1x256xf32>
    %c0_54 = arith.constant 0 : index
    %c0_55 = arith.constant 0 : index
    %90 = vector.load %arg9[%c0_54, %c0_55] : memref<256x32xf32, #tpu.memory_space<vmem>>, vector<256x32xf32>
    %cst_56 = arith.constant dense<0.000000e+00> : vector<1x32xf32>
    %91 = tpu.matmul %89, %90, %cst_56 {dimension_numbers = #tpu.dot_dimension_numbers<[1], [0], [0], [1], [0, 0, 1, 1], [], []>} : vector<1x256xf32>, vector<256x32xf32>, vector<1x32xf32> -> vector<1x32xf32>
    %92 = arith.mulf %86, %86 : vector<1x32xf32>
    %93 = arith.subf %91, %92 : vector<1x32xf32>
    %c0_57 = arith.constant 0 : index
    %c0_58 = arith.constant 0 : index
    %94 = vector.load %arg11[%c0_57, %c0_58] : memref<1x32xf32, #tpu.memory_space<vmem>>, vector<1x32xf32>
    %cst_59 = arith.constant 9.99999974E-6 : f32
    %95 = vector.broadcast %cst_59 : f32 to vector<1x32xf32>
    %96 = arith.addf %93, %95 : vector<1x32xf32>
    %97 = math.rsqrt %96 : vector<1x32xf32>
    %98 = arith.mulf %94, %97 : vector<1x32xf32>
    %c0_60 = arith.constant 0 : index
    %c0_61 = arith.constant 0 : index
    %99 = vector.load %arg12[%c0_60, %c0_61] : memref<1x32xf32, #tpu.memory_space<vmem>>, vector<1x32xf32>
    %100 = arith.mulf %86, %98 : vector<1x32xf32>
    %101 = arith.subf %99, %100 : vector<1x32xf32>
    %c0_62 = arith.constant 0 : index
    %c0_63 = arith.constant 0 : index
    %102 = vector.load %arg10[%c0_62, %c0_63] : memref<32x256xf32, #tpu.memory_space<vmem>>, vector<32x256xf32>
    %cst_64 = arith.constant dense<0.000000e+00> : vector<1x256xf32>
    %103 = tpu.matmul %98, %102, %cst_64 {dimension_numbers = #tpu.dot_dimension_numbers<[1], [0], [0], [1], [0, 0, 1, 1], [], []>} : vector<1x32xf32>, vector<32x256xf32>, vector<1x256xf32> -> vector<1x256xf32>
    %c0_65 = arith.constant 0 : index
    %c0_66 = arith.constant 0 : index
    %104 = vector.load %arg10[%c0_65, %c0_66] : memref<32x256xf32, #tpu.memory_space<vmem>>, vector<32x256xf32>
    %cst_67 = arith.constant dense<0.000000e+00> : vector<1x256xf32>
    %105 = tpu.matmul %101, %104, %cst_67 {dimension_numbers = #tpu.dot_dimension_numbers<[1], [0], [0], [1], [0, 0, 1, 1], [], []>} : vector<1x32xf32>, vector<32x256xf32>, vector<1x256xf32> -> vector<1x256xf32>
    %106 = vector.broadcast %103 : vector<1x256xf32> to vector<56x256xf32>
    %107 = arith.mulf %79, %106 : vector<56x256xf32>
    %108 = vector.broadcast %105 : vector<1x256xf32> to vector<56x256xf32>
    %109 = arith.addf %107, %108 : vector<56x256xf32>
    %c0_68 = arith.constant 0 : index
    %c0_69 = arith.constant 0 : index
    %110 = vector.load %arg14[%c0_68, %c0_69] : memref<256x1024xf32, #tpu.memory_space<vmem>>, vector<256x1024xf32>
    %cst_70 = arith.constant dense<0.000000e+00> : vector<56x1024xf32>
    %111 = tpu.matmul %109, %110, %cst_70 {dimension_numbers = #tpu.dot_dimension_numbers<[1], [0], [0], [1], [0, 0, 1, 1], [], []>} : vector<56x256xf32>, vector<256x1024xf32>, vector<56x1024xf32> -> vector<56x1024xf32>
    %112 = vector.extract_strided_slice %111 {offsets = [0, 256], sizes = [8, 256], strides = [1, 1]} : vector<56x1024xf32> to vector<8x256xf32>
    %113 = vector.extract_strided_slice %111 {offsets = [8, 0], sizes = [8, 256], strides = [1, 1]} : vector<56x1024xf32> to vector<8x256xf32>
    %114 = vector.extract_strided_slice %111 {offsets = [0, 512], sizes = [8, 256], strides = [1, 1]} : vector<56x1024xf32> to vector<8x256xf32>
    %115 = arith.addf %113, %114 : vector<8x256xf32>
    %116 = vector.extract_strided_slice %111 {offsets = [8, 256], sizes = [8, 256], strides = [1, 1]} : vector<56x1024xf32> to vector<8x256xf32>
    %117 = vector.extract_strided_slice %111 {offsets = [0, 768], sizes = [8, 256], strides = [1, 1]} : vector<56x1024xf32> to vector<8x256xf32>
    %118 = arith.addf %116, %117 : vector<8x256xf32>
    %119 = vector.extract_strided_slice %111 {offsets = [16, 0], sizes = [8, 256], strides = [1, 1]} : vector<56x1024xf32> to vector<8x256xf32>
    %120 = vector.extract_strided_slice %111 {offsets = [8, 512], sizes = [8, 256], strides = [1, 1]} : vector<56x1024xf32> to vector<8x256xf32>
    %121 = arith.addf %119, %120 : vector<8x256xf32>
    %122 = vector.extract_strided_slice %111 {offsets = [16, 256], sizes = [8, 256], strides = [1, 1]} : vector<56x1024xf32> to vector<8x256xf32>
    %123 = vector.extract_strided_slice %111 {offsets = [8, 768], sizes = [8, 256], strides = [1, 1]} : vector<56x1024xf32> to vector<8x256xf32>
    %124 = arith.addf %122, %123 : vector<8x256xf32>
    %125 = vector.extract_strided_slice %111 {offsets = [24, 0], sizes = [8, 256], strides = [1, 1]} : vector<56x1024xf32> to vector<8x256xf32>
    %126 = vector.extract_strided_slice %111 {offsets = [16, 512], sizes = [8, 256], strides = [1, 1]} : vector<56x1024xf32> to vector<8x256xf32>
    %127 = arith.addf %125, %126 : vector<8x256xf32>
    %128 = vector.extract_strided_slice %111 {offsets = [24, 256], sizes = [8, 256], strides = [1, 1]} : vector<56x1024xf32> to vector<8x256xf32>
    %129 = vector.extract_strided_slice %111 {offsets = [16, 768], sizes = [8, 256], strides = [1, 1]} : vector<56x1024xf32> to vector<8x256xf32>
    %130 = arith.addf %128, %129 : vector<8x256xf32>
    %131 = vector.extract_strided_slice %111 {offsets = [32, 0], sizes = [8, 256], strides = [1, 1]} : vector<56x1024xf32> to vector<8x256xf32>
    %132 = vector.extract_strided_slice %111 {offsets = [24, 512], sizes = [8, 256], strides = [1, 1]} : vector<56x1024xf32> to vector<8x256xf32>
    %133 = arith.addf %131, %132 : vector<8x256xf32>
    %134 = vector.extract_strided_slice %111 {offsets = [32, 256], sizes = [8, 256], strides = [1, 1]} : vector<56x1024xf32> to vector<8x256xf32>
    %135 = vector.extract_strided_slice %111 {offsets = [24, 768], sizes = [8, 256], strides = [1, 1]} : vector<56x1024xf32> to vector<8x256xf32>
    %136 = arith.addf %134, %135 : vector<8x256xf32>
    %137 = vector.extract_strided_slice %111 {offsets = [40, 0], sizes = [8, 256], strides = [1, 1]} : vector<56x1024xf32> to vector<8x256xf32>
    %138 = vector.extract_strided_slice %111 {offsets = [32, 512], sizes = [8, 256], strides = [1, 1]} : vector<56x1024xf32> to vector<8x256xf32>
    %139 = arith.addf %137, %138 : vector<8x256xf32>
    %140 = vector.extract_strided_slice %111 {offsets = [40, 256], sizes = [8, 256], strides = [1, 1]} : vector<56x1024xf32> to vector<8x256xf32>
    %141 = vector.extract_strided_slice %111 {offsets = [32, 768], sizes = [8, 256], strides = [1, 1]} : vector<56x1024xf32> to vector<8x256xf32>
    %142 = arith.addf %140, %141 : vector<8x256xf32>
    %143 = vector.extract_strided_slice %111 {offsets = [48, 0], sizes = [8, 256], strides = [1, 1]} : vector<56x1024xf32> to vector<8x256xf32>
    %144 = vector.extract_strided_slice %111 {offsets = [40, 512], sizes = [8, 256], strides = [1, 1]} : vector<56x1024xf32> to vector<8x256xf32>
    %145 = arith.addf %143, %144 : vector<8x256xf32>
    %146 = vector.extract_strided_slice %111 {offsets = [48, 256], sizes = [8, 256], strides = [1, 1]} : vector<56x1024xf32> to vector<8x256xf32>
    %147 = vector.extract_strided_slice %111 {offsets = [40, 768], sizes = [8, 256], strides = [1, 1]} : vector<56x1024xf32> to vector<8x256xf32>
    %148 = arith.addf %146, %147 : vector<8x256xf32>
    %149 = vector.extract_strided_slice %111 {offsets = [48, 512], sizes = [8, 256], strides = [1, 1]} : vector<56x1024xf32> to vector<8x256xf32>
    %c0_71 = arith.constant 0 : index
    %c0_72 = arith.constant 0 : index
    %150 = vector.load %arg15[%c0_71, %c0_72] : memref<1x256xf32, #tpu.memory_space<vmem>>, vector<1x256xf32>
    %151 = vector.shape_cast %150 : vector<1x256xf32> to vector<1x256xf32>
    %152 = vector.broadcast %151 : vector<1x256xf32> to vector<8x256xf32>
    %153 = arith.addf %112, %152 : vector<8x256xf32>
    %cst_73 = arith.constant 0.000000e+00 : f32
    %154 = vector.broadcast %cst_73 : f32 to vector<8x256xf32>
    %155 = arith.maximumf %153, %154 : vector<8x256xf32>
    %c0_74 = arith.constant 0 : index
    %c0_75 = arith.constant 0 : index
    %156 = vector.load %arg26[%c0_74, %c0_75] : memref<112x256xf32, #tpu.memory_space<vmem>>, vector<8x256xf32>
    tpu.vector_store %arg26[%c0_74, %c0_75], %155 {strides = array<i32>} : memref<112x256xf32, #tpu.memory_space<vmem>>, vector<8x256xf32>,
    %157 = arith.addf %115, %152 : vector<8x256xf32>
    %cst_76 = arith.constant 0.000000e+00 : f32
    %158 = vector.broadcast %cst_76 : f32 to vector<8x256xf32>
    %159 = arith.maximumf %157, %158 : vector<8x256xf32>
    %c8_77 = arith.constant 8 : index
    %c0_78 = arith.constant 0 : index
    %160 = vector.load %arg26[%c8_77, %c0_78] : memref<112x256xf32, #tpu.memory_space<vmem>>, vector<8x256xf32>
    tpu.vector_store %arg26[%c8_77, %c0_78], %159 {strides = array<i32>} : memref<112x256xf32, #tpu.memory_space<vmem>>, vector<8x256xf32>,
    %161 = arith.addf %118, %152 : vector<8x256xf32>
    %cst_79 = arith.constant 0.000000e+00 : f32
    %162 = vector.broadcast %cst_79 : f32 to vector<8x256xf32>
    %163 = arith.maximumf %161, %162 : vector<8x256xf32>
    %c16_80 = arith.constant 16 : index
    %c0_81 = arith.constant 0 : index
    %164 = vector.load %arg26[%c16_80, %c0_81] : memref<112x256xf32, #tpu.memory_space<vmem>>, vector<8x256xf32>
    tpu.vector_store %arg26[%c16_80, %c0_81], %163 {strides = array<i32>} : memref<112x256xf32, #tpu.memory_space<vmem>>, vector<8x256xf32>,
    %165 = arith.addf %121, %152 : vector<8x256xf32>
    %cst_82 = arith.constant 0.000000e+00 : f32
    %166 = vector.broadcast %cst_82 : f32 to vector<8x256xf32>
    %167 = arith.maximumf %165, %166 : vector<8x256xf32>
    %c24_83 = arith.constant 24 : index
    %c0_84 = arith.constant 0 : index
    %168 = vector.load %arg26[%c24_83, %c0_84] : memref<112x256xf32, #tpu.memory_space<vmem>>, vector<8x256xf32>
    tpu.vector_store %arg26[%c24_83, %c0_84], %167 {strides = array<i32>} : memref<112x256xf32, #tpu.memory_space<vmem>>, vector<8x256xf32>,
    %169 = arith.addf %124, %152 : vector<8x256xf32>
    %cst_85 = arith.constant 0.000000e+00 : f32
    %170 = vector.broadcast %cst_85 : f32 to vector<8x256xf32>
    %171 = arith.maximumf %169, %170 : vector<8x256xf32>
    %c32_86 = arith.constant 32 : index
    %c0_87 = arith.constant 0 : index
    %172 = vector.load %arg26[%c32_86, %c0_87] : memref<112x256xf32, #tpu.memory_space<vmem>>, vector<8x256xf32>
    tpu.vector_store %arg26[%c32_86, %c0_87], %171 {strides = array<i32>} : memref<112x256xf32, #tpu.memory_space<vmem>>, vector<8x256xf32>,
    %173 = arith.addf %127, %152 : vector<8x256xf32>
    %cst_88 = arith.constant 0.000000e+00 : f32
    %174 = vector.broadcast %cst_88 : f32 to vector<8x256xf32>
    %175 = arith.maximumf %173, %174 : vector<8x256xf32>
    %c40_89 = arith.constant 40 : index
    %c0_90 = arith.constant 0 : index
    %176 = vector.load %arg26[%c40_89, %c0_90] : memref<112x256xf32, #tpu.memory_space<vmem>>, vector<8x256xf32>
    tpu.vector_store %arg26[%c40_89, %c0_90], %175 {strides = array<i32>} : memref<112x256xf32, #tpu.memory_space<vmem>>, vector<8x256xf32>,
    %177 = arith.addf %130, %152 : vector<8x256xf32>
    %cst_91 = arith.constant 0.000000e+00 : f32
    %178 = vector.broadcast %cst_91 : f32 to vector<8x256xf32>
    %179 = arith.maximumf %177, %178 : vector<8x256xf32>
    %c48_92 = arith.constant 48 : index
    %c0_93 = arith.constant 0 : index
    %180 = vector.load %arg26[%c48_92, %c0_93] : memref<112x256xf32, #tpu.memory_space<vmem>>, vector<8x256xf32>
    tpu.vector_store %arg26[%c48_92, %c0_93], %179 {strides = array<i32>} : memref<112x256xf32, #tpu.memory_space<vmem>>, vector<8x256xf32>,
    %181 = arith.addf %133, %152 : vector<8x256xf32>
    %cst_94 = arith.constant 0.000000e+00 : f32
    %182 = vector.broadcast %cst_94 : f32 to vector<8x256xf32>
    %183 = arith.maximumf %181, %182 : vector<8x256xf32>
    %c56 = arith.constant 56 : index
    %c0_95 = arith.constant 0 : index
    %184 = vector.load %arg26[%c56, %c0_95] : memref<112x256xf32, #tpu.memory_space<vmem>>, vector<8x256xf32>
    tpu.vector_store %arg26[%c56, %c0_95], %183 {strides = array<i32>} : memref<112x256xf32, #tpu.memory_space<vmem>>, vector<8x256xf32>,
    %185 = arith.addf %136, %152 : vector<8x256xf32>
    %cst_96 = arith.constant 0.000000e+00 : f32
    %186 = vector.broadcast %cst_96 : f32 to vector<8x256xf32>
    %187 = arith.maximumf %185, %186 : vector<8x256xf32>
    %c64 = arith.constant 64 : index
    %c0_97 = arith.constant 0 : index
    %188 = vector.load %arg26[%c64, %c0_97] : memref<112x256xf32, #tpu.memory_space<vmem>>, vector<8x256xf32>
    tpu.vector_store %arg26[%c64, %c0_97], %187 {strides = array<i32>} : memref<112x256xf32, #tpu.memory_space<vmem>>, vector<8x256xf32>,
    %189 = arith.addf %139, %152 : vector<8x256xf32>
    %cst_98 = arith.constant 0.000000e+00 : f32
    %190 = vector.broadcast %cst_98 : f32 to vector<8x256xf32>
    %191 = arith.maximumf %189, %190 : vector<8x256xf32>
    %c72 = arith.constant 72 : index
    %c0_99 = arith.constant 0 : index
    %192 = vector.load %arg26[%c72, %c0_99] : memref<112x256xf32, #tpu.memory_space<vmem>>, vector<8x256xf32>
    tpu.vector_store %arg26[%c72, %c0_99], %191 {strides = array<i32>} : memref<112x256xf32, #tpu.memory_space<vmem>>, vector<8x256xf32>,
    %193 = arith.addf %142, %152 : vector<8x256xf32>
    %cst_100 = arith.constant 0.000000e+00 : f32
    %194 = vector.broadcast %cst_100 : f32 to vector<8x256xf32>
    %195 = arith.maximumf %193, %194 : vector<8x256xf32>
    %c80 = arith.constant 80 : index
    %c0_101 = arith.constant 0 : index
    %196 = vector.load %arg26[%c80, %c0_101] : memref<112x256xf32, #tpu.memory_space<vmem>>, vector<8x256xf32>
    tpu.vector_store %arg26[%c80, %c0_101], %195 {strides = array<i32>} : memref<112x256xf32, #tpu.memory_space<vmem>>, vector<8x256xf32>,
    %197 = arith.addf %145, %152 : vector<8x256xf32>
    %cst_102 = arith.constant 0.000000e+00 : f32
    %198 = vector.broadcast %cst_102 : f32 to vector<8x256xf32>
    %199 = arith.maximumf %197, %198 : vector<8x256xf32>
    %c88 = arith.constant 88 : index
    %c0_103 = arith.constant 0 : index
    %200 = vector.load %arg26[%c88, %c0_103] : memref<112x256xf32, #tpu.memory_space<vmem>>, vector<8x256xf32>
    tpu.vector_store %arg26[%c88, %c0_103], %199 {strides = array<i32>} : memref<112x256xf32, #tpu.memory_space<vmem>>, vector<8x256xf32>,
    %201 = arith.addf %148, %152 : vector<8x256xf32>
    %cst_104 = arith.constant 0.000000e+00 : f32
    %202 = vector.broadcast %cst_104 : f32 to vector<8x256xf32>
    %203 = arith.maximumf %201, %202 : vector<8x256xf32>
    %c96 = arith.constant 96 : index
    %c0_105 = arith.constant 0 : index
    %204 = vector.load %arg26[%c96, %c0_105] : memref<112x256xf32, #tpu.memory_space<vmem>>, vector<8x256xf32>
    tpu.vector_store %arg26[%c96, %c0_105], %203 {strides = array<i32>} : memref<112x256xf32, #tpu.memory_space<vmem>>, vector<8x256xf32>,
    %205 = arith.addf %149, %152 : vector<8x256xf32>
    %cst_106 = arith.constant 0.000000e+00 : f32
    %206 = vector.broadcast %cst_106 : f32 to vector<8x256xf32>
    %207 = arith.maximumf %205, %206 : vector<8x256xf32>
    %c104 = arith.constant 104 : index
    %c0_107 = arith.constant 0 : index
    %208 = vector.load %arg26[%c104, %c0_107] : memref<112x256xf32, #tpu.memory_space<vmem>>, vector<8x256xf32>
    tpu.vector_store %arg26[%c104, %c0_107], %207 {strides = array<i32>} : memref<112x256xf32, #tpu.memory_space<vmem>>, vector<8x256xf32>,
    %c0_108 = arith.constant 0 : index
    %c0_109 = arith.constant 0 : index
    %209 = vector.load %arg26[%c0_108, %c0_109] : memref<112x256xf32, #tpu.memory_space<vmem>>, vector<112x256xf32>
    %c0_110 = arith.constant 0 : index
    %c0_111 = arith.constant 0 : index
    %210 = vector.load %arg20[%c0_110, %c0_111] : memref<112x1xf32, #tpu.memory_space<vmem>>, vector<112x1xf32>
    %211 = vector.broadcast %210 : vector<112x1xf32> to vector<112x256xf32>
    %212 = arith.mulf %209, %211 : vector<112x256xf32>
    %cst_112 = arith.constant dense<0.000000e+00> : vector<256xf32>
    %213 = vector.multi_reduction <add>, %212, %cst_112 [0] : vector<112x256xf32> to vector<256xf32>
    %214 = vector.shape_cast %213 : vector<256xf32> to vector<1x256xf32>
    %c0_113 = arith.constant 0 : index
    %c0_114 = arith.constant 0 : index
    %215 = vector.load %arg16[%c0_113, %c0_114] : memref<256x16xf32, #tpu.memory_space<vmem>>, vector<256x16xf32>
    %cst_115 = arith.constant dense<0.000000e+00> : vector<1x16xf32>
    %216 = tpu.matmul %214, %215, %cst_115 {dimension_numbers = #tpu.dot_dimension_numbers<[1], [0], [0], [1], [0, 0, 1, 1], [], []>} : vector<1x256xf32>, vector<256x16xf32>, vector<1x16xf32> -> vector<1x16xf32>
    %217 = arith.mulf %212, %209 : vector<112x256xf32>
    %cst_116 = arith.constant dense<0.000000e+00> : vector<256xf32>
    %218 = vector.multi_reduction <add>, %217, %cst_116 [0] : vector<112x256xf32> to vector<256xf32>
    %219 = vector.shape_cast %218 : vector<256xf32> to vector<1x256xf32>
    %c0_117 = arith.constant 0 : index
    %c0_118 = arith.constant 0 : index
    %220 = vector.load %arg16[%c0_117, %c0_118] : memref<256x16xf32, #tpu.memory_space<vmem>>, vector<256x16xf32>
    %cst_119 = arith.constant dense<0.000000e+00> : vector<1x16xf32>
    %221 = tpu.matmul %219, %220, %cst_119 {dimension_numbers = #tpu.dot_dimension_numbers<[1], [0], [0], [1], [0, 0, 1, 1], [], []>} : vector<1x256xf32>, vector<256x16xf32>, vector<1x16xf32> -> vector<1x16xf32>
    %222 = arith.mulf %216, %216 : vector<1x16xf32>
    %223 = arith.subf %221, %222 : vector<1x16xf32>
    %c0_120 = arith.constant 0 : index
    %c0_121 = arith.constant 0 : index
    %224 = vector.load %arg18[%c0_120, %c0_121] : memref<1x16xf32, #tpu.memory_space<vmem>>, vector<1x16xf32>
    %cst_122 = arith.constant 9.99999974E-6 : f32
    %225 = vector.broadcast %cst_122 : f32 to vector<1x16xf32>
    %226 = arith.addf %223, %225 : vector<1x16xf32>
    %227 = math.rsqrt %226 : vector<1x16xf32>
    %228 = arith.mulf %224, %227 : vector<1x16xf32>
    %c0_123 = arith.constant 0 : index
    %c0_124 = arith.constant 0 : index
    %229 = vector.load %arg19[%c0_123, %c0_124] : memref<1x16xf32, #tpu.memory_space<vmem>>, vector<1x16xf32>
    %230 = arith.mulf %216, %228 : vector<1x16xf32>
    %231 = arith.subf %229, %230 : vector<1x16xf32>
    %c0_125 = arith.constant 0 : index
    %c0_126 = arith.constant 0 : index
    %232 = vector.load %arg17[%c0_125, %c0_126] : memref<16x256xf32, #tpu.memory_space<vmem>>, vector<16x256xf32>
    %cst_127 = arith.constant dense<0.000000e+00> : vector<1x256xf32>
    %233 = tpu.matmul %228, %232, %cst_127 {dimension_numbers = #tpu.dot_dimension_numbers<[1], [0], [0], [1], [0, 0, 1, 1], [], []>} : vector<1x16xf32>, vector<16x256xf32>, vector<1x256xf32> -> vector<1x256xf32>
    %c0_128 = arith.constant 0 : index
    %c0_129 = arith.constant 0 : index
    %234 = vector.load %arg17[%c0_128, %c0_129] : memref<16x256xf32, #tpu.memory_space<vmem>>, vector<16x256xf32>
    %cst_130 = arith.constant dense<0.000000e+00> : vector<1x256xf32>
    %235 = tpu.matmul %231, %234, %cst_130 {dimension_numbers = #tpu.dot_dimension_numbers<[1], [0], [0], [1], [0, 0, 1, 1], [], []>} : vector<1x16xf32>, vector<16x256xf32>, vector<1x256xf32> -> vector<1x256xf32>
    %236 = vector.broadcast %233 : vector<1x256xf32> to vector<112x256xf32>
    %237 = arith.mulf %209, %236 : vector<112x256xf32>
    %238 = vector.broadcast %235 : vector<1x256xf32> to vector<112x256xf32>
    %239 = arith.addf %237, %238 : vector<112x256xf32>
    %c0_131 = arith.constant 0 : index
    %c0_132 = arith.constant 0 : index
    %240 = vector.load %arg21[%c0_131, %c0_132] : memref<256x512xf32, #tpu.memory_space<vmem>>, vector<256x512xf32>
    %cst_133 = arith.constant dense<0.000000e+00> : vector<112x512xf32>
    %241 = tpu.matmul %239, %240, %cst_133 {dimension_numbers = #tpu.dot_dimension_numbers<[1], [0], [0], [1], [0, 0, 1, 1], [], []>} : vector<112x256xf32>, vector<256x512xf32>, vector<112x512xf32> -> vector<112x512xf32>
    %242 = vector.extract_strided_slice %241 {offsets = [0, 128], sizes = [8, 128], strides = [1, 1]} : vector<112x512xf32> to vector<8x128xf32>
    %243 = vector.extract_strided_slice %241 {offsets = [8, 0], sizes = [8, 128], strides = [1, 1]} : vector<112x512xf32> to vector<8x128xf32>
    %244 = vector.extract_strided_slice %241 {offsets = [0, 256], sizes = [8, 128], strides = [1, 1]} : vector<112x512xf32> to vector<8x128xf32>
    %245 = arith.addf %243, %244 : vector<8x128xf32>
    %246 = vector.extract_strided_slice %241 {offsets = [8, 128], sizes = [8, 128], strides = [1, 1]} : vector<112x512xf32> to vector<8x128xf32>
    %247 = vector.extract_strided_slice %241 {offsets = [0, 384], sizes = [8, 128], strides = [1, 1]} : vector<112x512xf32> to vector<8x128xf32>
    %248 = arith.addf %246, %247 : vector<8x128xf32>
    %249 = vector.extract_strided_slice %241 {offsets = [16, 0], sizes = [8, 128], strides = [1, 1]} : vector<112x512xf32> to vector<8x128xf32>
    %250 = vector.extract_strided_slice %241 {offsets = [8, 256], sizes = [8, 128], strides = [1, 1]} : vector<112x512xf32> to vector<8x128xf32>
    %251 = arith.addf %249, %250 : vector<8x128xf32>
    %252 = vector.extract_strided_slice %241 {offsets = [16, 128], sizes = [8, 128], strides = [1, 1]} : vector<112x512xf32> to vector<8x128xf32>
    %253 = vector.extract_strided_slice %241 {offsets = [8, 384], sizes = [8, 128], strides = [1, 1]} : vector<112x512xf32> to vector<8x128xf32>
    %254 = arith.addf %252, %253 : vector<8x128xf32>
    %255 = vector.extract_strided_slice %241 {offsets = [24, 0], sizes = [8, 128], strides = [1, 1]} : vector<112x512xf32> to vector<8x128xf32>
    %256 = vector.extract_strided_slice %241 {offsets = [16, 256], sizes = [8, 128], strides = [1, 1]} : vector<112x512xf32> to vector<8x128xf32>
    %257 = arith.addf %255, %256 : vector<8x128xf32>
    %258 = vector.extract_strided_slice %241 {offsets = [24, 128], sizes = [8, 128], strides = [1, 1]} : vector<112x512xf32> to vector<8x128xf32>
    %259 = vector.extract_strided_slice %241 {offsets = [16, 384], sizes = [8, 128], strides = [1, 1]} : vector<112x512xf32> to vector<8x128xf32>
    %260 = arith.addf %258, %259 : vector<8x128xf32>
    %261 = vector.extract_strided_slice %241 {offsets = [32, 0], sizes = [8, 128], strides = [1, 1]} : vector<112x512xf32> to vector<8x128xf32>
    %262 = vector.extract_strided_slice %241 {offsets = [24, 256], sizes = [8, 128], strides = [1, 1]} : vector<112x512xf32> to vector<8x128xf32>
    %263 = arith.addf %261, %262 : vector<8x128xf32>
    %264 = vector.extract_strided_slice %241 {offsets = [32, 128], sizes = [8, 128], strides = [1, 1]} : vector<112x512xf32> to vector<8x128xf32>
    %265 = vector.extract_strided_slice %241 {offsets = [24, 384], sizes = [8, 128], strides = [1, 1]} : vector<112x512xf32> to vector<8x128xf32>
    %266 = arith.addf %264, %265 : vector<8x128xf32>
    %267 = vector.extract_strided_slice %241 {offsets = [40, 0], sizes = [8, 128], strides = [1, 1]} : vector<112x512xf32> to vector<8x128xf32>
    %268 = vector.extract_strided_slice %241 {offsets = [32, 256], sizes = [8, 128], strides = [1, 1]} : vector<112x512xf32> to vector<8x128xf32>
    %269 = arith.addf %267, %268 : vector<8x128xf32>
    %270 = vector.extract_strided_slice %241 {offsets = [40, 128], sizes = [8, 128], strides = [1, 1]} : vector<112x512xf32> to vector<8x128xf32>
    %271 = vector.extract_strided_slice %241 {offsets = [32, 384], sizes = [8, 128], strides = [1, 1]} : vector<112x512xf32> to vector<8x128xf32>
    %272 = arith.addf %270, %271 : vector<8x128xf32>
    %273 = vector.extract_strided_slice %241 {offsets = [48, 0], sizes = [8, 128], strides = [1, 1]} : vector<112x512xf32> to vector<8x128xf32>
    %274 = vector.extract_strided_slice %241 {offsets = [40, 256], sizes = [8, 128], strides = [1, 1]} : vector<112x512xf32> to vector<8x128xf32>
    %275 = arith.addf %273, %274 : vector<8x128xf32>
    %276 = vector.extract_strided_slice %241 {offsets = [48, 128], sizes = [8, 128], strides = [1, 1]} : vector<112x512xf32> to vector<8x128xf32>
    %277 = vector.extract_strided_slice %241 {offsets = [40, 384], sizes = [8, 128], strides = [1, 1]} : vector<112x512xf32> to vector<8x128xf32>
    %278 = arith.addf %276, %277 : vector<8x128xf32>
    %279 = vector.extract_strided_slice %241 {offsets = [56, 0], sizes = [8, 128], strides = [1, 1]} : vector<112x512xf32> to vector<8x128xf32>
    %280 = vector.extract_strided_slice %241 {offsets = [48, 256], sizes = [8, 128], strides = [1, 1]} : vector<112x512xf32> to vector<8x128xf32>
    %281 = arith.addf %279, %280 : vector<8x128xf32>
    %282 = vector.extract_strided_slice %241 {offsets = [56, 128], sizes = [8, 128], strides = [1, 1]} : vector<112x512xf32> to vector<8x128xf32>
    %283 = vector.extract_strided_slice %241 {offsets = [48, 384], sizes = [8, 128], strides = [1, 1]} : vector<112x512xf32> to vector<8x128xf32>
    %284 = arith.addf %282, %283 : vector<8x128xf32>
    %285 = vector.extract_strided_slice %241 {offsets = [64, 0], sizes = [8, 128], strides = [1, 1]} : vector<112x512xf32> to vector<8x128xf32>
    %286 = vector.extract_strided_slice %241 {offsets = [56, 256], sizes = [8, 128], strides = [1, 1]} : vector<112x512xf32> to vector<8x128xf32>
    %287 = arith.addf %285, %286 : vector<8x128xf32>
    %288 = vector.extract_strided_slice %241 {offsets = [64, 128], sizes = [8, 128], strides = [1, 1]} : vector<112x512xf32> to vector<8x128xf32>
    %289 = vector.extract_strided_slice %241 {offsets = [56, 384], sizes = [8, 128], strides = [1, 1]} : vector<112x512xf32> to vector<8x128xf32>
    %290 = arith.addf %288, %289 : vector<8x128xf32>
    %291 = vector.extract_strided_slice %241 {offsets = [72, 0], sizes = [8, 128], strides = [1, 1]} : vector<112x512xf32> to vector<8x128xf32>
    %292 = vector.extract_strided_slice %241 {offsets = [64, 256], sizes = [8, 128], strides = [1, 1]} : vector<112x512xf32> to vector<8x128xf32>
    %293 = arith.addf %291, %292 : vector<8x128xf32>
    %294 = vector.extract_strided_slice %241 {offsets = [72, 128], sizes = [8, 128], strides = [1, 1]} : vector<112x512xf32> to vector<8x128xf32>
    %295 = vector.extract_strided_slice %241 {offsets = [64, 384], sizes = [8, 128], strides = [1, 1]} : vector<112x512xf32> to vector<8x128xf32>
    %296 = arith.addf %294, %295 : vector<8x128xf32>
    %297 = vector.extract_strided_slice %241 {offsets = [80, 0], sizes = [8, 128], strides = [1, 1]} : vector<112x512xf32> to vector<8x128xf32>
    %298 = vector.extract_strided_slice %241 {offsets = [72, 256], sizes = [8, 128], strides = [1, 1]} : vector<112x512xf32> to vector<8x128xf32>
    %299 = arith.addf %297, %298 : vector<8x128xf32>
    %300 = vector.extract_strided_slice %241 {offsets = [80, 128], sizes = [8, 128], strides = [1, 1]} : vector<112x512xf32> to vector<8x128xf32>
    %301 = vector.extract_strided_slice %241 {offsets = [72, 384], sizes = [8, 128], strides = [1, 1]} : vector<112x512xf32> to vector<8x128xf32>
    %302 = arith.addf %300, %301 : vector<8x128xf32>
    %303 = vector.extract_strided_slice %241 {offsets = [88, 0], sizes = [8, 128], strides = [1, 1]} : vector<112x512xf32> to vector<8x128xf32>
    %304 = vector.extract_strided_slice %241 {offsets = [80, 256], sizes = [8, 128], strides = [1, 1]} : vector<112x512xf32> to vector<8x128xf32>
    %305 = arith.addf %303, %304 : vector<8x128xf32>
    %306 = vector.extract_strided_slice %241 {offsets = [88, 128], sizes = [8, 128], strides = [1, 1]} : vector<112x512xf32> to vector<8x128xf32>
    %307 = vector.extract_strided_slice %241 {offsets = [80, 384], sizes = [8, 128], strides = [1, 1]} : vector<112x512xf32> to vector<8x128xf32>
    %308 = arith.addf %306, %307 : vector<8x128xf32>
    %309 = vector.extract_strided_slice %241 {offsets = [96, 0], sizes = [8, 128], strides = [1, 1]} : vector<112x512xf32> to vector<8x128xf32>
    %310 = vector.extract_strided_slice %241 {offsets = [88, 256], sizes = [8, 128], strides = [1, 1]} : vector<112x512xf32> to vector<8x128xf32>
    %311 = arith.addf %309, %310 : vector<8x128xf32>
    %312 = vector.extract_strided_slice %241 {offsets = [96, 128], sizes = [8, 128], strides = [1, 1]} : vector<112x512xf32> to vector<8x128xf32>
    %313 = vector.extract_strided_slice %241 {offsets = [88, 384], sizes = [8, 128], strides = [1, 1]} : vector<112x512xf32> to vector<8x128xf32>
    %314 = arith.addf %312, %313 : vector<8x128xf32>
    %315 = vector.extract_strided_slice %241 {offsets = [104, 0], sizes = [8, 128], strides = [1, 1]} : vector<112x512xf32> to vector<8x128xf32>
    %316 = vector.extract_strided_slice %241 {offsets = [96, 256], sizes = [8, 128], strides = [1, 1]} : vector<112x512xf32> to vector<8x128xf32>
    %317 = arith.addf %315, %316 : vector<8x128xf32>
    %318 = vector.extract_strided_slice %241 {offsets = [104, 128], sizes = [8, 128], strides = [1, 1]} : vector<112x512xf32> to vector<8x128xf32>
    %319 = vector.extract_strided_slice %241 {offsets = [96, 384], sizes = [8, 128], strides = [1, 1]} : vector<112x512xf32> to vector<8x128xf32>
    %320 = arith.addf %318, %319 : vector<8x128xf32>
    %321 = vector.extract_strided_slice %241 {offsets = [104, 256], sizes = [8, 128], strides = [1, 1]} : vector<112x512xf32> to vector<8x128xf32>
    %c0_134 = arith.constant 0 : index
    %c0_135 = arith.constant 0 : index
    %322 = vector.load %arg22[%c0_134, %c0_135] : memref<1x128xf32, #tpu.memory_space<vmem>>, vector<1x128xf32>
    %323 = vector.shape_cast %322 : vector<1x128xf32> to vector<1x128xf32>
    %324 = vector.broadcast %323 : vector<1x128xf32> to vector<8x128xf32>
    %325 = arith.addf %242, %324 : vector<8x128xf32>
    %326 = math.tanh %325 : vector<8x128xf32>
    %c0_136 = arith.constant 0 : index
    %c0_137 = arith.constant 0 : index
    %327 = vector.load %arg23[%c0_136, %c0_137] : memref<224x128xf32, #tpu.memory_space<vmem>>, vector<8x128xf32>
    tpu.vector_store %arg23[%c0_136, %c0_137], %326 {strides = array<i32>} : memref<224x128xf32, #tpu.memory_space<vmem>>, vector<8x128xf32>,
    %328 = arith.addf %245, %324 : vector<8x128xf32>
    %329 = math.tanh %328 : vector<8x128xf32>
    %c8_138 = arith.constant 8 : index
    %c0_139 = arith.constant 0 : index
    %330 = vector.load %arg23[%c8_138, %c0_139] : memref<224x128xf32, #tpu.memory_space<vmem>>, vector<8x128xf32>
    tpu.vector_store %arg23[%c8_138, %c0_139], %329 {strides = array<i32>} : memref<224x128xf32, #tpu.memory_space<vmem>>, vector<8x128xf32>,
    %331 = arith.addf %248, %324 : vector<8x128xf32>
    %332 = math.tanh %331 : vector<8x128xf32>
    %c16_140 = arith.constant 16 : index
    %c0_141 = arith.constant 0 : index
    %333 = vector.load %arg23[%c16_140, %c0_141] : memref<224x128xf32, #tpu.memory_space<vmem>>, vector<8x128xf32>
    tpu.vector_store %arg23[%c16_140, %c0_141], %332 {strides = array<i32>} : memref<224x128xf32, #tpu.memory_space<vmem>>, vector<8x128xf32>,
    %334 = arith.addf %251, %324 : vector<8x128xf32>
    %335 = math.tanh %334 : vector<8x128xf32>
    %c24_142 = arith.constant 24 : index
    %c0_143 = arith.constant 0 : index
    %336 = vector.load %arg23[%c24_142, %c0_143] : memref<224x128xf32, #tpu.memory_space<vmem>>, vector<8x128xf32>
    tpu.vector_store %arg23[%c24_142, %c0_143], %335 {strides = array<i32>} : memref<224x128xf32, #tpu.memory_space<vmem>>, vector<8x128xf32>,
    %337 = arith.addf %254, %324 : vector<8x128xf32>
    %338 = math.tanh %337 : vector<8x128xf32>
    %c32_144 = arith.constant 32 : index
    %c0_145 = arith.constant 0 : index
    %339 = vector.load %arg23[%c32_144, %c0_145] : memref<224x128xf32, #tpu.memory_space<vmem>>, vector<8x128xf32>
    tpu.vector_store %arg23[%c32_144, %c0_145], %338 {strides = array<i32>} : memref<224x128xf32, #tpu.memory_space<vmem>>, vector<8x128xf32>,
    %340 = arith.addf %257, %324 : vector<8x128xf32>
    %341 = math.tanh %340 : vector<8x128xf32>
    %c40_146 = arith.constant 40 : index
    %c0_147 = arith.constant 0 : index
    %342 = vector.load %arg23[%c40_146, %c0_147] : memref<224x128xf32, #tpu.memory_space<vmem>>, vector<8x128xf32>
    tpu.vector_store %arg23[%c40_146, %c0_147], %341 {strides = array<i32>} : memref<224x128xf32, #tpu.memory_space<vmem>>, vector<8x128xf32>,
    %343 = arith.addf %260, %324 : vector<8x128xf32>
    %344 = math.tanh %343 : vector<8x128xf32>
    %c48_148 = arith.constant 48 : index
    %c0_149 = arith.constant 0 : index
    %345 = vector.load %arg23[%c48_148, %c0_149] : memref<224x128xf32, #tpu.memory_space<vmem>>, vector<8x128xf32>
    tpu.vector_store %arg23[%c48_148, %c0_149], %344 {strides = array<i32>} : memref<224x128xf32, #tpu.memory_space<vmem>>, vector<8x128xf32>,
    %346 = arith.addf %263, %324 : vector<8x128xf32>
    %347 = math.tanh %346 : vector<8x128xf32>
    %c56_150 = arith.constant 56 : index
    %c0_151 = arith.constant 0 : index
    %348 = vector.load %arg23[%c56_150, %c0_151] : memref<224x128xf32, #tpu.memory_space<vmem>>, vector<8x128xf32>
    tpu.vector_store %arg23[%c56_150, %c0_151], %347 {strides = array<i32>} : memref<224x128xf32, #tpu.memory_space<vmem>>, vector<8x128xf32>,
    %349 = arith.addf %266, %324 : vector<8x128xf32>
    %350 = math.tanh %349 : vector<8x128xf32>
    %c64_152 = arith.constant 64 : index
    %c0_153 = arith.constant 0 : index
    %351 = vector.load %arg23[%c64_152, %c0_153] : memref<224x128xf32, #tpu.memory_space<vmem>>, vector<8x128xf32>
    tpu.vector_store %arg23[%c64_152, %c0_153], %350 {strides = array<i32>} : memref<224x128xf32, #tpu.memory_space<vmem>>, vector<8x128xf32>,
    %352 = arith.addf %269, %324 : vector<8x128xf32>
    %353 = math.tanh %352 : vector<8x128xf32>
    %c72_154 = arith.constant 72 : index
    %c0_155 = arith.constant 0 : index
    %354 = vector.load %arg23[%c72_154, %c0_155] : memref<224x128xf32, #tpu.memory_space<vmem>>, vector<8x128xf32>
    tpu.vector_store %arg23[%c72_154, %c0_155], %353 {strides = array<i32>} : memref<224x128xf32, #tpu.memory_space<vmem>>, vector<8x128xf32>,
    %355 = arith.addf %272, %324 : vector<8x128xf32>
    %356 = math.tanh %355 : vector<8x128xf32>
    %c80_156 = arith.constant 80 : index
    %c0_157 = arith.constant 0 : index
    %357 = vector.load %arg23[%c80_156, %c0_157] : memref<224x128xf32, #tpu.memory_space<vmem>>, vector<8x128xf32>
    tpu.vector_store %arg23[%c80_156, %c0_157], %356 {strides = array<i32>} : memref<224x128xf32, #tpu.memory_space<vmem>>, vector<8x128xf32>,
    %358 = arith.addf %275, %324 : vector<8x128xf32>
    %359 = math.tanh %358 : vector<8x128xf32>
    %c88_158 = arith.constant 88 : index
    %c0_159 = arith.constant 0 : index
    %360 = vector.load %arg23[%c88_158, %c0_159] : memref<224x128xf32, #tpu.memory_space<vmem>>, vector<8x128xf32>
    tpu.vector_store %arg23[%c88_158, %c0_159], %359 {strides = array<i32>} : memref<224x128xf32, #tpu.memory_space<vmem>>, vector<8x128xf32>,
    %361 = arith.addf %278, %324 : vector<8x128xf32>
    %362 = math.tanh %361 : vector<8x128xf32>
    %c96_160 = arith.constant 96 : index
    %c0_161 = arith.constant 0 : index
    %363 = vector.load %arg23[%c96_160, %c0_161] : memref<224x128xf32, #tpu.memory_space<vmem>>, vector<8x128xf32>
    tpu.vector_store %arg23[%c96_160, %c0_161], %362 {strides = array<i32>} : memref<224x128xf32, #tpu.memory_space<vmem>>, vector<8x128xf32>,
    %364 = arith.addf %281, %324 : vector<8x128xf32>
    %365 = math.tanh %364 : vector<8x128xf32>
    %c104_162 = arith.constant 104 : index
    %c0_163 = arith.constant 0 : index
    %366 = vector.load %arg23[%c104_162, %c0_163] : memref<224x128xf32, #tpu.memory_space<vmem>>, vector<8x128xf32>
    tpu.vector_store %arg23[%c104_162, %c0_163], %365 {strides = array<i32>} : memref<224x128xf32, #tpu.memory_space<vmem>>, vector<8x128xf32>,
    %367 = arith.addf %284, %324 : vector<8x128xf32>
    %368 = math.tanh %367 : vector<8x128xf32>
    %c112 = arith.constant 112 : index
    %c0_164 = arith.constant 0 : index
    %369 = vector.load %arg23[%c112, %c0_164] : memref<224x128xf32, #tpu.memory_space<vmem>>, vector<8x128xf32>
    tpu.vector_store %arg23[%c112, %c0_164], %368 {strides = array<i32>} : memref<224x128xf32, #tpu.memory_space<vmem>>, vector<8x128xf32>,
    %370 = arith.addf %287, %324 : vector<8x128xf32>
    %371 = math.tanh %370 : vector<8x128xf32>
    %c120 = arith.constant 120 : index
    %c0_165 = arith.constant 0 : index
    %372 = vector.load %arg23[%c120, %c0_165] : memref<224x128xf32, #tpu.memory_space<vmem>>, vector<8x128xf32>
    tpu.vector_store %arg23[%c120, %c0_165], %371 {strides = array<i32>} : memref<224x128xf32, #tpu.memory_space<vmem>>, vector<8x128xf32>,
    %373 = arith.addf %290, %324 : vector<8x128xf32>
    %374 = math.tanh %373 : vector<8x128xf32>
    %c128 = arith.constant 128 : index
    %c0_166 = arith.constant 0 : index
    %375 = vector.load %arg23[%c128, %c0_166] : memref<224x128xf32, #tpu.memory_space<vmem>>, vector<8x128xf32>
    tpu.vector_store %arg23[%c128, %c0_166], %374 {strides = array<i32>} : memref<224x128xf32, #tpu.memory_space<vmem>>, vector<8x128xf32>,
    %376 = arith.addf %293, %324 : vector<8x128xf32>
    %377 = math.tanh %376 : vector<8x128xf32>
    %c136 = arith.constant 136 : index
    %c0_167 = arith.constant 0 : index
    %378 = vector.load %arg23[%c136, %c0_167] : memref<224x128xf32, #tpu.memory_space<vmem>>, vector<8x128xf32>
    tpu.vector_store %arg23[%c136, %c0_167], %377 {strides = array<i32>} : memref<224x128xf32, #tpu.memory_space<vmem>>, vector<8x128xf32>,
    %379 = arith.addf %296, %324 : vector<8x128xf32>
    %380 = math.tanh %379 : vector<8x128xf32>
    %c144 = arith.constant 144 : index
    %c0_168 = arith.constant 0 : index
    %381 = vector.load %arg23[%c144, %c0_168] : memref<224x128xf32, #tpu.memory_space<vmem>>, vector<8x128xf32>
    tpu.vector_store %arg23[%c144, %c0_168], %380 {strides = array<i32>} : memref<224x128xf32, #tpu.memory_space<vmem>>, vector<8x128xf32>,
    %382 = arith.addf %299, %324 : vector<8x128xf32>
    %383 = math.tanh %382 : vector<8x128xf32>
    %c152 = arith.constant 152 : index
    %c0_169 = arith.constant 0 : index
    %384 = vector.load %arg23[%c152, %c0_169] : memref<224x128xf32, #tpu.memory_space<vmem>>, vector<8x128xf32>
    tpu.vector_store %arg23[%c152, %c0_169], %383 {strides = array<i32>} : memref<224x128xf32, #tpu.memory_space<vmem>>, vector<8x128xf32>,
    %385 = arith.addf %302, %324 : vector<8x128xf32>
    %386 = math.tanh %385 : vector<8x128xf32>
    %c160 = arith.constant 160 : index
    %c0_170 = arith.constant 0 : index
    %387 = vector.load %arg23[%c160, %c0_170] : memref<224x128xf32, #tpu.memory_space<vmem>>, vector<8x128xf32>
    tpu.vector_store %arg23[%c160, %c0_170], %386 {strides = array<i32>} : memref<224x128xf32, #tpu.memory_space<vmem>>, vector<8x128xf32>,
    %388 = arith.addf %305, %324 : vector<8x128xf32>
    %389 = math.tanh %388 : vector<8x128xf32>
    %c168 = arith.constant 168 : index
    %c0_171 = arith.constant 0 : index
    %390 = vector.load %arg23[%c168, %c0_171] : memref<224x128xf32, #tpu.memory_space<vmem>>, vector<8x128xf32>
    tpu.vector_store %arg23[%c168, %c0_171], %389 {strides = array<i32>} : memref<224x128xf32, #tpu.memory_space<vmem>>, vector<8x128xf32>,
    %391 = arith.addf %308, %324 : vector<8x128xf32>
    %392 = math.tanh %391 : vector<8x128xf32>
    %c176 = arith.constant 176 : index
    %c0_172 = arith.constant 0 : index
    %393 = vector.load %arg23[%c176, %c0_172] : memref<224x128xf32, #tpu.memory_space<vmem>>, vector<8x128xf32>
    tpu.vector_store %arg23[%c176, %c0_172], %392 {strides = array<i32>} : memref<224x128xf32, #tpu.memory_space<vmem>>, vector<8x128xf32>,
    %394 = arith.addf %311, %324 : vector<8x128xf32>
    %395 = math.tanh %394 : vector<8x128xf32>
    %c184 = arith.constant 184 : index
    %c0_173 = arith.constant 0 : index
    %396 = vector.load %arg23[%c184, %c0_173] : memref<224x128xf32, #tpu.memory_space<vmem>>, vector<8x128xf32>
    tpu.vector_store %arg23[%c184, %c0_173], %395 {strides = array<i32>} : memref<224x128xf32, #tpu.memory_space<vmem>>, vector<8x128xf32>,
    %397 = arith.addf %314, %324 : vector<8x128xf32>
    %398 = math.tanh %397 : vector<8x128xf32>
    %c192 = arith.constant 192 : index
    %c0_174 = arith.constant 0 : index
    %399 = vector.load %arg23[%c192, %c0_174] : memref<224x128xf32, #tpu.memory_space<vmem>>, vector<8x128xf32>
    tpu.vector_store %arg23[%c192, %c0_174], %398 {strides = array<i32>} : memref<224x128xf32, #tpu.memory_space<vmem>>, vector<8x128xf32>,
    %400 = arith.addf %317, %324 : vector<8x128xf32>
    %401 = math.tanh %400 : vector<8x128xf32>
    %c200 = arith.constant 200 : index
    %c0_175 = arith.constant 0 : index
    %402 = vector.load %arg23[%c200, %c0_175] : memref<224x128xf32, #tpu.memory_space<vmem>>, vector<8x128xf32>
    tpu.vector_store %arg23[%c200, %c0_175], %401 {strides = array<i32>} : memref<224x128xf32, #tpu.memory_space<vmem>>, vector<8x128xf32>,
    %403 = arith.addf %320, %324 : vector<8x128xf32>
    %404 = math.tanh %403 : vector<8x128xf32>
    %c208 = arith.constant 208 : index
    %c0_176 = arith.constant 0 : index
    %405 = vector.load %arg23[%c208, %c0_176] : memref<224x128xf32, #tpu.memory_space<vmem>>, vector<8x128xf32>
    tpu.vector_store %arg23[%c208, %c0_176], %404 {strides = array<i32>} : memref<224x128xf32, #tpu.memory_space<vmem>>, vector<8x128xf32>,
    %406 = arith.addf %321, %324 : vector<8x128xf32>
    %407 = math.tanh %406 : vector<8x128xf32>
    %c216 = arith.constant 216 : index
    %c0_177 = arith.constant 0 : index
    %408 = vector.load %arg23[%c216, %c0_177] : memref<224x128xf32, #tpu.memory_space<vmem>>, vector<8x128xf32>
    tpu.vector_store %arg23[%c216, %c0_177], %407 {strides = array<i32>} : memref<224x128xf32, #tpu.memory_space<vmem>>, vector<8x128xf32>,
    return
  }
}

</mosaic_0001>

<bundles_post_ra>
// kernel: tpu_custom_call.1
= control target key start
LH: loop header
LB: loop body
LE: loop exit
PB: predicated region body
PF: predicated region fallthrough
CT: control target
= control target key end

     0   :  { %s8247_s0 = inlined_call_operand.hbm [shape: f32[8,10], index: 0, kind: input, shape index: {}]   ;;  %s8248_s1 = inlined_call_operand.hbm [shape: f32[10,128], index: 1, kind: input, shape index: {}]   ;;  %s8249_s2 = inlined_call_operand.hbm [shape: f32[1,128], index: 2, kind: input, shape index: {}]   ;;  %s8250_s3 = inlined_call_operand.hbm [shape: f32[128,384], index: 3, kind: input, shape index: {}]   ;;  %s8251_s4 = inlined_call_operand.hbm [shape: f32[1,384], index: 4, kind: input, shape index: {}]   ;;  %s8252_s5 = inlined_call_operand.hbm [shape: f32[384,768], index: 5, kind: input, shape index: {}]   ;;  %s8253_s6 = inlined_call_operand.hbm [shape: f32[1,768], index: 6, kind: input, shape index: {}]   ;;  %s8254_s7 = inlined_call_operand.hbm [shape: f32[256,1280], index: 7, kind: input, shape index: {}]   ;;  %s8255_s8 = inlined_call_operand.hbm [shape: f32[1,256], index: 8, kind: input, shape index: {}]   ;;  %s8256_s9 = inlined_call_operand.vmem [shape: f32[256,32], index: 9, kind: input, shape index: {}]   ;;  %s8257_s10 = inlined_call_operand.hbm [shape: f32[32,256], index: 10, kind: input, shape index: {}]   ;;  %s8258_s11 = inlined_call_operand.hbm [shape: f32[1,32], index: 11, kind: input, shape index: {}]   ;;  %s8259_s12 = inlined_call_operand.hbm [shape: f32[1,32], index: 12, kind: input, shape index: {}]   ;;  %s8260_s13 = inlined_call_operand.vmem [shape: f32[56,1], index: 13, kind: input, shape index: {}]   ;;  %s8261_s14 = inlined_call_operand.hbm [shape: f32[256,1024], index: 14, kind: input, shape index: {}]   ;;  %s8262_s15 = inlined_call_operand.hbm [shape: f32[1,256], index: 15, kind: input, shape index: {}]   ;;  %s8263_s16 = inlined_call_operand.vmem [shape: f32[256,16], index: 16, kind: input, shape index: {}]   ;;  %s8264_s17 = inlined_call_operand.hbm [shape: f32[16,256], index: 17, kind: input, shape index: {}]   ;;  %s8265_s18 = inlined_call_operand.hbm [shape: f32[1,16], index: 18, kind: input, shape index: {}]   ;;  %s8266_s19 = inlined_call_operand.hbm [shape: f32[1,16], index: 19, kind: input, shape index: {}]   ;;  %s8267_s20 = inlined_call_operand.vmem [shape: f32[112,1], index: 20, kind: input, shape index: {}]   ;;  %s8268_s21 = inlined_call_operand.hbm [shape: f32[256,512], index: 21, kind: input, shape index: {}]   ;;  %s8269_s22 = inlined_call_operand.hbm [shape: f32[1,128], index: 22, kind: input, shape index: {}]   ;;  %s8270_s23 = inlined_call_operand.hbm [shape: f32[224,128], index: 23, kind: output, shape index: {}]  }
   0x1   :  { %8299 = sst [smem:[#allocation60_spill]] %s8247_s0 }
   0x2   :  { %8300 = sst [smem:[#allocation61_spill]] %s8248_s1 }
   0x3   :  { %8301 = sst [smem:[#allocation62_spill]] %s8249_s2 }
   0x4   :  { %8302 = sst [smem:[#allocation63_spill]] %s8250_s3 }
   0x5   :  { %8303 = sst [smem:[#allocation64_spill]] %s8251_s4 }
   0x6   :  { %8304 = sst [smem:[#allocation65_spill]] %s8252_s5 }
   0x7   :  { %8305 = sst [smem:[#allocation66_spill]] %s8253_s6 }
   0x8   :  { %8306 = sst [smem:[#allocation67_spill]] %s8254_s7 }
   0x9   :  { %8307 = sst [smem:[#allocation68_spill]] %s8263_s16 }
   0xa   :  { %8308 = sst [smem:[#allocation69_spill]] %s8270_s23 }
   0xb   :  { %28 = vsyncpa [#allocation6], 0 }
   0xc   :  { %29 = vsyncpa [#allocation9], 0 }
   0xd   :  { %30 = vsyncpa [#allocation12], 0 }
   0xe   :  { %31 = vsyncpa [#allocation15], 0 }
   0xf   :  { %32 = vsyncpa [#allocation18], 0 }
  0x10   :  { %33 = vsyncpa [#allocation21], 0 }
  0x11   :  { %34 = vsyncpa [#allocation24], 0 }
  0x12   :  { %35 = vsyncpa [#allocation27], 0 }
  0x13   :  { %36 = vsyncpa [#allocation30], 0 }
  0x14   :  { %37 = vsyncpa [#allocation33], 0 }
  0x15   :  { %38 = vsyncpa [#allocation7], 0  ;;  %s6745_s4 = smov [#allocation8]   ;;  %s8309_s5 = sld [smem:[#allocation61_spill]] }
  0x16   :  { %s54_s30 = sshll.u32 %s6745_s4, 4  ;;  %s55_s30 = int_to_ptr.vmem [resolvable:$true] %s54_s30 }
  0x1b   :  { %s6283_s1 = scalar_lea.hbm %s8309_s5, 256 }
  0x1c   :  { %p6284_p0 = scmp.ne.s32.totalorder %s8309_s5, %s6283_s1  ;;  %p6287_p1 = scmp.lt.u32.totalorder %s6283_s1, %s8309_s5 }
  0x1e   :  { %p6289_p2 = pnand %p6287_p1, %p6284_p0 }
  0x20   :  { %6292 = shalt.err (!%p6289_p2)
}
  0x21   :  { %s6293_s7 = scalar_lea.vmem %s55_s30, 256  ;;  %p6298_p4 = scmp.lt.s32.totalorder %s55_s30, %s55_s30 }
  0x22   :  { %p6294_p3 = scmp.ne.s32.totalorder %s55_s30, %s6293_s7  ;;  %p6299_p5 = scmp.lt.s32.totalorder %s6293_s7, %s6293_s7 }
  0x24   :  { %p6300_p6 = por %p6299_p5, %p6298_p4 }
  0x26   :  { %p6301_p7 = pnand %p6300_p6, %p6294_p3 }
  0x28   :  { %6304 = shalt.err (!%p6301_p7)
}
  0x29   :  { %s8281_s28 = smov 128   ;;  %s8282_s29 = smov 8  }
  0x2a   :  { %60 = dma.hbm_to_vmem [thread:$0]  %s8309_s5, 256, %s55_s30, [#allocation9], %s8281_s28, %s8281_s28, %s8282_s29  }
  0x2b   :  { %s6748_s4 = smov [#allocation11]   ;;  %s8310_s26 = sld [smem:[#allocation63_spill]] }
  0x2c   :  { %s76_s24 = sshll.u32 %s6748_s4, 4  ;;  %s77_s24 = int_to_ptr.vmem [resolvable:$true] %s76_s24 }
  0x31   :  { %s6305_s2 = scalar_lea.hbm %s8310_s26, 6144 }
  0x32   :  { %p6306_p8 = scmp.ne.s32.totalorder %s8310_s26, %s6305_s2  ;;  %p6309_p9 = scmp.lt.u32.totalorder %s6305_s2, %s8310_s26 }
  0x34   :  { %p6311_p10 = pnand %p6309_p9, %p6306_p8 }
  0x36   :  { %6314 = shalt.err (!%p6311_p10)
}
  0x37   :  { %s6315_s16 = scalar_lea.vmem %s77_s24, 6144  ;;  %p6320_p12 = scmp.lt.s32.totalorder %s77_s24, %s77_s24 }
  0x38   :  { %p6316_p11 = scmp.ne.s32.totalorder %s77_s24, %s6315_s16  ;;  %p6321_p13 = scmp.lt.s32.totalorder %s6315_s16, %s6315_s16 }
  0x3a   :  { %p6322_p0 = por %p6321_p13, %p6320_p12 }
  0x3c   :  { %p6323_p1 = pnand %p6322_p0, %p6316_p11 }
  0x3e   :  { %6326 = shalt.err (!%p6323_p1)
}
  0x3f   :  { %s6749_s30 = smov 384   ;;  %s6750_s5 = smov 24  }
  0x40   :  { %82 = dma.hbm_to_vmem [thread:$0]  %s8310_s26, 6144, %s77_s24, [#allocation12], %s6749_s30, %s6749_s30, %s6750_s5  }
  0x41   :  { %s6751_s4 = smov [#allocation14]   ;;  %s8311_s2 = sld [smem:[#allocation65_spill]] }
  0x42   :  { %s98_s25 = sshll.u32 %s6751_s4, 4  ;;  %s99_s25 = int_to_ptr.vmem [resolvable:$true] %s98_s25 }
  0x47   :  { %s6327_s6 = scalar_lea.hbm %s8311_s2, 36864 }
  0x48   :  { %p6328_p2 = scmp.ne.s32.totalorder %s8311_s2, %s6327_s6  ;;  %p6331_p3 = scmp.lt.u32.totalorder %s6327_s6, %s8311_s2 }
  0x4a   :  { %p6333_p4 = pnand %p6331_p3, %p6328_p2 }
  0x4c   :  { %6336 = shalt.err (!%p6333_p4)
}
  0x4d   :  { %s6337_s29 = scalar_lea.vmem %s99_s25, 36864  ;;  %p6342_p6 = scmp.lt.s32.totalorder %s99_s25, %s99_s25 }
  0x4e   :  { %p6338_p5 = scmp.ne.s32.totalorder %s99_s25, %s6337_s29  ;;  %p6343_p7 = scmp.lt.s32.totalorder %s6337_s29, %s6337_s29 }
  0x50   :  { %p6344_p8 = por %p6343_p7, %p6342_p6 }
  0x52   :  { %p6345_p9 = pnand %p6344_p8, %p6338_p5 }
  0x54   :  { %6348 = shalt.err (!%p6345_p9)
}
  0x55   :  { %s6752_s24 = smov 768   ;;  %s6753_s26 = smov 48  }
  0x56   :  { %104 = dma.hbm_to_vmem [thread:$0]  %s8311_s2, 36864, %s99_s25, [#allocation15], %s6752_s24, %s6752_s24, %s6753_s26  }
  0x57   :  { %s6754_s3 = smov [#allocation17]   ;;  %s8312_s23 = sld [smem:[#allocation67_spill]] }
  0x58   :  { %s120_s0 = sshll.u32 %s6754_s3, 4  ;;  %s121_s0 = int_to_ptr.vmem [resolvable:$true] %s120_s0 }
  0x5d   :  { %s6349_s1 = scalar_lea.hbm %s8312_s23, 40960 }
  0x5e   :  { %p6350_p10 = scmp.ne.s32.totalorder %s8312_s23, %s6349_s1  ;;  %p6353_p11 = scmp.lt.u32.totalorder %s6349_s1, %s8312_s23 }
  0x60   :  { %p6355_p12 = pnand %p6353_p11, %p6350_p10 }
  0x62   :  { %6358 = shalt.err (!%p6355_p12)
}
  0x63   :  { %s6359_s16 = scalar_lea.vmem %s121_s0, 40960  ;;  %p6364_p0 = scmp.lt.s32.totalorder %s121_s0, %s121_s0 }
  0x64   :  { %p6360_p13 = scmp.ne.s32.totalorder %s121_s0, %s6359_s16  ;;  %p6365_p1 = scmp.lt.s32.totalorder %s6359_s16, %s6359_s16 }
  0x66   :  { %p6366_p2 = por %p6365_p1, %p6364_p0 }
  0x68   :  { %p6367_p3 = pnand %p6366_p2, %p6360_p13 }
  0x6a   :  { %6370 = shalt.err (!%p6367_p3)
}
  0x6b   :  { %s6755_s25 = smov 1280   ;;  %s6756_s2 = smov 80  }
  0x6c   :  { %126 = dma.hbm_to_vmem [thread:$0]  %s8312_s23, 40960, %s121_s0, [#allocation18], %s6755_s25, %s6755_s25, %s6756_s2  }
  0x6d   :  { %s6757_s30 = smov [#allocation20]   ;;  %s6371_s4 = scalar_lea.hbm %s8257_s10, 1024 }
  0x6e   :  { %s144_s5 = sshll.u32 %s6757_s30, 4  ;;  %p6372_p4 = scmp.ne.s32.totalorder %s8257_s10, %s6371_s4  ;;  %s145_s5 = int_to_ptr.vmem [resolvable:$true] %s144_s5 }
  0x6f   :  { %p6375_p5 = scmp.lt.u32.totalorder %s6371_s4, %s8257_s10 }
  0x71   :  { %p6377_p6 = pnand %p6375_p5, %p6372_p4 }
  0x73   :  { %6380 = shalt.err (!%p6377_p6)
}
  0x74   :  { %s6381_s7 = scalar_lea.vmem %s145_s5, 1024  ;;  %p6386_p8 = scmp.lt.s32.totalorder %s145_s5, %s145_s5 }
  0x75   :  { %p6382_p7 = scmp.ne.s32.totalorder %s145_s5, %s6381_s7  ;;  %p6387_p9 = scmp.lt.s32.totalorder %s6381_s7, %s6381_s7 }
  0x77   :  { %p6388_p10 = por %p6387_p9, %p6386_p8 }
  0x79   :  { %p6389_p11 = pnand %p6388_p10, %p6382_p7 }
  0x7b   :  { %6392 = shalt.err (!%p6389_p11)
}
  0x7c   :  { %s6758_s0 = smov 256   ;;  %s6759_s23 = smov 16  }
  0x7d   :  { %150 = dma.hbm_to_vmem [thread:$0]  %s8257_s10, 1024, %s145_s5, [#allocation21], %s6758_s0, %s6758_s0, %s6759_s23  }
  0x7e   :  { %s6760_s2 = smov [#allocation23]   ;;  %s6761_s26 = smov [#allocation26]  }
  0x7f   :  { %s167_s24 = sshll.u32 %s6760_s2, 4  ;;  %s191_s30 = sshll.u32 %s6761_s26, 4  ;;  %s168_s24 = int_to_ptr.vmem [resolvable:$true] %s167_s24  ;;  %s192_s30 = int_to_ptr.vmem [resolvable:$true] %s191_s30 }
  0x80   :  { %s6393_s4 = scalar_lea.hbm %s8259_s12, 16 }
  0x81   :  { %p6394_p12 = scmp.ne.s32.totalorder %s8259_s12, %s6393_s4  ;;  %p6397_p13 = scmp.lt.u32.totalorder %s6393_s4, %s8259_s12 }
  0x83   :  { %p6399_p0 = pnand %p6397_p13, %p6394_p12 }
  0x85   :  { %6402 = shalt.err (!%p6399_p0)
}
  0x86   :  { %s6403_s10 = scalar_lea.vmem %s168_s24, 16  ;;  %s6407_s5 = scalar_lea.vmem %s168_s24, 32 }
  0x87   :  { %p6404_p1 = scmp.ne.s32.totalorder %s168_s24, %s6403_s10  ;;  %p6408_p2 = scmp.lt.s32.totalorder %s168_s24, %s168_s24 }
  0x88   :  { %p6409_p3 = scmp.lt.s32.totalorder %s6407_s5, %s6403_s10 }
  0x8a   :  { %p6410_p4 = por %p6409_p3, %p6408_p2 }
  0x8c   :  { %p6411_p5 = pnand %p6410_p4, %p6404_p1 }
  0x8e   :  { %6414 = shalt.err (!%p6411_p5)
}
  0x8f   :  { %170 = dma.hbm_to_vmem [thread:$0]  %s8259_s12, 16, %s168_s24, [#allocation24]  }
  0x90   :  { %s6415_s26 = scalar_lea.hbm %s8262_s15, 32 }
  0x91   :  { %p6416_p6 = scmp.ne.s32.totalorder %s8262_s15, %s6415_s26  ;;  %p6419_p7 = scmp.lt.u32.totalorder %s6415_s26, %s8262_s15 }
  0x93   :  { %p6421_p8 = pnand %p6419_p7, %p6416_p6 }
  0x95   :  { %6424 = shalt.err (!%p6421_p8)
}
  0x96   :  { %s6425_s6 = scalar_lea.vmem %s192_s30, 32  ;;  %p6430_p10 = scmp.lt.s32.totalorder %s192_s30, %s192_s30 }
  0x97   :  { %p6426_p9 = scmp.ne.s32.totalorder %s192_s30, %s6425_s6  ;;  %p6431_p11 = scmp.lt.s32.totalorder %s6425_s6, %s6425_s6 }
  0x99   :  { %p6432_p12 = por %p6431_p11, %p6430_p10 }
  0x9b   :  { %p6433_p13 = pnand %p6432_p12, %p6426_p9 }
  0x9d   :  { %6436 = shalt.err (!%p6433_p13)
}
  0x9e   :  { %194 = dma.hbm_to_vmem [thread:$0]  %s8262_s15, 32, %s192_s30, [#allocation27]  }
  0x9f   :  { %s6762_s27 = smov [#allocation29]   ;;  %s6763_s10 = smov [#allocation32]  }
  0xa0   :  { %s215_s29 = sshll.u32 %s6762_s27, 4  ;;  %s236_s5 = sshll.u32 %s6763_s10, 4  ;;  %s216_s29 = int_to_ptr.vmem [resolvable:$true] %s215_s29  ;;  %s237_s5 = int_to_ptr.vmem [resolvable:$true] %s236_s5 }
  0xa1   :  { %s6437_s25 = scalar_lea.hbm %s8265_s18, 16 }
  0xa2   :  { %p6438_p0 = scmp.ne.s32.totalorder %s8265_s18, %s6437_s25  ;;  %p6441_p1 = scmp.lt.u32.totalorder %s6437_s25, %s8265_s18 }
  0xa4   :  { %p6443_p2 = pnand %p6441_p1, %p6438_p0 }
  0xa6   :  { %6446 = shalt.err (!%p6443_p2)
}
  0xa7   :  { %s6447_s15 = scalar_lea.vmem %s216_s29, 16  ;;  %s6451_s30 = scalar_lea.vmem %s216_s29, 32 }
  0xa8   :  { %p6448_p3 = scmp.ne.s32.totalorder %s216_s29, %s6447_s15  ;;  %p6452_p4 = scmp.lt.s32.totalorder %s216_s29, %s216_s29 }
  0xa9   :  { %p6453_p5 = scmp.lt.s32.totalorder %s6451_s30, %s6447_s15 }
  0xab   :  { %p6454_p6 = por %p6453_p5, %p6452_p4 }
  0xad   :  { %p6455_p7 = pnand %p6454_p6, %p6448_p3 }
  0xaf   :  { %6458 = shalt.err (!%p6455_p7)
}
  0xb0   :  { %218 = dma.hbm_to_vmem [thread:$0]  %s8265_s18, 16, %s216_s29, [#allocation30]  }
  0xb1   :  { %s6459_s24 = scalar_lea.hbm %s8268_s21, 16384 }
  0xb2   :  { %p6460_p8 = scmp.ne.s32.totalorder %s8268_s21, %s6459_s24  ;;  %p6463_p9 = scmp.lt.u32.totalorder %s6459_s24, %s8268_s21 }
  0xb4   :  { %p6465_p10 = pnand %p6463_p9, %p6460_p8 }
  0xb6   :  { %6468 = shalt.err (!%p6465_p10)
}
  0xb7   :  { %s6469_s25 = scalar_lea.vmem %s237_s5, 16384  ;;  %p6474_p12 = scmp.lt.s32.totalorder %s237_s5, %s237_s5 }
  0xb8   :  { %p6470_p11 = scmp.ne.s32.totalorder %s237_s5, %s6469_s25  ;;  %p6475_p13 = scmp.lt.s32.totalorder %s6469_s25, %s6469_s25 }
  0xba   :  { %p6476_p0 = por %p6475_p13, %p6474_p12 }
  0xbc   :  { %p6477_p1 = pnand %p6476_p0, %p6470_p11 }
  0xbe   :  { %6480 = shalt.err (!%p6477_p1)
}
  0xbf   :  { %s6764_s18 = smov 512   ;;  %s6765_s29 = smov 32  }
  0xc0   :  { %242 = dma.hbm_to_vmem [thread:$0]  %s8268_s21, 16384, %s237_s5, [#allocation33], %s6764_s18, %s6764_s18, %s6765_s29  }
  0xc1   :  { %s6766_s3 = smov [#allocation5]   ;;  %s6767_s15 = smov [#allocation10]  }
  0xc2   :  { %s45_s28 = sshll.u32 %s6766_s3, 4  ;;  %s67_s30 = sshll.u32 %s6767_s15, 4  ;;  %s46_s28 = int_to_ptr.vmem [resolvable:$true] %s45_s28  ;;  %s68_s30 = int_to_ptr.vmem [resolvable:$true] %s67_s30 }
  0xc3   :  { %s8313_s6 = sld [smem:[#allocation60_spill]] }
  0xc9   :  { %s6481_s12 = scalar_lea.hbm %s8313_s6, 128 }
  0xca   :  { %p6482_p2 = scmp.ne.s32.totalorder %s8313_s6, %s6481_s12  ;;  %p6485_p3 = scmp.lt.u32.totalorder %s6481_s12, %s8313_s6 }
  0xcc   :  { %p6487_p4 = pnand %p6485_p3, %p6482_p2 }
  0xce   :  { %6490 = shalt.err (!%p6487_p4)
}
  0xcf   :  { %s6491_s21 = scalar_lea.vmem %s46_s28, 128  ;;  %p6496_p6 = scmp.lt.s32.totalorder %s46_s28, %s46_s28 }
  0xd0   :  { %p6492_p5 = scmp.ne.s32.totalorder %s46_s28, %s6491_s21  ;;  %p6497_p7 = scmp.lt.s32.totalorder %s6491_s21, %s6491_s21 }
  0xd2   :  { %p6498_p8 = por %p6497_p7, %p6496_p6 }
  0xd4   :  { %p6499_p9 = pnand %p6498_p8, %p6492_p5 }
  0xd6   :  { %6502 = shalt.err (!%p6499_p9)
}
  0xd7   :  { %48 = dma.hbm_to_vmem [thread:$0]  %s8313_s6, 128, %s46_s28, [#allocation6]  }
  0xd8   :  { %s8314_s29 = sld [smem:[#allocation62_spill]] }
  0xde   :  { %s6503_s2 = scalar_lea.hbm %s8314_s29, 16 }
  0xdf   :  { %p6504_p10 = scmp.ne.s32.totalorder %s8314_s29, %s6503_s2  ;;  %p6507_p11 = scmp.lt.u32.totalorder %s6503_s2, %s8314_s29 }
  0xe1   :  { %p6509_p12 = pnand %p6507_p11, %p6504_p10 }
  0xe3   :  { %6512 = shalt.err (!%p6509_p12)
}
  0xe4   :  { %s6513_s1 = scalar_lea.vmem %s68_s30, 16  ;;  %s6517_s12 = scalar_lea.vmem %s68_s30, 32 }
  0xe5   :  { %p6514_p13 = scmp.ne.s32.totalorder %s68_s30, %s6513_s1  ;;  %p6518_p0 = scmp.lt.s32.totalorder %s68_s30, %s68_s30 }
  0xe6   :  { %p6519_p1 = scmp.lt.s32.totalorder %s6517_s12, %s6513_s1 }
  0xe8   :  { %p6520_p2 = por %p6519_p1, %p6518_p0 }
  0xea   :  { %p6521_p3 = pnand %p6520_p2, %p6514_p13 }
  0xec   :  { %6524 = shalt.err (!%p6521_p3)
}
  0xed   :  { %70 = dma.hbm_to_vmem [thread:$0]  %s8314_s29, 16, %s68_s30, [#allocation9]  }
  0xee   :  { %s6768_s24 = smov [#allocation13]   ;;  %s6769_s10 = smov [#allocation16]  }
  0xef   :  { %s89_s27 = sshll.u32 %s6768_s24, 4  ;;  %s111_s7 = sshll.u32 %s6769_s10, 4  ;;  %s90_s27 = int_to_ptr.vmem [resolvable:$true] %s89_s27  ;;  %s112_s7 = int_to_ptr.vmem [resolvable:$true] %s111_s7 }
  0xf0   :  { %s8315_s16 = sld [smem:[#allocation64_spill]] }
  0xf6   :  { %s6525_s25 = scalar_lea.hbm %s8315_s16, 48 }
  0xf7   :  { %p6526_p4 = scmp.ne.s32.totalorder %s8315_s16, %s6525_s25  ;;  %p6529_p5 = scmp.lt.u32.totalorder %s6525_s25, %s8315_s16 }
  0xf9   :  { %p6531_p6 = pnand %p6529_p5, %p6526_p4 }
  0xfb   :  { %6534 = shalt.err (!%p6531_p6)
}
  0xfc   :  { %s6535_s30 = scalar_lea.vmem %s90_s27, 48  ;;  %s6539_s29 = scalar_lea.vmem %s90_s27, 64 }
  0xfd   :  { %p6536_p7 = scmp.ne.s32.totalorder %s90_s27, %s6535_s30  ;;  %p6540_p8 = scmp.lt.s32.totalorder %s90_s27, %s90_s27 }
  0xfe   :  { %p6541_p9 = scmp.lt.s32.totalorder %s6539_s29, %s6535_s30 }
 0x100   :  { %p6542_p10 = por %p6541_p9, %p6540_p8 }
 0x102   :  { %p6543_p11 = pnand %p6542_p10, %p6536_p7 }
 0x104   :  { %6546 = shalt.err (!%p6543_p11)
}
 0x105   :  { %92 = dma.hbm_to_vmem [thread:$0]  %s8315_s16, 48, %s90_s27, [#allocation12]  }
 0x106   :  { %s8316_s28 = sld [smem:[#allocation66_spill]] }
 0x10c   :  { %s6547_s6 = scalar_lea.hbm %s8316_s28, 96 }
 0x10d   :  { %p6548_p12 = scmp.ne.s32.totalorder %s8316_s28, %s6547_s6  ;;  %p6551_p13 = scmp.lt.u32.totalorder %s6547_s6, %s8316_s28 }
 0x10f   :  { %p6553_p0 = pnand %p6551_p13, %p6548_p12 }
 0x111   :  { %6556 = shalt.err (!%p6553_p0)
}
 0x112   :  { %s6557_s25 = scalar_lea.vmem %s112_s7, 96  ;;  %p6562_p2 = scmp.lt.s32.totalorder %s112_s7, %s112_s7 }
 0x113   :  { %p6558_p1 = scmp.ne.s32.totalorder %s112_s7, %s6557_s25  ;;  %p6563_p3 = scmp.lt.s32.totalorder %s6557_s25, %s6557_s25 }
 0x115   :  { %p6564_p4 = por %p6563_p3, %p6562_p2 }
 0x117   :  { %p6565_p5 = pnand %p6564_p4, %p6558_p1 }
 0x119   :  { %6568 = shalt.err (!%p6565_p5)
}
 0x11a   :  { %114 = dma.hbm_to_vmem [thread:$0]  %s8316_s28, 96, %s112_s7, [#allocation15]  }
 0x11b   :  { %s6770_s18 = smov [#allocation19]   ;;  %s6771_s26 = smov [#allocation22]  }
 0x11c   :  { %s133_s2 = sshll.u32 %s6770_s18, 4  ;;  %s157_s3 = sshll.u32 %s6771_s26, 4  ;;  %s134_s2 = int_to_ptr.vmem [resolvable:$true] %s133_s2  ;;  %s158_s3 = int_to_ptr.vmem [resolvable:$true] %s157_s3 }
 0x11d   :  { %s6569_s15 = scalar_lea.hbm %s8255_s8, 32 }
 0x11e   :  { %p6570_p6 = scmp.ne.s32.totalorder %s8255_s8, %s6569_s15  ;;  %p6573_p7 = scmp.lt.u32.totalorder %s6569_s15, %s8255_s8 }
 0x120   :  { %p6575_p8 = pnand %p6573_p7, %p6570_p6 }
 0x122   :  { %6578 = shalt.err (!%p6575_p8)
}
 0x123   :  { %s6579_s7 = scalar_lea.vmem %s134_s2, 32  ;;  %p6584_p10 = scmp.lt.s32.totalorder %s134_s2, %s134_s2 }
 0x124   :  { %p6580_p9 = scmp.ne.s32.totalorder %s134_s2, %s6579_s7  ;;  %p6585_p11 = scmp.lt.s32.totalorder %s6579_s7, %s6579_s7 }
 0x126   :  { %p6586_p12 = por %p6585_p11, %p6584_p10 }
 0x128   :  { %p6587_p13 = pnand %p6586_p12, %p6580_p9 }
 0x12a   :  { %6590 = shalt.err (!%p6587_p13)
}
 0x12b   :  { %136 = dma.hbm_to_vmem [thread:$0]  %s8255_s8, 32, %s134_s2, [#allocation18]  }
 0x12c   :  { %s6591_s5 = scalar_lea.hbm %s8258_s11, 16 }
 0x12d   :  { %p6592_p0 = scmp.ne.s32.totalorder %s8258_s11, %s6591_s5  ;;  %p6595_p1 = scmp.lt.u32.totalorder %s6591_s5, %s8258_s11 }
 0x12f   :  { %p6597_p2 = pnand %p6595_p1, %p6592_p0 }
 0x131   :  { %6600 = shalt.err (!%p6597_p2)
}
 0x132   :  { %s6601_s26 = scalar_lea.vmem %s158_s3, 16  ;;  %s6605_s30 = scalar_lea.vmem %s158_s3, 32 }
 0x133   :  { %p6602_p3 = scmp.ne.s32.totalorder %s158_s3, %s6601_s26  ;;  %p6606_p4 = scmp.lt.s32.totalorder %s158_s3, %s158_s3 }
 0x134   :  { %p6607_p5 = scmp.lt.s32.totalorder %s6605_s30, %s6601_s26 }
 0x136   :  { %p6608_p6 = por %p6607_p5, %p6606_p4 }
 0x138   :  { %p6609_p7 = pnand %p6608_p6, %p6602_p3 }
 0x13a   :  { %6612 = shalt.err (!%p6609_p7)
}
 0x13b   :  { %160 = dma.hbm_to_vmem [thread:$0]  %s8258_s11, 16, %s158_s3, [#allocation21]  }
 0x13c   :  { %s6772_s29 = smov [#allocation25]   ;;  %s6613_s12 = scalar_lea.hbm %s8261_s14, 32768 }
 0x13d   :  { %s178_s15 = sshll.u32 %s6772_s29, 4  ;;  %p6614_p8 = scmp.ne.s32.totalorder %s8261_s14, %s6613_s12  ;;  %s179_s15 = int_to_ptr.vmem [resolvable:$true] %s178_s15 }
 0x13e   :  { %p6617_p9 = scmp.lt.u32.totalorder %s6613_s12, %s8261_s14 }
 0x140   :  { %p6619_p10 = pnand %p6617_p9, %p6614_p8 }
 0x142   :  { %6622 = shalt.err (!%p6619_p10)
}
 0x143   :  { %s6623_s10 = scalar_lea.vmem %s179_s15, 32768  ;;  %p6628_p12 = scmp.lt.s32.totalorder %s179_s15, %s179_s15 }
 0x144   :  { %p6624_p11 = scmp.ne.s32.totalorder %s179_s15, %s6623_s10  ;;  %p6629_p13 = scmp.lt.s32.totalorder %s6623_s10, %s6623_s10 }
 0x146   :  { %p6630_p0 = por %p6629_p13, %p6628_p12 }
 0x148   :  { %p6631_p1 = pnand %p6630_p0, %p6624_p11 }
 0x14a   :  { %6634 = shalt.err (!%p6631_p1)
}
 0x14b   :  { %s6773_s11 = smov 1024   ;;  %s6774_s3 = smov 64  }
 0x14c   :  { %184 = dma.hbm_to_vmem [thread:$0]  %s8261_s14, 32768, %s179_s15, [#allocation24], %s6773_s11, %s6773_s11, %s6774_s3  }
 0x14d   :  { %s6775_s25 = smov [#allocation28]   ;;  %s6776_s16 = smov [#allocation31]  }
 0x14e   :  { %s202_s27 = sshll.u32 %s6775_s25, 4  ;;  %s225_s18 = sshll.u32 %s6776_s16, 4  ;;  %s203_s27 = int_to_ptr.vmem [resolvable:$true] %s202_s27  ;;  %s226_s18 = int_to_ptr.vmem [resolvable:$true] %s225_s18 }
 0x14f   :  { %s6635_s8 = scalar_lea.hbm %s8264_s17, 512 }
 0x150   :  { %p6636_p2 = scmp.ne.s32.totalorder %s8264_s17, %s6635_s8  ;;  %p6639_p3 = scmp.lt.u32.totalorder %s6635_s8, %s8264_s17 }
 0x152   :  { %p6641_p4 = pnand %p6639_p3, %p6636_p2 }
 0x154   :  { %6644 = shalt.err (!%p6641_p4)
}
 0x155   :  { %s6645_s14 = scalar_lea.vmem %s203_s27, 512  ;;  %p6650_p6 = scmp.lt.s32.totalorder %s203_s27, %s203_s27 }
 0x156   :  { %p6646_p5 = scmp.ne.s32.totalorder %s203_s27, %s6645_s14  ;;  %p6651_p7 = scmp.lt.s32.totalorder %s6645_s14, %s6645_s14 }
 0x158   :  { %p6652_p8 = por %p6651_p7, %p6650_p6 }
 0x15a   :  { %p6653_p9 = pnand %p6652_p8, %p6646_p5 }
 0x15c   :  { %6656 = shalt.err (!%p6653_p9)
}
 0x15d   :  { %208 = dma.hbm_to_vmem [thread:$0]  %s8264_s17, 512, %s203_s27, [#allocation27], %s6758_s0, %s6758_s0, %s6759_s23  }
 0x15e   :  { %s6657_s28 = scalar_lea.hbm %s8266_s19, 16 }
 0x15f   :  { %p6658_p10 = scmp.ne.s32.totalorder %s8266_s19, %s6657_s28  ;;  %p6661_p11 = scmp.lt.u32.totalorder %s6657_s28, %s8266_s19 }
 0x161   :  { %p6663_p12 = pnand %p6661_p11, %p6658_p10 }
 0x163   :  { %6666 = shalt.err (!%p6663_p12)
}
 0x164   :  { %s6667_s21 = scalar_lea.vmem %s226_s18, 16  ;;  %s6671_s5 = scalar_lea.vmem %s226_s18, 32 }
 0x165   :  { %p6668_p13 = scmp.ne.s32.totalorder %s226_s18, %s6667_s21  ;;  %p6672_p0 = scmp.lt.s32.totalorder %s226_s18, %s226_s18 }
 0x166   :  { %p6673_p1 = scmp.lt.s32.totalorder %s6671_s5, %s6667_s21 }
 0x168   :  { %p6674_p2 = por %p6673_p1, %p6672_p0 }
 0x16a   :  { %p6675_p3 = pnand %p6674_p2, %p6668_p13 }
 0x16c   :  { %6678 = shalt.err (!%p6675_p3)
}
 0x16d   :  { %228 = dma.hbm_to_vmem [thread:$0]  %s8266_s19, 16, %s226_s18, [#allocation30]  }
 0x16e   :  { %s6777_s23 = smov [#allocation34]   ;;  %s6679_s26 = scalar_lea.hbm %s8269_s22, 16 }
 0x16f   :  { %s249_s25 = sshll.u32 %s6777_s23, 4  ;;  %p6680_p4 = scmp.ne.s32.totalorder %s8269_s22, %s6679_s26  ;;  %s250_s25 = int_to_ptr.vmem [resolvable:$true] %s249_s25 }
 0x170   :  { %p6683_p5 = scmp.lt.u32.totalorder %s6679_s26, %s8269_s22 }
 0x172   :  { %p6685_p6 = pnand %p6683_p5, %p6680_p4 }
 0x174   :  { %6688 = shalt.err (!%p6685_p6)
}
 0x175   :  { %s6689_s4 = scalar_lea.vmem %s250_s25, 16  ;;  %s6693_s19 = scalar_lea.vmem %s250_s25, 32 }
 0x176   :  { %p6690_p7 = scmp.ne.s32.totalorder %s250_s25, %s6689_s4  ;;  %p6694_p8 = scmp.lt.s32.totalorder %s250_s25, %s250_s25 }
 0x177   :  { %p6695_p9 = scmp.lt.s32.totalorder %s6693_s19, %s6689_s4 }
 0x179   :  { %p6696_p10 = por %p6695_p9, %p6694_p8 }
 0x17b   :  { %p6697_p11 = pnand %p6696_p10, %p6690_p7 }
 0x17d   :  { %6700 = shalt.err (!%p6697_p11)
}
 0x17e   :  { %252 = dma.hbm_to_vmem [thread:$0]  %s8269_s22, 16, %s250_s25, [#allocation33]  }
 0x17f   :  { %6723 = dma.done.wait [#allocation6], 128  }
 0x180   :  { %6724 = vsyncadd [#allocation6], 4294967168 }
 0x181   :  { %6725 = dma.done.wait [#allocation9], 272  }
 0x182   :  { %6726 = vsyncadd [#allocation9], 4294967024 }
 0x183   :  { %6727 = dma.done.wait [#allocation12], 6192  }
 0x184   :  { %6728 = vsyncadd [#allocation12], 4294961104 }
 0x185   :  { %6729 = dma.done.wait [#allocation15], 36960  }
 0x186   :  { %6730 = vsyncadd [#allocation15], 4294930336 }
 0x187   :  { %6731 = dma.done.wait [#allocation18], 40992  }
 0x188   :  { %6732 = vsyncadd [#allocation18], 4294926304 }
 0x189   :  { %6733 = dma.done.wait [#allocation21], 1040  }
 0x18a   :  { %6734 = vsyncadd [#allocation21], 4294966256 }
 0x18b   :  { %6735 = dma.done.wait [#allocation24], 32784  }
 0x18c   :  { %6736 = vsyncadd [#allocation24], 4294934512 }
 0x18d   :  { %6737 = dma.done.wait [#allocation27], 544  }
 0x18e   :  { %6738 = vsyncadd [#allocation27], 4294966752 }
 0x18f   :  { %6739 = dma.done.wait [#allocation30], 32  }
 0x190   :  { %6740 = vsyncadd [#allocation30], 4294967264 }
 0x191   :  { %6741 = dma.done.wait [#allocation33], 16400  }
 0x192   :  { %6742 = vsyncadd [#allocation33], 4294950896  ;;  %v6778_v0 = vmov 0.0|0.0   ;;  %vm6779_vm0 = vmmov 0   ;;  %v8283_v1 = vmov 0.0   ;;  %vm324_vm1 = vcmask 1041408  }
 0x193   :  { %4904 = vmatprep.subr.bf16.mxu0 %v6778_v0  ;;  %4866 = vmatprep.mubr.msk.f32.mxu0 %vm6779_vm0, %v8283_v1  ;;  %v311_v2 = vld [vmem:[#allocation8] sm:$0xff]  ;;  %v312_v3 = vld [vmem:[#allocation8 + $0x8] sm:$0x3]  ;;  %vm6781_vm2 = vmmov 1   ;;  %v310_v5 = vld [vmem:[#allocation5] sm:$0xff]  ;;  %vm320_vm4 = vcmask 80896  }
 0x194   :  { %528 = vmatprep.mubr.f32.mxu1 %v8283_v1  ;;  %vm4906_vm3 = vmpackc.low %vm324_vm1, %vm6781_vm2  ;;  %v4905_v4 = vpack.c.bf16 %v312_v3, %v311_v2  ;;  %v400_v6 = vld [vmem:[#allocation11 + $0x8] sm:$0xff]  ;;  %v403_v7 = vld [vmem:[#allocation11 + $0x20] sm:$0xff]  ;;  %vm2484_vm5 = vcmask 261120   ;;  %s8318_s27 = sld [smem:[#allocation68_spill]]  ;;  %vm3906_vm6 = vcmask 130048  }
 0x195   :  { %v399_v8 = vld [vmem:[#allocation11] sm:$0xff]  ;;  %v4908_v9 = vpack.c.bf16 %v403_v7, %v400_v6  ;;  %v402_v10 = vld [vmem:[#allocation11 + $0x18] sm:$0xff]  ;;  %v401_v11 = vld [vmem:[#allocation11 + $0x10] sm:$0xff] }
 0x196   :  { %v404_v12 = vld [vmem:[#allocation11 + $0x28] sm:$0xff]  ;;  %4907 = vmatpush3.bf16.msk.msra.mxu0 %vm4906_vm3, %v4905_v4  ;;  %v4910_v13 = vpack.c.bf16 %v402_v10, %v399_v8  ;;  %v406_v15 = vld [vmem:[#allocation11 + $0x38] sm:$0xff]  ;;  %v409_v16 = vld [vmem:[#allocation11 + $0x50] sm:$0xff] }
 0x197   :  { %v4941_v14 = vpack.c.bf16 %v404_v12, %v401_v11  ;;  %v405_v17 = vld [vmem:[#allocation11 + $0x30] sm:$0xff]  ;;  %4909 = vmatprep.subr.bf16.mxu1 %v4908_v9  ;;  %4940 = vmatprep.subr.bf16.mxu0 %v6778_v0  ;;  %v4912_v18 = vpack.c.bf16 %v409_v16, %v406_v15  ;;  %v408_v19 = vld [vmem:[#allocation11 + $0x48] sm:$0xff]  ;;  %v407_v20 = vld [vmem:[#allocation11 + $0x40] sm:$0xff] }
 0x198   :  { %v410_v21 = vld [vmem:[#allocation11 + $0x58] sm:$0xff]  ;;  %4911 = vmatpush1.bf16.msra.mxu1 %v4910_v13  ;;  %v4914_v22 = vpack.c.bf16 %v408_v19, %v405_v17  ;;  %v412_v23 = vld [vmem:[#allocation11 + $0x68] sm:$0xff]  ;;  %v415_v24 = vld [vmem:[#allocation11 + $0x80] sm:$0xff] }
 0x199   :  { %4867 = vmatmul.mubr.msk.f32.vlgmr.msra.gmra.mrb[0].mxu0 %vm320_vm4, %v310_v5  ;;  %4913 = vmatprep.subr.bf16.mxu1 %v4912_v18  ;;  %v4916_v25 = vpack.c.bf16 %v415_v24, %v412_v23  ;;  %v411_v26 = vld [vmem:[#allocation11 + $0x60] sm:$0xff]  ;;  %v414_v27 = vld [vmem:[#allocation11 + $0x78] sm:$0xff]  ;;  %v4944_v28 = vpack.c.bf16 %v410_v21, %v407_v20  ;;  %v421_v30 = vld [vmem:[#allocation11 + $0xb0] sm:$0xff] }
 0x19a   :  { %4942 = vmatpush3.bf16.msra.mxu0 %v4941_v14  ;;  %v418_v29 = vld [vmem:[#allocation11 + $0x98] sm:$0xff]  ;;  %4901 = vmatprep.mubr.msk.f32.mxu0 %vm6779_vm0, %v8283_v1  ;;  %v413_v31 = vld [vmem:[#allocation11 + $0x70] sm:$0xff]  ;;  %v416_v32 = vld [vmem:[#allocation11 + $0x88] sm:$0xff]  ;;  %v4918_v33 = vpack.c.bf16 %v414_v27, %v411_v26 }
 0x19b   :  { %4943 = vmatprep.subr.bf16.mxu0 %v6778_v0  ;;  %v4920_v34 = vpack.c.bf16 %v421_v30, %v418_v29  ;;  %v417_v35 = vld [vmem:[#allocation11 + $0x90] sm:$0xff]  ;;  %v420_v36 = vld [vmem:[#allocation11 + $0xa8] sm:$0xff]  ;;  %v4947_v37 = vpack.c.bf16 %v416_v32, %v413_v31  ;;  %v427_v39 = vld [vmem:[#allocation11 + $0xe0] sm:$0xff] }
 0x19c   :  { %4915 = vmatpush1.bf16.msra.mxu1 %v4914_v22  ;;  %v424_v38 = vld [vmem:[#allocation11 + $0xc8] sm:$0xff]  ;;  %v419_v40 = vld [vmem:[#allocation11 + $0xa0] sm:$0xff]  ;;  %v422_v41 = vld [vmem:[#allocation11 + $0xb8] sm:$0xff]  ;;  %v4922_v42 = vpack.c.bf16 %v420_v36, %v417_v35 }
 0x19d   :  { %4917 = vmatprep.subr.bf16.mxu1 %v4916_v25  ;;  %v4924_v43 = vpack.c.bf16 %v427_v39, %v424_v38  ;;  %v423_v44 = vld [vmem:[#allocation11 + $0xc0] sm:$0xff]  ;;  %v426_v45 = vld [vmem:[#allocation11 + $0xd8] sm:$0xff]  ;;  %v4950_v46 = vpack.c.bf16 %v422_v41, %v419_v40  ;;  %v433_v48 = vld [vmem:[#allocation11 + $0x110] sm:$0xff] }
 0x19e   :  { %4945 = vmatpush3.bf16.msra.mxu0 %v4944_v28  ;;  %v430_v47 = vld [vmem:[#allocation11 + $0xf8] sm:$0xff]  ;;  %v425_v49 = vld [vmem:[#allocation11 + $0xd0] sm:$0xff]  ;;  %v428_v50 = vld [vmem:[#allocation11 + $0xe8] sm:$0xff]  ;;  %v4926_v51 = vpack.c.bf16 %v426_v45, %v423_v44 }
 0x19f   :  { %4946 = vmatprep.subr.bf16.mxu0 %v6778_v0  ;;  %v4928_v52 = vpack.c.bf16 %v433_v48, %v430_v47  ;;  %v429_v53 = vld [vmem:[#allocation11 + $0xf0] sm:$0xff]  ;;  %v432_v54 = vld [vmem:[#allocation11 + $0x108] sm:$0xff]  ;;  %v4953_v55 = vpack.c.bf16 %v428_v50, %v425_v49  ;;  %v439_v57 = vld [vmem:[#allocation11 + $0x140] sm:$0xff] }
 0x1a0   :  { %4919 = vmatpush1.bf16.msra.mxu1 %v4918_v33  ;;  %v436_v56 = vld [vmem:[#allocation11 + $0x128] sm:$0xff]  ;;  %v431_v58 = vld [vmem:[#allocation11 + $0x100] sm:$0xff]  ;;  %v434_v59 = vld [vmem:[#allocation11 + $0x118] sm:$0xff]  ;;  %v4930_v60 = vpack.c.bf16 %v432_v54, %v429_v53 }
 0x1a1   :  { %4921 = vmatprep.subr.bf16.mxu1 %v4920_v34  ;;  %v4932_v61 = vpack.c.bf16 %v439_v57, %v436_v56  ;;  %v435_v62 = vld [vmem:[#allocation11 + $0x120] sm:$0xff]  ;;  %v438_v63 = vld [vmem:[#allocation11 + $0x138] sm:$0xff]  ;;  %v4956_v2 = vpack.c.bf16 %v434_v59, %v431_v58  ;;  %v437_v3 = vld [vmem:[#allocation11 + $0x130] sm:$0xff] }
 0x1a2   :  { %4948 = vmatpush3.bf16.msra.mxu0 %v4947_v37  ;;  %v440_v4 = vld [vmem:[#allocation11 + $0x148] sm:$0xff]  ;;  %v4934_v5 = vpack.c.bf16 %v438_v63, %v435_v62  ;;  %v442_v7 = vld [vmem:[#allocation11 + $0x158] sm:$0xff]  ;;  %v445_v8 = vld [vmem:[#allocation11 + $0x170] sm:$0xff] }
 0x1a3   :  { %4949 = vmatprep.subr.bf16.mxu0 %v6778_v0  ;;  %v4959_v6 = vpack.c.bf16 %v440_v4, %v437_v3  ;;  %v4936_v9 = vpack.c.bf16 %v445_v8, %v442_v7  ;;  %v441_v10 = vld [vmem:[#allocation11 + $0x150] sm:$0xff]  ;;  %v444_v11 = vld [vmem:[#allocation11 + $0x168] sm:$0xff]  ;;  %v443_v12 = vld [vmem:[#allocation11 + $0x160] sm:$0xff] }
 0x1a4   :  { %4923 = vmatpush1.bf16.msra.mxu1 %v4922_v42  ;;  %v4938_v13 = vpack.c.bf16 %v444_v11, %v441_v10  ;;  %v446_v14 = vld [vmem:[#allocation11 + $0x178] sm:$0xff]  ;;  %v609_v16 = vld [vmem:[#allocation14 + $0x8] sm:$0xff]  ;;  %v608_v22 = vld [vmem:[#allocation14] sm:$0xff] }
 0x1a5   :  { %4925 = vmatprep.subr.bf16.mxu1 %v4924_v43  ;;  %v4962_v15 = vpack.c.bf16 %v446_v14, %v443_v12  ;;  %v615_v17 = vld [vmem:[#allocation14 + $0x38] sm:$0xff]  ;;  %v809_v20 = vld [vmem:[#allocation14 + $0x648] sm:$0xff]  ;;  %v614_v23 = vld [vmem:[#allocation14 + $0x30] sm:$0xff] }
 0x1a6   :  { %4951 = vmatpush3.bf16.msra.mxu0 %v4950_v46  ;;  %v4964_v18 = vpack.c.bf16 %v615_v17, %v609_v16  ;;  %v803_v19 = vld [vmem:[#allocation14 + $0x618] sm:$0xff]  ;;  %v621_v24 = vld [vmem:[#allocation14 + $0x68] sm:$0xff]  ;;  %v802_v25 = vld [vmem:[#allocation14 + $0x610] sm:$0xff]  ;;  %v4966_v33 = vpack.c.bf16 %v614_v23, %v608_v22 }
 0x1a7   :  { %4952 = vmatprep.subr.bf16.mxu0 %v6778_v0  ;;  %v5124_v21 = vpack.c.bf16 %v809_v20, %v803_v19  ;;  %v808_v26 = vld [vmem:[#allocation14 + $0x640] sm:$0xff]  ;;  %v627_v28 = vld [vmem:[#allocation14 + $0x98] sm:$0xff]  ;;  %v821_v30 = vld [vmem:[#allocation14 + $0x6a8] sm:$0xff] }
 0x1a8   :  { %4927 = vmatpush1.bf16.msra.mxu1 %v4926_v51  ;;  %v815_v29 = vld [vmem:[#allocation14 + $0x678] sm:$0xff]  ;;  %v620_v34 = vld [vmem:[#allocation14 + $0x60] sm:$0xff]  ;;  %v626_v35 = vld [vmem:[#allocation14 + $0x90] sm:$0xff]  ;;  %v5126_v36 = vpack.c.bf16 %v808_v26, %v802_v25  ;;  %v4968_v38 = vpack.c.bf16 %v627_v28, %v621_v24 }
 0x1a9   :  { %4929 = vmatprep.subr.bf16.mxu1 %v4928_v52  ;;  %v633_v39 = vld [vmem:[#allocation14 + $0xc8] sm:$0xff]  ;;  %v5128_v40 = vpack.c.bf16 %v821_v30, %v815_v29  ;;  %v814_v41 = vld [vmem:[#allocation14 + $0x670] sm:$0xff]  ;;  %v820_v42 = vld [vmem:[#allocation14 + $0x6a0] sm:$0xff]  ;;  %v4970_v46 = vpack.c.bf16 %v626_v35, %v620_v34 }
 0x1aa   :  { %4954 = vmatpush3.bf16.msra.mxu0 %v4953_v55  ;;  %v639_v43 = vld [vmem:[#allocation14 + $0xf8] sm:$0xff]  ;;  %v833_v45 = vld [vmem:[#allocation14 + $0x708] sm:$0xff]  ;;  %v632_v47 = vld [vmem:[#allocation14 + $0xc0] sm:$0xff]  ;;  %v5130_v49 = vpack.c.bf16 %v820_v42, %v814_v41 }
 0x1ab   :  { %4955 = vmatprep.subr.bf16.mxu0 %v6778_v0  ;;  %v827_v44 = vld [vmem:[#allocation14 + $0x6d8] sm:$0xff]  ;;  %v638_v48 = vld [vmem:[#allocation14 + $0xf0] sm:$0xff]  ;;  %v4972_v50 = vpack.c.bf16 %v639_v43, %v633_v39  ;;  %v645_v51 = vld [vmem:[#allocation14 + $0x128] sm:$0xff] }
 0x1ac   :  { %4931 = vmatpush1.bf16.msra.mxu1 %v4930_v60  ;;  %v5132_v52 = vpack.c.bf16 %v833_v45, %v827_v44  ;;  %v826_v53 = vld [vmem:[#allocation14 + $0x6d0] sm:$0xff]  ;;  %v832_v54 = vld [vmem:[#allocation14 + $0x700] sm:$0xff]  ;;  %v651_v55 = vld [vmem:[#allocation14 + $0x158] sm:$0xff]  ;;  %v4974_v58 = vpack.c.bf16 %v638_v48, %v632_v47 }
 0x1ad   :  { %4933 = vmatprep.subr.bf16.mxu1 %v4932_v61  ;;  %v839_v56 = vld [vmem:[#allocation14 + $0x738] sm:$0xff]  ;;  %v845_v57 = vld [vmem:[#allocation14 + $0x768] sm:$0xff]  ;;  %v644_v59 = vld [vmem:[#allocation14 + $0x120] sm:$0xff]  ;;  %v5134_v61 = vpack.c.bf16 %v832_v54, %v826_v53  ;;  %v4976_v62 = vpack.c.bf16 %v651_v55, %v645_v51 }
 0x1ae   :  { %4957 = vmatpush3.bf16.msra.mxu0 %v4956_v2  ;;  %v650_v60 = vld [vmem:[#allocation14 + $0x150] sm:$0xff]  ;;  %v657_v63 = vld [vmem:[#allocation14 + $0x188] sm:$0xff]  ;;  %v5136_v2 = vpack.c.bf16 %v845_v57, %v839_v56  ;;  %v844_v4 = vld [vmem:[#allocation14 + $0x760] sm:$0xff] }
 0x1af   :  { %4958 = vmatprep.subr.bf16.mxu0 %v6778_v0  ;;  %v838_v3 = vld [vmem:[#allocation14 + $0x730] sm:$0xff]  ;;  %v857_v7 = vld [vmem:[#allocation14 + $0x7c8] sm:$0xff]  ;;  %v4978_v8 = vpack.c.bf16 %v650_v60, %v644_v59  ;;  %v856_v16 = vld [vmem:[#allocation14 + $0x7c0] sm:$0xff] }
 0x1b0   :  { %4935 = vmatpush1.bf16.msra.mxu1 %v4934_v5  ;;  %v663_v5 = vld [vmem:[#allocation14 + $0x1b8] sm:$0xff]  ;;  %v662_v10 = vld [vmem:[#allocation14 + $0x1b0] sm:$0xff]  ;;  %v5138_v11 = vpack.c.bf16 %v844_v4, %v838_v3  ;;  %v869_v19 = vld [vmem:[#allocation14 + $0x828] sm:$0xff] }
 0x1b1   :  { %4937 = vmatprep.subr.bf16.mxu1 %v4936_v9  ;;  %v656_v9 = vld [vmem:[#allocation14 + $0x180] sm:$0xff]  ;;  %v4980_v12 = vpack.c.bf16 %v663_v5, %v657_v63  ;;  %v675_v17 = vld [vmem:[#allocation14 + $0x218] sm:$0xff]  ;;  %v681_v24 = vld [vmem:[#allocation14 + $0x248] sm:$0xff] }
 0x1b2   :  { %4960 = vmatpush3.bf16.msra.mxu0 %v4959_v6  ;;  %v851_v6 = vld [vmem:[#allocation14 + $0x798] sm:$0xff]  ;;  %v4982_v20 = vpack.c.bf16 %v662_v10, %v656_v9  ;;  %v862_v26 = vld [vmem:[#allocation14 + $0x7f0] sm:$0xff]  ;;  %v881_v30 = vld [vmem:[#allocation14 + $0x888] sm:$0xff] }
 0x1b3   :  { %4961 = vmatprep.subr.bf16.mxu0 %v6778_v0  ;;  %v4694_v0 = vld [vmem:[#allocation10] ss:$0 sm:$0xff]  ;;  %v5140_v14 = vpack.c.bf16 %v857_v7, %v851_v6  ;;  %v686_v35 = vld [vmem:[#allocation14 + $0x270] sm:$0xff]  ;;  %v693_v39 = vld [vmem:[#allocation14 + $0x2a8] sm:$0xff] }
 0x1b4   :  { %4939 = vmatpush1.bf16.msra.mxu1 %v4938_v13  ;;  %v669_v13 = vld [vmem:[#allocation14 + $0x1e8] sm:$0xff]  ;;  %v687_v28 = vld [vmem:[#allocation14 + $0x278] sm:$0xff]  ;;  %v692_v44 = vld [vmem:[#allocation14 + $0x2a0] sm:$0xff] }
 0x1b5   :  { %4965 = vmatprep.subr.bf16.mxu1 %v4964_v18  ;;  %v863_v18 = vld [vmem:[#allocation14 + $0x7f8] sm:$0xff]  ;;  %v4984_v23 = vpack.c.bf16 %v675_v17, %v669_v13  ;;  %v4988_v34 = vpack.c.bf16 %v687_v28, %v681_v24  ;;  %v698_v45 = vld [vmem:[#allocation14 + $0x2d0] sm:$0xff]  ;;  %v716_v56 = vld [vmem:[#allocation14 + $0x360] sm:$0xff] }
 0x1b6   :  { %4963 = vmatpush3.bf16.msra.mxu0 %v4962_v15  ;;  %v850_v15 = vld [vmem:[#allocation14 + $0x790] sm:$0xff]  ;;  %v5144_v25 = vpack.c.bf16 %v869_v19, %v863_v18  ;;  %v875_v29 = vld [vmem:[#allocation14 + $0x858] sm:$0xff]  ;;  %v4994_v48 = vpack.c.bf16 %v698_v45, %v692_v44  ;;  %v740_v6 = vld [vmem:[#allocation14 + $0x420] sm:$0xff] }
 0x1b7   :  { %5125 = vmatprep.subr.bf16.mxu0 %v5124_v21  ;;  %v668_v21 = vld [vmem:[#allocation14 + $0x1e0] sm:$0xff]  ;;  %v5142_v22 = vpack.c.bf16 %v856_v16, %v850_v15  ;;  %v711_v47 = vld [vmem:[#allocation14 + $0x338] sm:$0xff]  ;;  %v710_v51 = vld [vmem:[#allocation14 + $0x330] sm:$0xff] }
 0x1b8   :  { %v723_v53 = vld [vmem:[#allocation14 + $0x398] sm:$0xff]  ;;  %v722_v57 = vld [vmem:[#allocation14 + $0x390] sm:$0xff]  ;;  %v764_v18 = vld [vmem:[#allocation14 + $0x4e0] sm:$0xff] }
 0x1b9   :  { %v735_v59 = vld [vmem:[#allocation14 + $0x3f8] sm:$0xff]  ;;  %v5002_v60 = vpack.c.bf16 %v722_v57, %v716_v56  ;;  %v734_v63 = vld [vmem:[#allocation14 + $0x3f0] sm:$0xff]  ;;  %v800_v56 = vld [vmem:[#allocation14 + $0x600] sm:$0xff] }
 0x1ba   :  { %v747_v3 = vld [vmem:[#allocation14 + $0x458] sm:$0xff]  ;;  %v746_v7 = vld [vmem:[#allocation14 + $0x450] sm:$0xff] }
 0x1bb   :  { %v759_v9 = vld [vmem:[#allocation14 + $0x4b8] sm:$0xff]  ;;  %v5010_v10 = vpack.c.bf16 %v746_v7, %v740_v6  ;;  %v758_v13 = vld [vmem:[#allocation14 + $0x4b0] sm:$0xff]  ;;  %v825_v6 = vld [vmem:[#allocation14 + $0x6c8] sm:$0xff] }
 0x1bc   :  { %v771_v15 = vld [vmem:[#allocation14 + $0x518] sm:$0xff]  ;;  %v770_v19 = vld [vmem:[#allocation14 + $0x510] sm:$0xff] }
 0x1bd   :  { %v782_v24 = vld [vmem:[#allocation14 + $0x570] sm:$0xff]  ;;  %v447_v45 = vld [vmem:[#allocation13] sm:$0x7] }
 0x1be   :  { %v806_v57 = vld [vmem:[#allocation14 + $0x630] sm:$0xff]  ;;  %v831_v7 = vld [vmem:[#allocation14 + $0x6f8] sm:$0xff] }
 0x26c   :  { %v394_v27 = vpop.f32.mrb[0].mxu0 }
 0x26d   :  { %v395_v31 = vadd.f32 %v4694_v0, %v394_v27  ;;  %v4868_v32 = vpop.f32.mrb[1].mxu0  ;;  %v674_v0 = vld [vmem:[#allocation14 + $0x210] sm:$0xff]  ;;  %v868_v27 = vld [vmem:[#allocation14 + $0x820] sm:$0xff] }
 0x26e   :  { %v680_v32 = vld [vmem:[#allocation14 + $0x240] sm:$0xff] }
 0x26f   :  { %v398_v37 = vmax.f32 %v395_v31, 0.0  ;;  %v4986_v31 = vpack.c.bf16 %v674_v0, %v668_v21  ;;  %v4990_v41 = vpack.c.bf16 %v686_v35, %v680_v32  ;;  %v783_v21 = vld [vmem:[#allocation14 + $0x578] sm:$0xff]  ;;  %v5018_v0 = vpack.c.bf16 %v770_v19, %v764_v18  ;;  %v794_v35 = vld [vmem:[#allocation14 + $0x5d0] sm:$0xff]  ;;  %v849_v18 = vld [vmem:[#allocation14 + $0x788] sm:$0xff] }
 0x270   :  { %v855_v19 = vld [vmem:[#allocation14 + $0x7b8] sm:$0xff] }
 0x271   :  { %529 = vmatmul.mubr.f32.vlgmr.msra.gmra.mrb[0].mxu1 %v398_v37  ;;  %4902 = vmatmul.mubr.f32.vlgmr.msra.gmra.mrb[2].mxu0 %v398_v37  ;;  %v874_v37 = vld [vmem:[#allocation14 + $0x850] sm:$0xff] }
 0x272   :  { %4967 = vmatpush1.bf16.msra.mxu1 %v4966_v33  ;;  %5127 = vmatpush1.bf16.msra.mxu0 %v5126_v36  ;;  %v5146_v33 = vpack.c.bf16 %v868_v27, %v862_v26  ;;  %v5148_v36 = vpack.c.bf16 %v881_v30, %v875_v29  ;;  %v887_v26 = vld [vmem:[#allocation14 + $0x8b8] sm:$0xff]  ;;  %v893_v27 = vld [vmem:[#allocation14 + $0x8e8] sm:$0xff] }
 0x273   :  { %4969 = vmatprep.subr.bf16.mxu1 %v4968_v38  ;;  %5129 = vmatprep.subr.bf16.mxu0 %v5128_v40  ;;  %v880_v38 = vld [vmem:[#allocation14 + $0x880] sm:$0xff]  ;;  %v699_v40 = vld [vmem:[#allocation14 + $0x2d8] sm:$0xff]  ;;  %v5152_v28 = vpack.c.bf16 %v893_v27, %v887_v26  ;;  %v789_v29 = vld [vmem:[#allocation14 + $0x5a8] sm:$0xff] }
 0x274   :  { %1205 = vmatprep.mubr.f32.mxu0 %v8283_v1  ;;  %v5150_v42 = vpack.c.bf16 %v880_v38, %v874_v37  ;;  %v4992_v43 = vpack.c.bf16 %v699_v40, %v693_v39  ;;  %v795_v30 = vld [vmem:[#allocation14 + $0x5d8] sm:$0xff]  ;;  %v801_v38 = vld [vmem:[#allocation14 + $0x608] sm:$0xff]  ;;  %v860_v27 = vld [vmem:[#allocation14 + $0x7e0] sm:$0xff] }
 0x275   :  { %v5024_v32 = vpack.c.bf16 %v795_v30, %v789_v29  ;;  %v807_v39 = vld [vmem:[#allocation14 + $0x638] sm:$0xff]  ;;  %v873_v29 = vld [vmem:[#allocation14 + $0x848] sm:$0xff] }
 0x276   :  { %4971 = vmatpush1.bf16.msra.mxu1 %v4970_v46  ;;  %5131 = vmatpush1.bf16.msra.mxu0 %v5130_v49  ;;  %v705_v46 = vld [vmem:[#allocation14 + $0x308] sm:$0xff]  ;;  %v5028_v40 = vpack.c.bf16 %v807_v39, %v801_v38  ;;  %v879_v30 = vld [vmem:[#allocation14 + $0x878] sm:$0xff]  ;;  %v884_v39 = vld [vmem:[#allocation14 + $0x8a0] sm:$0xff] }
 0x277   :  { %4973 = vmatprep.subr.bf16.mxu1 %v4972_v50  ;;  %5133 = vmatprep.subr.bf16.mxu0 %v5132_v52  ;;  %v4996_v49 = vpack.c.bf16 %v711_v47, %v705_v46  ;;  %v704_v50 = vld [vmem:[#allocation14 + $0x300] sm:$0xff]  ;;  %v717_v52 = vld [vmem:[#allocation14 + $0x368] sm:$0xff] }
 0x278   :  { %v4998_v54 = vpack.c.bf16 %v710_v51, %v704_v50  ;;  %v5000_v55 = vpack.c.bf16 %v723_v53, %v717_v52 }
 0x27a   :  { %4975 = vmatpush1.bf16.msra.mxu1 %v4974_v58  ;;  %5135 = vmatpush1.bf16.msra.mxu0 %v5134_v61  ;;  %v729_v58 = vld [vmem:[#allocation14 + $0x3c8] sm:$0xff] }
 0x27b   :  { %4977 = vmatprep.subr.bf16.mxu1 %v4976_v62  ;;  %5137 = vmatprep.subr.bf16.mxu0 %v5136_v2  ;;  %v5004_v61 = vpack.c.bf16 %v735_v59, %v729_v58  ;;  %v728_v62 = vld [vmem:[#allocation14 + $0x3c0] sm:$0xff]  ;;  %v741_v2 = vld [vmem:[#allocation14 + $0x428] sm:$0xff] }
 0x27c   :  { %v5006_v4 = vpack.c.bf16 %v734_v63, %v728_v62  ;;  %v5008_v5 = vpack.c.bf16 %v747_v3, %v741_v2  ;;  %v813_v59 = vld [vmem:[#allocation14 + $0x668] sm:$0xff]  ;;  %v5030_v63 = vpack.c.bf16 %v806_v57, %v800_v56  ;;  %v628_v56 = vld [vmem:[#allocation14 + $0xa0] sm:$0xff]  ;;  %v635_v57 = vld [vmem:[#allocation14 + $0xd8] sm:$0xff] }
 0x27e   :  { %4979 = vmatpush1.bf16.msra.mxu1 %v4978_v8  ;;  %5139 = vmatpush1.bf16.msra.mxu0 %v5138_v11  ;;  %v753_v8 = vld [vmem:[#allocation14 + $0x488] sm:$0xff] }
 0x27f   :  { %4981 = vmatprep.subr.bf16.mxu1 %v4980_v12  ;;  %5141 = vmatprep.subr.bf16.mxu0 %v5140_v14  ;;  %v5012_v11 = vpack.c.bf16 %v759_v9, %v753_v8  ;;  %v752_v12 = vld [vmem:[#allocation14 + $0x480] sm:$0xff]  ;;  %v765_v14 = vld [vmem:[#allocation14 + $0x4e8] sm:$0xff]  ;;  %v5036_v9 = vpack.c.bf16 %v831_v7, %v825_v6 }
 0x280   :  { %v5014_v16 = vpack.c.bf16 %v758_v13, %v752_v12  ;;  %v5016_v17 = vpack.c.bf16 %v771_v15, %v765_v14  ;;  %v837_v12 = vld [vmem:[#allocation14 + $0x728] sm:$0xff]  ;;  %v843_v13 = vld [vmem:[#allocation14 + $0x758] sm:$0xff] }
 0x281   :  { %v5040_v15 = vpack.c.bf16 %v843_v13, %v837_v12 }
 0x282   :  { %4983 = vmatpush1.bf16.msra.mxu1 %v4982_v20  ;;  %5143 = vmatpush1.bf16.msra.mxu0 %v5142_v22  ;;  %v777_v20 = vld [vmem:[#allocation14 + $0x548] sm:$0xff] }
 0x283   :  { %4985 = vmatprep.subr.bf16.mxu1 %v4984_v23  ;;  %5145 = vmatprep.subr.bf16.mxu0 %v5144_v25  ;;  %v5020_v22 = vpack.c.bf16 %v783_v21, %v777_v20  ;;  %v776_v23 = vld [vmem:[#allocation14 + $0x540] sm:$0xff]  ;;  %v5044_v21 = vpack.c.bf16 %v855_v19, %v849_v18 }
 0x284   :  { %v5022_v25 = vpack.c.bf16 %v782_v24, %v776_v23  ;;  %v861_v23 = vld [vmem:[#allocation14 + $0x7e8] sm:$0xff]  ;;  %v867_v24 = vld [vmem:[#allocation14 + $0x818] sm:$0xff] }
 0x285   :  { %v5048_v26 = vpack.c.bf16 %v867_v24, %v861_v23 }
 0x286   :  { %4987 = vmatpush1.bf16.msra.mxu1 %v4986_v31  ;;  %5147 = vmatpush1.bf16.msra.mxu0 %v5146_v33  ;;  %v886_v31 = vld [vmem:[#allocation14 + $0x8b0] sm:$0xff]  ;;  %v892_v33 = vld [vmem:[#allocation14 + $0x8e0] sm:$0xff] }
 0x287   :  { %4989 = vmatprep.subr.bf16.mxu1 %v4988_v34  ;;  %5149 = vmatprep.subr.bf16.mxu0 %v5148_v36  ;;  %v788_v34 = vld [vmem:[#allocation14 + $0x5a0] sm:$0xff]  ;;  %v5154_v36 = vpack.c.bf16 %v892_v33, %v886_v31 }
 0x288   :  { %v5026_v37 = vpack.c.bf16 %v794_v35, %v788_v34  ;;  %v872_v33 = vld [vmem:[#allocation14 + $0x840] sm:$0xff]  ;;  %v878_v34 = vld [vmem:[#allocation14 + $0x870] sm:$0xff]  ;;  %v885_v35 = vld [vmem:[#allocation14 + $0x8a8] sm:$0xff] }
 0x28a   :  { %4991 = vmatpush1.bf16.msra.mxu1 %v4990_v41  ;;  %5151 = vmatpush1.bf16.msra.mxu0 %v5150_v42  ;;  %v449_v41 = vlaneseq }
 0x28b   :  { %4993 = vmatprep.subr.bf16.mxu1 %v4992_v43  ;;  %5153 = vmatprep.subr.bf16.mxu0 %v5152_v28  ;;  %v866_v28 = vld [vmem:[#allocation14 + $0x810] sm:$0xff] }
 0x28c   :  { %v7157_v42 = vshrl.u32 %v449_v41, 7  ;;  %v5050_v31 = vpack.c.bf16 %v866_v28, %v860_v27  ;;  %v611_v41 = vld [vmem:[#allocation14 + $0x18] sm:$0xff]  ;;  %v701_v28 = vld [vmem:[#allocation14 + $0x2e8] sm:$0xff] }
 0x28d   :  { %v695_v27 = vld [vmem:[#allocation14 + $0x2b8] sm:$0xff] }
 0x28e   :  { %4995 = vmatpush1.bf16.msra.mxu1 %v4994_v48  ;;  %5155 = vmatpush1.bf16.msra.mxu0 %v5154_v36  ;;  %v7160_v43 = vsub.s32 0, %v7157_v42  ;;  %v459_v44 = vsub.s32 2, %v7157_v42  ;;  %v7164_v46 = vsub.s32 1, %v7157_v42  ;;  %v891_v36 = vld [vmem:[#allocation14 + $0x8d8] sm:$0xff] }
 0x28f   :  { %4997 = vmatprep.subr.bf16.mxu1 %v4996_v49  ;;  %v5056_v38 = vpack.c.bf16 %v891_v36, %v885_v35  ;;  %v1377_v35 = vld [vmem:[#allocation17 + $0x58] sm:$0xff]  ;;  %v713_v36 = vld [vmem:[#allocation14 + $0x348] sm:$0xff] }
 0x290   :  { %8317 = vst [vmem:[#allocation47_spill] sm:$0xff] %v7160_v43  ;;  %v452_v47 = vrot.slane %v447_v45, %v7160_v43  ;;  %v460_v48 = vrot.slane %v447_v45, %v459_v44  ;;  %v456_v49 = vrot.slane %v447_v45, %v7164_v46  ;;  %v617_v45 = vld [vmem:[#allocation14 + $0x48] sm:$0xff] }
 0x292   :  { %4999 = vmatpush1.bf16.msra.mxu1 %v4998_v54 }
 0x293   :  { %5001 = vmatprep.subr.bf16.mxu1 %v5000_v55 }
 0x296   :  { %5003 = vmatpush1.bf16.msra.mxu1 %v5002_v60  ;;  %v819_v60 = vld [vmem:[#allocation14 + $0x698] sm:$0xff] }
 0x297   :  { %5005 = vmatprep.subr.bf16.mxu1 %v5004_v61  ;;  %v5032_v3 = vpack.c.bf16 %v819_v60, %v813_v59 }
 0x29a   :  { %5007 = vmatpush1.bf16.msra.mxu1 %v5006_v4  ;;  %v812_v4 = vld [vmem:[#allocation14 + $0x660] sm:$0xff] }
 0x29b   :  { %5009 = vmatprep.subr.bf16.mxu1 %v5008_v5  ;;  %v818_v5 = vld [vmem:[#allocation14 + $0x690] sm:$0xff] }
 0x29c   :  { %v5034_v8 = vpack.c.bf16 %v818_v5, %v812_v4  ;;  %v647_v4 = vld [vmem:[#allocation14 + $0x138] sm:$0xff]  ;;  %v653_v5 = vld [vmem:[#allocation14 + $0x168] sm:$0xff] }
 0x29d   :  { %v5072_v7 = vpack.c.bf16 %v653_v5, %v647_v4  ;;  %v1406_v5 = vld [vmem:[#allocation17 + $0x140] sm:$0xff] }
 0x29e   :  { %5011 = vmatpush1.bf16.msra.mxu1 %v5010_v10  ;;  %v824_v10 = vld [vmem:[#allocation14 + $0x6c0] sm:$0xff] }
 0x29f   :  { %5013 = vmatprep.subr.bf16.mxu1 %v5012_v11  ;;  %v830_v11 = vld [vmem:[#allocation14 + $0x6f0] sm:$0xff] }
 0x2a0   :  { %v5038_v14 = vpack.c.bf16 %v830_v11, %v824_v10  ;;  %v659_v10 = vld [vmem:[#allocation14 + $0x198] sm:$0xff]  ;;  %v665_v11 = vld [vmem:[#allocation14 + $0x1c8] sm:$0xff] }
 0x2a1   :  { %v5076_v13 = vpack.c.bf16 %v665_v11, %v659_v10  ;;  %v1427_v10 = vld [vmem:[#allocation17 + $0x1e8] sm:$0xff]  ;;  %v1437_v11 = vld [vmem:[#allocation17 + $0x238] sm:$0xff] }
 0x2a2   :  { %5015 = vmatpush1.bf16.msra.mxu1 %v5014_v16  ;;  %v836_v16 = vld [vmem:[#allocation14 + $0x720] sm:$0xff] }
 0x2a3   :  { %5017 = vmatprep.subr.bf16.mxu1 %v5016_v17  ;;  %v842_v17 = vld [vmem:[#allocation14 + $0x750] sm:$0xff] }
 0x2a4   :  { %v5042_v20 = vpack.c.bf16 %v842_v17, %v836_v16  ;;  %v671_v16 = vld [vmem:[#allocation14 + $0x1f8] sm:$0xff]  ;;  %v677_v17 = vld [vmem:[#allocation14 + $0x228] sm:$0xff] }
 0x2a5   :  { %v5080_v19 = vpack.c.bf16 %v677_v17, %v671_v16  ;;  %v1447_v16 = vld [vmem:[#allocation17 + $0x288] sm:$0xff]  ;;  %v1457_v17 = vld [vmem:[#allocation17 + $0x2d8] sm:$0xff] }
 0x2a6   :  { %5019 = vmatpush1.bf16.msra.mxu1 %v5018_v0  ;;  %v848_v0 = vld [vmem:[#allocation14 + $0x780] sm:$0xff] }
 0x2a7   :  { %5021 = vmatprep.subr.bf16.mxu1 %v5020_v22  ;;  %v854_v22 = vld [vmem:[#allocation14 + $0x7b0] sm:$0xff] }
 0x2aa   :  { %5023 = vmatpush1.bf16.msra.mxu1 %v5022_v25  ;;  %v5046_v25 = vpack.c.bf16 %v854_v22, %v848_v0  ;;  %v683_v0 = vld [vmem:[#allocation14 + $0x258] sm:$0xff]  ;;  %v689_v22 = vld [vmem:[#allocation14 + $0x288] sm:$0xff] }
 0x2ab   :  { %5025 = vmatprep.subr.bf16.mxu1 %v5024_v32  ;;  %v5052_v32 = vpack.c.bf16 %v879_v30, %v873_v29  ;;  %v5084_v24 = vpack.c.bf16 %v689_v22, %v683_v0  ;;  %v694_v30 = vld [vmem:[#allocation14 + $0x2b0] sm:$0xff]  ;;  %v749_v22 = vld [vmem:[#allocation14 + $0x468] sm:$0xff] }
 0x2ae   :  { %5027 = vmatpush1.bf16.msra.mxu1 %v5026_v37  ;;  %v5054_v37 = vpack.c.bf16 %v878_v34, %v872_v33  ;;  %v700_v33 = vld [vmem:[#allocation14 + $0x2e0] sm:$0xff]  ;;  %v707_v34 = vld [vmem:[#allocation14 + $0x318] sm:$0xff] }
 0x2af   :  { %5029 = vmatprep.subr.bf16.mxu1 %v5028_v40  ;;  %v890_v40 = vld [vmem:[#allocation14 + $0x8d0] sm:$0xff] }
 0x344   :  { %v530_v50 = vpop.f32.mrb[0].mxu1  ;;  %v601_v51 = vpop.f32.mrb[2].mxu0 }
 0x345   :  { %v531_v52 = vadd.f32 %v530_v50, %v452_v47  ;;  %v602_v53 = vadd.f32 %v601_v51, %v460_v48  ;;  %v532_v54 = vpop.f32.mrb[1].mxu1  ;;  %v4903_v55 = vpop.f32.mrb[3].mxu0  ;;  %v5058_v47 = vpack.c.bf16 %v890_v40, %v884_v39  ;;  %v5060_v48 = vpack.c.bf16 %v617_v45, %v611_v41  ;;  %v616_v50 = vld [vmem:[#allocation14 + $0x40] sm:$0xff]  ;;  %v623_v51 = vld [vmem:[#allocation14 + $0x78] sm:$0xff]  ;;  %v706_v45 = vld [vmem:[#allocation14 + $0x310] sm:$0xff] }
 0x346   :  { %v533_v58 = vadd.f32 %v532_v54, %v456_v49  ;;  %v610_v49 = vld [vmem:[#allocation14 + $0x10] sm:$0xff]  ;;  %v5090_v41 = vpack.c.bf16 %v700_v33, %v694_v30 }
 0x347   :  { %v7170_v61 = vmax.f32 %v602_v53, 0.0  ;;  %v7174_v2 = vmax.f32 %v531_v52, 0.0  ;;  %v629_v52 = vld [vmem:[#allocation14 + $0xa8] sm:$0xff]  ;;  %v5062_v53 = vpack.c.bf16 %v616_v50, %v610_v49  ;;  %v622_v55 = vld [vmem:[#allocation14 + $0x70] sm:$0xff]  ;;  %v712_v49 = vld [vmem:[#allocation14 + $0x340] sm:$0xff] }
 0x348   :  { %v7172_v62 = vmax.f32 %v533_v58, 0.0  ;;  %v5064_v54 = vpack.c.bf16 %v629_v52, %v623_v51  ;;  %v641_v58 = vld [vmem:[#allocation14 + $0x108] sm:$0xff]  ;;  %v5066_v59 = vpack.c.bf16 %v628_v56, %v622_v55  ;;  %v1376_v39 = vld [vmem:[#allocation17 + $0x50] sm:$0xff]  ;;  %v1397_v51 = vld [vmem:[#allocation17 + $0xf8] sm:$0xff] }
 0x349   :  { %1206 = vmatmul.mubr.f32.vlgmr.msra.gmra.mrb[4].mxu0 %v7170_v61  ;;  %v5068_v60 = vpack.c.bf16 %v641_v58, %v635_v57  ;;  %v719_v50 = vld [vmem:[#allocation14 + $0x378] sm:$0xff]  ;;  %v725_v52 = vld [vmem:[#allocation14 + $0x3a8] sm:$0xff]  ;;  %v5094_v57 = vpack.c.bf16 %v712_v49, %v706_v45  ;;  %v718_v58 = vld [vmem:[#allocation14 + $0x370] sm:$0xff] }
 0x34a   :  { %992 = vmatprep.mubr.f32.mxu1 %v7172_v62  ;;  %v1396_v55 = vld [vmem:[#allocation17 + $0xf0] sm:$0xff] }
 0x34b   :  { %993 = vmatmul.mubr.f32.vlgmr.msra.gmra.mrb[2].mxu1 %v7174_v2  ;;  %v742_v30 = vld [vmem:[#allocation14 + $0x430] sm:$0xff] }
 0x34c   :  { %5031 = vmatpush1.bf16.msra.mxu1 %v5030_v63  ;;  %1063 = vmatprep.mubr.f32.mxu1 %v8283_v1  ;;  %v634_v63 = vld [vmem:[#allocation14 + $0xd0] sm:$0xff] }
 0x34d   :  { %5033 = vmatprep.subr.bf16.mxu1 %v5032_v3  ;;  %v640_v3 = vld [vmem:[#allocation14 + $0x100] sm:$0xff]  ;;  %v754_v45 = vld [vmem:[#allocation14 + $0x490] sm:$0xff] }
 0x34e   :  { %v5070_v6 = vpack.c.bf16 %v640_v3, %v634_v63  ;;  %v5096_v63 = vpack.c.bf16 %v725_v52, %v719_v50  ;;  %v724_v3 = vld [vmem:[#allocation14 + $0x3a0] sm:$0xff]  ;;  %v773_v50 = vld [vmem:[#allocation14 + $0x528] sm:$0xff] }
 0x34f   :  { %v1486_v52 = vld [vmem:[#allocation17 + $0x3c0] sm:$0xff] }
 0x350   :  { %5035 = vmatpush1.bf16.msra.mxu1 %v5034_v8  ;;  %v646_v8 = vld [vmem:[#allocation14 + $0x130] sm:$0xff] }
 0x351   :  { %5037 = vmatprep.subr.bf16.mxu1 %v5036_v9  ;;  %v652_v9 = vld [vmem:[#allocation14 + $0x160] sm:$0xff] }
 0x352   :  { %v5074_v12 = vpack.c.bf16 %v652_v9, %v646_v8  ;;  %v737_v8 = vld [vmem:[#allocation14 + $0x408] sm:$0xff] }
 0x354   :  { %5039 = vmatpush1.bf16.msra.mxu1 %v5038_v14  ;;  %v658_v14 = vld [vmem:[#allocation14 + $0x190] sm:$0xff] }
 0x355   :  { %5041 = vmatprep.subr.bf16.mxu1 %v5040_v15  ;;  %v664_v15 = vld [vmem:[#allocation14 + $0x1c0] sm:$0xff] }
 0x356   :  { %v5078_v18 = vpack.c.bf16 %v664_v15, %v658_v14  ;;  %v5264_v14 = vpack.c.bf16 %v1437_v11, %v1427_v10  ;;  %v1436_v15 = vld [vmem:[#allocation17 + $0x230] sm:$0xff]  ;;  %v1506_v11 = vld [vmem:[#allocation17 + $0x460] sm:$0xff] }
 0x358   :  { %5043 = vmatpush1.bf16.msra.mxu1 %v5042_v20  ;;  %v670_v20 = vld [vmem:[#allocation14 + $0x1f0] sm:$0xff] }
 0x359   :  { %5045 = vmatprep.subr.bf16.mxu1 %v5044_v21  ;;  %v676_v21 = vld [vmem:[#allocation14 + $0x220] sm:$0xff] }
 0x35a   :  { %v5082_v23 = vpack.c.bf16 %v676_v21, %v670_v20  ;;  %v736_v20 = vld [vmem:[#allocation14 + $0x400] sm:$0xff]  ;;  %v743_v21 = vld [vmem:[#allocation14 + $0x438] sm:$0xff] }
 0x35c   :  { %5047 = vmatpush1.bf16.msra.mxu1 %v5046_v25  ;;  %v682_v25 = vld [vmem:[#allocation14 + $0x250] sm:$0xff] }
 0x35d   :  { %5049 = vmatprep.subr.bf16.mxu1 %v5048_v26  ;;  %v688_v26 = vld [vmem:[#allocation14 + $0x280] sm:$0xff] }
 0x35e   :  { %v5086_v29 = vpack.c.bf16 %v688_v26, %v682_v25  ;;  %v1456_v25 = vld [vmem:[#allocation17 + $0x2d0] sm:$0xff]  ;;  %v1467_v26 = vld [vmem:[#allocation17 + $0x328] sm:$0xff] }
 0x360   :  { %5051 = vmatpush1.bf16.msra.mxu1 %v5050_v31  ;;  %v1367_v31 = vld [vmem:[#allocation17 + $0x8] sm:$0xff] }
 0x361   :  { %5053 = vmatprep.subr.bf16.mxu1 %v5052_v32  ;;  %v5088_v32 = vpack.c.bf16 %v701_v28, %v695_v27  ;;  %v1477_v27 = vld [vmem:[#allocation17 + $0x378] sm:$0xff] }
 0x364   :  { %5055 = vmatpush1.bf16.msra.mxu1 %v5054_v37  ;;  %v5252_v37 = vpack.c.bf16 %v1377_v35, %v1367_v31  ;;  %v748_v31 = vld [vmem:[#allocation14 + $0x460] sm:$0xff]  ;;  %v5272_v35 = vpack.c.bf16 %v1477_v27, %v1467_v26  ;;  %v619_v26 = vld [vmem:[#allocation14 + $0x58] sm:$0xff] }
 0x365   :  { %5057 = vmatprep.subr.bf16.mxu1 %v5056_v38  ;;  %v1366_v38 = vld [vmem:[#allocation17] sm:$0xff] }
 0x366   :  { %v5254_v40 = vpack.c.bf16 %v1376_v39, %v1366_v38  ;;  %5253 = vmatprep.subr.bf16.mxu0 %v5252_v37  ;;  %v1476_v37 = vld [vmem:[#allocation17 + $0x370] sm:$0xff]  ;;  %v1487_v38 = vld [vmem:[#allocation17 + $0x3c8] sm:$0xff]  ;;  %v1497_v39 = vld [vmem:[#allocation17 + $0x418] sm:$0xff] }
 0x368   :  { %5059 = vmatpush1.bf16.msra.mxu1 %v5058_v47  ;;  %v1387_v47 = vld [vmem:[#allocation17 + $0xa8] sm:$0xff]  ;;  %5255 = vmatpush1.bf16.msra.mxu0 %v5254_v40  ;;  %v5106_v40 = vpack.c.bf16 %v748_v31, %v742_v30  ;;  %v1577_v31 = vld [vmem:[#allocation17 + $0x698] sm:$0xff] }
 0x369   :  { %5061 = vmatprep.subr.bf16.mxu1 %v5060_v48  ;;  %v5092_v48 = vpack.c.bf16 %v713_v36, %v707_v34  ;;  %v761_v34 = vld [vmem:[#allocation14 + $0x4c8] sm:$0xff] }
 0x36a   :  { %v1466_v36 = vld [vmem:[#allocation17 + $0x320] sm:$0xff]  ;;  %v1567_v30 = vld [vmem:[#allocation17 + $0x648] sm:$0xff] }
 0x36b   :  { %1064 = vmatmul.mubr.f32.vlgmr.msra.gmra.mrb[2].mxu1 %v7170_v61  ;;  %v5274_v49 = vpack.c.bf16 %v1476_v37, %v1466_v36  ;;  %v625_v36 = vld [vmem:[#allocation14 + $0x88] sm:$0xff] }
 0x36c   :  { %5063 = vmatpush1.bf16.msra.mxu1 %v5062_v53  ;;  %1134 = vmatprep.mubr.f32.mxu1 %v7172_v62  ;;  %v5256_v53 = vpack.c.bf16 %v1397_v51, %v1387_v47  ;;  %v760_v47 = vld [vmem:[#allocation14 + $0x4c0] sm:$0xff]  ;;  %v5276_v51 = vpack.c.bf16 %v1497_v39, %v1487_v38  ;;  %v631_v38 = vld [vmem:[#allocation14 + $0xb8] sm:$0xff]  ;;  %v5292_v39 = vpack.c.bf16 %v1577_v31, %v1567_v30 }
 0x36d   :  { %5065 = vmatprep.subr.bf16.mxu1 %v5064_v54  ;;  %v1386_v54 = vld [vmem:[#allocation17 + $0xa0] sm:$0xff] }
 0x36e   :  { %v5258_v56 = vpack.c.bf16 %v1396_v55, %v1386_v54  ;;  %5257 = vmatprep.subr.bf16.mxu0 %v5256_v53  ;;  %v1496_v53 = vld [vmem:[#allocation17 + $0x410] sm:$0xff]  ;;  %v5110_v54 = vpack.c.bf16 %v760_v47, %v754_v45  ;;  %v1587_v45 = vld [vmem:[#allocation17 + $0x6e8] sm:$0xff]  ;;  %v1597_v47 = vld [vmem:[#allocation17 + $0x738] sm:$0xff] }
 0x36f   :  { %v1646_v31 = vld [vmem:[#allocation17 + $0x8c0] sm:$0xff] }
 0x370   :  { %5067 = vmatpush1.bf16.msra.mxu1 %v5066_v59  ;;  %v1407_v59 = vld [vmem:[#allocation17 + $0x148] sm:$0xff]  ;;  %5259 = vmatpush1.bf16.msra.mxu0 %v5258_v56 }
 0x371   :  { %5069 = vmatprep.subr.bf16.mxu1 %v5068_v60  ;;  %v1417_v60 = vld [vmem:[#allocation17 + $0x198] sm:$0xff]  ;;  %v766_v56 = vld [vmem:[#allocation14 + $0x4f0] sm:$0xff] }
 0x372   :  { %v5260_v4 = vpack.c.bf16 %v1417_v60, %v1407_v59  ;;  %v779_v59 = vld [vmem:[#allocation14 + $0x558] sm:$0xff]  ;;  %v785_v60 = vld [vmem:[#allocation14 + $0x588] sm:$0xff] }
 0x374   :  { %5071 = vmatpush1.bf16.msra.mxu1 %v5070_v6  ;;  %v1416_v6 = vld [vmem:[#allocation17 + $0x190] sm:$0xff]  ;;  %5261 = vmatprep.subr.bf16.mxu0 %v5260_v4 }
 0x375   :  { %5073 = vmatprep.subr.bf16.mxu1 %v5072_v7  ;;  %v731_v7 = vld [vmem:[#allocation14 + $0x3d8] sm:$0xff]  ;;  %v5262_v9 = vpack.c.bf16 %v1416_v6, %v1406_v5  ;;  %v797_v6 = vld [vmem:[#allocation14 + $0x5e8] sm:$0xff] }
 0x376   :  { %v791_v5 = vld [vmem:[#allocation14 + $0x5b8] sm:$0xff] }
 0x377   :  { %5263 = vmatpush1.bf16.msra.mxu0 %v5262_v9  ;;  %v5116_v9 = vpack.c.bf16 %v785_v60, %v779_v59  ;;  %v1617_v59 = vld [vmem:[#allocation17 + $0x7d8] sm:$0xff] }
 0x378   :  { %5075 = vmatpush1.bf16.msra.mxu1 %v5074_v12  ;;  %v1426_v12 = vld [vmem:[#allocation17 + $0x1e0] sm:$0xff]  ;;  %5265 = vmatprep.subr.bf16.mxu0 %v5264_v14 }
 0x379   :  { %5077 = vmatprep.subr.bf16.mxu1 %v5076_v13  ;;  %v5098_v13 = vpack.c.bf16 %v724_v3, %v718_v58  ;;  %v5266_v0 = vpack.c.bf16 %v1436_v15, %v1426_v12  ;;  %v5278_v58 = vpack.c.bf16 %v1496_v53, %v1486_v52  ;;  %v784_v3 = vld [vmem:[#allocation14 + $0x580] sm:$0xff]  ;;  %v1516_v12 = vld [vmem:[#allocation17 + $0x4b0] sm:$0xff]  ;;  %v637_v52 = vld [vmem:[#allocation14 + $0xe8] sm:$0xff] }
 0x37a   :  { %v5282_v14 = vpack.c.bf16 %v1516_v12, %v1506_v11  ;;  %v1537_v15 = vld [vmem:[#allocation17 + $0x558] sm:$0xff]  ;;  %v1627_v11 = vld [vmem:[#allocation17 + $0x828] sm:$0xff] }
 0x37b   :  { %5267 = vmatpush1.bf16.msra.mxu0 %v5266_v0  ;;  %v5120_v0 = vpack.c.bf16 %v797_v6, %v791_v5  ;;  %v649_v5 = vld [vmem:[#allocation14 + $0x148] sm:$0xff]  ;;  %v1637_v12 = vld [vmem:[#allocation17 + $0x878] sm:$0xff] }
 0x37c   :  { %5079 = vmatpush1.bf16.msra.mxu1 %v5078_v18  ;;  %v5100_v18 = vpack.c.bf16 %v737_v8, %v731_v7  ;;  %v1507_v7 = vld [vmem:[#allocation17 + $0x468] sm:$0xff]  ;;  %v1517_v8 = vld [vmem:[#allocation17 + $0x4b8] sm:$0xff] }
 0x37d   :  { %5081 = vmatprep.subr.bf16.mxu1 %v5080_v19  ;;  %v730_v19 = vld [vmem:[#allocation14 + $0x3d0] sm:$0xff]  ;;  %v5280_v10 = vpack.c.bf16 %v1517_v8, %v1507_v7  ;;  %v655_v7 = vld [vmem:[#allocation14 + $0x178] sm:$0xff] }
 0x37e   :  { %v5102_v28 = vpack.c.bf16 %v736_v20, %v730_v19  ;;  %v1547_v19 = vld [vmem:[#allocation17 + $0x5a8] sm:$0xff]  ;;  %v1557_v20 = vld [vmem:[#allocation17 + $0x5f8] sm:$0xff] }
 0x37f   :  { %v5288_v27 = vpack.c.bf16 %v1557_v20, %v1547_v19  ;;  %v5304_v19 = vpack.c.bf16 %v1637_v12, %v1627_v11  ;;  %v1626_v20 = vld [vmem:[#allocation17 + $0x820] sm:$0xff]  ;;  %v726_v12 = vld [vmem:[#allocation14 + $0x3b0] sm:$0xff] }
 0x380   :  { %5083 = vmatpush1.bf16.msra.mxu1 %v5082_v23  ;;  %v5268_v23 = vpack.c.bf16 %v1457_v17, %v1447_v16  ;;  %v1526_v16 = vld [vmem:[#allocation17 + $0x500] sm:$0xff]  ;;  %v1536_v17 = vld [vmem:[#allocation17 + $0x550] sm:$0xff] }
 0x381   :  { %5085 = vmatprep.subr.bf16.mxu1 %v5084_v24  ;;  %v1446_v24 = vld [vmem:[#allocation17 + $0x280] sm:$0xff] }
 0x382   :  { %v5270_v33 = vpack.c.bf16 %v1456_v25, %v1446_v24  ;;  %5269 = vmatprep.subr.bf16.mxu0 %v5268_v23  ;;  %v796_v23 = vld [vmem:[#allocation14 + $0x5e0] sm:$0xff]  ;;  %v613_v24 = vld [vmem:[#allocation14 + $0x28] sm:$0xff]  ;;  %v5286_v25 = vpack.c.bf16 %v1536_v17, %v1526_v16 }
 0x383   :  { %v661_v16 = vld [vmem:[#allocation14 + $0x1a8] sm:$0xff]  ;;  %v720_v11 = vld [vmem:[#allocation14 + $0x380] sm:$0xff] }
 0x384   :  { %5087 = vmatpush1.bf16.msra.mxu1 %v5086_v29  ;;  %v5104_v29 = vpack.c.bf16 %v749_v22, %v743_v21  ;;  %5271 = vmatpush1.bf16.msra.mxu0 %v5270_v33  ;;  %v790_v22 = vld [vmem:[#allocation14 + $0x5b0] sm:$0xff]  ;;  %v5156_v33 = vpack.c.bf16 %v619_v26, %v613_v24 }
 0x385   :  { %5089 = vmatprep.subr.bf16.mxu1 %v5088_v32  ;;  %v755_v32 = vld [vmem:[#allocation14 + $0x498] sm:$0xff]  ;;  %5273 = vmatprep.subr.bf16.mxu0 %v5272_v35  ;;  %v618_v35 = vld [vmem:[#allocation14 + $0x50] sm:$0xff] }
 0x386   :  { %v666_v26 = vld [vmem:[#allocation14 + $0x1d0] sm:$0xff] }
 0x388   :  { %5091 = vmatpush1.bf16.msra.mxu1 %v5090_v41  ;;  %v5108_v41 = vpack.c.bf16 %v761_v34, %v755_v32  ;;  %5275 = vmatpush1.bf16.msra.mxu0 %v5274_v49  ;;  %v5122_v32 = vpack.c.bf16 %v796_v23, %v790_v22  ;;  %v612_v34 = vld [vmem:[#allocation14 + $0x20] sm:$0xff]  ;;  %v5160_v49 = vpack.c.bf16 %v631_v38, %v625_v36  ;;  %v678_v36 = vld [vmem:[#allocation14 + $0x230] sm:$0xff]  ;;  %v685_v38 = vld [vmem:[#allocation14 + $0x268] sm:$0xff] }
 0x389   :  { %5093 = vmatprep.subr.bf16.mxu1 %v5092_v48  ;;  %v767_v48 = vld [vmem:[#allocation14 + $0x4f8] sm:$0xff]  ;;  %5277 = vmatprep.subr.bf16.mxu0 %v5276_v51  ;;  %v630_v51 = vld [vmem:[#allocation14 + $0xb0] sm:$0xff] }
 0x38a   :  { %v5112_v55 = vpack.c.bf16 %v773_v50, %v767_v48  ;;  %v5158_v48 = vpack.c.bf16 %v618_v35, %v612_v34  ;;  %v624_v50 = vld [vmem:[#allocation14 + $0x80] sm:$0xff] }
 0x38b   :  { %v5162_v60 = vpack.c.bf16 %v630_v51, %v624_v50  ;;  %v1657_v22 = vld [vmem:[#allocation17 + $0x918] sm:$0xff]  ;;  %v1666_v51 = vld [vmem:[#allocation17 + $0x960] sm:$0xff] }
 0x38c   :  { %5095 = vmatpush1.bf16.msra.mxu1 %v5094_v57  ;;  %v772_v57 = vld [vmem:[#allocation14 + $0x520] sm:$0xff]  ;;  %5279 = vmatpush1.bf16.msra.mxu0 %v5278_v58  ;;  %v1607_v58 = vld [vmem:[#allocation17 + $0x788] sm:$0xff] }
 0x38d   :  { %5097 = vmatprep.subr.bf16.mxu1 %v5096_v63  ;;  %v778_v63 = vld [vmem:[#allocation14 + $0x550] sm:$0xff]  ;;  %v5114_v4 = vpack.c.bf16 %v772_v57, %v766_v56  ;;  %5281 = vmatprep.subr.bf16.mxu0 %v5280_v10  ;;  %v1586_v56 = vld [vmem:[#allocation17 + $0x6e0] sm:$0xff]  ;;  %v5300_v8 = vpack.c.bf16 %v1617_v59, %v1607_v58 }
 0x38e   :  { %v5118_v21 = vpack.c.bf16 %v784_v3, %v778_v63  ;;  %v1596_v57 = vld [vmem:[#allocation17 + $0x730] sm:$0xff]  ;;  %v636_v3 = vld [vmem:[#allocation14 + $0xe0] sm:$0xff] }
 0x38f   :  { %v5298_v6 = vpack.c.bf16 %v1596_v57, %v1586_v56  ;;  %v1616_v10 = vld [vmem:[#allocation17 + $0x7d0] sm:$0xff]  ;;  %v672_v35 = vld [vmem:[#allocation14 + $0x200] sm:$0xff] }
 0x390   :  { %5099 = vmatpush1.bf16.msra.mxu1 %v5098_v13  ;;  %v1527_v13 = vld [vmem:[#allocation17 + $0x508] sm:$0xff]  ;;  %5283 = vmatpush1.bf16.msra.mxu0 %v5282_v14  ;;  %v5168_v14 = vpack.c.bf16 %v655_v7, %v649_v5  ;;  %v696_v58 = vld [vmem:[#allocation14 + $0x2c0] sm:$0xff] }
 0x391   :  { %5101 = vmatprep.subr.bf16.mxu1 %v5100_v18  ;;  %v5284_v18 = vpack.c.bf16 %v1537_v15, %v1527_v13  ;;  %v654_v15 = vld [vmem:[#allocation14 + $0x170] sm:$0xff]  ;;  %v708_v5 = vld [vmem:[#allocation14 + $0x320] sm:$0xff]  ;;  %v721_v7 = vld [vmem:[#allocation14 + $0x388] sm:$0xff] }
 0x392   :  { %v702_v59 = vld [vmem:[#allocation14 + $0x2f0] sm:$0xff] }
 0x393   :  { %5285 = vmatprep.subr.bf16.mxu0 %v5284_v18  ;;  %v667_v18 = vld [vmem:[#allocation14 + $0x1d8] sm:$0xff] }
 0x394   :  { %5103 = vmatpush1.bf16.msra.mxu1 %v5102_v28  ;;  %v1546_v28 = vld [vmem:[#allocation17 + $0x5a0] sm:$0xff]  ;;  %5287 = vmatpush1.bf16.msra.mxu0 %v5286_v25  ;;  %v5172_v24 = vpack.c.bf16 %v667_v18, %v661_v16 }
 0x395   :  { %5105 = vmatprep.subr.bf16.mxu1 %v5104_v29  ;;  %v1556_v29 = vld [vmem:[#allocation17 + $0x5f0] sm:$0xff]  ;;  %5289 = vmatprep.subr.bf16.mxu0 %v5288_v27  ;;  %v660_v25 = vld [vmem:[#allocation14 + $0x1a0] sm:$0xff]  ;;  %v673_v27 = vld [vmem:[#allocation14 + $0x208] sm:$0xff] }
 0x396   :  { %v5290_v37 = vpack.c.bf16 %v1556_v29, %v1546_v28  ;;  %v679_v29 = vld [vmem:[#allocation14 + $0x238] sm:$0xff]  ;;  %v732_v16 = vld [vmem:[#allocation14 + $0x3e0] sm:$0xff]  ;;  %v745_v18 = vld [vmem:[#allocation14 + $0x448] sm:$0xff] }
 0x397   :  { %v5176_v34 = vpack.c.bf16 %v679_v29, %v673_v27  ;;  %v756_v27 = vld [vmem:[#allocation14 + $0x4a0] sm:$0xff]  ;;  %v769_v29 = vld [vmem:[#allocation14 + $0x508] sm:$0xff] }
 0x398   :  { %5107 = vmatpush1.bf16.msra.mxu1 %v5106_v40  ;;  %v1566_v40 = vld [vmem:[#allocation17 + $0x640] sm:$0xff]  ;;  %5291 = vmatpush1.bf16.msra.mxu0 %v5290_v37 }
 0x399   :  { %5109 = vmatprep.subr.bf16.mxu1 %v5108_v41  ;;  %v1576_v41 = vld [vmem:[#allocation17 + $0x690] sm:$0xff]  ;;  %5293 = vmatprep.subr.bf16.mxu0 %v5292_v39 }
 0x39a   :  { %v5294_v53 = vpack.c.bf16 %v1576_v41, %v1566_v40  ;;  %v691_v39 = vld [vmem:[#allocation14 + $0x298] sm:$0xff]  ;;  %v5178_v40 = vpack.c.bf16 %v678_v36, %v672_v35  ;;  %v684_v41 = vld [vmem:[#allocation14 + $0x260] sm:$0xff]  ;;  %v781_v35 = vld [vmem:[#allocation14 + $0x568] sm:$0xff] }
 0x39b   :  { %v787_v36 = vld [vmem:[#allocation14 + $0x598] sm:$0xff] }
 0x39c   :  { %5111 = vmatpush1.bf16.msra.mxu1 %v5110_v54  ;;  %v643_v54 = vld [vmem:[#allocation14 + $0x118] sm:$0xff]  ;;  %5295 = vmatpush1.bf16.msra.mxu0 %v5294_v53  ;;  %v697_v53 = vld [vmem:[#allocation14 + $0x2c8] sm:$0xff] }
 0x39d   :  { %5113 = vmatprep.subr.bf16.mxu1 %v5112_v55  ;;  %v5296_v55 = vpack.c.bf16 %v1597_v47, %v1587_v45  ;;  %v5164_v63 = vpack.c.bf16 %v643_v54, %v637_v52  ;;  %v1667_v45 = vld [vmem:[#allocation17 + $0x968] sm:$0xff]  ;;  %v1677_v47 = vld [vmem:[#allocation17 + $0x9b8] sm:$0xff]  ;;  %v1676_v52 = vld [vmem:[#allocation17 + $0x9b0] sm:$0xff] }
 0x39e   :  { %v5312_v50 = vpack.c.bf16 %v1677_v47, %v1667_v45  ;;  %v703_v54 = vld [vmem:[#allocation14 + $0x2f8] sm:$0xff] }
 0x39f   :  { %5297 = vmatprep.subr.bf16.mxu0 %v5296_v55  ;;  %v5314_v55 = vpack.c.bf16 %v1676_v52, %v1666_v51  ;;  %v5184_v57 = vpack.c.bf16 %v703_v54, %v697_v53  ;;  %v799_v45 = vld [vmem:[#allocation14 + $0x5f8] sm:$0xff]  ;;  %v805_v51 = vld [vmem:[#allocation14 + $0x628] sm:$0xff] }
 0x3a0   :  { %5115 = vmatpush1.bf16.msra.mxu1 %v5114_v4  ;;  %v642_v4 = vld [vmem:[#allocation14 + $0x110] sm:$0xff]  ;;  %5299 = vmatpush1.bf16.msra.mxu0 %v5298_v6  ;;  %v811_v52 = vld [vmem:[#allocation14 + $0x658] sm:$0xff] }
 0x3a1   :  { %5117 = vmatprep.subr.bf16.mxu1 %v5116_v9  ;;  %v1606_v9 = vld [vmem:[#allocation17 + $0x780] sm:$0xff]  ;;  %v5166_v13 = vpack.c.bf16 %v642_v4, %v636_v3  ;;  %5301 = vmatprep.subr.bf16.mxu0 %v5300_v8  ;;  %v5186_v3 = vpack.c.bf16 %v702_v59, %v696_v58  ;;  %v714_v6 = vld [vmem:[#allocation14 + $0x350] sm:$0xff]  ;;  %v727_v8 = vld [vmem:[#allocation14 + $0x3b8] sm:$0xff]  ;;  %v5220_v54 = vpack.c.bf16 %v811_v52, %v805_v51 }
 0x3a2   :  { %v5302_v17 = vpack.c.bf16 %v1616_v10, %v1606_v9  ;;  %v5190_v9 = vpack.c.bf16 %v714_v6, %v708_v5  ;;  %v5192_v10 = vpack.c.bf16 %v727_v8, %v721_v7  ;;  %v823_v58 = vld [vmem:[#allocation14 + $0x6b8] sm:$0xff]  ;;  %v828_v8 = vld [vmem:[#allocation14 + $0x6e0] sm:$0xff] }
 0x3a3   :  { %v835_v5 = vld [vmem:[#allocation14 + $0x718] sm:$0xff]  ;;  %v1378_v51 = vld [vmem:[#allocation17 + $0x60] sm:$0xff] }
 0x3a4   :  { %5119 = vmatpush1.bf16.msra.mxu1 %v5118_v21  ;;  %v1636_v21 = vld [vmem:[#allocation17 + $0x870] sm:$0xff]  ;;  %5303 = vmatpush1.bf16.msra.mxu0 %v5302_v17 }
 0x3a5   :  { %5121 = vmatprep.subr.bf16.mxu1 %v5120_v0  ;;  %v1647_v0 = vld [vmem:[#allocation17 + $0x8c8] sm:$0xff]  ;;  %v5306_v28 = vpack.c.bf16 %v1636_v21, %v1626_v20  ;;  %5305 = vmatprep.subr.bf16.mxu0 %v5304_v19  ;;  %v751_v19 = vld [vmem:[#allocation14 + $0x478] sm:$0xff] }
 0x3a6   :  { %v5308_v30 = vpack.c.bf16 %v1657_v22, %v1647_v0  ;;  %v738_v17 = vld [vmem:[#allocation14 + $0x410] sm:$0xff]  ;;  %v5200_v21 = vpack.c.bf16 %v751_v19, %v745_v18  ;;  %v744_v0 = vld [vmem:[#allocation14 + $0x440] sm:$0xff] }
 0x3a7   :  { %v5198_v20 = vpack.c.bf16 %v738_v17, %v732_v16  ;;  %v750_v22 = vld [vmem:[#allocation14 + $0x470] sm:$0xff]  ;;  %v859_v16 = vld [vmem:[#allocation14 + $0x7d8] sm:$0xff]  ;;  %v852_v18 = vld [vmem:[#allocation14 + $0x7a0] sm:$0xff] }
 0x3a8   :  { %5123 = vmatpush1.bf16.msra.mxu1 %v5122_v32  ;;  %v1656_v32 = vld [vmem:[#allocation17 + $0x910] sm:$0xff]  ;;  %5307 = vmatpush1.bf16.msra.mxu0 %v5306_v28 }
 0x3a9   :  { %5157 = vmatprep.subr.bf16.mxu1 %v5156_v33  ;;  %v5174_v33 = vpack.c.bf16 %v666_v26, %v660_v25  ;;  %v5310_v37 = vpack.c.bf16 %v1656_v32, %v1646_v31  ;;  %5309 = vmatprep.subr.bf16.mxu0 %v5308_v30  ;;  %v5202_v25 = vpack.c.bf16 %v750_v22, %v744_v0  ;;  %v762_v28 = vld [vmem:[#allocation14 + $0x4d0] sm:$0xff]  ;;  %v775_v30 = vld [vmem:[#allocation14 + $0x538] sm:$0xff] }
 0x3aa   :  { %v5206_v31 = vpack.c.bf16 %v762_v28, %v756_v27  ;;  %v5208_v32 = vpack.c.bf16 %v775_v30, %v769_v29  ;;  %v858_v19 = vld [vmem:[#allocation14 + $0x7d0] sm:$0xff]  ;;  %v876_v29 = vld [vmem:[#allocation14 + $0x860] sm:$0xff] }
 0x3ab   :  { %1135 = vmatmul.mubr.f32.vlgmr.msra.gmra.mrb[4].mxu1 %v7174_v2  ;;  %v5238_v0 = vpack.c.bf16 %v858_v19, %v852_v18  ;;  %v882_v30 = vld [vmem:[#allocation14 + $0x890] sm:$0xff]  ;;  %v1469_v18 = vld [vmem:[#allocation17 + $0x338] sm:$0xff] }
 0x3ac   :  { %5159 = vmatpush1.bf16.msra.mxu1 %v5158_v48  ;;  %1276 = vmatprep.mubr.f32.mxu1 %v7172_v62  ;;  %v648_v62 = vld [vmem:[#allocation14 + $0x140] sm:$0xff]  ;;  %v5180_v48 = vpack.c.bf16 %v691_v39, %v685_v38  ;;  %v5212_v38 = vpack.c.bf16 %v787_v36, %v781_v35  ;;  %v894_v36 = vld [vmem:[#allocation14 + $0x8f0] sm:$0xff] }
 0x3ad   :  { %5161 = vmatprep.subr.bf16.mxu1 %v5160_v49  ;;  %v5170_v23 = vpack.c.bf16 %v654_v15, %v648_v62  ;;  %v690_v49 = vld [vmem:[#allocation14 + $0x290] sm:$0xff]  ;;  %5311 = vmatpush1.bf16.msra.mxu0 %v5310_v37  ;;  %v5194_v62 = vpack.c.bf16 %v726_v12, %v720_v11  ;;  %v780_v39 = vld [vmem:[#allocation14 + $0x560] sm:$0xff]  ;;  %v847_v11 = vld [vmem:[#allocation14 + $0x778] sm:$0xff] }
 0x3ae   :  { %5313 = vmatprep.subr.bf16.mxu0 %v5312_v50  ;;  %v5182_v56 = vpack.c.bf16 %v690_v49, %v684_v41  ;;  %v793_v41 = vld [vmem:[#allocation14 + $0x5c8] sm:$0xff]  ;;  %v792_v49 = vld [vmem:[#allocation14 + $0x5c0] sm:$0xff]  ;;  %v798_v50 = vld [vmem:[#allocation14 + $0x5f0] sm:$0xff] }
 0x3af   :  { %v5218_v53 = vpack.c.bf16 %v798_v50, %v792_v49  ;;  %v888_v35 = vld [vmem:[#allocation14 + $0x8c0] sm:$0xff]  ;;  %v1368_v50 = vld [vmem:[#allocation17 + $0x10] sm:$0xff]  ;;  %v1479_v19 = vld [vmem:[#allocation17 + $0x388] sm:$0xff] }
 0x3b0   :  { %5163 = vmatpush1.bf16.msra.mxu1 %v5162_v60  ;;  %v709_v60 = vld [vmem:[#allocation14 + $0x328] sm:$0xff] }
 0x3b1   :  { %5165 = vmatprep.subr.bf16.mxu1 %v5164_v63  ;;  %5315 = vmatpush1.bf16.msra.mxu0 %v5314_v55  ;;  %v715_v63 = vld [vmem:[#allocation14 + $0x358] sm:$0xff]  ;;  %v804_v55 = vld [vmem:[#allocation14 + $0x620] sm:$0xff] }
 0x3b2   :  { %v5188_v4 = vpack.c.bf16 %v715_v63, %v709_v60  ;;  %v816_v63 = vld [vmem:[#allocation14 + $0x680] sm:$0xff] }
 0x3b4   :  { %5167 = vmatpush1.bf16.msra.mxu1 %v5166_v13  ;;  %v733_v13 = vld [vmem:[#allocation14 + $0x3e8] sm:$0xff] }
 0x3b5   :  { %5169 = vmatprep.subr.bf16.mxu1 %v5168_v14  ;;  %v739_v14 = vld [vmem:[#allocation14 + $0x418] sm:$0xff] }
 0x3b6   :  { %v5196_v15 = vpack.c.bf16 %v739_v14, %v733_v13  ;;  %v840_v14 = vld [vmem:[#allocation14 + $0x740] sm:$0xff] }
 0x3b8   :  { %5171 = vmatpush1.bf16.msra.mxu1 %v5170_v23  ;;  %v757_v23 = vld [vmem:[#allocation14 + $0x4a8] sm:$0xff] }
 0x3b9   :  { %5173 = vmatprep.subr.bf16.mxu1 %v5172_v24  ;;  %v763_v24 = vld [vmem:[#allocation14 + $0x4d8] sm:$0xff] }
 0x3ba   :  { %v5204_v26 = vpack.c.bf16 %v763_v24, %v757_v23  ;;  %v864_v23 = vld [vmem:[#allocation14 + $0x800] sm:$0xff]  ;;  %v870_v24 = vld [vmem:[#allocation14 + $0x830] sm:$0xff] }
 0x3bb   :  { %v5242_v27 = vpack.c.bf16 %v870_v24, %v864_v23  ;;  %v1489_v23 = vld [vmem:[#allocation17 + $0x3d8] sm:$0xff]  ;;  %v1499_v24 = vld [vmem:[#allocation17 + $0x428] sm:$0xff] }
 0x3bc   :  { %5175 = vmatpush1.bf16.msra.mxu1 %v5174_v33  ;;  %v768_v33 = vld [vmem:[#allocation14 + $0x500] sm:$0xff] }
 0x3bd   :  { %5177 = vmatprep.subr.bf16.mxu1 %v5176_v34  ;;  %v774_v34 = vld [vmem:[#allocation14 + $0x530] sm:$0xff] }
 0x3be   :  { %v5210_v37 = vpack.c.bf16 %v774_v34, %v768_v33  ;;  %v5246_v33 = vpack.c.bf16 %v882_v30, %v876_v29  ;;  %v1509_v29 = vld [vmem:[#allocation17 + $0x478] sm:$0xff]  ;;  %v1519_v30 = vld [vmem:[#allocation17 + $0x4c8] sm:$0xff] }
 0x3c0   :  { %5179 = vmatpush1.bf16.msra.mxu1 %v5178_v40  ;;  %v786_v40 = vld [vmem:[#allocation14 + $0x590] sm:$0xff] }
 0x3c1   :  { %5181 = vmatprep.subr.bf16.mxu1 %v5180_v48  ;;  %v5214_v47 = vpack.c.bf16 %v786_v40, %v780_v39  ;;  %v5216_v48 = vpack.c.bf16 %v799_v45, %v793_v41  ;;  %v1379_v39 = vld [vmem:[#allocation17 + $0x68] sm:$0xff] }
 0x3c4   :  { %5183 = vmatpush1.bf16.msra.mxu1 %v5182_v56  ;;  %v810_v56 = vld [vmem:[#allocation14 + $0x650] sm:$0xff] }
 0x3c5   :  { %5185 = vmatprep.subr.bf16.mxu1 %v5184_v57  ;;  %v817_v57 = vld [vmem:[#allocation14 + $0x688] sm:$0xff]  ;;  %v5222_v59 = vpack.c.bf16 %v810_v56, %v804_v55 }
 0x3c6   :  { %v5224_v60 = vpack.c.bf16 %v823_v58, %v817_v57 }
 0x3c8   :  { %5187 = vmatpush1.bf16.msra.mxu1 %v5186_v3  ;;  %v822_v3 = vld [vmem:[#allocation14 + $0x6b0] sm:$0xff] }
 0x3c9   :  { %5189 = vmatprep.subr.bf16.mxu1 %v5188_v4  ;;  %v829_v4 = vld [vmem:[#allocation14 + $0x6e8] sm:$0xff]  ;;  %v5226_v6 = vpack.c.bf16 %v822_v3, %v816_v63  ;;  %v1409_v63 = vld [vmem:[#allocation17 + $0x158] sm:$0xff] }
 0x3ca   :  { %v5228_v7 = vpack.c.bf16 %v835_v5, %v829_v4  ;;  %v1419_v3 = vld [vmem:[#allocation17 + $0x1a8] sm:$0xff] }
 0x3cb   :  { %v5324_v5 = vpack.c.bf16 %v1419_v3, %v1409_v63  ;;  %v1589_v63 = vld [vmem:[#allocation17 + $0x6f8] sm:$0xff]  ;;  %v1599_v3 = vld [vmem:[#allocation17 + $0x748] sm:$0xff] }
 0x3cc   :  { %5191 = vmatpush1.bf16.msra.mxu1 %v5190_v9  ;;  %v834_v9 = vld [vmem:[#allocation14 + $0x710] sm:$0xff] }
 0x3cd   :  { %5193 = vmatprep.subr.bf16.mxu1 %v5192_v10  ;;  %v841_v10 = vld [vmem:[#allocation14 + $0x748] sm:$0xff]  ;;  %v5230_v12 = vpack.c.bf16 %v834_v9, %v828_v8  ;;  %v1429_v8 = vld [vmem:[#allocation17 + $0x1f8] sm:$0xff] }
 0x3ce   :  { %v5232_v13 = vpack.c.bf16 %v847_v11, %v841_v10  ;;  %v1439_v9 = vld [vmem:[#allocation17 + $0x248] sm:$0xff] }
 0x3cf   :  { %v5328_v11 = vpack.c.bf16 %v1439_v9, %v1429_v8  ;;  %v1609_v8 = vld [vmem:[#allocation17 + $0x798] sm:$0xff]  ;;  %v1619_v9 = vld [vmem:[#allocation17 + $0x7e8] sm:$0xff] }
 0x3d0   :  { %5195 = vmatpush1.bf16.msra.mxu1 %v5194_v62  ;;  %v846_v62 = vld [vmem:[#allocation14 + $0x770] sm:$0xff] }
 0x3d1   :  { %5197 = vmatprep.subr.bf16.mxu1 %v5196_v15  ;;  %v853_v15 = vld [vmem:[#allocation14 + $0x7a8] sm:$0xff] }
 0x3d2   :  { %v5236_v17 = vpack.c.bf16 %v859_v16, %v853_v15 }
 0x3d4   :  { %5199 = vmatpush1.bf16.msra.mxu1 %v5198_v20  ;;  %v865_v20 = vld [vmem:[#allocation14 + $0x808] sm:$0xff] }
 0x3d5   :  { %5201 = vmatprep.subr.bf16.mxu1 %v5200_v21  ;;  %v871_v21 = vld [vmem:[#allocation14 + $0x838] sm:$0xff] }
 0x3d6   :  { %v5240_v22 = vpack.c.bf16 %v871_v21, %v865_v20  ;;  %v5336_v21 = vpack.c.bf16 %v1479_v19, %v1469_v18  ;;  %v1649_v18 = vld [vmem:[#allocation17 + $0x8d8] sm:$0xff]  ;;  %v1659_v19 = vld [vmem:[#allocation17 + $0x928] sm:$0xff] }
 0x3d8   :  { %5203 = vmatpush1.bf16.msra.mxu1 %v5202_v25  ;;  %v877_v25 = vld [vmem:[#allocation14 + $0x868] sm:$0xff] }
 0x3d9   :  { %5205 = vmatprep.subr.bf16.mxu1 %v5204_v26  ;;  %v883_v26 = vld [vmem:[#allocation14 + $0x898] sm:$0xff] }
 0x3da   :  { %v5244_v28 = vpack.c.bf16 %v883_v26, %v877_v25  ;;  %v5340_v26 = vpack.c.bf16 %v1499_v24, %v1489_v23  ;;  %v1669_v23 = vld [vmem:[#allocation17 + $0x978] sm:$0xff]  ;;  %v1679_v24 = vld [vmem:[#allocation17 + $0x9c8] sm:$0xff] }
 0x3dc   :  { %5207 = vmatpush1.bf16.msra.mxu1 %v5206_v31  ;;  %v889_v31 = vld [vmem:[#allocation14 + $0x8c8] sm:$0xff] }
 0x3dd   :  { %5209 = vmatprep.subr.bf16.mxu1 %v5208_v32  ;;  %v895_v32 = vld [vmem:[#allocation14 + $0x8f8] sm:$0xff] }
 0x3de   :  { %v5248_v34 = vpack.c.bf16 %v895_v32, %v889_v31  ;;  %v5344_v32 = vpack.c.bf16 %v1519_v30, %v1509_v29  ;;  %v1678_v29 = vld [vmem:[#allocation17 + $0x9c0] sm:$0xff]  ;;  %v1371_v30 = vld [vmem:[#allocation17 + $0x28] sm:$0xff] }
 0x3e0   :  { %5211 = vmatpush1.bf16.msra.mxu1 %v5210_v37  ;;  %v5250_v37 = vpack.c.bf16 %v894_v36, %v888_v35  ;;  %v1529_v35 = vld [vmem:[#allocation17 + $0x518] sm:$0xff]  ;;  %v1539_v36 = vld [vmem:[#allocation17 + $0x568] sm:$0xff] }
 0x3e1   :  { %5213 = vmatprep.subr.bf16.mxu1 %v5212_v38  ;;  %v1369_v38 = vld [vmem:[#allocation17 + $0x18] sm:$0xff] }
 0x3e2   :  { %v5316_v40 = vpack.c.bf16 %v1379_v39, %v1369_v38  ;;  %v5348_v38 = vpack.c.bf16 %v1539_v36, %v1529_v35  ;;  %v1528_v39 = vld [vmem:[#allocation17 + $0x510] sm:$0xff] }
 0x3e4   :  { %5215 = vmatpush1.bf16.msra.mxu1 %v5214_v47  ;;  %5317 = vmatprep.subr.bf16.mxu0 %v5316_v40  ;;  %v7191_v47 = vld [vmem:[#allocation16] sm:$0x3f]  ;;  %v1538_v40 = vld [vmem:[#allocation17 + $0x560] sm:$0xff] }
 0x3e5   :  { %5217 = vmatprep.subr.bf16.mxu1 %v5216_v48  ;;  %v905_v48 = vrot.slane %v7191_v47, %v7164_v46  ;;  %v901_v49 = vrot.slane %v7191_v47, %v7160_v43 }
 0x3e8   :  { %5219 = vmatpush1.bf16.msra.mxu1 %v5218_v53  ;;  %v1389_v53 = vld [vmem:[#allocation17 + $0xb8] sm:$0xff] }
 0x3e9   :  { %5221 = vmatprep.subr.bf16.mxu1 %v5220_v54  ;;  %v1399_v54 = vld [vmem:[#allocation17 + $0x108] sm:$0xff] }
 0x3ea   :  { %v5320_v58 = vpack.c.bf16 %v1399_v54, %v1389_v53  ;;  %v1558_v53 = vld [vmem:[#allocation17 + $0x600] sm:$0xff]  ;;  %v1569_v54 = vld [vmem:[#allocation17 + $0x658] sm:$0xff] }
 0x3eb   :  { %1277 = vmatmul.mubr.f32.vlgmr.msra.gmra.mrb[6].mxu1 %v7174_v2  ;;  %v5234_v2 = vpack.c.bf16 %v846_v62, %v840_v14  ;;  %v1449_v14 = vld [vmem:[#allocation17 + $0x298] sm:$0xff]  ;;  %v1459_v62 = vld [vmem:[#allocation17 + $0x2e8] sm:$0xff] }
 0x3ec   :  { %5223 = vmatpush1.bf16.msra.mxu1 %v5222_v59  ;;  %1347 = vmatprep.mubr.f32.mxu1 %v8283_v1  ;;  %v1388_v59 = vld [vmem:[#allocation17 + $0xb0] sm:$0xff]  ;;  %v5332_v16 = vpack.c.bf16 %v1459_v62, %v1449_v14  ;;  %v1629_v14 = vld [vmem:[#allocation17 + $0x838] sm:$0xff]  ;;  %v1639_v62 = vld [vmem:[#allocation17 + $0x888] sm:$0xff] }
 0x3ed   :  { %5225 = vmatprep.subr.bf16.mxu1 %v5224_v60  ;;  %v1398_v60 = vld [vmem:[#allocation17 + $0x100] sm:$0xff] }
 0x3ee   :  { %v5322_v4 = vpack.c.bf16 %v1398_v60, %v1388_v59  ;;  %v1568_v59 = vld [vmem:[#allocation17 + $0x650] sm:$0xff]  ;;  %v1578_v60 = vld [vmem:[#allocation17 + $0x6a0] sm:$0xff] }
 0x3f0   :  { %5227 = vmatpush1.bf16.msra.mxu1 %v5226_v6  ;;  %v1408_v6 = vld [vmem:[#allocation17 + $0x150] sm:$0xff] }
 0x3f1   :  { %5229 = vmatprep.subr.bf16.mxu1 %v5228_v7  ;;  %v1418_v7 = vld [vmem:[#allocation17 + $0x1a0] sm:$0xff] }
 0x3f2   :  { %v5326_v10 = vpack.c.bf16 %v1418_v7, %v1408_v6  ;;  %v1588_v6 = vld [vmem:[#allocation17 + $0x6f0] sm:$0xff]  ;;  %v1598_v7 = vld [vmem:[#allocation17 + $0x740] sm:$0xff] }
 0x3f4   :  { %5231 = vmatpush1.bf16.msra.mxu1 %v5230_v12  ;;  %v1428_v12 = vld [vmem:[#allocation17 + $0x1f0] sm:$0xff] }
 0x3f5   :  { %5233 = vmatprep.subr.bf16.mxu1 %v5232_v13  ;;  %v1438_v13 = vld [vmem:[#allocation17 + $0x240] sm:$0xff] }
 0x3f6   :  { %v5330_v15 = vpack.c.bf16 %v1438_v13, %v1428_v12  ;;  %v1608_v12 = vld [vmem:[#allocation17 + $0x790] sm:$0xff]  ;;  %v1618_v13 = vld [vmem:[#allocation17 + $0x7e0] sm:$0xff] }
 0x3f8   :  { %5235 = vmatpush1.bf16.msra.mxu1 %v5234_v2  ;;  %v1448_v2 = vld [vmem:[#allocation17 + $0x290] sm:$0xff] }
 0x3f9   :  { %5237 = vmatprep.subr.bf16.mxu1 %v5236_v17  ;;  %v1458_v17 = vld [vmem:[#allocation17 + $0x2e0] sm:$0xff] }
 0x3fa   :  { %v5334_v20 = vpack.c.bf16 %v1458_v17, %v1448_v2  ;;  %v1628_v2 = vld [vmem:[#allocation17 + $0x830] sm:$0xff]  ;;  %v1638_v17 = vld [vmem:[#allocation17 + $0x880] sm:$0xff] }
 0x3fc   :  { %5239 = vmatpush1.bf16.msra.mxu1 %v5238_v0  ;;  %v1468_v0 = vld [vmem:[#allocation17 + $0x330] sm:$0xff] }
 0x3fd   :  { %5241 = vmatprep.subr.bf16.mxu1 %v5240_v22  ;;  %v1478_v22 = vld [vmem:[#allocation17 + $0x380] sm:$0xff] }
 0x3fe   :  { %v5338_v25 = vpack.c.bf16 %v1478_v22, %v1468_v0  ;;  %v1648_v0 = vld [vmem:[#allocation17 + $0x8d0] sm:$0xff]  ;;  %v1658_v22 = vld [vmem:[#allocation17 + $0x920] sm:$0xff] }
 0x400   :  { %5243 = vmatpush1.bf16.msra.mxu1 %v5242_v27  ;;  %v1488_v27 = vld [vmem:[#allocation17 + $0x3d0] sm:$0xff] }
 0x401   :  { %5245 = vmatprep.subr.bf16.mxu1 %v5244_v28  ;;  %v1498_v28 = vld [vmem:[#allocation17 + $0x420] sm:$0xff] }
 0x402   :  { %v5342_v31 = vpack.c.bf16 %v1498_v28, %v1488_v27  ;;  %v5376_v27 = vpack.c.bf16 %v1679_v24, %v1669_v23  ;;  %v1668_v28 = vld [vmem:[#allocation17 + $0x970] sm:$0xff]  ;;  %v1470_v23 = vld [vmem:[#allocation17 + $0x340] sm:$0xff] }
 0x403   :  { %v1480_v24 = vld [vmem:[#allocation17 + $0x390] sm:$0xff] }
 0x404   :  { %5247 = vmatpush1.bf16.msra.mxu1 %v5246_v33  ;;  %v1508_v33 = vld [vmem:[#allocation17 + $0x470] sm:$0xff] }
 0x405   :  { %5249 = vmatprep.subr.bf16.mxu1 %v5248_v34  ;;  %v1518_v34 = vld [vmem:[#allocation17 + $0x4c0] sm:$0xff] }
 0x408   :  { %5251 = vmatpush1.bf16.msra.mxu1 %v5250_v37  ;;  %v5346_v37 = vpack.c.bf16 %v1518_v34, %v1508_v33  ;;  %v5378_v34 = vpack.c.bf16 %v1678_v29, %v1668_v28  ;;  %v1490_v29 = vld [vmem:[#allocation17 + $0x3e0] sm:$0xff] }
 0x40b   :  { %1348 = vmatmul.mubr.f32.vlgmr.msra.gmra.mrb[6].mxu1 %v7170_v61  ;;  %v5318_v61 = vpack.c.bf16 %v1378_v51, %v1368_v50  ;;  %v5350_v50 = vpack.c.bf16 %v1538_v40, %v1528_v39 }
 0x41c   :  { %v7187_v41 = vpop.f32.mrb[4].mxu0 }
 0x41d   :  { %v7189_v45 = vpop.f32.mrb[5].mxu0 }
 0x43e   :  { %v1065_v52 = vpop.f32.mrb[2].mxu1 }
 0x43f   :  { %v1067_v55 = vpop.f32.mrb[3].mxu1  ;;  %v7199_v57 = vadd.f32 %v1065_v52, %v901_v49  ;;  %v1559_v49 = vld [vmem:[#allocation17 + $0x608] sm:$0xff]  ;;  %v1548_v52 = vld [vmem:[#allocation17 + $0x5b0] sm:$0xff] }
 0x440   :  { %v7197_v56 = vadd.f32 %v1067_v55, %v905_v48  ;;  %v1549_v48 = vld [vmem:[#allocation17 + $0x5b8] sm:$0xff]  ;;  %v1579_v55 = vld [vmem:[#allocation17 + $0x6a8] sm:$0xff] }
 0x441   :  { %v5352_v51 = vpack.c.bf16 %v1559_v49, %v1549_v48  ;;  %v2177_v49 = vld [vmem:[%s8260_s13] sm:$0xff] }
 0x442   :  { %1750 = vmatprep.mubr.f32.mxu0 %v7197_v56 }
 0x443   :  { %1751 = vmatmul.mubr.f32.vlgmr.msra.gmra.mrb[6].mxu0 %v7199_v57 }
 0x444   :  { %5319 = vmatpush1.bf16.msra.mxu0 %v5318_v61  ;;  %v5354_v61 = vpack.c.bf16 %v1558_v53, %v1548_v52 }
 0x445   :  { %5321 = vmatprep.subr.bf16.mxu0 %v5320_v58  ;;  %v5356_v58 = vpack.c.bf16 %v1579_v55, %v1569_v54 }
 0x448   :  { %5323 = vmatpush1.bf16.msra.mxu0 %v5322_v4  ;;  %v5358_v4 = vpack.c.bf16 %v1578_v60, %v1568_v59  ;;  %v1391_v59 = vld [vmem:[#allocation17 + $0xc8] sm:$0xff]  ;;  %v1401_v60 = vld [vmem:[#allocation17 + $0x118] sm:$0xff] }
 0x449   :  { %5325 = vmatprep.subr.bf16.mxu0 %v5324_v5  ;;  %v5360_v5 = vpack.c.bf16 %v1599_v3, %v1589_v63  ;;  %v5384_v63 = vpack.c.bf16 %v1401_v60, %v1391_v59  ;;  %v1390_v3 = vld [vmem:[#allocation17 + $0xc0] sm:$0xff]  ;;  %v1571_v59 = vld [vmem:[#allocation17 + $0x668] sm:$0xff]  ;;  %v1581_v60 = vld [vmem:[#allocation17 + $0x6b8] sm:$0xff] }
 0x44c   :  { %5327 = vmatpush1.bf16.msra.mxu0 %v5326_v10  ;;  %v5362_v10 = vpack.c.bf16 %v1598_v7, %v1588_v6 }
 0x44d   :  { %5329 = vmatprep.subr.bf16.mxu0 %v5328_v11  ;;  %v5364_v11 = vpack.c.bf16 %v1619_v9, %v1609_v8  ;;  %v1410_v8 = vld [vmem:[#allocation17 + $0x160] sm:$0xff]  ;;  %v1420_v9 = vld [vmem:[#allocation17 + $0x1b0] sm:$0xff] }
 0x450   :  { %5331 = vmatpush1.bf16.msra.mxu0 %v5330_v15  ;;  %v5366_v15 = vpack.c.bf16 %v1618_v13, %v1608_v12  ;;  %v5390_v12 = vpack.c.bf16 %v1420_v9, %v1410_v8  ;;  %v1590_v8 = vld [vmem:[#allocation17 + $0x700] sm:$0xff]  ;;  %v1600_v9 = vld [vmem:[#allocation17 + $0x750] sm:$0xff] }
 0x451   :  { %5333 = vmatprep.subr.bf16.mxu0 %v5332_v16  ;;  %v5368_v16 = vpack.c.bf16 %v1639_v62, %v1629_v14  ;;  %v1430_v14 = vld [vmem:[#allocation17 + $0x200] sm:$0xff]  ;;  %v1440_v62 = vld [vmem:[#allocation17 + $0x250] sm:$0xff] }
 0x454   :  { %5335 = vmatpush1.bf16.msra.mxu0 %v5334_v20  ;;  %v5370_v20 = vpack.c.bf16 %v1638_v17, %v1628_v2  ;;  %v5394_v2 = vpack.c.bf16 %v1440_v62, %v1430_v14  ;;  %v1610_v14 = vld [vmem:[#allocation17 + $0x7a0] sm:$0xff]  ;;  %v1620_v62 = vld [vmem:[#allocation17 + $0x7f0] sm:$0xff] }
 0x455   :  { %5337 = vmatprep.subr.bf16.mxu0 %v5336_v21  ;;  %v5372_v21 = vpack.c.bf16 %v1659_v19, %v1649_v18  ;;  %v1450_v18 = vld [vmem:[#allocation17 + $0x2a0] sm:$0xff]  ;;  %v1460_v19 = vld [vmem:[#allocation17 + $0x2f0] sm:$0xff] }
 0x458   :  { %5339 = vmatpush1.bf16.msra.mxu0 %v5338_v25  ;;  %v912_v25 = vsub.s32 3, %v7157_v42 }
 0x459   :  { %5341 = vmatprep.subr.bf16.mxu0 %v5340_v26  ;;  %v5374_v26 = vpack.c.bf16 %v1658_v22, %v1648_v0  ;;  %v5398_v0 = vpack.c.bf16 %v1460_v19, %v1450_v18  ;;  %v1630_v18 = vld [vmem:[#allocation17 + $0x840] sm:$0xff]  ;;  %v1640_v19 = vld [vmem:[#allocation17 + $0x890] sm:$0xff] }
 0x45a   :  { %v913_v33 = vrot.slane %v7191_v47, %v912_v25  ;;  %v1491_v25 = vld [vmem:[#allocation17 + $0x3e8] sm:$0xff] }
 0x45c   :  { %5343 = vmatpush1.bf16.msra.mxu0 %v5342_v31  ;;  %v1381_v31 = vld [vmem:[#allocation17 + $0x78] sm:$0xff] }
 0x45d   :  { %5345 = vmatprep.subr.bf16.mxu0 %v5344_v32  ;;  %v909_v32 = vrot.slane %v7191_v47, %v459_v44  ;;  %v5380_v35 = vpack.c.bf16 %v1381_v31, %v1371_v30  ;;  %v6782_v44 = vmov 0   ;;  %v1500_v30 = vld [vmem:[#allocation17 + $0x430] sm:$0xff]  ;;  %v1511_v31 = vld [vmem:[#allocation17 + $0x488] sm:$0xff] }
 0x45e   :  { %6221 = vset.pattern.permute.xlu0 %v6782_v44  ;;  %6222 = vset.pattern.permute.xlu1 %v6782_v44 }
 0x45f   :  { %2186 = vperm.xlu0 %6221, %v2177_v49  }
 0x460   :  { %5347 = vmatpush1.bf16.msra.mxu0 %v5346_v37 }
 0x461   :  { %5349 = vmatprep.subr.bf16.mxu0 %v5348_v38 }
 0x464   :  { %5351 = vmatpush1.bf16.msra.mxu0 %v5350_v50  ;;  %v920_v50 = vsub.s32 5, %v7157_v42 }
 0x465   :  { %5353 = vmatprep.subr.bf16.mxu0 %v5352_v51 }
 0x466   :  { %v921_v51 = vrot.slane %v7191_v47, %v920_v50  ;;  %v1530_v50 = vld [vmem:[#allocation17 + $0x520] sm:$0xff] }
 0x468   :  { %5355 = vmatpush1.bf16.msra.mxu0 %v5354_v61  ;;  %v1370_v61 = vld [vmem:[#allocation17 + $0x20] sm:$0xff] }
 0x469   :  { %5357 = vmatprep.subr.bf16.mxu0 %v5356_v58  ;;  %v1380_v58 = vld [vmem:[#allocation17 + $0x70] sm:$0xff] }
 0x46c   :  { %5359 = vmatpush1.bf16.msra.mxu0 %v5358_v4  ;;  %v1411_v4 = vld [vmem:[#allocation17 + $0x168] sm:$0xff] }
 0x46d   :  { %5361 = vmatprep.subr.bf16.mxu0 %v5360_v5  ;;  %v1421_v5 = vld [vmem:[#allocation17 + $0x1b8] sm:$0xff] }
 0x46e   :  { %v5388_v7 = vpack.c.bf16 %v1421_v5, %v1411_v4  ;;  %v1591_v4 = vld [vmem:[#allocation17 + $0x708] sm:$0xff]  ;;  %v1601_v5 = vld [vmem:[#allocation17 + $0x758] sm:$0xff] }
 0x470   :  { %5363 = vmatpush1.bf16.msra.mxu0 %v5362_v10  ;;  %v1431_v10 = vld [vmem:[#allocation17 + $0x208] sm:$0xff] }
 0x471   :  { %5365 = vmatprep.subr.bf16.mxu0 %v5364_v11  ;;  %v1441_v11 = vld [vmem:[#allocation17 + $0x258] sm:$0xff] }
 0x472   :  { %v5392_v13 = vpack.c.bf16 %v1441_v11, %v1431_v10  ;;  %v1611_v10 = vld [vmem:[#allocation17 + $0x7a8] sm:$0xff]  ;;  %v1621_v11 = vld [vmem:[#allocation17 + $0x7f8] sm:$0xff] }
 0x474   :  { %5367 = vmatpush1.bf16.msra.mxu0 %v5366_v15  ;;  %v1451_v15 = vld [vmem:[#allocation17 + $0x2a8] sm:$0xff] }
 0x475   :  { %5369 = vmatprep.subr.bf16.mxu0 %v5368_v16  ;;  %v1461_v16 = vld [vmem:[#allocation17 + $0x2f8] sm:$0xff] }
 0x476   :  { %v5396_v17 = vpack.c.bf16 %v1461_v16, %v1451_v15  ;;  %v1631_v15 = vld [vmem:[#allocation17 + $0x848] sm:$0xff]  ;;  %v1641_v16 = vld [vmem:[#allocation17 + $0x898] sm:$0xff] }
 0x478   :  { %5371 = vmatpush1.bf16.msra.mxu0 %v5370_v20  ;;  %v1471_v20 = vld [vmem:[#allocation17 + $0x348] sm:$0xff] }
 0x479   :  { %5373 = vmatprep.subr.bf16.mxu0 %v5372_v21  ;;  %v1481_v21 = vld [vmem:[#allocation17 + $0x398] sm:$0xff] }
 0x47a   :  { %v5400_v22 = vpack.c.bf16 %v1481_v21, %v1471_v20  ;;  %v1651_v21 = vld [vmem:[#allocation17 + $0x8e8] sm:$0xff] }
 0x47c   :  { %5375 = vmatpush1.bf16.msra.mxu0 %v5374_v26  ;;  %v1501_v26 = vld [vmem:[#allocation17 + $0x438] sm:$0xff] }
 0x47d   :  { %5377 = vmatprep.subr.bf16.mxu0 %v5376_v27  ;;  %v5402_v27 = vpack.c.bf16 %v1480_v24, %v1470_v23  ;;  %v5404_v28 = vpack.c.bf16 %v1501_v26, %v1491_v25  ;;  %v5434_v23 = vpack.c.bf16 %v1640_v19, %v1630_v18  ;;  %v1650_v25 = vld [vmem:[#allocation17 + $0x8e0] sm:$0xff]  ;;  %v1660_v26 = vld [vmem:[#allocation17 + $0x930] sm:$0xff] }
 0x47e   :  { %v1136_v36 = vpop.f32.mrb[4].mxu1  ;;  %v1492_v19 = vld [vmem:[#allocation17 + $0x3f0] sm:$0xff] }
 0x47f   :  { %v1137_v37 = vadd.f32 %v1136_v36, %v909_v32  ;;  %v1138_v38 = vpop.f32.mrb[5].mxu1  ;;  %v1521_v32 = vld [vmem:[#allocation17 + $0x4d8] sm:$0xff]  ;;  %v1510_v36 = vld [vmem:[#allocation17 + $0x480] sm:$0xff] }
 0x480   :  { %v1139_v39 = vadd.f32 %v1138_v38, %v913_v33  ;;  %5379 = vmatpush1.bf16.msra.mxu0 %v5378_v34  ;;  %v5406_v33 = vpack.c.bf16 %v1500_v30, %v1490_v29  ;;  %v2178_v34 = vld [vmem:[%s8260_s13 + $0x8] sm:$0xff]  ;;  %v5438_v29 = vpack.c.bf16 %v1660_v26, %v1650_v25  ;;  %v1533_v26 = vld [vmem:[#allocation17 + $0x538] sm:$0xff] }
 0x481   :  { %v7209_v40 = vadd.f32 %v7187_v41, %v1137_v37  ;;  %5381 = vmatprep.subr.bf16.mxu0 %v5380_v35  ;;  %v916_v41 = vsub.s32 4, %v7157_v42  ;;  %v5382_v42 = vpack.c.bf16 %v1380_v58, %v1370_v61  ;;  %v5408_v35 = vpack.c.bf16 %v1521_v32, %v1511_v31  ;;  %v1520_v37 = vld [vmem:[#allocation17 + $0x4d0] sm:$0xff]  ;;  %2191 = vperm.xlu0 %6221, %v2178_v34   ;;  %v1531_v38 = vld [vmem:[#allocation17 + $0x528] sm:$0xff]  ;;  %v1550_v61 = vld [vmem:[#allocation17 + $0x5c0] sm:$0xff] }
 0x482   :  { %v7212_v48 = vadd.f32 %v7189_v45, %v1139_v39  ;;  %v1541_v39 = vld [vmem:[#allocation17 + $0x578] sm:$0xff]  ;;  %v5410_v44 = vpack.c.bf16 %v1520_v37, %v1510_v36  ;;  %v1560_v58 = vld [vmem:[#allocation17 + $0x610] sm:$0xff]  ;;  %v1670_v31 = vld [vmem:[#allocation17 + $0x980] sm:$0xff] }
 0x483   :  { %v917_v45 = vrot.slane %v7191_v47, %v916_v41  ;;  %v1400_v47 = vld [vmem:[#allocation17 + $0x110] sm:$0xff]  ;;  %v5412_v49 = vpack.c.bf16 %v1541_v39, %v1531_v38  ;;  %v1383_v34 = vld [vmem:[#allocation17 + $0x88] sm:$0xff]  ;;  %v1382_v38 = vld [vmem:[#allocation17 + $0x80] sm:$0xff] }
 0x484   :  { %1754 = vmatprep.mubr.f32.mxu0 %v7212_v48  ;;  %v5386_v6 = vpack.c.bf16 %v1400_v47, %v1390_v3  ;;  %v1540_v41 = vld [vmem:[#allocation17 + $0x570] sm:$0xff]  ;;  %v1570_v3 = vld [vmem:[#allocation17 + $0x660] sm:$0xff]  ;;  %v1393_v39 = vld [vmem:[#allocation17 + $0xd8] sm:$0xff] }
 0x485   :  { %1755 = vmatmul.mubr.f32.gmra.mrb[8].mxu0 %v7209_v40  ;;  %v1580_v47 = vld [vmem:[#allocation17 + $0x6b0] sm:$0xff]  ;;  %v1522_v25 = vld [vmem:[#allocation17 + $0x4e0] sm:$0xff] }
 0x486   :  { %v1680_v32 = vld [vmem:[#allocation17 + $0x9d0] sm:$0xff] }
 0x487   :  { %v1372_v37 = vld [vmem:[#allocation17 + $0x30] sm:$0xff] }
 0x4de   :  { %v1349_v52 = vpop.f32.mrb[6].mxu1 }
 0x4df   :  { %v1351_v53 = vpop.f32.mrb[7].mxu1  ;;  %v7225_v55 = vadd.f32 %v1349_v52, %v917_v45  ;;  %v1561_v45 = vld [vmem:[#allocation17 + $0x618] sm:$0xff]  ;;  %v5414_v52 = vpack.c.bf16 %v1540_v41, %v1530_v50  ;;  %v1392_v41 = vld [vmem:[#allocation17 + $0xd0] sm:$0xff] }
 0x4e0   :  { %v7223_v54 = vadd.f32 %v1351_v53, %v921_v51  ;;  %v1551_v51 = vld [vmem:[#allocation17 + $0x5c8] sm:$0xff] }
 0x4e1   :  { %v5416_v53 = vpack.c.bf16 %v1561_v45, %v1551_v51  ;;  %v1402_v51 = vld [vmem:[#allocation17 + $0x120] sm:$0xff]  ;;  %v1413_v45 = vld [vmem:[#allocation17 + $0x178] sm:$0xff] }
 0x4e2   :  { %1760 = vmatprep.mubr.f32.mxu0 %v7223_v54 }
 0x4e3   :  { %1761 = vmatmul.mubr.f32.gmra.mrb[10].mxu0 %v7225_v55 }
 0x4e4   :  { %1831 = vmatprep.mubr.f32.mxu0 %v7197_v56 }
 0x4e7   :  { %1832 = vmatmul.mubr.f32.vlgmr.msra.gmra.mrb[12].mxu0 %v7199_v57 }
 0x4e8   :  { %5383 = vmatpush1.bf16.msra.mxu0 %v5382_v42  ;;  %1837 = vmatprep.mubr.f32.mxu0 %v7212_v48  ;;  %v5418_v42 = vpack.c.bf16 %v1560_v58, %v1550_v61  ;;  %v1412_v58 = vld [vmem:[#allocation17 + $0x170] sm:$0xff] }
 0x4e9   :  { %5385 = vmatprep.subr.bf16.mxu0 %v5384_v63  ;;  %v5420_v63 = vpack.c.bf16 %v1581_v60, %v1571_v59  ;;  %v1422_v59 = vld [vmem:[#allocation17 + $0x1c0] sm:$0xff]  ;;  %v1433_v60 = vld [vmem:[#allocation17 + $0x218] sm:$0xff] }
 0x4eb   :  { %1838 = vmatmul.mubr.f32.gmra.mrb[14].mxu0 %v7209_v40 }
 0x4ec   :  { %5387 = vmatpush1.bf16.msra.mxu0 %v5386_v6  ;;  %1843 = vmatprep.mubr.f32.mxu0 %v7223_v54  ;;  %v5422_v6 = vpack.c.bf16 %v1580_v47, %v1570_v3  ;;  %v1432_v47 = vld [vmem:[#allocation17 + $0x210] sm:$0xff] }
 0x4ed   :  { %5389 = vmatprep.subr.bf16.mxu0 %v5388_v7  ;;  %v5424_v7 = vpack.c.bf16 %v1601_v5, %v1591_v4  ;;  %v1442_v4 = vld [vmem:[#allocation17 + $0x260] sm:$0xff]  ;;  %v1453_v5 = vld [vmem:[#allocation17 + $0x2b8] sm:$0xff] }
 0x4ef   :  { %1844 = vmatmul.mubr.f32.gmra.mrb[16].mxu0 %v7225_v55 }
 0x4f0   :  { %5391 = vmatpush1.bf16.msra.mxu0 %v5390_v12  ;;  %1914 = vmatprep.mubr.f32.mxu0 %v7197_v56  ;;  %v5426_v12 = vpack.c.bf16 %v1600_v9, %v1590_v8  ;;  %v1452_v9 = vld [vmem:[#allocation17 + $0x2b0] sm:$0xff] }
 0x4f1   :  { %5393 = vmatprep.subr.bf16.mxu0 %v5392_v13  ;;  %v5428_v13 = vpack.c.bf16 %v1621_v11, %v1611_v10  ;;  %v1462_v10 = vld [vmem:[#allocation17 + $0x300] sm:$0xff]  ;;  %v1473_v11 = vld [vmem:[#allocation17 + $0x358] sm:$0xff] }
 0x4f4   :  { %5395 = vmatpush1.bf16.msra.mxu0 %v5394_v2  ;;  %v5430_v2 = vpack.c.bf16 %v1620_v62, %v1610_v14  ;;  %v1472_v62 = vld [vmem:[#allocation17 + $0x350] sm:$0xff] }
 0x4f5   :  { %5397 = vmatprep.subr.bf16.mxu0 %v5396_v17  ;;  %v5432_v17 = vpack.c.bf16 %v1641_v16, %v1631_v15  ;;  %v1482_v15 = vld [vmem:[#allocation17 + $0x3a0] sm:$0xff]  ;;  %v1493_v16 = vld [vmem:[#allocation17 + $0x3f8] sm:$0xff] }
 0x4f8   :  { %5399 = vmatpush1.bf16.msra.mxu0 %v5398_v0  ;;  %v1661_v0 = vld [vmem:[#allocation17 + $0x938] sm:$0xff] }
 0x4f9   :  { %5401 = vmatprep.subr.bf16.mxu0 %v5400_v22  ;;  %v5436_v24 = vpack.c.bf16 %v1661_v0, %v1651_v21  ;;  %v1513_v21 = vld [vmem:[#allocation17 + $0x498] sm:$0xff]  ;;  %v1523_v0 = vld [vmem:[#allocation17 + $0x4e8] sm:$0xff] }
 0x4fc   :  { %5403 = vmatpush1.bf16.msra.mxu0 %v5402_v27  ;;  %v1671_v27 = vld [vmem:[#allocation17 + $0x988] sm:$0xff] }
 0x4fd   :  { %5405 = vmatprep.subr.bf16.mxu0 %v5404_v28  ;;  %v1681_v28 = vld [vmem:[#allocation17 + $0x9d8] sm:$0xff] }
 0x4fe   :  { %v5440_v30 = vpack.c.bf16 %v1681_v28, %v1671_v27  ;;  %v1543_v27 = vld [vmem:[#allocation17 + $0x588] sm:$0xff] }
 0x4ff   :  { %v2179_v28 = vld [vmem:[%s8260_s13 + $0x10] sm:$0xff] }
 0x500   :  { %5407 = vmatpush1.bf16.msra.mxu0 %v5406_v33  ;;  %v1373_v33 = vld [vmem:[#allocation17 + $0x38] sm:$0xff]  ;;  %2196 = vperm.xlu1 %6222, %v2179_v28  }
 0x501   :  { %5409 = vmatprep.subr.bf16.mxu0 %v5408_v35  ;;  %v5442_v35 = vpack.c.bf16 %v1680_v32, %v1670_v31  ;;  %v5444_v36 = vpack.c.bf16 %v1383_v34, %v1373_v33  ;;  %v1532_v31 = vld [vmem:[#allocation17 + $0x530] sm:$0xff]  ;;  %v1542_v32 = vld [vmem:[#allocation17 + $0x580] sm:$0xff]  ;;  %v1553_v33 = vld [vmem:[#allocation17 + $0x5d8] sm:$0xff] }
 0x502   :  { %v1563_v34 = vld [vmem:[#allocation17 + $0x628] sm:$0xff]  ;;  %v1673_v28 = vld [vmem:[#allocation17 + $0x998] sm:$0xff] }
 0x504   :  { %5411 = vmatpush1.bf16.msra.mxu0 %v5410_v44  ;;  %v1403_v44 = vld [vmem:[#allocation17 + $0x128] sm:$0xff] }
 0x505   :  { %5413 = vmatprep.subr.bf16.mxu0 %v5412_v49  ;;  %v5446_v49 = vpack.c.bf16 %v1382_v38, %v1372_v37  ;;  %v5448_v50 = vpack.c.bf16 %v1403_v44, %v1393_v39  ;;  %v5478_v37 = vpack.c.bf16 %v1542_v32, %v1532_v31  ;;  %v2183_v38 = vld [vmem:[%s8260_s13 + $0x30] sm:$0xff]  ;;  %v2182_v39 = vld [vmem:[%s8260_s13 + $0x28] sm:$0xff]  ;;  %v5480_v44 = vpack.c.bf16 %v1563_v34, %v1553_v33  ;;  %v3516_v31 = vld [vmem:[%s8267_s20 + $0x58] sm:$0xff] }
 0x506   :  { %v3515_v32 = vld [vmem:[%s8267_s20 + $0x50] sm:$0xff] }
 0x507   :  { %v1672_v34 = vld [vmem:[#allocation17 + $0x990] sm:$0xff] }
 0x508   :  { %5415 = vmatpush1.bf16.msra.mxu0 %v5414_v52  ;;  %v1423_v52 = vld [vmem:[#allocation17 + $0x1c8] sm:$0xff] }
 0x509   :  { %5417 = vmatprep.subr.bf16.mxu0 %v5416_v53  ;;  %v5450_v53 = vpack.c.bf16 %v1402_v51, %v1392_v41  ;;  %v5452_v61 = vpack.c.bf16 %v1423_v52, %v1413_v45  ;;  %v1573_v41 = vld [vmem:[#allocation17 + $0x678] sm:$0xff]  ;;  %v1583_v51 = vld [vmem:[#allocation17 + $0x6c8] sm:$0xff] }
 0x50a   :  { %v3506_v52 = vld [vmem:[%s8267_s20 + $0x8] sm:$0xff] }
 0x50c   :  { %5419 = vmatpush1.bf16.msra.mxu0 %v5418_v42  ;;  %v1443_v42 = vld [vmem:[#allocation17 + $0x268] sm:$0xff] }
 0x50d   :  { %5421 = vmatprep.subr.bf16.mxu0 %v5420_v63  ;;  %v5454_v63 = vpack.c.bf16 %v1422_v59, %v1412_v58  ;;  %v5456_v3 = vpack.c.bf16 %v1443_v42, %v1433_v60  ;;  %v1572_v58 = vld [vmem:[#allocation17 + $0x670] sm:$0xff]  ;;  %v1582_v59 = vld [vmem:[#allocation17 + $0x6c0] sm:$0xff]  ;;  %v1593_v60 = vld [vmem:[#allocation17 + $0x718] sm:$0xff] }
 0x50e   :  { %v1603_v42 = vld [vmem:[#allocation17 + $0x768] sm:$0xff] }
 0x510   :  { %5423 = vmatpush1.bf16.msra.mxu0 %v5422_v6  ;;  %v1463_v6 = vld [vmem:[#allocation17 + $0x308] sm:$0xff] }
 0x511   :  { %5425 = vmatprep.subr.bf16.mxu0 %v5424_v7  ;;  %v5458_v7 = vpack.c.bf16 %v1442_v4, %v1432_v47  ;;  %v5460_v8 = vpack.c.bf16 %v1463_v6, %v1453_v5  ;;  %v3507_v47 = vld [vmem:[%s8267_s20 + $0x10] sm:$0xff]  ;;  %v5488_v4 = vpack.c.bf16 %v1603_v42, %v1593_v60  ;;  %v1602_v6 = vld [vmem:[#allocation17 + $0x760] sm:$0xff] }
 0x512   :  { %v1592_v5 = vld [vmem:[#allocation17 + $0x710] sm:$0xff] }
 0x514   :  { %5427 = vmatpush1.bf16.msra.mxu0 %v5426_v12  ;;  %v1483_v12 = vld [vmem:[#allocation17 + $0x3a8] sm:$0xff] }
 0x515   :  { %5429 = vmatprep.subr.bf16.mxu0 %v5428_v13  ;;  %v5462_v13 = vpack.c.bf16 %v1462_v10, %v1452_v9  ;;  %v5464_v14 = vpack.c.bf16 %v1483_v12, %v1473_v11  ;;  %v5490_v9 = vpack.c.bf16 %v1602_v6, %v1592_v5  ;;  %v3510_v10 = vld [vmem:[%s8267_s20 + $0x28] sm:$0xff]  ;;  %v3509_v11 = vld [vmem:[%s8267_s20 + $0x20] sm:$0xff] }
 0x516   :  { %v1752_v20 = vpop.f32.mrb[6].mxu0 }
 0x517   :  { %v1753_v22 = vpop.f32.mrb[7].mxu0  ;;  %v1502_v20 = vld [vmem:[#allocation17 + $0x440] sm:$0xff] }
 0x518   :  { %5431 = vmatpush1.bf16.msra.mxu0 %v5430_v2  ;;  %v1503_v2 = vld [vmem:[#allocation17 + $0x448] sm:$0xff]  ;;  %v5470_v22 = vpack.c.bf16 %v1502_v20, %v1492_v19  ;;  %v1632_v19 = vld [vmem:[#allocation17 + $0x850] sm:$0xff]  ;;  %v1642_v20 = vld [vmem:[#allocation17 + $0x8a0] sm:$0xff] }
 0x519   :  { %5433 = vmatprep.subr.bf16.mxu0 %v5432_v17  ;;  %v5466_v17 = vpack.c.bf16 %v1482_v15, %v1472_v62  ;;  %v5468_v18 = vpack.c.bf16 %v1503_v2, %v1493_v16  ;;  %v1633_v62 = vld [vmem:[#allocation17 + $0x858] sm:$0xff]  ;;  %v1643_v15 = vld [vmem:[#allocation17 + $0x8a8] sm:$0xff] }
 0x51a   :  { %v3512_v2 = vld [vmem:[%s8267_s20 + $0x38] sm:$0xff] }
 0x51c   :  { %5435 = vmatpush1.bf16.msra.mxu0 %v5434_v23  ;;  %v5472_v23 = vpack.c.bf16 %v1523_v0, %v1513_v21  ;;  %v1653_v21 = vld [vmem:[#allocation17 + $0x8f8] sm:$0xff]  ;;  %v1663_v0 = vld [vmem:[#allocation17 + $0x948] sm:$0xff] }
 0x51d   :  { %5437 = vmatprep.subr.bf16.mxu0 %v5436_v24  ;;  %v1512_v24 = vld [vmem:[#allocation17 + $0x490] sm:$0xff] }
 0x520   :  { %5439 = vmatpush1.bf16.msra.mxu0 %v5438_v29  ;;  %v5474_v29 = vpack.c.bf16 %v1522_v25, %v1512_v24  ;;  %v3513_v24 = vld [vmem:[%s8267_s20 + $0x40] sm:$0xff]  ;;  %v5500_v25 = vpack.c.bf16 %v1663_v0, %v1653_v21 }
 0x521   :  { %5441 = vmatprep.subr.bf16.mxu0 %v5440_v30  ;;  %v5476_v30 = vpack.c.bf16 %v1543_v27, %v1533_v26  ;;  %v1652_v26 = vld [vmem:[#allocation17 + $0x8f0] sm:$0xff]  ;;  %v1662_v27 = vld [vmem:[#allocation17 + $0x940] sm:$0xff] }
 0x524   :  { %5443 = vmatpush1.bf16.msra.mxu0 %v5442_v35  ;;  %v2181_v35 = vld [vmem:[%s8260_s13 + $0x20] sm:$0xff] }
 0x525   :  { %5445 = vmatprep.subr.bf16.mxu0 %v5444_v36  ;;  %v2180_v36 = vld [vmem:[%s8260_s13 + $0x18] sm:$0xff]  ;;  %2206 = vperm.xlu0 %6221, %v2181_v35   ;;  %v1682_v35 = vld [vmem:[#allocation17 + $0x9e0] sm:$0xff] }
 0x526   :  { %2201 = vperm.xlu1 %6222, %v2180_v36   ;;  %v1375_v36 = vld [vmem:[#allocation17 + $0x48] sm:$0xff] }
 0x527   :  { %1915 = vmatmul.mubr.f32.vlgmr.msra.gmra.mrb[8].mxu0 %v7199_v57 }
 0x528   :  { %1920 = vmatprep.mubr.f32.mxu0 %v7212_v48  ;;  %5447 = vmatpush1.bf16.msra.mxu0 %v5446_v49  ;;  %v1552_v49 = vld [vmem:[#allocation17 + $0x5d0] sm:$0xff] }
 0x529   :  { %5449 = vmatprep.subr.bf16.mxu0 %v5448_v50  ;;  %v1562_v50 = vld [vmem:[#allocation17 + $0x620] sm:$0xff]  ;;  %2216 = vperm.xlu0 %6221, %v2183_v38   ;;  %v5506_v38 = vpack.c.bf16 %v1682_v35, %v1672_v34  ;;  %v1544_v35 = vld [vmem:[#allocation17 + $0x590] sm:$0xff] }
 0x52a   :  { %2211 = vperm.xlu1 %6222, %v2182_v39   ;;  %v5482_v45 = vpack.c.bf16 %v1562_v50, %v1552_v49  ;;  %v3518_v39 = vld [vmem:[%s8267_s20 + $0x68] sm:$0xff]  ;;  %v1384_v50 = vld [vmem:[#allocation17 + $0x90] sm:$0xff] }
 0x52b   :  { %1921 = vmatmul.mubr.f32.gmra.mrb[10].mxu0 %v7209_v40  ;;  %v1374_v49 = vld [vmem:[#allocation17 + $0x40] sm:$0xff] }
 0x52c   :  { %1926 = vmatprep.mubr.f32.mxu0 %v7223_v54  ;;  %5451 = vmatpush1.bf16.msra.mxu0 %v5450_v53  ;;  %v3505_v53 = vld [vmem:[%s8267_s20] sm:$0xff] }
 0x52d   :  { %5453 = vmatprep.subr.bf16.mxu0 %v5452_v61  ;;  %v5484_v61 = vpack.c.bf16 %v1583_v51, %v1573_v41  ;;  %3526 = vperm.xlu0 %6221, %v3506_v52   ;;  %v1395_v41 = vld [vmem:[#allocation17 + $0xe8] sm:$0xff]  ;;  %v1405_v51 = vld [vmem:[#allocation17 + $0x138] sm:$0xff]  ;;  %v1534_v34 = vld [vmem:[#allocation17 + $0x540] sm:$0xff] }
 0x52e   :  { %3521 = vperm.xlu1 %6222, %v3505_v53   ;;  %v5512_v52 = vpack.c.bf16 %v1405_v51, %v1395_v41  ;;  %v1394_v53 = vld [vmem:[#allocation17 + $0xe0] sm:$0xff]  ;;  %v1585_v41 = vld [vmem:[#allocation17 + $0x6d8] sm:$0xff] }
 0x52f   :  { %1927 = vmatmul.mubr.f32.gmra.mrb[18].mxu0 %v7225_v55 }
 0x530   :  { %5455 = vmatpush1.bf16.msra.mxu0 %v5454_v63  ;;  %1997 = vmatprep.mubr.f32.mxu0 %v7197_v56  ;;  %v5486_v63 = vpack.c.bf16 %v1582_v59, %v1572_v58  ;;  %v1415_v58 = vld [vmem:[#allocation17 + $0x188] sm:$0xff]  ;;  %v1425_v59 = vld [vmem:[#allocation17 + $0x1d8] sm:$0xff] }
 0x531   :  { %5457 = vmatprep.subr.bf16.mxu0 %v5456_v3  ;;  %v3508_v3 = vld [vmem:[%s8267_s20 + $0x18] sm:$0xff]  ;;  %v5516_v42 = vpack.c.bf16 %v1425_v59, %v1415_v58 }
 0x532   :  { %3536 = vperm.xlu0 %6221, %v3508_v3   ;;  %3531 = vperm.xlu1 %6222, %v3507_v47   ;;  %v1424_v3 = vld [vmem:[#allocation17 + $0x1d0] sm:$0xff]  ;;  %v1435_v47 = vld [vmem:[#allocation17 + $0x228] sm:$0xff]  ;;  %v1605_v58 = vld [vmem:[#allocation17 + $0x778] sm:$0xff] }
 0x534   :  { %5459 = vmatpush1.bf16.msra.mxu0 %v5458_v7  ;;  %v1613_v7 = vld [vmem:[#allocation17 + $0x7b8] sm:$0xff] }
 0x535   :  { %5461 = vmatprep.subr.bf16.mxu0 %v5460_v8  ;;  %v1623_v8 = vld [vmem:[#allocation17 + $0x808] sm:$0xff] }
 0x536   :  { %v5492_v12 = vpack.c.bf16 %v1623_v8, %v1613_v7  ;;  %3546 = vperm.xlu0 %6221, %v3510_v10   ;;  %3541 = vperm.xlu1 %6222, %v3509_v11   ;;  %v1434_v7 = vld [vmem:[#allocation17 + $0x220] sm:$0xff]  ;;  %v1444_v8 = vld [vmem:[#allocation17 + $0x270] sm:$0xff]  ;;  %v1465_v10 = vld [vmem:[#allocation17 + $0x318] sm:$0xff] }
 0x537   :  { %v5522_v11 = vpack.c.bf16 %v1444_v8, %v1434_v7  ;;  %v1624_v7 = vld [vmem:[#allocation17 + $0x810] sm:$0xff]  ;;  %v1635_v8 = vld [vmem:[#allocation17 + $0x868] sm:$0xff] }
 0x538   :  { %5463 = vmatpush1.bf16.msra.mxu0 %v5462_v13  ;;  %v1612_v13 = vld [vmem:[#allocation17 + $0x7b0] sm:$0xff] }
 0x539   :  { %5465 = vmatprep.subr.bf16.mxu0 %v5464_v14  ;;  %v1622_v14 = vld [vmem:[#allocation17 + $0x800] sm:$0xff] }
 0x53a   :  { %v5494_v16 = vpack.c.bf16 %v1622_v14, %v1612_v13  ;;  %3556 = vperm.xlu0 %6221, %v3512_v2   ;;  %v1454_v13 = vld [vmem:[#allocation17 + $0x2c0] sm:$0xff]  ;;  %v1464_v14 = vld [vmem:[#allocation17 + $0x310] sm:$0xff] }
 0x53c   :  { %5467 = vmatpush1.bf16.msra.mxu0 %v5466_v17  ;;  %v3511_v17 = vld [vmem:[%s8267_s20 + $0x30] sm:$0xff] }
 0x53d   :  { %5469 = vmatprep.subr.bf16.mxu0 %v5468_v18  ;;  %v5496_v18 = vpack.c.bf16 %v1643_v15, %v1633_v62  ;;  %3551 = vperm.xlu1 %6222, %v3511_v17   ;;  %v1475_v62 = vld [vmem:[#allocation17 + $0x368] sm:$0xff]  ;;  %v1485_v15 = vld [vmem:[#allocation17 + $0x3b8] sm:$0xff]  ;;  %v1474_v17 = vld [vmem:[#allocation17 + $0x360] sm:$0xff] }
 0x53e   :  { %v5528_v2 = vpack.c.bf16 %v1485_v15, %v1475_v62  ;;  %v1665_v62 = vld [vmem:[#allocation17 + $0x958] sm:$0xff] }
 0x540   :  { %5471 = vmatpush1.bf16.msra.mxu0 %v5470_v22  ;;  %v5498_v22 = vpack.c.bf16 %v1642_v20, %v1632_v19  ;;  %v1495_v19 = vld [vmem:[#allocation17 + $0x408] sm:$0xff]  ;;  %v1505_v20 = vld [vmem:[#allocation17 + $0x458] sm:$0xff] }
 0x541   :  { %5473 = vmatprep.subr.bf16.mxu0 %v5472_v23  ;;  %v3514_v23 = vld [vmem:[%s8267_s20 + $0x48] sm:$0xff]  ;;  %3561 = vperm.xlu1 %6222, %v3513_v24   ;;  %v5532_v0 = vpack.c.bf16 %v1505_v20, %v1495_v19  ;;  %v1525_v24 = vld [vmem:[#allocation17 + $0x4f8] sm:$0xff] }
 0x542   :  { %3566 = vperm.xlu0 %6221, %v3514_v23   ;;  %v1515_v23 = vld [vmem:[#allocation17 + $0x4a8] sm:$0xff]  ;;  %v1685_v19 = vld [vmem:[#allocation17 + $0x9f8] sm:$0xff] }
 0x544   :  { %5475 = vmatpush1.bf16.msra.mxu0 %v5474_v29  ;;  %v1683_v29 = vld [vmem:[#allocation17 + $0x9e8] sm:$0xff] }
 0x545   :  { %5477 = vmatprep.subr.bf16.mxu0 %v5476_v30  ;;  %v5502_v30 = vpack.c.bf16 %v1662_v27, %v1652_v26  ;;  %v5504_v33 = vpack.c.bf16 %v1683_v29, %v1673_v28  ;;  %3571 = vperm.xlu1 %6222, %v3515_v32   ;;  %v5536_v27 = vpack.c.bf16 %v1525_v24, %v1515_v23  ;;  %v1514_v28 = vld [vmem:[#allocation17 + $0x4a0] sm:$0xff]  ;;  %v1524_v29 = vld [vmem:[#allocation17 + $0x4f0] sm:$0xff] }
 0x546   :  { %3576 = vperm.xlu0 %6221, %v3516_v31   ;;  %v1545_v31 = vld [vmem:[#allocation17 + $0x598] sm:$0xff]  ;;  %v5538_v32 = vpack.c.bf16 %v1524_v29, %v1514_v28  ;;  %v2259_v29 = vld [vmem:[%s8256_s9 + $0x10] sm:$0xff] }
 0x548   :  { %5479 = vmatpush1.bf16.msra.mxu0 %v5478_v37  ;;  %v1385_v37 = vld [vmem:[#allocation17 + $0x98] sm:$0xff] }
 0x549   :  { %5481 = vmatprep.subr.bf16.mxu0 %v5480_v44  ;;  %v5508_v44 = vpack.c.bf16 %v1385_v37, %v1375_v36  ;;  %v1555_v36 = vld [vmem:[#allocation17 + $0x5e8] sm:$0xff]  ;;  %v1565_v37 = vld [vmem:[#allocation17 + $0x638] sm:$0xff] }
 0x54a   :  { %3586 = vperm.xlu0 %6221, %v3518_v39   ;;  %v5544_v39 = vpack.c.bf16 %v1565_v37, %v1555_v36  ;;  %v2261_v37 = vld [vmem:[%s8256_s9 + $0x20] sm:$0xff] }
 0x54c   :  { %5483 = vmatpush1.bf16.msra.mxu0 %v5482_v45  ;;  %v5510_v45 = vpack.c.bf16 %v1384_v50, %v1374_v49  ;;  %v1564_v49 = vld [vmem:[#allocation17 + $0x630] sm:$0xff]  ;;  %v1575_v50 = vld [vmem:[#allocation17 + $0x688] sm:$0xff] }
 0x54d   :  { %5485 = vmatprep.subr.bf16.mxu0 %v5484_v61  ;;  %v1404_v61 = vld [vmem:[#allocation17 + $0x130] sm:$0xff] }
 0x54e   :  { %v5514_v60 = vpack.c.bf16 %v1404_v61, %v1394_v53  ;;  %v1584_v53 = vld [vmem:[#allocation17 + $0x6d0] sm:$0xff]  ;;  %v1595_v61 = vld [vmem:[#allocation17 + $0x728] sm:$0xff] }
 0x550   :  { %5487 = vmatpush1.bf16.msra.mxu0 %v5486_v63  ;;  %v1414_v63 = vld [vmem:[#allocation17 + $0x180] sm:$0xff] }
 0x551   :  { %5489 = vmatprep.subr.bf16.mxu0 %v5488_v4  ;;  %v1445_v4 = vld [vmem:[#allocation17 + $0x278] sm:$0xff]  ;;  %v5518_v5 = vpack.c.bf16 %v1424_v3, %v1414_v63  ;;  %v1604_v63 = vld [vmem:[#allocation17 + $0x770] sm:$0xff]  ;;  %v1615_v3 = vld [vmem:[#allocation17 + $0x7c8] sm:$0xff] }
 0x552   :  { %v5520_v6 = vpack.c.bf16 %v1445_v4, %v1435_v47  ;;  %v1625_v47 = vld [vmem:[#allocation17 + $0x818] sm:$0xff] }
 0x554   :  { %5491 = vmatpush1.bf16.msra.mxu0 %v5490_v9  ;;  %v1455_v9 = vld [vmem:[#allocation17 + $0x2c8] sm:$0xff] }
 0x555   :  { %5493 = vmatprep.subr.bf16.mxu0 %v5492_v12  ;;  %v5524_v12 = vpack.c.bf16 %v1465_v10, %v1455_v9  ;;  %v1645_v9 = vld [vmem:[#allocation17 + $0x8b8] sm:$0xff] }
 0x558   :  { %5495 = vmatpush1.bf16.msra.mxu0 %v5494_v16  ;;  %v5526_v16 = vpack.c.bf16 %v1464_v14, %v1454_v13  ;;  %v1644_v13 = vld [vmem:[#allocation17 + $0x8b0] sm:$0xff]  ;;  %v1655_v14 = vld [vmem:[#allocation17 + $0x908] sm:$0xff] }
 0x559   :  { %5497 = vmatprep.subr.bf16.mxu0 %v5496_v18  ;;  %v1484_v18 = vld [vmem:[#allocation17 + $0x3b0] sm:$0xff] }
 0x55a   :  { %v5530_v21 = vpack.c.bf16 %v1484_v18, %v1474_v17  ;;  %v1664_v17 = vld [vmem:[#allocation17 + $0x950] sm:$0xff]  ;;  %v1675_v18 = vld [vmem:[#allocation17 + $0x9a8] sm:$0xff] }
 0x55c   :  { %5499 = vmatpush1.bf16.msra.mxu0 %v5498_v22  ;;  %v1504_v22 = vld [vmem:[#allocation17 + $0x450] sm:$0xff] }
 0x55d   :  { %5501 = vmatprep.subr.bf16.mxu0 %v5500_v25  ;;  %v3517_v25 = vld [vmem:[%s8267_s20 + $0x60] sm:$0xff] }
 0x55e   :  { %3581 = vperm.xlu1 %6222, %v3517_v25   ;;  %v2273_v25 = vld [vmem:[%s8256_s9 + $0x80] sm:$0xff] }
 0x560   :  { %5503 = vmatpush1.bf16.msra.mxu0 %v5502_v30  ;;  %v1535_v30 = vld [vmem:[#allocation17 + $0x548] sm:$0xff] }
 0x561   :  { %5505 = vmatprep.subr.bf16.mxu0 %v5504_v33  ;;  %v5540_v33 = vpack.c.bf16 %v1545_v31, %v1535_v30  ;;  %v2260_v30 = vld [vmem:[%s8256_s9 + $0x18] sm:$0xff] }
 0x562   :  { %v7346_v31 = vpack.c.bf16 %v2260_v30, %v2259_v29 }
 0x564   :  { %5507 = vmatpush1.bf16.msra.mxu0 %v5506_v38  ;;  %v5542_v38 = vpack.c.bf16 %v1544_v35, %v1534_v34  ;;  %v2277_v34 = vld [vmem:[%s8256_s9 + $0xa0] sm:$0xff]  ;;  %v2278_v35 = vld [vmem:[%s8256_s9 + $0xa8] sm:$0xff] }
 0x565   :  { %5509 = vmatprep.subr.bf16.mxu0 %v5508_v44  ;;  %v1554_v44 = vld [vmem:[#allocation17 + $0x5e0] sm:$0xff]  ;;  %v7358_v36 = vpack.c.bf16 %v2278_v35, %v2277_v34 }
 0x566   :  { %v5546_v51 = vpack.c.bf16 %v1564_v49, %v1554_v44  ;;  %v2279_v44 = vld [vmem:[%s8256_s9 + $0xb0] sm:$0xff]  ;;  %v2280_v49 = vld [vmem:[%s8256_s9 + $0xb8] sm:$0xff] }
 0x567   :  { %1998 = vmatmul.mubr.f32.vlgmr.msra.gmra.mrb[14].mxu0 %v7199_v57 }
 0x568   :  { %2003 = vmatprep.mubr.f32.mxu0 %v7212_v48  ;;  %5511 = vmatpush1.bf16.msra.mxu0 %v5510_v45  ;;  %v5548_v45 = vpack.c.bf16 %v1585_v41, %v1575_v50  ;;  %v7376_v50 = vpack.c.bf16 %v2280_v49, %v2279_v44  ;;  %v2263_v41 = vld [vmem:[%s8256_s9 + $0x30] sm:$0xff] }
 0x569   :  { %5513 = vmatprep.subr.bf16.mxu0 %v5512_v52  ;;  %v1574_v52 = vld [vmem:[#allocation17 + $0x680] sm:$0xff] }
 0x56a   :  { %v5550_v59 = vpack.c.bf16 %v1584_v53, %v1574_v52  ;;  %v2281_v52 = vld [vmem:[%s8256_s9 + $0xc0] sm:$0xff]  ;;  %v2282_v53 = vld [vmem:[%s8256_s9 + $0xc8] sm:$0xff] }
 0x56b   :  { %2004 = vmatmul.mubr.f32.gmra.mrb[16].mxu0 %v7209_v40 }
 0x56c   :  { %2009 = vmatprep.mubr.f32.mxu0 %v7223_v54  ;;  %5515 = vmatpush1.bf16.msra.mxu0 %v5514_v60  ;;  %v5552_v60 = vpack.c.bf16 %v1605_v58, %v1595_v61  ;;  %v7394_v61 = vpack.c.bf16 %v2282_v53, %v2281_v52  ;;  %v2265_v58 = vld [vmem:[%s8256_s9 + $0x40] sm:$0xff] }
 0x56d   :  { %5517 = vmatprep.subr.bf16.mxu0 %v5516_v42  ;;  %v1594_v42 = vld [vmem:[#allocation17 + $0x720] sm:$0xff] }
 0x56e   :  { %v5554_v4 = vpack.c.bf16 %v1604_v63, %v1594_v42  ;;  %v2283_v42 = vld [vmem:[%s8256_s9 + $0xd0] sm:$0xff]  ;;  %v2284_v63 = vld [vmem:[%s8256_s9 + $0xd8] sm:$0xff] }
 0x56f   :  { %2010 = vmatmul.mubr.f32.gmra.mrb[20].mxu0 %v7225_v55 }
 0x570   :  { %5519 = vmatpush1.bf16.msra.mxu0 %v5518_v5  ;;  %2080 = vmatprep.mubr.f32.mxu0 %v7197_v56  ;;  %v1494_v56 = vld [vmem:[#allocation17 + $0x400] sm:$0xff]  ;;  %v5556_v5 = vpack.c.bf16 %v1625_v47, %v1615_v3  ;;  %v7412_v3 = vpack.c.bf16 %v2284_v63, %v2283_v42  ;;  %v2267_v47 = vld [vmem:[%s8256_s9 + $0x50] sm:$0xff] }
 0x571   :  { %5521 = vmatprep.subr.bf16.mxu0 %v5520_v6  ;;  %v5534_v26 = vpack.c.bf16 %v1504_v22, %v1494_v56  ;;  %v1614_v6 = vld [vmem:[#allocation17 + $0x7c0] sm:$0xff]  ;;  %v1684_v56 = vld [vmem:[#allocation17 + $0x9f0] sm:$0xff] }
 0x572   :  { %v5558_v10 = vpack.c.bf16 %v1624_v7, %v1614_v6  ;;  %v2285_v6 = vld [vmem:[%s8256_s9 + $0xe0] sm:$0xff]  ;;  %v2286_v7 = vld [vmem:[%s8256_s9 + $0xe8] sm:$0xff] }
 0x574   :  { %5523 = vmatpush1.bf16.msra.mxu0 %v5522_v11  ;;  %v5560_v11 = vpack.c.bf16 %v1645_v9, %v1635_v8  ;;  %v2269_v8 = vld [vmem:[%s8256_s9 + $0x60] sm:$0xff]  ;;  %v7433_v9 = vpack.c.bf16 %v2286_v7, %v2285_v6 }
 0x575   :  { %5525 = vmatprep.subr.bf16.mxu0 %v5524_v12  ;;  %v1634_v12 = vld [vmem:[#allocation17 + $0x860] sm:$0xff] }
 0x576   :  { %v5562_v15 = vpack.c.bf16 %v1644_v13, %v1634_v12  ;;  %v2288_v12 = vld [vmem:[%s8256_s9 + $0xf8] sm:$0xff] }
 0x578   :  { %5527 = vmatpush1.bf16.msra.mxu0 %v5526_v16  ;;  %v5564_v16 = vpack.c.bf16 %v1665_v62, %v1655_v14  ;;  %v2271_v62 = vld [vmem:[%s8256_s9 + $0x70] sm:$0xff] }
 0x579   :  { %5529 = vmatprep.subr.bf16.mxu0 %v5528_v2  ;;  %v1654_v2 = vld [vmem:[#allocation17 + $0x900] sm:$0xff] }
 0x57a   :  { %v5566_v20 = vpack.c.bf16 %v1664_v17, %v1654_v2 }
 0x57c   :  { %5531 = vmatpush1.bf16.msra.mxu0 %v5530_v21  ;;  %v5568_v21 = vpack.c.bf16 %v1685_v19, %v1675_v18 }
 0x57d   :  { %5533 = vmatprep.subr.bf16.mxu0 %v5532_v0  ;;  %v1674_v0 = vld [vmem:[#allocation17 + $0x9a0] sm:$0xff] }
 0x57e   :  { %v5570_v22 = vpack.c.bf16 %v1684_v56, %v1674_v0  ;;  %v2109_v0 = vld [vmem:[#allocation19] sm:$0x3] }
 0x57f   :  { %v2118_v56 = vrot.slane %v2109_v0, %v7164_v46 }
 0x580   :  { %5535 = vmatpush1.bf16.msra.mxu0 %v5534_v26  ;;  %v2275_v26 = vld [vmem:[%s8256_s9 + $0x90] sm:$0xff] }
 0x581   :  { %5537 = vmatprep.subr.bf16.mxu0 %v5536_v27  ;;  %v2276_v27 = vld [vmem:[%s8256_s9 + $0x98] sm:$0xff] }
 0x582   :  { %v7338_v28 = vpack.c.bf16 %v2276_v27, %v2275_v26 }
 0x584   :  { %5539 = vmatpush1.bf16.msra.mxu0 %v5538_v32 }
 0x585   :  { %5541 = vmatprep.subr.bf16.mxu0 %v5540_v33 }
 0x588   :  { %5543 = vmatpush1.bf16.msra.mxu0 %v5542_v38  ;;  %v2262_v38 = vld [vmem:[%s8256_s9 + $0x28] sm:$0xff] }
 0x589   :  { %5545 = vmatprep.subr.bf16.mxu0 %v5544_v39  ;;  %v7366_v39 = vpack.c.bf16 %v2262_v38, %v2261_v37 }
 0x58c   :  { %5547 = vmatpush1.bf16.msra.mxu0 %v5546_v51  ;;  %v2264_v51 = vld [vmem:[%s8256_s9 + $0x38] sm:$0xff] }
 0x58d   :  { %5549 = vmatprep.subr.bf16.mxu0 %v5548_v45  ;;  %v7384_v45 = vpack.c.bf16 %v2264_v51, %v2263_v41 }
 0x590   :  { %5551 = vmatpush1.bf16.msra.mxu0 %v5550_v59  ;;  %v2266_v59 = vld [vmem:[%s8256_s9 + $0x48] sm:$0xff] }
 0x591   :  { %5553 = vmatprep.subr.bf16.mxu0 %v5552_v60  ;;  %v7402_v60 = vpack.c.bf16 %v2266_v59, %v2265_v58 }
 0x594   :  { %5555 = vmatpush1.bf16.msra.mxu0 %v5554_v4  ;;  %v2268_v4 = vld [vmem:[%s8256_s9 + $0x58] sm:$0xff] }
 0x595   :  { %5557 = vmatprep.subr.bf16.mxu0 %v5556_v5  ;;  %v7420_v5 = vpack.c.bf16 %v2268_v4, %v2267_v47 }
 0x598   :  { %5559 = vmatpush1.bf16.msra.mxu0 %v5558_v10  ;;  %v2270_v10 = vld [vmem:[%s8256_s9 + $0x68] sm:$0xff] }
 0x599   :  { %5561 = vmatprep.subr.bf16.mxu0 %v5560_v11  ;;  %v2287_v11 = vld [vmem:[%s8256_s9 + $0xf0] sm:$0xff]  ;;  %v7444_v13 = vpack.c.bf16 %v2270_v10, %v2269_v8 }
 0x59a   :  { %v7446_v14 = vpack.c.bf16 %v2288_v12, %v2287_v11 }
 0x59c   :  { %5563 = vmatpush1.bf16.msra.mxu0 %v5562_v15  ;;  %v2272_v15 = vld [vmem:[%s8256_s9 + $0x78] sm:$0xff] }
 0x59d   :  { %5565 = vmatprep.subr.bf16.mxu0 %v5564_v16  ;;  %v7456_v16 = vpack.c.bf16 %v2272_v15, %v2271_v62 }
 0x5a0   :  { %5567 = vmatpush1.bf16.msra.mxu0 %v5566_v20 }
 0x5a1   :  { %5569 = vmatprep.subr.bf16.mxu0 %v5568_v21 }
 0x5a4   :  { %5571 = vmatpush1.bf16.msra.mxu0 %v5570_v22 }
 0x5a7   :  { %2081 = vmatmul.mubr.f32.vlgmr.msra.gmra.mrb[10].mxu0 %v7199_v57  ;;  %v2274_v57 = vld [vmem:[%s8256_s9 + $0x88] sm:$0xff] }
 0x5a8   :  { %2086 = vmatprep.mubr.f32.mxu0 %v7212_v48  ;;  %v5572_v48 = vpack.c.bf16 %v2274_v57, %v2273_v25  ;;  %v2114_v25 = vrot.slane %v2109_v0, %v7160_v43  ;;  %v2187_v57 = vpop.permute.xlu0 %2186 }
 0x5aa   :  { %5573 = vmatprep.subr.bf16.mxu1 %v5572_v48 }
 0x5ab   :  { %2087 = vmatmul.mubr.f32.gmra.mrb[18].mxu0 %v7209_v40  ;;  %v2257_v40 = vld [vmem:[%s8256_s9] sm:$0xff] }
 0x5ac   :  { %2092 = vmatprep.mubr.f32.mxu0 %v7223_v54  ;;  %v2258_v54 = vld [vmem:[%s8256_s9 + $0x8] sm:$0xff]  ;;  %v2192_v29 = vpop.permute.xlu0 %2191 }
 0x5af   :  { %2093 = vmatmul.mubr.f32.gmra.mrb[22].mxu0 %v7225_v55  ;;  %v7329_v55 = vpack.c.bf16 %v2258_v54, %v2257_v40 }
 0x5b0   :  { %v2207_v63 = vpop.permute.xlu0 %2206 }
 0x5b1   :  { %5575 = vmatpush3.bf16.msra.mxu1 %v7329_v55 }
 0x5b2   :  { %5577 = vmatprep.subr.bf16.mxu1 %v7338_v28 }
 0x5b5   :  { %5579 = vmatpush3.bf16.msra.mxu1 %v7346_v31 }
 0x5b6   :  { %5581 = vmatprep.subr.bf16.mxu1 %v7358_v36 }
 0x5b9   :  { %5583 = vmatpush3.bf16.msra.mxu1 %v7366_v39 }
 0x5ba   :  { %v7313_v23 = vpop.f32.mrb[12].mxu0  ;;  %5585 = vmatprep.subr.bf16.mxu1 %v7376_v50 }
 0x5bb   :  { %v7315_v24 = vpop.f32.mrb[13].mxu0  ;;  %v2121_v27 = vadd.f32 %v2114_v25, %v7313_v23 }
 0x5bc   :  { %v2122_v40 = vadd.f32 %v2118_v56, %v7315_v24 }
 0x5bd   :  { %5587 = vmatpush3.bf16.msra.mxu1 %v7384_v45  ;;  %v7474_v38 = vmax.f32 %v2121_v27, 0.0 }
 0x5be   :  { %5589 = vmatprep.subr.bf16.mxu1 %v7394_v61  ;;  %v7467_v34 = vmax.f32 %v2122_v40, 0.0 }
 0x5bf   :  { %v2219_v58 = vmul.f32 %v2187_v57, %v7474_v38 }
 0x5c0   :  { %v2220_v49 = vmul.f32 %v2187_v57, %v7467_v34 }
 0x5c1   :  { %5591 = vmatpush3.bf16.msra.mxu1 %v7402_v60 }
 0x5c2   :  { %5593 = vmatprep.subr.bf16.mxu1 %v7412_v3  ;;  %v2360_v6 = vmul.f32 %v2220_v49, %v7467_v34 }
 0x5c5   :  { %5595 = vmatpush3.bf16.msra.mxu1 %v7420_v5 }
 0x5c6   :  { %5597 = vmatprep.subr.bf16.mxu1 %v7433_v9 }
 0x5c9   :  { %5599 = vmatpush3.bf16.msra.mxu1 %v7444_v13 }
 0x5ca   :  { %5601 = vmatprep.subr.bf16.mxu1 %v7446_v14 }
 0x5cd   :  { %5603 = vmatpush3.bf16.msra.mxu1 %v7456_v16 }
 0x5ce   :  { %5605 = vmatprep.subr.bf16.mxu1 %v5572_v48 }
 0x5fa   :  { %v7348_v32 = vpop.f32.mrb[8].mxu0 }
 0x5fb   :  { %v1918_v33 = vpop.f32.mrb[9].mxu0  ;;  %v2127_v54 = vadd.f32 %v2114_v25, %v7348_v32  ;;  %v2197_v32 = vpop.permute.xlu1 %2196 }
 0x5fc   :  { %v2128_v22 = vadd.f32 %v2118_v56, %v1918_v33 }
 0x5fd   :  { %v7469_v35 = vmax.f32 %v2127_v54, 0.0 }
 0x5fe   :  { %v7464_v26 = vmax.f32 %v2128_v22, 0.0 }
 0x5ff   :  { %v2221_v23 = vmul.f32 %v2192_v29, %v7469_v35  ;;  %v2202_v8 = vpop.permute.xlu1 %2201 }
 0x600   :  { %v2222_v33 = vmul.f32 %v2192_v29, %v7464_v26 }
 0x601   :  { %v2233_v11 = vadd.f32 %v2221_v23, %v2219_v58 }
 0x602   :  { %v2362_v51 = vmul.f32 %v2222_v33, %v7464_v26 }
 0x63a   :  { %v1999_v2 = vpop.f32.mrb[14].mxu0 }
 0x63b   :  { %v2001_v17 = vpop.f32.mrb[15].mxu0  ;;  %v2133_v30 = vadd.f32 %v2114_v25, %v1999_v2  ;;  %v2245_v2 = vadd.f32 %v2222_v33, %v2220_v49 }
 0x63c   :  { %v2134_v48 = vadd.f32 %v2118_v56, %v2001_v17  ;;  %v2385_v17 = vadd.f32 %v2362_v51, %v2360_v6  ;;  %v2212_v51 = vpop.permute.xlu1 %2211 }
 0x63d   :  { %v7476_v24 = vmax.f32 %v2133_v30, 0.0 }
 0x63e   :  { %v2005_v18 = vpop.f32.mrb[16].mxu0  ;;  %v7472_v37 = vmax.f32 %v2134_v48, 0.0 }
 0x63f   :  { %v2007_v19 = vpop.f32.mrb[17].mxu0  ;;  %v2145_v41 = vadd.f32 %v2114_v25, %v2005_v18  ;;  %v2223_v59 = vmul.f32 %v2197_v32, %v7476_v24 }
 0x640   :  { %v2146_v44 = vadd.f32 %v2118_v56, %v2007_v19  ;;  %v2224_v52 = vmul.f32 %v2197_v32, %v7472_v37  ;;  %v2217_v32 = vpop.permute.xlu0 %2216 }
 0x641   :  { %v7487_v12 = vmax.f32 %v2145_v41, 0.0  ;;  %v2234_v22 = vadd.f32 %v2233_v11, %v2223_v59 }
 0x642   :  { %v2011_v20 = vpop.f32.mrb[20].mxu0  ;;  %v7484_v42 = vmax.f32 %v2146_v44, 0.0  ;;  %v2364_v18 = vmul.f32 %v2224_v52, %v7472_v37  ;;  %v2246_v48 = vadd.f32 %v2245_v2, %v2224_v52 }
 0x643   :  { %v2013_v21 = vpop.f32.mrb[21].mxu0  ;;  %v2157_v62 = vadd.f32 %v2114_v25, %v2011_v20  ;;  %v2227_v30 = vmul.f32 %v2207_v63, %v7487_v12 }
 0x644   :  { %v2158_v7 = vadd.f32 %v2118_v56, %v2013_v21  ;;  %v2228_v57 = vmul.f32 %v2207_v63, %v7484_v42  ;;  %v2386_v41 = vadd.f32 %v2385_v17, %v2364_v18 }
 0x645   :  { %v7500_v33 = vmax.f32 %v2157_v62, 0.0 }
 0x646   :  { %v7496_v27 = vmax.f32 %v2158_v7, 0.0 }
 0x647   :  { %v2231_v62 = vmul.f32 %v2217_v32, %v7500_v33 }
 0x648   :  { %v2232_v7 = vmul.f32 %v2217_v32, %v7496_v27 }
 0x67a   :  { %v2082_v53 = vpop.f32.mrb[10].mxu0 }
 0x67b   :  { %v2139_v47 = vadd.f32 %v2114_v25, %v2082_v53  ;;  %v2084_v4 = vpop.f32.mrb[11].mxu0 }
 0x67c   :  { %v2140_v10 = vadd.f32 %v2118_v56, %v2084_v4  ;;  %v2368_v4 = vmul.f32 %v2228_v57, %v7484_v42 }
 0x67d   :  { %v7489_v15 = vmax.f32 %v2139_v47, 0.0 }
 0x67e   :  { %v7492_v19 = vmax.f32 %v2140_v10, 0.0  ;;  %v2088_v0 = vpop.f32.mrb[18].mxu0 }
 0x67f   :  { %v2225_v21 = vmul.f32 %v2202_v8, %v7489_v15  ;;  %v2151_v40 = vadd.f32 %v2114_v25, %v2088_v0  ;;  %v2090_v54 = vpop.f32.mrb[19].mxu0 }
 0x680   :  { %v2226_v20 = vmul.f32 %v2202_v8, %v7492_v19  ;;  %v2152_v29 = vadd.f32 %v2118_v56, %v2090_v54 }
 0x681   :  { %v2235_v44 = vadd.f32 %v2234_v22, %v2225_v21  ;;  %v7502_v49 = vmax.f32 %v2151_v40, 0.0  ;;  %v2372_v40 = vmul.f32 %v2232_v7, %v7496_v27 }
 0x682   :  { %v2247_v53 = vadd.f32 %v2246_v48, %v2226_v20  ;;  %v2366_v25 = vmul.f32 %v2226_v20, %v7492_v19  ;;  %v7505_v47 = vmax.f32 %v2152_v29, 0.0  ;;  %v2094_v52 = vpop.f32.mrb[22].mxu0  ;;  %v2361_v20 = vmul.f32 %v2221_v23, %v7469_v35 }
 0x683   :  { %v2229_v56 = vmul.f32 %v2212_v51, %v7502_v49  ;;  %v2236_v6 = vadd.f32 %v2235_v44, %v2227_v30  ;;  %v2095_v63 = vpop.f32.mrb[23].mxu0 }
 0x684   :  { %v2387_v8 = vadd.f32 %v2386_v41, %v2366_v25  ;;  %v2230_v10 = vmul.f32 %v2212_v51, %v7505_v47  ;;  %v2248_v11 = vadd.f32 %v2247_v53, %v2228_v57  ;;  %v2359_v51 = vmul.f32 %v2219_v58, %v7474_v38 }
 0x685   :  { %v2237_v2 = vadd.f32 %v2236_v6, %v2229_v56  ;;  %v2363_v57 = vmul.f32 %v2223_v59, %v7476_v24  ;;  %v2367_v58 = vmul.f32 %v2227_v30, %v7487_v12 }
 0x686   :  { %v2249_v17 = vadd.f32 %v2248_v11, %v2230_v10  ;;  %v2370_v18 = vmul.f32 %v2230_v10, %v7505_v47  ;;  %v2388_v0 = vadd.f32 %v2387_v8, %v2368_v4  ;;  %v2373_v52 = vadd.f32 %v2361_v20, %v2359_v51 }
 0x687   :  { %v2238_v22 = vadd.f32 %v2237_v2, %v2231_v62  ;;  %v2365_v4 = vmul.f32 %v2225_v21, %v7489_v15 }
 0x688   :  { %v2250_v54 = vadd.f32 %v2249_v17, %v2232_v7  ;;  %v2389_v48 = vadd.f32 %v2388_v0, %v2370_v18  ;;  %v2374_v7 = vadd.f32 %v2373_v52, %v2363_v57 }
 0x689   :  { %v2239_v29 = vrot.slane %v2238_v22, 4 }
 0x68a   :  { %v2390_v44 = vadd.f32 %v2389_v48, %v2372_v40  ;;  %v2251_v41 = vrot.slane %v2250_v54, 4  ;;  %v2375_v2 = vadd.f32 %v2374_v7, %v2365_v4  ;;  %v2369_v40 = vmul.f32 %v2229_v56, %v7502_v49 }
 0x68b   :  { %v2240_v32 = vadd.f32 %v2239_v29, %v2238_v22  ;;  %v2371_v29 = vmul.f32 %v2231_v62, %v7500_v33  ;;  %v2483_v62 = vld [vmem:[#allocation20 + $0x38] sm:$0xff] }
 0x68c   :  { %v2252_v53 = vadd.f32 %v2251_v41, %v2250_v54  ;;  %v2391_v25 = vrot.slane %v2390_v44, 4  ;;  %v2376_v54 = vadd.f32 %v2375_v2, %v2367_v58  ;;  %v2480_v41 = vld [vmem:[#allocation20 + $0x20] sm:$0xff]  ;;  %v2694_v58 = vld [vmem:[#allocation25 + $0x88] sm:$0xff] }
 0x68d   :  { %v2241_v6 = vrot.slane %v2240_v32, 2 }
 0x68e   :  { %v2253_v63 = vrot.slane %v2252_v53, 2  ;;  %v2392_v8 = vadd.f32 %v2391_v25, %v2390_v44  ;;  %v2377_v20 = vadd.f32 %v2376_v54, %v2369_v40 }
 0x68f   :  { %v2242_v10 = vadd.f32 %v2241_v6, %v2240_v32 }
 0x690   :  { %v2254_v11 = vadd.f32 %v2253_v63, %v2252_v53  ;;  %v2393_v23 = vrot.slane %v2392_v8, 2  ;;  %v2378_v30 = vadd.f32 %v2377_v20, %v2371_v29  ;;  %v2469_v63 = vld [vmem:[#allocation22] sm:$0x1]  ;;  %v2710_v20 = vld [vmem:[#allocation25 + $0x108] sm:$0xff] }
 0x691   :  { %v2243_v17 = vrot.slane %v2242_v10, 1  ;;  %v2718_v29 = vld [vmem:[#allocation25 + $0x148] sm:$0xff] }
 0x692   :  { %v2255_v18 = vrot.slane %v2254_v11, 1  ;;  %v2394_v0 = vadd.f32 %v2393_v23, %v2392_v8  ;;  %v2379_v56 = vrot.slane %v2378_v30, 4 }
 0x693   :  { %v2244_v48 = vadd.f32 %v2243_v17, %v2242_v10  ;;  %v2678_v10 = vld [vmem:[#allocation25 + $0x8] sm:$0xff]  ;;  %v2677_v17 = vld [vmem:[#allocation25] sm:$0xff] }
 0x694   :  { %v2256_v59 = vadd.f32 %v2255_v18, %v2254_v11  ;;  %v2395_v22 = vrot.slane %v2394_v0, 1  ;;  %v2686_v11 = vld [vmem:[#allocation25 + $0x48] sm:$0xff]  ;;  %v2685_v18 = vld [vmem:[#allocation25 + $0x40] sm:$0xff] }
 0x695   :  { %v5652_v2 = vpack.c.bf16 %v2686_v11, %v2678_v10  ;;  %v2789_v11 = vld [vmem:[#allocation25 + $0x380] sm:$0xff] }
 0x696   :  { %2353 = vmatprep.mubr.f32.mxu1 %v2256_v59  ;;  %v2396_v21 = vadd.f32 %v2395_v22, %v2394_v0  ;;  %v2473_v0 = vld [vmem:[#allocation23] sm:$0x1]  ;;  %v2702_v59 = vld [vmem:[#allocation25 + $0xc8] sm:$0xff]  ;;  %v5654_v22 = vpack.c.bf16 %v2685_v18, %v2677_v17 }
 0x697   :  { %2354 = vmatmul.mubr.f32.vlgmr.msra.gmra.mrb[8].mxu1 %v2244_v48  ;;  %v5656_v54 = vpack.c.bf16 %v2702_v59, %v2694_v58  ;;  %v2693_v48 = vld [vmem:[#allocation25 + $0x80] sm:$0xff]  ;;  %v2814_v17 = vld [vmem:[#allocation25 + $0x448] sm:$0xff] }
 0x698   :  { %5607 = vmatpush3.bf16.msra.mxu1 %v7329_v55  ;;  %2461 = vmatprep.mubr.f32.mxu1 %v2396_v21  ;;  %v2380_v55 = vadd.f32 %v2379_v56, %v2378_v30  ;;  %v2701_v21 = vld [vmem:[#allocation25 + $0xc0] sm:$0xff]  ;;  %v5660_v56 = vpack.c.bf16 %v2718_v29, %v2710_v20  ;;  %v2838_v29 = vld [vmem:[#allocation25 + $0x508] sm:$0xff] }
 0x699   :  { %5609 = vmatprep.subr.bf16.mxu1 %v7338_v28  ;;  %v5658_v30 = vpack.c.bf16 %v2701_v21, %v2693_v48  ;;  %v2805_v58 = vld [vmem:[#allocation25 + $0x400] sm:$0xff] }
 0x69a   :  { %v2381_v28 = vrot.slane %v2380_v55, 2  ;;  %v2813_v59 = vld [vmem:[#allocation25 + $0x440] sm:$0xff] }
 0x69b   :  { %v2821_v21 = vld [vmem:[#allocation25 + $0x480] sm:$0xff] }
 0x69c   :  { %5611 = vmatpush3.bf16.msra.mxu1 %v7346_v31  ;;  %v2382_v31 = vadd.f32 %v2381_v28, %v2380_v55  ;;  %v2709_v55 = vld [vmem:[#allocation25 + $0x100] sm:$0xff] }
 0x69d   :  { %5613 = vmatprep.subr.bf16.mxu1 %v7358_v36  ;;  %v2717_v28 = vld [vmem:[#allocation25 + $0x140] sm:$0xff] }
 0x69e   :  { %v2383_v36 = vrot.slane %v2382_v31, 1  ;;  %v2829_v20 = vld [vmem:[#allocation25 + $0x4c0] sm:$0xff] }
 0x6a0   :  { %5615 = vmatpush3.bf16.msra.mxu1 %v7366_v39  ;;  %v2384_v39 = vadd.f32 %v2383_v36, %v2382_v31  ;;  %v2726_v31 = vld [vmem:[#allocation25 + $0x188] sm:$0xff] }
 0x6a1   :  { %5617 = vmatprep.subr.bf16.mxu1 %v7376_v50  ;;  %v2477_v50 = vld [vmem:[#allocation20 + $0x8] sm:$0xff] }
 0x6a2   :  { %v2734_v36 = vld [vmem:[#allocation25 + $0x1c8] sm:$0xff] }
 0x6a4   :  { %5619 = vmatpush3.bf16.msra.mxu1 %v7384_v45  ;;  %v2479_v45 = vld [vmem:[#allocation20 + $0x18] sm:$0xff] }
 0x6a5   :  { %5621 = vmatprep.subr.bf16.mxu1 %v7394_v61  ;;  %v2476_v61 = vld [vmem:[#allocation20] sm:$0xff] }
 0x6a8   :  { %5623 = vmatpush3.bf16.msra.mxu1 %v7402_v60  ;;  %v5636_v60 = vpack.c.bf16 %v2479_v45, %v2477_v50  ;;  %v5664_v50 = vpack.c.bf16 %v2734_v36, %v2726_v31  ;;  %v2725_v45 = vld [vmem:[#allocation25 + $0x180] sm:$0xff]  ;;  %v2854_v36 = vld [vmem:[#allocation25 + $0x588] sm:$0xff] }
 0x6a9   :  { %5625 = vmatprep.subr.bf16.mxu1 %v7412_v3  ;;  %v2478_v3 = vld [vmem:[#allocation20 + $0x10] sm:$0xff]  ;;  %v2845_v31 = vld [vmem:[#allocation25 + $0x540] sm:$0xff] }
 0x6ac   :  { %5627 = vmatpush3.bf16.msra.mxu1 %v7420_v5  ;;  %v2481_v5 = vld [vmem:[#allocation20 + $0x28] sm:$0xff] }
 0x6ad   :  { %5629 = vmatprep.subr.bf16.mxu1 %v7433_v9  ;;  %v5638_v9 = vpack.c.bf16 %v2478_v3, %v2476_v61  ;;  %v5640_v44 = vpack.c.bf16 %v2483_v62, %v2481_v5  ;;  %v2733_v61 = vld [vmem:[#allocation25 + $0x1c0] sm:$0xff]  ;;  %v2750_v3 = vld [vmem:[#allocation25 + $0x248] sm:$0xff] }
 0x6ae   :  { %v5666_v5 = vpack.c.bf16 %v2733_v61, %v2725_v45  ;;  %v2853_v61 = vld [vmem:[#allocation25 + $0x580] sm:$0xff] }
 0x6b0   :  { %5631 = vmatpush3.bf16.msra.mxu1 %v7444_v13  ;;  %v2482_v13 = vld [vmem:[#allocation20 + $0x30] sm:$0xff] }
 0x6b1   :  { %5633 = vmatprep.subr.bf16.mxu1 %v7446_v14  ;;  %v5642_v14 = vpack.c.bf16 %v2482_v13, %v2480_v41  ;;  %v2758_v41 = vld [vmem:[#allocation25 + $0x288] sm:$0xff] }
 0x6b2   :  { %v2766_v13 = vld [vmem:[#allocation25 + $0x2c8] sm:$0xff] }
 0x6b4   :  { %5635 = vmatpush3.bf16.msra.mxu1 %v7456_v16 }
 0x6b5   :  { %5637 = vmatprep.subr.bf16.mxu1 %v5636_v60 }
 0x6b7   :  { %2462 = vmatmul.mubr.f32.vlgmr.msra.gmra.mrb[10].mxu1 %v2384_v39  ;;  %v5662_v39 = vpack.c.bf16 %v2717_v28, %v2709_v55  ;;  %v2837_v28 = vld [vmem:[#allocation25 + $0x500] sm:$0xff] }
 0x6b8   :  { %2552 = vmatprep.mubr.f32.mxu1 %v8283_v1  ;;  %5639 = vmatpush1.bf16.msra.mxu1 %v5638_v9 }
 0x6b9   :  { %5641 = vmatprep.subr.bf16.mxu1 %v5640_v44 }
 0x6bc   :  { %5643 = vmatpush1.bf16.msra.mxu1 %v5642_v14 }
 0x6bd   :  { %5645 = vmatprep.subr.bf16.mxu1 %v5636_v60  ;;  %v2742_v60 = vld [vmem:[#allocation25 + $0x208] sm:$0xff] }
 0x6be   :  { %v5668_v62 = vpack.c.bf16 %v2750_v3, %v2742_v60  ;;  %v2861_v60 = vld [vmem:[#allocation25 + $0x5c0] sm:$0xff]  ;;  %v2870_v3 = vld [vmem:[#allocation25 + $0x608] sm:$0xff] }
 0x76a   :  { %v4754_v16 = vpop.f32.mrb[8].mxu1 }
 0x76b   :  { %v4755_v51 = vpop.f32.mrb[9].mxu1 }
 0x76c   :  { %v4756_v57 = vadd.f32 %v4755_v51, %v4754_v16  ;;  %v5672_v16 = vpack.c.bf16 %v2766_v13, %v2758_v41  ;;  %v2757_v51 = vld [vmem:[#allocation25 + $0x280] sm:$0xff] }
 0x76d   :  { %v2877_v41 = vld [vmem:[#allocation25 + $0x640] sm:$0xff] }
 0x76e   :  { %v2467_v25 = vmul.f32 %v4756_v57, %v4756_v57 }
 0x78a   :  { %v4789_v32 = vpop.f32.mrb[10].mxu1 }
 0x78b   :  { %v4790_v53 = vpop.f32.mrb[11].mxu1 }
 0x78c   :  { %v4791_v52 = vadd.f32 %v4790_v53, %v4789_v32  ;;  %v2774_v32 = vld [vmem:[#allocation25 + $0x308] sm:$0xff] }
 0x78d   :  { %v2782_v53 = vld [vmem:[#allocation25 + $0x348] sm:$0xff] }
 0x78e   :  { %v2468_v4 = vsub.f32 %v4791_v52, %v2467_v25  ;;  %v5676_v52 = vpack.c.bf16 %v2782_v53, %v2774_v32  ;;  %v2893_v32 = vld [vmem:[#allocation25 + $0x6c0] sm:$0xff] }
 0x790   :  { %v2470_v6 = vadd.f32 1e-05, %v2468_v4  ;;  %v2773_v4 = vld [vmem:[#allocation25 + $0x300] sm:$0xff] }
 0x792   :  { %6223 = vrsqrt.f32 %v2470_v6  ;;  %v2781_v6 = vld [vmem:[#allocation25 + $0x340] sm:$0xff] }
 0x79c   :  { %v6224_v8 = vpop.eup %6223 }
 0x79d   :  { %v2472_v7 = vmul.f32 %v6224_v8, %v2469_v63  ;;  %v2790_v63 = vld [vmem:[#allocation25 + $0x388] sm:$0xff] }
 0x79e   :  { %v2798_v8 = vld [vmem:[#allocation25 + $0x3c8] sm:$0xff] }
 0x79f   :  { %4697 = vmatmul.mubr.msk.f32.vlgmr.msra.gmra.mrb[12].mxu1 %vm2484_vm5, %v2472_v7  ;;  %v2474_v23 = vmul.f32 %v4756_v57, %v2472_v7  ;;  %v2765_v57 = vld [vmem:[#allocation25 + $0x2c0] sm:$0xff]  ;;  %v5678_v7 = vpack.c.bf16 %v2781_v6, %v2773_v4  ;;  %v5680_v10 = vpack.c.bf16 %v2798_v8, %v2790_v63 }
 0x7a0   :  { %5647 = vmatpush1.bf16.msra.mxu1 %v5638_v9  ;;  %2626 = vmatprep.mubr.f32.mxu1 %v8283_v1  ;;  %v2741_v9 = vld [vmem:[#allocation25 + $0x200] sm:$0xff]  ;;  %v5674_v25 = vpack.c.bf16 %v2765_v57, %v2757_v51 }
 0x7a1   :  { %5649 = vmatprep.subr.bf16.mxu1 %v5640_v44  ;;  %v2475_v40 = vsub.f32 %v2473_v0, %v2474_v23  ;;  %v2749_v44 = vld [vmem:[#allocation25 + $0x240] sm:$0xff] }
 0x7a2   :  { %v2797_v23 = vld [vmem:[#allocation25 + $0x3c0] sm:$0xff] }
 0x7a3   :  { %v5682_v18 = vpack.c.bf16 %v2797_v23, %v2789_v11  ;;  %v2885_v57 = vld [vmem:[#allocation25 + $0x680] sm:$0xff] }
 0x7a4   :  { %5651 = vmatpush1.bf16.msra.mxu1 %v5642_v14  ;;  %v5670_v14 = vpack.c.bf16 %v2749_v44, %v2741_v9  ;;  %v2869_v44 = vld [vmem:[#allocation25 + $0x600] sm:$0xff]  ;;  %v5706_v53 = vpack.c.bf16 %v2893_v32, %v2885_v57  ;;  %v2720_v57 = vld [vmem:[#allocation25 + $0x158] sm:$0xff] }
 0x7a5   :  { %5653 = vmatprep.subr.bf16.mxu1 %v5652_v2  ;;  %v2806_v2 = vld [vmem:[#allocation25 + $0x408] sm:$0xff]  ;;  %v5702_v13 = vpack.c.bf16 %v2877_v41, %v2869_v44  ;;  %v2901_v4 = vld [vmem:[#allocation25 + $0x700] sm:$0xff] }
 0x7a6   :  { %v5684_v0 = vpack.c.bf16 %v2814_v17, %v2806_v2  ;;  %v2909_v63 = vld [vmem:[#allocation25 + $0x740] sm:$0xff] }
 0x7a7   :  { %4698 = vmatmul.mubr.msk.f32.vlgmr.msra.gmra.mrb[14].mxu1 %vm2484_vm5, %v2475_v40  ;;  %v2830_v40 = vld [vmem:[#allocation25 + $0x4c8] sm:$0xff]  ;;  %v5710_v8 = vpack.c.bf16 %v2909_v63, %v2901_v4  ;;  %v2917_v23 = vld [vmem:[#allocation25 + $0x780] sm:$0xff]  ;;  %v2711_v4 = vld [vmem:[#allocation25 + $0x110] sm:$0xff] }
 0x7a8   :  { %5655 = vmatpush1.bf16.msra.mxu1 %v5654_v22  ;;  %v2822_v22 = vld [vmem:[#allocation25 + $0x488] sm:$0xff]  ;;  %v2925_v2 = vld [vmem:[#allocation25 + $0x7c0] sm:$0xff]  ;;  %v2728_v63 = vld [vmem:[#allocation25 + $0x198] sm:$0xff] }
 0x7a9   :  { %5657 = vmatprep.subr.bf16.mxu1 %v5656_v54  ;;  %v5686_v54 = vpack.c.bf16 %v2813_v59, %v2805_v58  ;;  %v5688_v48 = vpack.c.bf16 %v2830_v40, %v2822_v22  ;;  %v5714_v17 = vpack.c.bf16 %v2925_v2, %v2917_v23  ;;  %v2679_v40 = vld [vmem:[#allocation25 + $0x10] sm:$0xff]  ;;  %v2744_v2 = vld [vmem:[#allocation25 + $0x218] sm:$0xff] }
 0x7aa   :  { %v2735_v23 = vld [vmem:[#allocation25 + $0x1d0] sm:$0xff] }
 0x7ac   :  { %5659 = vmatpush1.bf16.msra.mxu1 %v5658_v30  ;;  %v2846_v30 = vld [vmem:[#allocation25 + $0x548] sm:$0xff] }
 0x7ad   :  { %5661 = vmatprep.subr.bf16.mxu1 %v5660_v56  ;;  %v5690_v56 = vpack.c.bf16 %v2829_v20, %v2821_v21  ;;  %v5692_v55 = vpack.c.bf16 %v2846_v30, %v2838_v29  ;;  %v2696_v21 = vld [vmem:[#allocation25 + $0x98] sm:$0xff] }
 0x7ae   :  { %v2704_v20 = vld [vmem:[#allocation25 + $0xd8] sm:$0xff] }
 0x7b0   :  { %5663 = vmatpush1.bf16.msra.mxu1 %v5662_v39  ;;  %v2862_v39 = vld [vmem:[#allocation25 + $0x5c8] sm:$0xff] }
 0x7b1   :  { %5665 = vmatprep.subr.bf16.mxu1 %v5664_v50  ;;  %v5694_v50 = vpack.c.bf16 %v2845_v31, %v2837_v28  ;;  %v5696_v45 = vpack.c.bf16 %v2862_v39, %v2854_v36 }
 0x7b4   :  { %5667 = vmatpush1.bf16.msra.mxu1 %v5666_v5  ;;  %v2878_v5 = vld [vmem:[#allocation25 + $0x648] sm:$0xff] }
 0x7b5   :  { %5669 = vmatprep.subr.bf16.mxu1 %v5668_v62  ;;  %v5698_v62 = vpack.c.bf16 %v2861_v60, %v2853_v61  ;;  %v5700_v9 = vpack.c.bf16 %v2878_v5, %v2870_v3 }
 0x7b8   :  { %5671 = vmatpush1.bf16.msra.mxu1 %v5670_v14  ;;  %v2886_v14 = vld [vmem:[#allocation25 + $0x688] sm:$0xff] }
 0x7b9   :  { %5673 = vmatprep.subr.bf16.mxu1 %v5672_v16  ;;  %v2894_v16 = vld [vmem:[#allocation25 + $0x6c8] sm:$0xff] }
 0x7ba   :  { %v5704_v51 = vpack.c.bf16 %v2894_v16, %v2886_v14 }
 0x7bc   :  { %5675 = vmatpush1.bf16.msra.mxu1 %v5674_v25  ;;  %v2902_v25 = vld [vmem:[#allocation25 + $0x708] sm:$0xff] }
 0x7bd   :  { %5677 = vmatprep.subr.bf16.mxu1 %v5676_v52  ;;  %v2910_v52 = vld [vmem:[#allocation25 + $0x748] sm:$0xff] }
 0x7be   :  { %v5708_v6 = vpack.c.bf16 %v2910_v52, %v2902_v25 }
 0x7c0   :  { %5679 = vmatpush1.bf16.msra.mxu1 %v5678_v7  ;;  %v2918_v7 = vld [vmem:[#allocation25 + $0x788] sm:$0xff] }
 0x7c1   :  { %5681 = vmatprep.subr.bf16.mxu1 %v5680_v10  ;;  %v2926_v10 = vld [vmem:[#allocation25 + $0x7c8] sm:$0xff] }
 0x7c2   :  { %v5712_v11 = vpack.c.bf16 %v2926_v10, %v2918_v7 }
 0x7c4   :  { %5683 = vmatpush1.bf16.msra.mxu1 %v5682_v18  ;;  %v2680_v18 = vld [vmem:[#allocation25 + $0x18] sm:$0xff] }
 0x7c5   :  { %5685 = vmatprep.subr.bf16.mxu1 %v5684_v0  ;;  %v2688_v0 = vld [vmem:[#allocation25 + $0x58] sm:$0xff] }
 0x7c6   :  { %v5716_v58 = vpack.c.bf16 %v2688_v0, %v2680_v18 }
 0x7c8   :  { %5687 = vmatpush1.bf16.msra.mxu1 %v5686_v54 }
 0x7c9   :  { %5689 = vmatprep.subr.bf16.mxu1 %v5688_v48  ;;  %v2687_v48 = vld [vmem:[#allocation25 + $0x50] sm:$0xff] }
 0x7ca   :  { %v5718_v30 = vpack.c.bf16 %v2687_v48, %v2679_v40  ;;  %v2768_v40 = vld [vmem:[#allocation25 + $0x2d8] sm:$0xff] }
 0x7cc   :  { %5691 = vmatpush1.bf16.msra.mxu1 %v5690_v56  ;;  %v5720_v56 = vpack.c.bf16 %v2704_v20, %v2696_v21  ;;  %v2759_v21 = vld [vmem:[#allocation25 + $0x290] sm:$0xff] }
 0x7cd   :  { %5693 = vmatprep.subr.bf16.mxu1 %v5692_v55  ;;  %v2767_v20 = vld [vmem:[#allocation25 + $0x2d0] sm:$0xff] }
 0x7d0   :  { %5695 = vmatpush1.bf16.msra.mxu1 %v5694_v50 }
 0x7d1   :  { %5697 = vmatprep.subr.bf16.mxu1 %v5696_v45 }
 0x7d4   :  { %5699 = vmatpush1.bf16.msra.mxu1 %v5698_v62 }
 0x7d5   :  { %5701 = vmatprep.subr.bf16.mxu1 %v5700_v9 }
 0x7d8   :  { %5703 = vmatpush1.bf16.msra.mxu1 %v5702_v13 }
 0x7d9   :  { %5705 = vmatprep.subr.bf16.mxu1 %v5704_v51  ;;  %v2712_v51 = vld [vmem:[#allocation25 + $0x118] sm:$0xff] }
 0x7da   :  { %v5724_v52 = vpack.c.bf16 %v2720_v57, %v2712_v51  ;;  %v2831_v51 = vld [vmem:[#allocation25 + $0x4d0] sm:$0xff]  ;;  %v2840_v57 = vld [vmem:[#allocation25 + $0x518] sm:$0xff] }
 0x7dc   :  { %5707 = vmatpush1.bf16.msra.mxu1 %v5706_v53 }
 0x7dd   :  { %5709 = vmatprep.subr.bf16.mxu1 %v5708_v6  ;;  %v2719_v6 = vld [vmem:[#allocation25 + $0x150] sm:$0xff] }
 0x7de   :  { %v5726_v7 = vpack.c.bf16 %v2719_v6, %v2711_v4  ;;  %v2839_v6 = vld [vmem:[#allocation25 + $0x510] sm:$0xff] }
 0x7e0   :  { %5711 = vmatpush1.bf16.msra.mxu1 %v5710_v8  ;;  %v2736_v8 = vld [vmem:[#allocation25 + $0x1d8] sm:$0xff] }
 0x7e1   :  { %5713 = vmatprep.subr.bf16.mxu1 %v5712_v11  ;;  %v5728_v10 = vpack.c.bf16 %v2736_v8, %v2728_v63  ;;  %v2727_v11 = vld [vmem:[#allocation25 + $0x190] sm:$0xff]  ;;  %v2856_v8 = vld [vmem:[#allocation25 + $0x598] sm:$0xff] }
 0x7e2   :  { %v5730_v18 = vpack.c.bf16 %v2735_v23, %v2727_v11  ;;  %v2847_v63 = vld [vmem:[#allocation25 + $0x550] sm:$0xff] }
 0x7e3   :  { %v2855_v23 = vld [vmem:[#allocation25 + $0x590] sm:$0xff] }
 0x7e4   :  { %5715 = vmatpush1.bf16.msra.mxu1 %v5714_v17  ;;  %v2752_v17 = vld [vmem:[#allocation25 + $0x258] sm:$0xff] }
 0x7e5   :  { %5717 = vmatprep.subr.bf16.mxu1 %v5716_v58  ;;  %v5732_v0 = vpack.c.bf16 %v2752_v17, %v2744_v2  ;;  %v2743_v58 = vld [vmem:[#allocation25 + $0x210] sm:$0xff]  ;;  %v2872_v17 = vld [vmem:[#allocation25 + $0x618] sm:$0xff] }
 0x7e6   :  { %v2863_v2 = vld [vmem:[#allocation25 + $0x5d0] sm:$0xff] }
 0x872   :  { %v2554_v59 = vpop.f32.mrb[12].mxu1 }
 0x873   :  { %v2556_v22 = vpop.f32.mrb[13].mxu1  ;;  %v2636_v54 = vrot.slane %v2554_v59, %v7160_v43  ;;  %v2751_v59 = vld [vmem:[#allocation25 + $0x250] sm:$0xff] }
 0x874   :  { %v2640_v29 = vrot.slane %v2556_v22, %v7160_v43  ;;  %v2760_v22 = vld [vmem:[#allocation25 + $0x298] sm:$0xff] }
 0x875   :  { %v2641_v55 = vmul.f32 %v2636_v54, %v7474_v38  ;;  %v2643_v28 = vmul.f32 %v2636_v54, %v7469_v35  ;;  %v2645_v31 = vmul.f32 %v2636_v54, %v7476_v24  ;;  %v2647_v36 = vmul.f32 %v2636_v54, %v7489_v15 }
 0x876   :  { %v2642_v50 = vmul.f32 %v2640_v29, %v7467_v34  ;;  %v2644_v45 = vmul.f32 %v2640_v29, %v7464_v26  ;;  %v2646_v61 = vmul.f32 %v2640_v29, %v7472_v37  ;;  %v2648_v60 = vmul.f32 %v2640_v29, %v7492_v19 }
 0x877   :  { %v2650_v38 = vmul.f32 %v2640_v29, %v7484_v42  ;;  %v2649_v35 = vmul.f32 %v2636_v54, %v7487_v12  ;;  %v2652_v24 = vmul.f32 %v2640_v29, %v7505_v47  ;;  %v2651_v62 = vmul.f32 %v2636_v54, %v7502_v49  ;;  %v2695_v49 = vld [vmem:[#allocation25 + $0x90] sm:$0xff] }
 0x878   :  { %v2654_v34 = vmul.f32 %v2640_v29, %v7496_v27  ;;  %v2653_v26 = vmul.f32 %v2636_v54, %v7500_v33  ;;  %v2703_v27 = vld [vmem:[#allocation25 + $0xd0] sm:$0xff]  ;;  %v5734_v54 = vpack.c.bf16 %v2751_v59, %v2743_v58  ;;  %v5736_v48 = vpack.c.bf16 %v2768_v40, %v2760_v22  ;;  %v2776_v29 = vld [vmem:[#allocation25 + $0x318] sm:$0xff] }
 0x879   :  { %v5722_v25 = vpack.c.bf16 %v2703_v27, %v2695_v49  ;;  %v2823_v27 = vld [vmem:[#allocation25 + $0x490] sm:$0xff]  ;;  %v2888_v40 = vld [vmem:[#allocation25 + $0x698] sm:$0xff] }
 0x87a   :  { %v2628_v39 = vpop.f32.mrb[14].mxu1  ;;  %v2871_v59 = vld [vmem:[#allocation25 + $0x610] sm:$0xff] }
 0x87b   :  { %v2658_v3 = vrot.slane %v2628_v39, %v7160_v43  ;;  %v2630_v5 = vpop.f32.mrb[15].mxu1  ;;  %v2800_v39 = vld [vmem:[#allocation25 + $0x3d8] sm:$0xff]  ;;  %v2879_v22 = vld [vmem:[#allocation25 + $0x650] sm:$0xff] }
 0x87c   :  { %v2662_v15 = vrot.slane %v2630_v5, %v7160_v43  ;;  %v2816_v5 = vld [vmem:[#allocation25 + $0x458] sm:$0xff] }
 0x87d   :  { %v7558_v37 = vadd.f32 %v2658_v3, %v2641_v55  ;;  %v7560_v19 = vadd.f32 %v2658_v3, %v2643_v28  ;;  %v7562_v9 = vadd.f32 %v2658_v3, %v2645_v31  ;;  %v7564_v44 = vadd.f32 %v2658_v3, %v2647_v36  ;;  %v2775_v28 = vld [vmem:[#allocation25 + $0x310] sm:$0xff]  ;;  %v2792_v36 = vld [vmem:[#allocation25 + $0x398] sm:$0xff] }
 0x87e   :  { %v7566_v42 = vadd.f32 %v2662_v15, %v2642_v50  ;;  %v7568_v12 = vadd.f32 %v2662_v15, %v2644_v45  ;;  %v7570_v47 = vadd.f32 %v2662_v15, %v2646_v61  ;;  %v7572_v41 = vadd.f32 %v2662_v15, %v2648_v60  ;;  %v2783_v31 = vld [vmem:[#allocation25 + $0x350] sm:$0xff] }
 0x87f   :  { %v7574_v13 = vadd.f32 %v2662_v15, %v2650_v38  ;;  %v7576_v33 = vadd.f32 %v2658_v3, %v2649_v35  ;;  %v7578_v14 = vadd.f32 %v2662_v15, %v2652_v24  ;;  %v7580_v16 = vadd.f32 %v2658_v3, %v2651_v62  ;;  %v2791_v61 = vld [vmem:[#allocation25 + $0x390] sm:$0xff]  ;;  %v2824_v62 = vld [vmem:[#allocation25 + $0x498] sm:$0xff] }
 0x880   :  { %2997 = vmatprep.mubr.f32.mxu1 %v7566_v42  ;;  %v7583_v32 = vadd.f32 %v2662_v15, %v2654_v34  ;;  %v7585_v53 = vadd.f32 %v2658_v3, %v2653_v26  ;;  %v5742_v50 = vpack.c.bf16 %v2783_v31, %v2775_v28  ;;  %v5744_v45 = vpack.c.bf16 %v2800_v39, %v2792_v36  ;;  %v2799_v60 = vld [vmem:[#allocation25 + $0x3d0] sm:$0xff]  ;;  %v2808_v3 = vld [vmem:[#allocation25 + $0x418] sm:$0xff] }
 0x881   :  { %2998 = vmatmul.mubr.f32.vlgmr.msra.gmra.mrb[16].mxu1 %v7558_v37  ;;  %v5746_v38 = vpack.c.bf16 %v2799_v60, %v2791_v61  ;;  %v5748_v35 = vpack.c.bf16 %v2816_v5, %v2808_v3  ;;  %v2807_v24 = vld [vmem:[#allocation25 + $0x410] sm:$0xff]  ;;  %v2832_v34 = vld [vmem:[#allocation25 + $0x4d8] sm:$0xff]  ;;  %v2682_v5 = vld [vmem:[#allocation25 + $0x28] sm:$0xff] }
 0x882   :  { %5719 = vmatpush1.bf16.msra.mxu1 %v5718_v30  ;;  %3001 = vmatprep.mubr.f32.mxu1 %v7568_v12  ;;  %v2784_v30 = vld [vmem:[#allocation25 + $0x358] sm:$0xff]  ;;  %v2815_v15 = vld [vmem:[#allocation25 + $0x450] sm:$0xff]  ;;  %v5752_v49 = vpack.c.bf16 %v2832_v34, %v2824_v62  ;;  %v2689_v62 = vld [vmem:[#allocation25 + $0x60] sm:$0xff] }
 0x883   :  { %5721 = vmatprep.subr.bf16.mxu1 %v5720_v56  ;;  %v5738_v56 = vpack.c.bf16 %v2767_v20, %v2759_v21  ;;  %v5740_v55 = vpack.c.bf16 %v2784_v30, %v2776_v29  ;;  %v5750_v26 = vpack.c.bf16 %v2815_v15, %v2807_v24  ;;  %v2887_v20 = vld [vmem:[#allocation25 + $0x690] sm:$0xff]  ;;  %v2904_v30 = vld [vmem:[#allocation25 + $0x718] sm:$0xff]  ;;  %v2681_v15 = vld [vmem:[#allocation25 + $0x20] sm:$0xff] }
 0x884   :  { %v2895_v29 = vld [vmem:[#allocation25 + $0x6d0] sm:$0xff]  ;;  %v2920_v39 = vld [vmem:[#allocation25 + $0x798] sm:$0xff]  ;;  %v2698_v34 = vld [vmem:[#allocation25 + $0xa8] sm:$0xff] }
 0x885   :  { %3002 = vmatmul.mubr.f32.gmra.mrb[18].mxu1 %v7560_v19  ;;  %v2903_v31 = vld [vmem:[#allocation25 + $0x710] sm:$0xff] }
 0x886   :  { %5723 = vmatpush1.bf16.msra.mxu1 %v5722_v25  ;;  %3007 = vmatprep.mubr.f32.mxu1 %v7570_v47  ;;  %v2848_v25 = vld [vmem:[#allocation25 + $0x558] sm:$0xff]  ;;  %v2911_v36 = vld [vmem:[#allocation25 + $0x750] sm:$0xff] }
 0x887   :  { %5725 = vmatprep.subr.bf16.mxu1 %v5724_v52  ;;  %v5754_v52 = vpack.c.bf16 %v2831_v51, %v2823_v27  ;;  %v5756_v4 = vpack.c.bf16 %v2848_v25, %v2840_v57  ;;  %v2919_v60 = vld [vmem:[#allocation25 + $0x790] sm:$0xff]  ;;  %v2697_v51 = vld [vmem:[#allocation25 + $0xa0] sm:$0xff]  ;;  %v2714_v25 = vld [vmem:[#allocation25 + $0x128] sm:$0xff] }
 0x888   :  { %v2927_v3 = vld [vmem:[#allocation25 + $0x7d0] sm:$0xff]  ;;  %v2705_v57 = vld [vmem:[#allocation25 + $0xe0] sm:$0xff] }
 0x889   :  { %3008 = vmatmul.mubr.f32.gmra.mrb[20].mxu1 %v7562_v9 }
 0x88a   :  { %5727 = vmatpush1.bf16.msra.mxu1 %v5726_v7  ;;  %3013 = vmatprep.mubr.f32.mxu1 %v7572_v41  ;;  %v2864_v7 = vld [vmem:[#allocation25 + $0x5d8] sm:$0xff] }
 0x88b   :  { %5729 = vmatprep.subr.bf16.mxu1 %v5728_v10  ;;  %v5758_v10 = vpack.c.bf16 %v2847_v63, %v2839_v6  ;;  %v5760_v11 = vpack.c.bf16 %v2864_v7, %v2856_v8  ;;  %v2713_v63 = vld [vmem:[#allocation25 + $0x120] sm:$0xff]  ;;  %v2730_v7 = vld [vmem:[#allocation25 + $0x1a8] sm:$0xff] }
 0x88c   :  { %v2721_v8 = vld [vmem:[#allocation25 + $0x160] sm:$0xff] }
 0x88d   :  { %3014 = vmatmul.mubr.f32.gmra.mrb[22].mxu1 %v7564_v44 }
 0x88e   :  { %5731 = vmatpush1.bf16.msra.mxu1 %v5730_v18  ;;  %3019 = vmatprep.mubr.f32.mxu1 %v7574_v13  ;;  %v2880_v18 = vld [vmem:[#allocation25 + $0x658] sm:$0xff] }
 0x88f   :  { %5733 = vmatprep.subr.bf16.mxu1 %v5732_v0  ;;  %v5762_v0 = vpack.c.bf16 %v2863_v2, %v2855_v23  ;;  %v5764_v58 = vpack.c.bf16 %v2880_v18, %v2872_v17  ;;  %v2729_v2 = vld [vmem:[#allocation25 + $0x1a0] sm:$0xff]  ;;  %v2746_v18 = vld [vmem:[#allocation25 + $0x228] sm:$0xff] }
 0x890   :  { %v2737_v17 = vld [vmem:[#allocation25 + $0x1e0] sm:$0xff] }
 0x891   :  { %3020 = vmatmul.mubr.f32.gmra.mrb[24].mxu1 %v7576_v33 }
 0x892   :  { %5735 = vmatpush1.bf16.msra.mxu1 %v5734_v54  ;;  %3025 = vmatprep.mubr.f32.mxu1 %v7578_v14  ;;  %v2896_v54 = vld [vmem:[#allocation25 + $0x6d8] sm:$0xff] }
 0x893   :  { %5737 = vmatprep.subr.bf16.mxu1 %v5736_v48  ;;  %v5766_v48 = vpack.c.bf16 %v2879_v22, %v2871_v59  ;;  %v5768_v21 = vpack.c.bf16 %v2896_v54, %v2888_v40  ;;  %v2745_v22 = vld [vmem:[#allocation25 + $0x220] sm:$0xff]  ;;  %v2762_v54 = vld [vmem:[#allocation25 + $0x2a8] sm:$0xff] }
 0x894   :  { %v2753_v40 = vld [vmem:[#allocation25 + $0x260] sm:$0xff] }
 0x895   :  { %3026 = vmatmul.mubr.f32.gmra.mrb[26].mxu1 %v7580_v16 }
 0x896   :  { %5739 = vmatpush1.bf16.msra.mxu1 %v5738_v56  ;;  %3031 = vmatprep.mubr.f32.mxu1 %v7583_v32  ;;  %v2912_v56 = vld [vmem:[#allocation25 + $0x758] sm:$0xff] }
 0x897   :  { %5741 = vmatprep.subr.bf16.mxu1 %v5740_v55  ;;  %v5770_v55 = vpack.c.bf16 %v2895_v29, %v2887_v20  ;;  %v5772_v28 = vpack.c.bf16 %v2912_v56, %v2904_v30  ;;  %v2761_v29 = vld [vmem:[#allocation25 + $0x2a0] sm:$0xff]  ;;  %v2778_v56 = vld [vmem:[#allocation25 + $0x328] sm:$0xff] }
 0x898   :  { %v2769_v30 = vld [vmem:[#allocation25 + $0x2e0] sm:$0xff] }
 0x899   :  { %3032 = vmatmul.mubr.f32.gmra.mrb[28].mxu1 %v7585_v53 }
 0x89a   :  { %5743 = vmatpush1.bf16.msra.mxu1 %v5742_v50  ;;  %3102 = vmatprep.mubr.f32.mxu1 %v7566_v42  ;;  %v2928_v50 = vld [vmem:[#allocation25 + $0x7d8] sm:$0xff] }
 0x89b   :  { %5745 = vmatprep.subr.bf16.mxu1 %v5744_v45  ;;  %v5774_v45 = vpack.c.bf16 %v2911_v36, %v2903_v31  ;;  %v5776_v61 = vpack.c.bf16 %v2928_v50, %v2920_v39  ;;  %v2777_v36 = vld [vmem:[#allocation25 + $0x320] sm:$0xff]  ;;  %v2794_v50 = vld [vmem:[#allocation25 + $0x3a8] sm:$0xff] }
 0x89c   :  { %v2785_v39 = vld [vmem:[#allocation25 + $0x360] sm:$0xff] }
 0x89e   :  { %5747 = vmatpush1.bf16.msra.mxu1 %v5746_v38  ;;  %v2690_v38 = vld [vmem:[#allocation25 + $0x68] sm:$0xff] }
 0x89f   :  { %5749 = vmatprep.subr.bf16.mxu1 %v5748_v35  ;;  %v5778_v35 = vpack.c.bf16 %v2927_v3, %v2919_v60  ;;  %v5780_v24 = vpack.c.bf16 %v2690_v38, %v2682_v5  ;;  %v2793_v3 = vld [vmem:[#allocation25 + $0x3a0] sm:$0xff]  ;;  %v2810_v38 = vld [vmem:[#allocation25 + $0x428] sm:$0xff] }
 0x8a0   :  { %v2801_v5 = vld [vmem:[#allocation25 + $0x3e0] sm:$0xff] }
 0x8a2   :  { %5751 = vmatpush1.bf16.msra.mxu1 %v5750_v26  ;;  %v2706_v26 = vld [vmem:[#allocation25 + $0xe8] sm:$0xff] }
 0x8a3   :  { %5753 = vmatprep.subr.bf16.mxu1 %v5752_v49  ;;  %v5782_v49 = vpack.c.bf16 %v2689_v62, %v2681_v15  ;;  %v5784_v27 = vpack.c.bf16 %v2706_v26, %v2698_v34  ;;  %v2809_v62 = vld [vmem:[#allocation25 + $0x420] sm:$0xff]  ;;  %v2826_v26 = vld [vmem:[#allocation25 + $0x4a8] sm:$0xff] }
 0x8a4   :  { %v2817_v34 = vld [vmem:[#allocation25 + $0x460] sm:$0xff] }
 0x8a6   :  { %5755 = vmatpush1.bf16.msra.mxu1 %v5754_v52  ;;  %v2722_v52 = vld [vmem:[#allocation25 + $0x168] sm:$0xff] }
 0x8a7   :  { %5757 = vmatprep.subr.bf16.mxu1 %v5756_v4  ;;  %v5786_v4 = vpack.c.bf16 %v2705_v57, %v2697_v51  ;;  %v5788_v6 = vpack.c.bf16 %v2722_v52, %v2714_v25  ;;  %v2825_v57 = vld [vmem:[#allocation25 + $0x4a0] sm:$0xff]  ;;  %v2842_v52 = vld [vmem:[#allocation25 + $0x528] sm:$0xff] }
 0x8a8   :  { %v2833_v25 = vld [vmem:[#allocation25 + $0x4e0] sm:$0xff] }
 0x8aa   :  { %5759 = vmatpush1.bf16.msra.mxu1 %v5758_v10  ;;  %v2738_v10 = vld [vmem:[#allocation25 + $0x1e8] sm:$0xff] }
 0x8ab   :  { %5761 = vmatprep.subr.bf16.mxu1 %v5760_v11  ;;  %v5790_v11 = vpack.c.bf16 %v2721_v8, %v2713_v63  ;;  %v5792_v23 = vpack.c.bf16 %v2738_v10, %v2730_v7  ;;  %v2841_v8 = vld [vmem:[#allocation25 + $0x520] sm:$0xff]  ;;  %v2858_v10 = vld [vmem:[#allocation25 + $0x5a8] sm:$0xff] }
 0x8ac   :  { %v2849_v7 = vld [vmem:[#allocation25 + $0x560] sm:$0xff] }
 0x8ae   :  { %5763 = vmatpush1.bf16.msra.mxu1 %v5762_v0  ;;  %v2754_v0 = vld [vmem:[#allocation25 + $0x268] sm:$0xff] }
 0x8af   :  { %5765 = vmatprep.subr.bf16.mxu1 %v5764_v58  ;;  %v5794_v58 = vpack.c.bf16 %v2737_v17, %v2729_v2  ;;  %v5796_v59 = vpack.c.bf16 %v2754_v0, %v2746_v18  ;;  %v2857_v17 = vld [vmem:[#allocation25 + $0x5a0] sm:$0xff]  ;;  %v2874_v0 = vld [vmem:[#allocation25 + $0x628] sm:$0xff] }
 0x8b0   :  { %v2865_v18 = vld [vmem:[#allocation25 + $0x5e0] sm:$0xff] }
 0x8b2   :  { %5767 = vmatpush1.bf16.msra.mxu1 %v5766_v48  ;;  %v2770_v48 = vld [vmem:[#allocation25 + $0x2e8] sm:$0xff] }
 0x8b3   :  { %5769 = vmatprep.subr.bf16.mxu1 %v5768_v21  ;;  %v5798_v21 = vpack.c.bf16 %v2753_v40, %v2745_v22  ;;  %v5800_v20 = vpack.c.bf16 %v2770_v48, %v2762_v54  ;;  %v2873_v40 = vld [vmem:[#allocation25 + $0x620] sm:$0xff]  ;;  %v2890_v48 = vld [vmem:[#allocation25 + $0x6a8] sm:$0xff] }
 0x8b4   :  { %v2881_v54 = vld [vmem:[#allocation25 + $0x660] sm:$0xff] }
 0x8b6   :  { %5771 = vmatpush1.bf16.msra.mxu1 %v5770_v55  ;;  %v2786_v55 = vld [vmem:[#allocation25 + $0x368] sm:$0xff] }
 0x8b7   :  { %5773 = vmatprep.subr.bf16.mxu1 %v5772_v28  ;;  %v5802_v28 = vpack.c.bf16 %v2769_v30, %v2761_v29  ;;  %v5804_v31 = vpack.c.bf16 %v2786_v55, %v2778_v56  ;;  %v2889_v30 = vld [vmem:[#allocation25 + $0x6a0] sm:$0xff]  ;;  %v2906_v55 = vld [vmem:[#allocation25 + $0x728] sm:$0xff] }
 0x8b8   :  { %v2897_v56 = vld [vmem:[#allocation25 + $0x6e0] sm:$0xff] }
 0x8ba   :  { %5775 = vmatpush1.bf16.msra.mxu1 %v5774_v45  ;;  %v2802_v45 = vld [vmem:[#allocation25 + $0x3e8] sm:$0xff] }
 0x8bb   :  { %5777 = vmatprep.subr.bf16.mxu1 %v5776_v61  ;;  %v5806_v61 = vpack.c.bf16 %v2785_v39, %v2777_v36  ;;  %v5808_v60 = vpack.c.bf16 %v2802_v45, %v2794_v50  ;;  %v2905_v39 = vld [vmem:[#allocation25 + $0x720] sm:$0xff]  ;;  %v2922_v45 = vld [vmem:[#allocation25 + $0x7a8] sm:$0xff] }
 0x8bc   :  { %v2913_v50 = vld [vmem:[#allocation25 + $0x760] sm:$0xff] }
 0x8be   :  { %5779 = vmatpush1.bf16.msra.mxu1 %v5778_v35  ;;  %v2818_v35 = vld [vmem:[#allocation25 + $0x468] sm:$0xff] }
 0x8bf   :  { %5781 = vmatprep.subr.bf16.mxu1 %v5780_v24  ;;  %v5810_v24 = vpack.c.bf16 %v2801_v5, %v2793_v3  ;;  %v5812_v15 = vpack.c.bf16 %v2818_v35, %v2810_v38  ;;  %v2921_v5 = vld [vmem:[#allocation25 + $0x7a0] sm:$0xff]  ;;  %v2684_v35 = vld [vmem:[#allocation25 + $0x38] sm:$0xff] }
 0x8c0   :  { %v2929_v38 = vld [vmem:[#allocation25 + $0x7e0] sm:$0xff] }
 0x8c1   :  { %3103 = vmatmul.mubr.f32.vlgmr.msra.gmra.mrb[30].mxu1 %v7558_v37 }
 0x8c2   :  { %3108 = vmatprep.mubr.f32.mxu1 %v7568_v12  ;;  %5783 = vmatpush1.bf16.msra.mxu1 %v5782_v49  ;;  %v2834_v49 = vld [vmem:[#allocation25 + $0x4e8] sm:$0xff] }
 0x8c3   :  { %5785 = vmatprep.subr.bf16.mxu1 %v5784_v27  ;;  %v5814_v27 = vpack.c.bf16 %v2817_v34, %v2809_v62  ;;  %v5816_v51 = vpack.c.bf16 %v2834_v49, %v2826_v26  ;;  %v2683_v34 = vld [vmem:[#allocation25 + $0x30] sm:$0xff]  ;;  %v2700_v49 = vld [vmem:[#allocation25 + $0xb8] sm:$0xff] }
 0x8c4   :  { %v2691_v26 = vld [vmem:[#allocation25 + $0x70] sm:$0xff] }
 0x8c5   :  { %3109 = vmatmul.mubr.f32.gmra.mrb[32].mxu1 %v7560_v19 }
 0x8c6   :  { %3114 = vmatprep.mubr.f32.mxu1 %v7570_v47  ;;  %5787 = vmatpush1.bf16.msra.mxu1 %v5786_v4  ;;  %v2850_v4 = vld [vmem:[#allocation25 + $0x568] sm:$0xff] }
 0x8c7   :  { %5789 = vmatprep.subr.bf16.mxu1 %v5788_v6  ;;  %v5818_v6 = vpack.c.bf16 %v2833_v25, %v2825_v57  ;;  %v5820_v63 = vpack.c.bf16 %v2850_v4, %v2842_v52  ;;  %v2699_v25 = vld [vmem:[#allocation25 + $0xb0] sm:$0xff]  ;;  %v2716_v4 = vld [vmem:[#allocation25 + $0x138] sm:$0xff] }
 0x8c8   :  { %v2707_v52 = vld [vmem:[#allocation25 + $0xf0] sm:$0xff] }
 0x8c9   :  { %3115 = vmatmul.mubr.f32.gmra.mrb[34].mxu1 %v7562_v9 }
 0x8ca   :  { %3120 = vmatprep.mubr.f32.mxu1 %v7572_v41  ;;  %5791 = vmatpush1.bf16.msra.mxu1 %v5790_v11  ;;  %v2866_v11 = vld [vmem:[#allocation25 + $0x5e8] sm:$0xff] }
 0x8cb   :  { %5793 = vmatprep.subr.bf16.mxu1 %v5792_v23  ;;  %v5822_v23 = vpack.c.bf16 %v2849_v7, %v2841_v8  ;;  %v5824_v2 = vpack.c.bf16 %v2866_v11, %v2858_v10  ;;  %v2715_v7 = vld [vmem:[#allocation25 + $0x130] sm:$0xff]  ;;  %v2732_v11 = vld [vmem:[#allocation25 + $0x1b8] sm:$0xff] }
 0x8cc   :  { %v2723_v10 = vld [vmem:[#allocation25 + $0x170] sm:$0xff] }
 0x8cd   :  { %3121 = vmatmul.mubr.f32.gmra.mrb[36].mxu1 %v7564_v44 }
 0x8ce   :  { %3126 = vmatprep.mubr.f32.mxu1 %v7574_v13  ;;  %5795 = vmatpush1.bf16.msra.mxu1 %v5794_v58  ;;  %v2882_v58 = vld [vmem:[#allocation25 + $0x668] sm:$0xff] }
 0x8cf   :  { %5797 = vmatprep.subr.bf16.mxu1 %v5796_v59  ;;  %v5826_v59 = vpack.c.bf16 %v2865_v18, %v2857_v17  ;;  %v5828_v22 = vpack.c.bf16 %v2882_v58, %v2874_v0  ;;  %v2731_v18 = vld [vmem:[#allocation25 + $0x1b0] sm:$0xff]  ;;  %v2748_v58 = vld [vmem:[#allocation25 + $0x238] sm:$0xff] }
 0x8d0   :  { %v2739_v0 = vld [vmem:[#allocation25 + $0x1f0] sm:$0xff] }
 0x8d1   :  { %3127 = vmatmul.mubr.f32.gmra.mrb[38].mxu1 %v7576_v33 }
 0x8d2   :  { %3132 = vmatprep.mubr.f32.mxu1 %v7578_v14  ;;  %5799 = vmatpush1.bf16.msra.mxu1 %v5798_v21  ;;  %v2898_v21 = vld [vmem:[#allocation25 + $0x6e8] sm:$0xff] }
 0x8d3   :  { %5801 = vmatprep.subr.bf16.mxu1 %v5800_v20  ;;  %v5830_v20 = vpack.c.bf16 %v2881_v54, %v2873_v40  ;;  %v5832_v29 = vpack.c.bf16 %v2898_v21, %v2890_v48  ;;  %v2747_v54 = vld [vmem:[#allocation25 + $0x230] sm:$0xff]  ;;  %v2764_v21 = vld [vmem:[#allocation25 + $0x2b8] sm:$0xff] }
 0x8d4   :  { %v2755_v48 = vld [vmem:[#allocation25 + $0x270] sm:$0xff] }
 0x8d5   :  { %3133 = vmatmul.mubr.f32.gmra.mrb[40].mxu1 %v7580_v16 }
 0x8d6   :  { %3138 = vmatprep.mubr.f32.mxu1 %v7583_v32  ;;  %5803 = vmatpush1.bf16.msra.mxu1 %v5802_v28  ;;  %v2914_v28 = vld [vmem:[#allocation25 + $0x768] sm:$0xff] }
 0x8d7   :  { %5805 = vmatprep.subr.bf16.mxu1 %v5804_v31  ;;  %v5834_v31 = vpack.c.bf16 %v2897_v56, %v2889_v30  ;;  %v5836_v36 = vpack.c.bf16 %v2914_v28, %v2906_v55  ;;  %v2763_v56 = vld [vmem:[#allocation25 + $0x2b0] sm:$0xff]  ;;  %v2780_v28 = vld [vmem:[#allocation25 + $0x338] sm:$0xff] }
 0x8d8   :  { %v2771_v55 = vld [vmem:[#allocation25 + $0x2f0] sm:$0xff] }
 0x8d9   :  { %3139 = vmatmul.mubr.f32.gmra.mrb[42].mxu1 %v7585_v53 }
 0x8da   :  { %5807 = vmatpush1.bf16.msra.mxu1 %v5806_v61  ;;  %3209 = vmatprep.mubr.f32.mxu1 %v7566_v42  ;;  %v2930_v61 = vld [vmem:[#allocation25 + $0x7e8] sm:$0xff] }
 0x8db   :  { %5809 = vmatprep.subr.bf16.mxu1 %v5808_v60  ;;  %v5838_v60 = vpack.c.bf16 %v2913_v50, %v2905_v39  ;;  %v5840_v3 = vpack.c.bf16 %v2930_v61, %v2922_v45  ;;  %v2779_v50 = vld [vmem:[#allocation25 + $0x330] sm:$0xff]  ;;  %v2796_v61 = vld [vmem:[#allocation25 + $0x3b8] sm:$0xff] }
 0x8dc   :  { %v2787_v45 = vld [vmem:[#allocation25 + $0x370] sm:$0xff] }
 0x8de   :  { %5811 = vmatpush1.bf16.msra.mxu1 %v5810_v24  ;;  %v2692_v24 = vld [vmem:[#allocation25 + $0x78] sm:$0xff] }
 0x8df   :  { %5813 = vmatprep.subr.bf16.mxu1 %v5812_v15  ;;  %v5842_v15 = vpack.c.bf16 %v2929_v38, %v2921_v5  ;;  %v5844_v62 = vpack.c.bf16 %v2692_v24, %v2684_v35  ;;  %v2795_v38 = vld [vmem:[#allocation25 + $0x3b0] sm:$0xff]  ;;  %v2812_v24 = vld [vmem:[#allocation25 + $0x438] sm:$0xff] }
 0x8e0   :  { %v2803_v35 = vld [vmem:[#allocation25 + $0x3f0] sm:$0xff] }
 0x8e2   :  { %5815 = vmatpush1.bf16.msra.mxu1 %v5814_v27  ;;  %v2708_v27 = vld [vmem:[#allocation25 + $0xf8] sm:$0xff] }
 0x8e3   :  { %5817 = vmatprep.subr.bf16.mxu1 %v5816_v51  ;;  %v5846_v51 = vpack.c.bf16 %v2691_v26, %v2683_v34  ;;  %v5848_v57 = vpack.c.bf16 %v2708_v27, %v2700_v49  ;;  %v2811_v26 = vld [vmem:[#allocation25 + $0x430] sm:$0xff]  ;;  %v2828_v27 = vld [vmem:[#allocation25 + $0x4b8] sm:$0xff] }
 0x8e4   :  { %v2819_v49 = vld [vmem:[#allocation25 + $0x470] sm:$0xff] }
 0x8e6   :  { %5819 = vmatpush1.bf16.msra.mxu1 %v5818_v6  ;;  %v2724_v6 = vld [vmem:[#allocation25 + $0x178] sm:$0xff] }
 0x8e7   :  { %5821 = vmatprep.subr.bf16.mxu1 %v5820_v63  ;;  %v5850_v63 = vpack.c.bf16 %v2707_v52, %v2699_v25  ;;  %v5852_v8 = vpack.c.bf16 %v2724_v6, %v2716_v4  ;;  %v2827_v52 = vld [vmem:[#allocation25 + $0x4b0] sm:$0xff]  ;;  %v2844_v6 = vld [vmem:[#allocation25 + $0x538] sm:$0xff] }
 0x8e8   :  { %v2835_v4 = vld [vmem:[#allocation25 + $0x4f0] sm:$0xff] }
 0x8ea   :  { %5823 = vmatpush1.bf16.msra.mxu1 %v5822_v23  ;;  %v2740_v23 = vld [vmem:[#allocation25 + $0x1f8] sm:$0xff] }
 0x8eb   :  { %5825 = vmatprep.subr.bf16.mxu1 %v5824_v2  ;;  %v5854_v2 = vpack.c.bf16 %v2723_v10, %v2715_v7  ;;  %v5856_v17 = vpack.c.bf16 %v2740_v23, %v2732_v11  ;;  %v2851_v10 = vld [vmem:[#allocation25 + $0x570] sm:$0xff]  ;;  %v2860_v11 = vld [vmem:[#allocation25 + $0x5b8] sm:$0xff] }
 0x8ec   :  { %v2868_v23 = vld [vmem:[#allocation25 + $0x5f8] sm:$0xff] }
 0x8ee   :  { %5827 = vmatpush1.bf16.msra.mxu1 %v5826_v59  ;;  %v2756_v59 = vld [vmem:[#allocation25 + $0x278] sm:$0xff] }
 0x8ef   :  { %5829 = vmatprep.subr.bf16.mxu1 %v5828_v22  ;;  %v5858_v22 = vpack.c.bf16 %v2739_v0, %v2731_v18  ;;  %v5860_v40 = vpack.c.bf16 %v2756_v59, %v2748_v58  ;;  %v2859_v18 = vld [vmem:[#allocation25 + $0x5b0] sm:$0xff]  ;;  %v2876_v58 = vld [vmem:[#allocation25 + $0x638] sm:$0xff] }
 0x8f0   :  { %v2867_v0 = vld [vmem:[#allocation25 + $0x5f0] sm:$0xff]  ;;  %v2884_v59 = vld [vmem:[#allocation25 + $0x678] sm:$0xff] }
 0x8f2   :  { %5831 = vmatpush1.bf16.msra.mxu1 %v5830_v20  ;;  %v2772_v20 = vld [vmem:[#allocation25 + $0x2f8] sm:$0xff] }
 0x8f3   :  { %5833 = vmatprep.subr.bf16.mxu1 %v5832_v29  ;;  %v5862_v29 = vpack.c.bf16 %v2755_v48, %v2747_v54  ;;  %v5864_v30 = vpack.c.bf16 %v2772_v20, %v2764_v21  ;;  %v2875_v54 = vld [vmem:[#allocation25 + $0x630] sm:$0xff]  ;;  %v2892_v21 = vld [vmem:[#allocation25 + $0x6b8] sm:$0xff] }
 0x8f4   :  { %v2883_v48 = vld [vmem:[#allocation25 + $0x670] sm:$0xff]  ;;  %v2900_v20 = vld [vmem:[#allocation25 + $0x6f8] sm:$0xff] }
 0x8f6   :  { %5835 = vmatpush1.bf16.msra.mxu1 %v5834_v31  ;;  %v2788_v31 = vld [vmem:[#allocation25 + $0x378] sm:$0xff] }
 0x8f7   :  { %5837 = vmatprep.subr.bf16.mxu1 %v5836_v36  ;;  %v5866_v36 = vpack.c.bf16 %v2771_v55, %v2763_v56  ;;  %v5868_v39 = vpack.c.bf16 %v2788_v31, %v2780_v28  ;;  %v2891_v56 = vld [vmem:[#allocation25 + $0x6b0] sm:$0xff]  ;;  %v2908_v28 = vld [vmem:[#allocation25 + $0x738] sm:$0xff] }
 0x8f8   :  { %v2899_v55 = vld [vmem:[#allocation25 + $0x6f0] sm:$0xff]  ;;  %v2916_v31 = vld [vmem:[#allocation25 + $0x778] sm:$0xff] }
 0x8fa   :  { %5839 = vmatpush1.bf16.msra.mxu1 %v5838_v60  ;;  %v2804_v60 = vld [vmem:[#allocation25 + $0x3f8] sm:$0xff] }
 0x8fb   :  { %5841 = vmatprep.subr.bf16.mxu1 %v5840_v3  ;;  %v5870_v3 = vpack.c.bf16 %v2787_v45, %v2779_v50  ;;  %v5872_v5 = vpack.c.bf16 %v2804_v60, %v2796_v61  ;;  %v2907_v50 = vld [vmem:[#allocation25 + $0x730] sm:$0xff]  ;;  %v2924_v61 = vld [vmem:[#allocation25 + $0x7b8] sm:$0xff] }
 0x8fc   :  { %v2915_v45 = vld [vmem:[#allocation25 + $0x770] sm:$0xff]  ;;  %v2932_v60 = vld [vmem:[#allocation25 + $0x7f8] sm:$0xff] }
 0x8fe   :  { %5843 = vmatpush1.bf16.msra.mxu1 %v5842_v15  ;;  %v2820_v15 = vld [vmem:[#allocation25 + $0x478] sm:$0xff] }
 0x8ff   :  { %5845 = vmatprep.subr.bf16.mxu1 %v5844_v62  ;;  %v5874_v62 = vpack.c.bf16 %v2803_v35, %v2795_v38  ;;  %v5876_v34 = vpack.c.bf16 %v2820_v15, %v2812_v24  ;;  %v2923_v38 = vld [vmem:[#allocation25 + $0x7b0] sm:$0xff] }
 0x900   :  { %v2931_v35 = vld [vmem:[#allocation25 + $0x7f0] sm:$0xff] }
 0x901   :  { %3210 = vmatmul.mubr.f32.vlgmr.msra.gmra.mrb[18].mxu1 %v7558_v37  ;;  %v5906_v24 = vpack.c.bf16 %v2931_v35, %v2923_v38 }
 0x902   :  { %3215 = vmatprep.mubr.f32.mxu1 %v7568_v12  ;;  %5847 = vmatpush1.bf16.msra.mxu1 %v5846_v51  ;;  %v2836_v51 = vld [vmem:[#allocation25 + $0x4f8] sm:$0xff] }
 0x903   :  { %5849 = vmatprep.subr.bf16.mxu1 %v5848_v57  ;;  %v5878_v57 = vpack.c.bf16 %v2819_v49, %v2811_v26  ;;  %v5880_v25 = vpack.c.bf16 %v2836_v51, %v2828_v27  ;;  %v3675_v26 = vld [vmem:[%s8318_s27 + $0xa0] sm:$0xff]  ;;  %v3676_v49 = vld [vmem:[%s8318_s27 + $0xa8] sm:$0xff] }
 0x904   :  { %v7685_v27 = vpack.c.bf16 %v3676_v49, %v3675_v26  ;;  %v3659_v51 = vld [vmem:[%s8318_s27 + $0x20] sm:$0xff] }
 0x905   :  { %3216 = vmatmul.mubr.f32.gmra.mrb[20].mxu1 %v7560_v19 }
 0x906   :  { %3221 = vmatprep.mubr.f32.mxu1 %v7570_v47  ;;  %5851 = vmatpush1.bf16.msra.mxu1 %v5850_v63  ;;  %v2852_v63 = vld [vmem:[#allocation25 + $0x578] sm:$0xff] }
 0x907   :  { %5853 = vmatprep.subr.bf16.mxu1 %v5852_v8  ;;  %v5882_v8 = vpack.c.bf16 %v2835_v4, %v2827_v52  ;;  %v5884_v7 = vpack.c.bf16 %v2852_v63, %v2844_v6  ;;  %v3677_v52 = vld [vmem:[%s8318_s27 + $0xb0] sm:$0xff]  ;;  %v3678_v4 = vld [vmem:[%s8318_s27 + $0xb8] sm:$0xff] }
 0x908   :  { %v7703_v6 = vpack.c.bf16 %v3678_v4, %v3677_v52  ;;  %v3661_v63 = vld [vmem:[%s8318_s27 + $0x30] sm:$0xff] }
 0x909   :  { %3222 = vmatmul.mubr.f32.gmra.mrb[22].mxu1 %v7562_v9 }
 0x90a   :  { %3227 = vmatprep.mubr.f32.mxu1 %v7572_v41  ;;  %5855 = vmatpush1.bf16.msra.mxu1 %v5854_v2 }
 0x90b   :  { %5857 = vmatprep.subr.bf16.mxu1 %v5856_v17  ;;  %v5888_v17 = vpack.c.bf16 %v2868_v23, %v2860_v11  ;;  %v3663_v23 = vld [vmem:[%s8318_s27 + $0x40] sm:$0xff] }
 0x90d   :  { %3228 = vmatmul.mubr.f32.gmra.mrb[24].mxu1 %v7564_v44 }
 0x90e   :  { %3233 = vmatprep.mubr.f32.mxu1 %v7574_v13  ;;  %5859 = vmatpush1.bf16.msra.mxu1 %v5858_v22  ;;  %v5890_v22 = vpack.c.bf16 %v2867_v0, %v2859_v18  ;;  %v3681_v18 = vld [vmem:[%s8318_s27 + $0xd0] sm:$0xff]  ;;  %v3682_v0 = vld [vmem:[%s8318_s27 + $0xd8] sm:$0xff] }
 0x90f   :  { %5861 = vmatprep.subr.bf16.mxu1 %v5860_v40  ;;  %v5892_v40 = vpack.c.bf16 %v2884_v59, %v2876_v58  ;;  %v7739_v58 = vpack.c.bf16 %v3682_v0, %v3681_v18  ;;  %v3665_v59 = vld [vmem:[%s8318_s27 + $0x50] sm:$0xff] }
 0x911   :  { %3234 = vmatmul.mubr.f32.gmra.mrb[26].mxu1 %v7576_v33 }
 0x912   :  { %3239 = vmatprep.mubr.f32.mxu1 %v7578_v14  ;;  %5863 = vmatpush1.bf16.msra.mxu1 %v5862_v29  ;;  %v5894_v29 = vpack.c.bf16 %v2883_v48, %v2875_v54  ;;  %v3683_v54 = vld [vmem:[%s8318_s27 + $0xe0] sm:$0xff]  ;;  %v3684_v48 = vld [vmem:[%s8318_s27 + $0xe8] sm:$0xff] }
 0x913   :  { %5865 = vmatprep.subr.bf16.mxu1 %v5864_v30  ;;  %v5896_v30 = vpack.c.bf16 %v2900_v20, %v2892_v21  ;;  %v7757_v21 = vpack.c.bf16 %v3684_v48, %v3683_v54  ;;  %v3667_v20 = vld [vmem:[%s8318_s27 + $0x60] sm:$0xff] }
 0x915   :  { %3240 = vmatmul.mubr.f32.gmra.mrb[28].mxu1 %v7580_v16 }
 0x916   :  { %3245 = vmatprep.mubr.f32.mxu1 %v7583_v32  ;;  %5867 = vmatpush1.bf16.msra.mxu1 %v5866_v36  ;;  %v5898_v36 = vpack.c.bf16 %v2899_v55, %v2891_v56  ;;  %v3685_v56 = vld [vmem:[%s8318_s27 + $0xf0] sm:$0xff]  ;;  %v3686_v55 = vld [vmem:[%s8318_s27 + $0xf8] sm:$0xff] }
 0x917   :  { %5869 = vmatprep.subr.bf16.mxu1 %v5868_v39  ;;  %v5900_v39 = vpack.c.bf16 %v2916_v31, %v2908_v28  ;;  %v3669_v28 = vld [vmem:[%s8318_s27 + $0x70] sm:$0xff]  ;;  %v7777_v31 = vpack.c.bf16 %v3686_v55, %v3685_v56 }
 0x919   :  { %3246 = vmatmul.mubr.f32.gmra.mrb[44].mxu1 %v7585_v53 }
 0x91a   :  { %5871 = vmatpush1.bf16.msra.mxu1 %v5870_v3  ;;  %3316 = vmatprep.mubr.f32.mxu1 %v7566_v42  ;;  %v2843_v42 = vld [vmem:[#allocation25 + $0x530] sm:$0xff]  ;;  %v5902_v3 = vpack.c.bf16 %v2915_v45, %v2907_v50 }
 0x91b   :  { %5873 = vmatprep.subr.bf16.mxu1 %v5872_v5  ;;  %v5886_v2 = vpack.c.bf16 %v2851_v10, %v2843_v42  ;;  %v5904_v5 = vpack.c.bf16 %v2932_v60, %v2924_v61  ;;  %v3679_v42 = vld [vmem:[%s8318_s27 + $0xc0] sm:$0xff]  ;;  %v3680_v10 = vld [vmem:[%s8318_s27 + $0xc8] sm:$0xff] }
 0x91c   :  { %v7721_v11 = vpack.c.bf16 %v3680_v10, %v3679_v42 }
 0x91e   :  { %5875 = vmatpush1.bf16.msra.mxu1 %v5874_v62  ;;  %v3658_v62 = vld [vmem:[%s8318_s27 + $0x18] sm:$0xff] }
 0x91f   :  { %5877 = vmatprep.subr.bf16.mxu1 %v5876_v34 }
 0x922   :  { %5879 = vmatpush1.bf16.msra.mxu1 %v5878_v57  ;;  %v3660_v57 = vld [vmem:[%s8318_s27 + $0x28] sm:$0xff] }
 0x923   :  { %5881 = vmatprep.subr.bf16.mxu1 %v5880_v25  ;;  %v7693_v25 = vpack.c.bf16 %v3660_v57, %v3659_v51  ;;  %v3522_v57 = vpop.permute.xlu1 %3521 }
 0x926   :  { %5883 = vmatpush1.bf16.msra.mxu1 %v5882_v8  ;;  %v3662_v8 = vld [vmem:[%s8318_s27 + $0x38] sm:$0xff] }
 0x927   :  { %5885 = vmatprep.subr.bf16.mxu1 %v5884_v7  ;;  %v7711_v7 = vpack.c.bf16 %v3662_v8, %v3661_v63  ;;  %v3532_v18 = vpop.permute.xlu1 %3531 }
 0x92a   :  { %5887 = vmatpush1.bf16.msra.mxu1 %v5886_v2  ;;  %v3664_v2 = vld [vmem:[%s8318_s27 + $0x48] sm:$0xff] }
 0x92b   :  { %5889 = vmatprep.subr.bf16.mxu1 %v5888_v17  ;;  %v7729_v17 = vpack.c.bf16 %v3664_v2, %v3663_v23 }
 0x92e   :  { %5891 = vmatpush1.bf16.msra.mxu1 %v5890_v22  ;;  %v3666_v22 = vld [vmem:[%s8318_s27 + $0x58] sm:$0xff] }
 0x92f   :  { %5893 = vmatprep.subr.bf16.mxu1 %v5892_v40  ;;  %v7747_v40 = vpack.c.bf16 %v3666_v22, %v3665_v59 }
 0x932   :  { %5895 = vmatpush1.bf16.msra.mxu1 %v5894_v29  ;;  %v3668_v29 = vld [vmem:[%s8318_s27 + $0x68] sm:$0xff] }
 0x933   :  { %5897 = vmatprep.subr.bf16.mxu1 %v5896_v30  ;;  %v7765_v30 = vpack.c.bf16 %v3668_v29, %v3667_v20 }
 0x936   :  { %5899 = vmatpush1.bf16.msra.mxu1 %v5898_v36  ;;  %v3670_v36 = vld [vmem:[%s8318_s27 + $0x78] sm:$0xff] }
 0x937   :  { %5901 = vmatprep.subr.bf16.mxu1 %v5900_v39  ;;  %v7783_v39 = vpack.c.bf16 %v3670_v36, %v3669_v28 }
 0x93a   :  { %5903 = vmatpush1.bf16.msra.mxu1 %v5902_v3 }
 0x93b   :  { %5905 = vmatprep.subr.bf16.mxu1 %v5904_v5 }
 0x93e   :  { %5907 = vmatpush1.bf16.msra.mxu1 %v5906_v24 }
 0x941   :  { %3317 = vmatmul.mubr.f32.vlgmr.msra.gmra.mrb[32].mxu1 %v7558_v37 }
 0x942   :  { %3322 = vmatprep.mubr.f32.mxu1 %v7568_v12  ;;  %v3672_v12 = vld [vmem:[%s8318_s27 + $0x88] sm:$0xff] }
 0x945   :  { %3323 = vmatmul.mubr.f32.gmra.mrb[34].mxu1 %v7560_v19 }
 0x946   :  { %3328 = vmatprep.mubr.f32.mxu1 %v7570_v47 }
 0x949   :  { %3329 = vmatmul.mubr.f32.gmra.mrb[36].mxu1 %v7562_v9 }
 0x94a   :  { %3334 = vmatprep.mubr.f32.mxu1 %v7572_v41  ;;  %v3655_v41 = vld [vmem:[%s8318_s27] sm:$0xff] }
 0x94d   :  { %3335 = vmatmul.mubr.f32.gmra.mrb[38].mxu1 %v7564_v44  ;;  %v3671_v44 = vld [vmem:[%s8318_s27 + $0x80] sm:$0xff] }
 0x94e   :  { %3340 = vmatprep.mubr.f32.mxu1 %v7574_v13  ;;  %v5908_v47 = vpack.c.bf16 %v3672_v12, %v3671_v44  ;;  %v3656_v13 = vld [vmem:[%s8318_s27 + $0x8] sm:$0xff] }
 0x950   :  { %5909 = vmatprep.subr.bf16.mxu0 %v5908_v47 }
 0x951   :  { %3341 = vmatmul.mubr.f32.gmra.mrb[40].mxu1 %v7576_v33  ;;  %v7658_v33 = vpack.c.bf16 %v3656_v13, %v3655_v41  ;;  %v3527_v13 = vpop.permute.xlu0 %3526 }
 0x952   :  { %3346 = vmatprep.mubr.f32.mxu1 %v7578_v14  ;;  %v3673_v14 = vld [vmem:[%s8318_s27 + $0x90] sm:$0xff] }
 0x953   :  { %5911 = vmatpush3.bf16.msra.mxu0 %v7658_v33 }
 0x954   :  { %v2999_v15 = vpop.f32.mrb[16].mxu1 }
 0x955   :  { %3347 = vmatmul.mubr.f32.gmra.mrb[42].mxu1 %v7580_v16  ;;  %v3000_v37 = vpop.f32.mrb[17].mxu1  ;;  %v3674_v16 = vld [vmem:[%s8318_s27 + $0x98] sm:$0xff] }
 0x956   :  { %3352 = vmatprep.mubr.f32.mxu1 %v7583_v32  ;;  %v7667_v32 = vpack.c.bf16 %v3674_v16, %v3673_v14  ;;  %v3381_v14 = vld [vmem:[#allocation26] sm:$0x3] }
 0x957   :  { %v7797_v16 = vrot.slane %v3381_v14, %v7164_v46 }
 0x958   :  { %5913 = vmatprep.subr.bf16.mxu0 %v7667_v32 }
 0x959   :  { %3353 = vmatmul.mubr.f32.gmra.mrb[46].mxu1 %v7585_v53  ;;  %v3657_v53 = vld [vmem:[%s8318_s27 + $0x10] sm:$0xff]  ;;  %s6783_s27 = smov [#allocation35]  }
 0x95a   :  { %v7675_v34 = vpack.c.bf16 %v3658_v62, %v3657_v53  ;;  %v3537_v53 = vpop.permute.xlu0 %3536  ;;  %s4673_s26 = sshll.u32 %s6783_s27, 4  ;;  %s4674_s26 = int_to_ptr.vmem [resolvable:$true] %s4673_s26 }
 0x95b   :  { %s6701_s30 = scalar_lea.vmem %s4674_s26, 3584  ;;  %p6706_p13 = scmp.lt.s32.totalorder %s4674_s26, %s4674_s26 }
 0x95c   :  { %5915 = vmatpush3.bf16.msra.mxu0 %v7675_v34  ;;  %p6702_p12 = scmp.ne.s32.totalorder %s4674_s26, %s6701_s30  ;;  %p6707_p0 = scmp.lt.s32.totalorder %s6701_s30, %s6701_s30 }
 0x95d   :  { %5917 = vmatprep.subr.bf16.mxu0 %v7685_v27 }
 0x95e   :  { %v3547_v52 = vpop.permute.xlu0 %3546  ;;  %p6708_p1 = por %p6707_p0, %p6706_p13 }
 0x960   :  { %5919 = vmatpush3.bf16.msra.mxu0 %v7693_v25  ;;  %p6709_p2 = pnand %p6708_p1, %p6702_p12 }
 0x961   :  { %5921 = vmatprep.subr.bf16.mxu0 %v7703_v6 }
 0x962   :  { %v3557_v54 = vpop.permute.xlu0 %3556 }
 0x964   :  { %5923 = vmatpush3.bf16.msra.mxu0 %v7711_v7 }
 0x965   :  { %5925 = vmatprep.subr.bf16.mxu0 %v7721_v11 }
 0x968   :  { %5927 = vmatpush3.bf16.msra.mxu0 %v7729_v17 }
 0x969   :  { %5929 = vmatprep.subr.bf16.mxu0 %v7739_v58 }
 0x96c   :  { %5931 = vmatpush3.bf16.msra.mxu0 %v7747_v40 }
 0x96d   :  { %5933 = vmatprep.subr.bf16.mxu0 %v7757_v21 }
 0x970   :  { %5935 = vmatpush3.bf16.msra.mxu0 %v7765_v30 }
 0x971   :  { %5937 = vmatprep.subr.bf16.mxu0 %v7777_v31 }
 0x974   :  { %5939 = vmatpush3.bf16.msra.mxu0 %v7783_v39 }
 0x975   :  { %5941 = vmatprep.subr.bf16.mxu0 %v5908_v47  ;;  %v7794_v47 = vrot.slane %v3381_v14, %v7160_v43  ;;  %v3542_v14 = vpop.permute.xlu1 %3541 }
 0x994   :  { %v7642_v19 = vpop.f32.mrb[30].mxu1 }
 0x995   :  { %v7644_v9 = vpop.f32.mrb[31].mxu1  ;;  %v3393_v26 = vadd.f32 %v7794_v47, %v7642_v19 }
 0x996   :  { %v3394_v51 = vadd.f32 %v7797_v16, %v7644_v9 }
 0x997   :  { %v7807_v63 = vmax.f32 %v3393_v26, 0.0 }
 0x998   :  { %v7811_v46 = vmax.f32 %v3394_v51, 0.0  ;;  %v3567_v51 = vpop.permute.xlu0 %3566 }
 0x999   :  { %8320 = vst [vmem:[#allocation49_spill] sm:$0xff] %v7807_v63  ;;  %v3589_v0 = vmul.f32 %v3522_v57, %v7807_v63 }
 0x99a   :  { %8322 = vst [vmem:[#allocation51_spill] sm:$0xff] %v7811_v46  ;;  %v3590_v48 = vmul.f32 %v3522_v57, %v7811_v46 }
 0x9d4   :  { %v3211_v50 = vpop.f32.mrb[18].mxu1 }
 0x9d5   :  { %v3213_v45 = vpop.f32.mrb[19].mxu1  ;;  %v3399_v62 = vadd.f32 %v7794_v47, %v3211_v50 }
 0x9d6   :  { %v3400_v49 = vadd.f32 %v7797_v16, %v3213_v45  ;;  %v3757_v45 = vmul.f32 %v3589_v0, %v7807_v63 }
 0x9d7   :  { %v7805_v4 = vmax.f32 %v3399_v62, 0.0 }
 0x9d8   :  { %v3217_v61 = vpop.f32.mrb[20].mxu1  ;;  %v7809_v8 = vmax.f32 %v3400_v49, 0.0 }
 0x9d9   :  { %v3219_v60 = vpop.f32.mrb[21].mxu1  ;;  %8319 = vst [vmem:[#allocation48_spill] sm:$0xff] %v7805_v4  ;;  %v3411_v42 = vadd.f32 %v7794_v47, %v3217_v61  ;;  %v3591_v9 = vmul.f32 %v3527_v13, %v7805_v4 }
 0x9da   :  { %8321 = vst [vmem:[#allocation50_spill] sm:$0xff] %v7809_v8  ;;  %v3412_v10 = vadd.f32 %v7797_v16, %v3219_v60  ;;  %v3592_v59 = vmul.f32 %v3527_v13, %v7809_v8 }
 0x9db   :  { %v7823_v20 = vmax.f32 %v3411_v42, 0.0  ;;  %v3759_v28 = vmul.f32 %v3591_v9, %v7805_v4 }
 0x9dc   :  { %v3223_v3 = vpop.f32.mrb[22].mxu1  ;;  %v7825_v29 = vmax.f32 %v3412_v10, 0.0  ;;  %v3760_v61 = vmul.f32 %v3592_v59, %v7809_v8  ;;  %v3636_v62 = vadd.f32 %v3592_v59, %v3590_v48 }
 0x9dd   :  { %v3225_v5 = vpop.f32.mrb[23].mxu1  ;;  %v3423_v19 = vadd.f32 %v7794_v47, %v3223_v3  ;;  %8323 = vst [vmem:[#allocation52_spill] sm:$0xff] %v7823_v20  ;;  %v3785_v57 = vadd.f32 %v3759_v28, %v3757_v45 }
 0x9de   :  { %v3424_v23 = vadd.f32 %v7797_v16, %v3225_v5  ;;  %8324 = vst [vmem:[#allocation53_spill] sm:$0xff] %v7825_v29  ;;  %v3758_v5 = vmul.f32 %v3590_v48, %v7811_v46  ;;  %v3596_v13 = vmul.f32 %v3537_v53, %v7825_v29 }
 0x9df   :  { %v7827_v56 = vmax.f32 %v3423_v19, 0.0 }
 0x9e0   :  { %v3229_v38 = vpop.f32.mrb[24].mxu1  ;;  %v7829_v55 = vmax.f32 %v3424_v23, 0.0  ;;  %v3804_v23 = vadd.f32 %v3760_v61, %v3758_v5 }
 0x9e1   :  { %v3231_v35 = vpop.f32.mrb[25].mxu1  ;;  %8325 = vst [vmem:[#allocation54_spill] sm:$0xff] %v7827_v56  ;;  %v3435_v36 = vadd.f32 %v7794_v47, %v3229_v38  ;;  %v7844_v38 = vmul.f32 %v3547_v52, %v7827_v56 }
 0x9e2   :  { %v3436_v2 = vadd.f32 %v7797_v16, %v3231_v35  ;;  %8326 = vst [vmem:[#allocation55_spill] sm:$0xff] %v7829_v55  ;;  %v3617_v35 = vadd.f32 %v3591_v9, %v3589_v0  ;;  %v7847_v26 = vmul.f32 %v3547_v52, %v7829_v55  ;;  %v3764_v0 = vmul.f32 %v3596_v13, %v7825_v29 }
 0x9e3   :  { %v7850_v42 = vmax.f32 %v3435_v36, 0.0  ;;  %v7870_v48 = vmul.f32 %v7844_v38, %v7827_v56  ;;  %v3577_v56 = vpop.permute.xlu0 %3576 }
 0x9e4   :  { %v3235_v24 = vpop.f32.mrb[26].mxu1  ;;  %v7833_v50 = vmax.f32 %v3436_v2, 0.0  ;;  %v3768_v28 = vmul.f32 %v7847_v26, %v7829_v55 }
 0x9e5   :  { %v3237_v15 = vpop.f32.mrb[27].mxu1  ;;  %v3447_v60 = vadd.f32 %v7794_v47, %v3235_v24 }
 0x9e6   :  { %v3448_v22 = vadd.f32 %v7797_v16, %v3237_v15  ;;  %8327 = vst [vmem:[#allocation56_spill] sm:$0xff] %v7833_v50  ;;  %v3595_v15 = vmul.f32 %v3537_v53, %v7823_v20  ;;  %v7853_v10 = vmul.f32 %v3557_v54, %v7833_v50 }
 0x9e7   :  { %v7856_v9 = vmax.f32 %v3447_v60, 0.0  ;;  %v7879_v60 = vmul.f32 %v3557_v54, %v7850_v42 }
 0x9e8   :  { %v3241_v37 = vpop.f32.mrb[28].mxu1  ;;  %v7838_v3 = vmax.f32 %v3448_v22, 0.0 }
 0x9e9   :  { %v7787_v44 = vpop.f32.mrb[29].mxu1  ;;  %v3459_v49 = vadd.f32 %v7794_v47, %v3241_v37  ;;  %v3763_v37 = vmul.f32 %v3595_v15, %v7823_v20  ;;  %v7888_v1 = vmul.f32 %v3567_v51, %v7856_v9 }
 0x9ea   :  { %8328 = vst [vmem:[#allocation57_spill] sm:$0xff] %v7838_v3  ;;  %v7859_v2 = vmul.f32 %v3567_v51, %v7838_v3  ;;  %v3460_v59 = vadd.f32 %v7797_v16, %v7787_v44  ;;  %v7883_v44 = vmul.f32 %v7853_v10, %v7833_v50 }
 0x9eb   :  { %v7874_v36 = vmax.f32 %v3459_v49, 0.0 }
 0x9ec   :  { %v7789_v12 = vpop.f32.mrb[44].mxu1  ;;  %v7892_v49 = vmul.f32 %v7859_v2, %v7838_v3  ;;  %v7896_v50 = vmax.f32 %v3460_v59, 0.0 }
 0x9ed   :  { %v7791_v41 = vpop.f32.mrb[45].mxu1  ;;  %v7902_v8 = vmul.f32 %v3577_v56, %v7874_v36 }
 0xa14   :  { %v3318_v24 = vpop.f32.mrb[32].mxu1 }
 0xa15   :  { %v3405_v53 = vadd.f32 %v7794_v47, %v3318_v24  ;;  %v3320_v19 = vpop.f32.mrb[33].mxu1 }
 0xa16   :  { %v3406_v52 = vadd.f32 %v7797_v16, %v3320_v19  ;;  %v3552_v19 = vpop.permute.xlu1 %3551 }
 0xa17   :  { %v7866_v22 = vmax.f32 %v3405_v53, 0.0 }
 0xa18   :  { %v7876_v45 = vmax.f32 %v3406_v52, 0.0  ;;  %v3324_v61 = vpop.f32.mrb[34].mxu1 }
 0xa19   :  { %8329 = vst [vmem:[#allocation58_spill] sm:$0xff] %v7866_v22  ;;  %v3593_v5 = vmul.f32 %v3532_v18, %v7866_v22  ;;  %v3417_v24 = vadd.f32 %v7794_v47, %v3324_v61  ;;  %v3326_v53 = vpop.f32.mrb[35].mxu1 }
 0xa1a   :  { %8330 = vst [vmem:[#allocation59_spill] sm:$0xff] %v7876_v45  ;;  %v3594_v54 = vmul.f32 %v3532_v18, %v7876_v45  ;;  %v3418_v52 = vadd.f32 %v7797_v16, %v3326_v53 }
 0xa1b   :  { %v3618_v55 = vadd.f32 %v3617_v35, %v3593_v5  ;;  %v3761_v29 = vmul.f32 %v3593_v5, %v7866_v22  ;;  %v7899_v61 = vmax.f32 %v3417_v24, 0.0 }
 0xa1c   :  { %v3637_v51 = vadd.f32 %v3636_v62, %v3594_v54  ;;  %v3762_v46 = vmul.f32 %v3594_v54, %v7876_v45  ;;  %v7905_v3 = vmax.f32 %v3418_v52, 0.0  ;;  %v3330_v20 = vpop.f32.mrb[36].mxu1  ;;  %v3562_v45 = vpop.permute.xlu1 %3561 }
 0xa1d   :  { %v3786_v18 = vadd.f32 %v3785_v57, %v3761_v29  ;;  %v3597_v53 = vmul.f32 %v3542_v14, %v7899_v61  ;;  %v3619_v4 = vadd.f32 %v3618_v55, %v3595_v15  ;;  %v3429_v59 = vadd.f32 %v7794_v47, %v3330_v20  ;;  %v3332_v35 = vpop.f32.mrb[37].mxu1 }
 0xa1e   :  { %v3805_v63 = vadd.f32 %v3804_v23, %v3762_v46  ;;  %v3598_v5 = vmul.f32 %v3542_v14, %v7905_v3  ;;  %v3638_v24 = vadd.f32 %v3637_v51, %v3596_v13  ;;  %v3430_v22 = vadd.f32 %v7797_v16, %v3332_v35 }
 0xa1f   :  { %v3620_v43 = vadd.f32 %v3619_v4, %v3597_v53  ;;  %v3765_v62 = vmul.f32 %v3597_v53, %v7899_v61  ;;  %v3787_v54 = vadd.f32 %v3786_v18, %v3763_v37  ;;  %v7912_v52 = vmax.f32 %v3429_v59, 0.0 }
 0xa20   :  { %v3639_v29 = vadd.f32 %v3638_v24, %v3598_v5  ;;  %v3766_v57 = vmul.f32 %v3598_v5, %v7905_v3  ;;  %v3806_v55 = vadd.f32 %v3805_v63, %v3764_v0  ;;  %v7915_v15 = vmax.f32 %v3430_v22, 0.0  ;;  %v3336_v20 = vpop.f32.mrb[38].mxu1 }
 0xa21   :  { %v3471_v46 = vadd.f32 %v7794_v47, %v7789_v12  ;;  %v3601_v13 = vmul.f32 %v3552_v19, %v7912_v52  ;;  %v3621_v4 = vadd.f32 %v3620_v43, %v7844_v38  ;;  %v3441_v14 = vadd.f32 %v7794_v47, %v3336_v20  ;;  %v3338_v23 = vpop.f32.mrb[39].mxu1 }
 0xa22   :  { %v3807_v37 = vadd.f32 %v3806_v55, %v3766_v57  ;;  %v3602_v51 = vmul.f32 %v3552_v19, %v7915_v15  ;;  %v3640_v18 = vadd.f32 %v3639_v29, %v7847_v26  ;;  %v3442_v63 = vadd.f32 %v7797_v16, %v3338_v23 }
 0xa23   :  { %v3612_v0 = vmul.f32 %v3577_v56, %v7896_v50  ;;  %v3788_v22 = vadd.f32 %v3787_v54, %v3765_v62  ;;  %v3622_v53 = vadd.f32 %v3621_v4, %v3601_v13  ;;  %v7926_v59 = vmax.f32 %v3441_v14, 0.0  ;;  %v3572_v54 = vpop.permute.xlu1 %3571 }
 0xa24   :  { %v3641_v12 = vadd.f32 %v3640_v18, %v3602_v51  ;;  %v3770_v35 = vmul.f32 %v3602_v51, %v7915_v15  ;;  %v3808_v43 = vadd.f32 %v3807_v37, %v3768_v28  ;;  %v7929_v38 = vmax.f32 %v3442_v63, 0.0  ;;  %v3342_v5 = vpop.f32.mrb[40].mxu1 }
 0xa25   :  { %v3472_v19 = vadd.f32 %v7797_v16, %v7791_v41  ;;  %v3605_v26 = vmul.f32 %v3562_v45, %v7926_v59  ;;  %v3623_v24 = vadd.f32 %v3622_v53, %v7879_v60  ;;  %v3453_v56 = vadd.f32 %v7794_v47, %v3342_v5  ;;  %v3344_v62 = vpop.f32.mrb[41].mxu1 }
 0xa26   :  { %v3809_v29 = vadd.f32 %v3808_v43, %v3770_v35  ;;  %v3606_v57 = vmul.f32 %v3562_v45, %v7929_v38  ;;  %v3642_v55 = vadd.f32 %v3641_v12, %v7853_v10  ;;  %v3454_v28 = vadd.f32 %v7797_v16, %v3344_v62 }
 0xa27   :  { %v3769_v20 = vmul.f32 %v3601_v13, %v7912_v52  ;;  %v3789_v4 = vadd.f32 %v3788_v22, %v7870_v48  ;;  %v3624_v41 = vadd.f32 %v3623_v24, %v3605_v26  ;;  %v7941_v14 = vmax.f32 %v3453_v56, 0.0  ;;  %v3582_v56 = vpop.permute.xlu1 %3581 }
 0xa28   :  { %v3643_v23 = vadd.f32 %v3642_v55, %v3606_v57  ;;  %v3774_v37 = vmul.f32 %v3606_v57, %v7929_v38  ;;  %v3810_v51 = vadd.f32 %v3809_v29, %v7883_v44  ;;  %v7945_v18 = vmax.f32 %v3454_v28, 0.0  ;;  %v3348_v63 = vpop.f32.mrb[42].mxu1 }
 0xa29   :  { %v7947_v45 = vmax.f32 %v3472_v19, 0.0  ;;  %v3609_v10 = vmul.f32 %v3572_v54, %v7941_v14  ;;  %v3625_v53 = vadd.f32 %v3624_v41, %v7888_v1  ;;  %v3465_v13 = vadd.f32 %v7794_v47, %v3348_v63  ;;  %v3350_v48 = vpop.f32.mrb[43].mxu1 }
 0xa2a   :  { %v3811_v22 = vadd.f32 %v3810_v51, %v3774_v37  ;;  %v3610_v12 = vmul.f32 %v3572_v54, %v7945_v18  ;;  %v3644_v35 = vadd.f32 %v3643_v23, %v7859_v2  ;;  %v3466_v43 = vadd.f32 %v7797_v16, %v3350_v48  ;;  %v3587_v54 = vpop.permute.xlu0 %3586 }
 0xa2b   :  { %v7955_v44 = vmax.f32 %v3471_v46, 0.0  ;;  %v3790_v5 = vadd.f32 %v3789_v4, %v3769_v20  ;;  %v3626_v24 = vadd.f32 %v3625_v53, %v3609_v10  ;;  %v7957_v19 = vmax.f32 %v3465_v13, 0.0 }
 0xa2c   :  { %v3645_v62 = vadd.f32 %v3644_v35, %v3610_v12  ;;  %v3778_v29 = vmul.f32 %v3610_v12, %v7945_v18  ;;  %v3812_v47 = vadd.f32 %v3811_v22, %v7892_v49  ;;  %v7961_v57 = vmax.f32 %v3466_v43, 0.0  ;;  %v3354_v55 = vpop.f32.mrb[46].mxu1 }
 0xa2d   :  { %v3771_v2 = vmul.f32 %v7879_v60, %v7850_v42  ;;  %v3780_v16 = vmul.f32 %v3612_v0, %v7896_v50  ;;  %v3613_v46 = vmul.f32 %v3582_v56, %v7957_v19  ;;  %v3627_v28 = vadd.f32 %v3626_v24, %v7902_v8  ;;  %v3355_v20 = vpop.f32.mrb[47].mxu1 }
 0xa2e   :  { %v3616_v4 = vmul.f32 %v3587_v54, %v7947_v45  ;;  %v3813_v41 = vadd.f32 %v3812_v47, %v3778_v29  ;;  %v3614_v23 = vmul.f32 %v3582_v56, %v7961_v57  ;;  %v3646_v49 = vadd.f32 %v3645_v62, %v3612_v0 }
 0xa2f   :  { %v3615_v37 = vmul.f32 %v3587_v54, %v7955_v44  ;;  %v3773_v51 = vmul.f32 %v3605_v26, %v7926_v59  ;;  %v3791_v63 = vadd.f32 %v3790_v5, %v3771_v2  ;;  %v3628_v53 = vadd.f32 %v3627_v28, %v3613_v46 }
 0xa30   :  { %v3647_v60 = vadd.f32 %v3646_v49, %v3614_v23  ;;  %v3782_v13 = vmul.f32 %v3614_v23, %v7961_v57  ;;  %v3814_v48 = vadd.f32 %v3813_v41, %v3780_v16  ;;  %v3784_v12 = vmul.f32 %v3616_v4, %v7947_v45 }
 0xa31   :  { %v3629_v22 = vadd.f32 %v3628_v53, %v3615_v37  ;;  %v3792_v24 = vadd.f32 %v3791_v63, %v3773_v51  ;;  %v3775_v0 = vmul.f32 %v7888_v1, %v7856_v9  ;;  %v3777_v55 = vmul.f32 %v3609_v10, %v7941_v14 }
 0xa32   :  { %v3648_v35 = vadd.f32 %v3647_v60, %v3616_v4  ;;  %v3815_v43 = vadd.f32 %v3814_v48, %v3782_v13  ;;  %v3779_v53 = vmul.f32 %v7902_v8, %v7874_v36  ;;  %v3781_v13 = vmul.f32 %v3613_v46, %v7957_v19 }
 0xa33   :  { %v3630_v29 = vrot.slane %v3629_v22, 4  ;;  %v3793_v54 = vadd.f32 %v3792_v24, %v3775_v0  ;;  %v3895_v0 = vld [vmem:[#allocation29] sm:$0x1] }
 0xa34   :  { %v3816_v47 = vadd.f32 %v3815_v43, %v3784_v12  ;;  %v3649_v56 = vrot.slane %v3648_v35, 4 }
 0xa35   :  { %v3631_v62 = vadd.f32 %v3630_v29, %v3629_v22  ;;  %v3794_v23 = vadd.f32 %v3793_v54, %v3777_v55 }
 0xa36   :  { %v3650_v26 = vadd.f32 %v3649_v56, %v3648_v35  ;;  %v3817_v5 = vrot.slane %v3816_v47, 4  ;;  %v3783_v35 = vmul.f32 %v3615_v37, %v7955_v44  ;;  %v3904_v37 = vld [vmem:[#allocation28 + $0x10] sm:$0xff] }
 0xa37   :  { %v3632_v2 = vrot.slane %v3631_v62, 2  ;;  %v3795_v48 = vadd.f32 %v3794_v23, %v3779_v53  ;;  %v4139_v53 = vld [vmem:[#allocation32 + $0x60] sm:$0xff] }
 0xa38   :  { %v3651_v16 = vrot.slane %v3650_v26, 2  ;;  %v3818_v28 = vadd.f32 %v3817_v5, %v3816_v47 }
 0xa39   :  { %v3633_v20 = vadd.f32 %v3632_v2, %v3631_v62  ;;  %v3796_v12 = vadd.f32 %v3795_v48, %v3781_v13  ;;  %v4128_v62 = vld [vmem:[#allocation32 + $0x8] sm:$0xff]  ;;  %v4127_v2 = vld [vmem:[#allocation32] sm:$0xff] }
 0xa3a   :  { %v3652_v41 = vadd.f32 %v3651_v16, %v3650_v26  ;;  %v3819_v4 = vrot.slane %v3818_v28, 2  ;;  %v4132_v26 = vld [vmem:[#allocation32 + $0x28] sm:$0xff]  ;;  %v4131_v16 = vld [vmem:[#allocation32 + $0x20] sm:$0xff] }
 0xa3b   :  { %v3634_v49 = vrot.slane %v3633_v20, 1  ;;  %v3797_v8 = vadd.f32 %v3796_v12, %v3783_v35  ;;  %v5980_v54 = vpack.c.bf16 %v4132_v26, %v4128_v62  ;;  %v5982_v23 = vpack.c.bf16 %v4131_v16, %v4127_v2  ;;  %v4152_v12 = vld [vmem:[#allocation32 + $0xc8] sm:$0xff] }
 0xa3c   :  { %v3653_v51 = vrot.slane %v3652_v41, 1  ;;  %v3820_v63 = vadd.f32 %v3819_v4, %v3818_v28  ;;  %v3899_v28 = vld [vmem:[#allocation31] sm:$0x1]  ;;  %v4156_v35 = vld [vmem:[#allocation32 + $0xe8] sm:$0xff] }
 0xa3d   :  { %v3635_v10 = vadd.f32 %v3634_v49, %v3633_v20  ;;  %v3798_v46 = vrot.slane %v3797_v8, 4  ;;  %v4136_v20 = vld [vmem:[#allocation32 + $0x48] sm:$0xff] }
 0xa3e   :  { %v3654_v1 = vadd.f32 %v3653_v51, %v3652_v41  ;;  %v3821_v60 = vrot.slane %v3820_v63, 1  ;;  %v4140_v41 = vld [vmem:[#allocation32 + $0x68] sm:$0xff] }
 0xa3f   :  { %v5984_v51 = vpack.c.bf16 %v4140_v41, %v4136_v20  ;;  %v4196_v2 = vld [vmem:[#allocation32 + $0x228] sm:$0xff]  ;;  %v4191_v20 = vld [vmem:[#allocation32 + $0x200] sm:$0xff] }
 0xa40   :  { %3751 = vmatprep.mubr.f32.mxu0 %v3654_v1  ;;  %v3822_v22 = vadd.f32 %v3821_v60, %v3820_v63  ;;  %v4135_v63 = vld [vmem:[#allocation32 + $0x40] sm:$0xff]  ;;  %v4144_v1 = vld [vmem:[#allocation32 + $0x88] sm:$0xff] }
 0xa41   :  { %3752 = vmatmul.mubr.f32.vlgmr.msra.gmra.mrb[24].mxu0 %v3635_v10  ;;  %v4148_v60 = vld [vmem:[#allocation32 + $0xa8] sm:$0xff]  ;;  %v5986_v13 = vpack.c.bf16 %v4139_v53, %v4135_v63  ;;  %v4143_v10 = vld [vmem:[#allocation32 + $0x80] sm:$0xff] }
 0xa42   :  { %5943 = vmatpush3.bf16.msra.mxu0 %v7658_v33  ;;  %3887 = vmatprep.mubr.f32.mxu0 %v3822_v22  ;;  %v3799_v33 = vadd.f32 %v3798_v46, %v3797_v8  ;;  %v5988_v48 = vpack.c.bf16 %v4148_v60, %v4144_v1  ;;  %v4147_v22 = vld [vmem:[#allocation32 + $0xa0] sm:$0xff]  ;;  %v5992_v46 = vpack.c.bf16 %v4156_v35, %v4152_v12  ;;  %v4208_v1 = vld [vmem:[#allocation32 + $0x288] sm:$0xff] }
 0xa43   :  { %5945 = vmatprep.subr.bf16.mxu0 %v7667_v32  ;;  %v5990_v8 = vpack.c.bf16 %v4147_v22, %v4143_v10  ;;  %v4195_v41 = vld [vmem:[#allocation32 + $0x220] sm:$0xff]  ;;  %v4212_v60 = vld [vmem:[#allocation32 + $0x2a8] sm:$0xff] }
 0xa44   :  { %v3800_v32 = vrot.slane %v3799_v33, 2  ;;  %v4199_v63 = vld [vmem:[#allocation32 + $0x240] sm:$0xff]  ;;  %v4216_v12 = vld [vmem:[#allocation32 + $0x2c8] sm:$0xff] }
 0xa45   :  { %v4203_v53 = vld [vmem:[#allocation32 + $0x260] sm:$0xff]  ;;  %v4220_v35 = vld [vmem:[#allocation32 + $0x2e8] sm:$0xff] }
 0xa46   :  { %5947 = vmatpush3.bf16.msra.mxu0 %v7675_v34  ;;  %v3801_v34 = vadd.f32 %v3800_v32, %v3799_v33  ;;  %v4151_v33 = vld [vmem:[#allocation32 + $0xc0] sm:$0xff] }
 0xa47   :  { %5949 = vmatprep.subr.bf16.mxu0 %v7685_v27  ;;  %v4155_v32 = vld [vmem:[#allocation32 + $0xe0] sm:$0xff] }
 0xa48   :  { %v3802_v27 = vrot.slane %v3801_v34, 1  ;;  %v4207_v10 = vld [vmem:[#allocation32 + $0x280] sm:$0xff] }
 0xa49   :  { %v4211_v22 = vld [vmem:[#allocation32 + $0x2a0] sm:$0xff] }
 0xa4a   :  { %5951 = vmatpush3.bf16.msra.mxu0 %v7693_v25  ;;  %v3803_v25 = vadd.f32 %v3802_v27, %v3801_v34  ;;  %v4160_v34 = vld [vmem:[#allocation32 + $0x108] sm:$0xff] }
 0xa4b   :  { %5953 = vmatprep.subr.bf16.mxu0 %v7703_v6  ;;  %v8331_v6 = vmov 0.0   ;;  %v4164_v27 = vld [vmem:[#allocation32 + $0x128] sm:$0xff] }
 0xa4e   :  { %5955 = vmatpush3.bf16.msra.mxu0 %v7711_v7  ;;  %v3903_v7 = vld [vmem:[#allocation28 + $0x8] sm:$0xff] }
 0xa4f   :  { %5957 = vmatprep.subr.bf16.mxu0 %v7721_v11  ;;  %v3905_v11 = vld [vmem:[#allocation28 + $0x18] sm:$0xff] }
 0xa52   :  { %5959 = vmatpush3.bf16.msra.mxu0 %v7729_v17  ;;  %v3902_v17 = vld [vmem:[#allocation28] sm:$0xff] }
 0xa53   :  { %5961 = vmatprep.subr.bf16.mxu0 %v7739_v58  ;;  %v5972_v58 = vpack.c.bf16 %v3905_v11, %v3903_v7  ;;  %v4159_v7 = vld [vmem:[#allocation32 + $0x100] sm:$0xff] }
 0xa54   :  { %v4163_v11 = vld [vmem:[#allocation32 + $0x120] sm:$0xff] }
 0xa56   :  { %5963 = vmatpush3.bf16.msra.mxu0 %v7747_v40  ;;  %v5974_v40 = vpack.c.bf16 %v3904_v37, %v3902_v17  ;;  %v4168_v17 = vld [vmem:[#allocation32 + $0x148] sm:$0xff]  ;;  %v5998_v37 = vpack.c.bf16 %v4163_v11, %v4159_v7  ;;  %v4223_v7 = vld [vmem:[#allocation32 + $0x300] sm:$0xff] }
 0xa57   :  { %5965 = vmatprep.subr.bf16.mxu0 %v7757_v21  ;;  %v4227_v11 = vld [vmem:[#allocation32 + $0x320] sm:$0xff] }
 0xa5a   :  { %5967 = vmatpush3.bf16.msra.mxu0 %v7765_v30 }
 0xa5b   :  { %5969 = vmatprep.subr.bf16.mxu0 %v7777_v31 }
 0xa5e   :  { %5971 = vmatpush3.bf16.msra.mxu0 %v7783_v39 }
 0xa5f   :  { %5973 = vmatprep.subr.bf16.mxu0 %v5972_v58 }
 0xa61   :  { %3888 = vmatmul.mubr.f32.vlgmr.msra.gmra.mrb[26].mxu0 %v3803_v25  ;;  %v5994_v25 = vpack.c.bf16 %v4155_v32, %v4151_v33  ;;  %v4215_v33 = vld [vmem:[#allocation32 + $0x2c0] sm:$0xff] }
 0xa62   :  { %3974 = vmatprep.mubr.f32.mxu0 %v8331_v6  ;;  %5975 = vmatpush1.bf16.msra.mxu0 %v5974_v40  ;;  %v4219_v32 = vld [vmem:[#allocation32 + $0x2e0] sm:$0xff] }
 0xa63   :  { %5977 = vmatprep.subr.bf16.mxu0 %v5972_v58  ;;  %v4172_v58 = vld [vmem:[#allocation32 + $0x168] sm:$0xff] }
 0xb14   :  { %v4824_v21 = vpop.f32.mrb[24].mxu0 }
 0xb15   :  { %v4825_v30 = vpop.f32.mrb[25].mxu0 }
 0xb16   :  { %v4826_v43 = vadd.f32 %v4825_v30, %v4824_v21  ;;  %v4167_v21 = vld [vmem:[#allocation32 + $0x140] sm:$0xff] }
 0xb17   :  { %v4171_v30 = vld [vmem:[#allocation32 + $0x160] sm:$0xff] }
 0xb18   :  { %v3893_v29 = vmul.f32 %v4826_v43, %v4826_v43 }
 0xb34   :  { %v4859_v31 = vpop.f32.mrb[26].mxu0 }
 0xb35   :  { %v4860_v24 = vpop.f32.mrb[27].mxu0 }
 0xb36   :  { %v4861_v39 = vadd.f32 %v4860_v24, %v4859_v31  ;;  %v4180_v31 = vld [vmem:[#allocation32 + $0x1a8] sm:$0xff]  ;;  %v6002_v24 = vpack.c.bf16 %v4171_v30, %v4167_v21  ;;  %v4231_v21 = vld [vmem:[#allocation32 + $0x340] sm:$0xff] }
 0xb37   :  { %v4235_v30 = vld [vmem:[#allocation32 + $0x360] sm:$0xff] }
 0xb38   :  { %v3894_v47 = vsub.f32 %v4861_v39, %v3893_v29  ;;  %v4175_v39 = vld [vmem:[#allocation32 + $0x180] sm:$0xff] }
 0xb3a   :  { %v3896_v56 = vadd.f32 1e-05, %v3894_v47  ;;  %v4179_v47 = vld [vmem:[#allocation32 + $0x1a0] sm:$0xff] }
 0xb3b   :  { %v6006_v62 = vpack.c.bf16 %v4179_v47, %v4175_v39  ;;  %v4239_v39 = vld [vmem:[#allocation32 + $0x380] sm:$0xff] }
 0xb3c   :  { %6225 = vrsqrt.f32 %v3896_v56  ;;  %v4184_v56 = vld [vmem:[#allocation32 + $0x1c8] sm:$0xff]  ;;  %v4243_v47 = vld [vmem:[#allocation32 + $0x3a0] sm:$0xff] }
 0xb46   :  { %v6226_v5 = vpop.eup %6225 }
 0xb47   :  { %v3898_v55 = vmul.f32 %v6226_v5, %v3895_v0  ;;  %v4188_v0 = vld [vmem:[#allocation32 + $0x1e8] sm:$0xff]  ;;  %v4183_v5 = vld [vmem:[#allocation32 + $0x1c0] sm:$0xff] }
 0xb48   :  { %v6008_v26 = vpack.c.bf16 %v4188_v0, %v4184_v56  ;;  %v6038_v56 = vpack.c.bf16 %v4243_v47, %v4239_v39  ;;  %v4248_v0 = vld [vmem:[#allocation32 + $0x3c8] sm:$0xff] }
 0xb49   :  { %4699 = vmatmul.mubr.msk.f32.vlgmr.msra.gmra.mrb[28].mxu0 %vm3906_vm6, %v3898_v55  ;;  %v3900_v4 = vmul.f32 %v4826_v43, %v3898_v55  ;;  %v4176_v43 = vld [vmem:[#allocation32 + $0x188] sm:$0xff]  ;;  %v4187_v55 = vld [vmem:[#allocation32 + $0x1e0] sm:$0xff] }
 0xb4a   :  { %5979 = vmatpush1.bf16.msra.mxu0 %v5974_v40  ;;  %4048 = vmatprep.mubr.f32.mxu0 %v8331_v6  ;;  %v5996_v6 = vpack.c.bf16 %v4164_v27, %v4160_v34  ;;  %v6000_v40 = vpack.c.bf16 %v4172_v58, %v4168_v17  ;;  %v6004_v29 = vpack.c.bf16 %v4180_v31, %v4176_v43  ;;  %v4224_v34 = vld [vmem:[#allocation32 + $0x308] sm:$0xff] }
 0xb4b   :  { %v3901_v49 = vsub.f32 %v3899_v28, %v3900_v4  ;;  %5981 = vmatprep.subr.bf16.mxu0 %v5980_v54  ;;  %v4192_v54 = vld [vmem:[#allocation32 + $0x208] sm:$0xff]  ;;  %v6010_v16 = vpack.c.bf16 %v4187_v55, %v4183_v5  ;;  %v6034_v43 = vpack.c.bf16 %v4235_v30, %v4231_v21  ;;  %v4247_v5 = vld [vmem:[#allocation32 + $0x3c0] sm:$0xff] }
 0xb4c   :  { %v6012_v28 = vpack.c.bf16 %v4196_v2, %v4192_v54  ;;  %v4200_v4 = vld [vmem:[#allocation32 + $0x248] sm:$0xff]  ;;  %v4251_v55 = vld [vmem:[#allocation32 + $0x3e0] sm:$0xff]  ;;  %v4130_v2 = vld [vmem:[#allocation32 + $0x18] sm:$0xff] }
 0xb4d   :  { %4700 = vmatmul.mubr.msk.f32.vlgmr.msra.gmra.mrb[30].mxu0 %vm3906_vm6, %v3901_v49  ;;  %v6014_v49 = vpack.c.bf16 %v4195_v41, %v4191_v20  ;;  %v4228_v27 = vld [vmem:[#allocation32 + $0x328] sm:$0xff]  ;;  %v6042_v54 = vpack.c.bf16 %v4251_v55, %v4247_v5  ;;  %v4129_v20 = vld [vmem:[#allocation32 + $0x10] sm:$0xff] }
 0xb4e   :  { %5983 = vmatpush1.bf16.msra.mxu0 %v5982_v23  ;;  %v4204_v23 = vld [vmem:[#allocation32 + $0x268] sm:$0xff]  ;;  %v4133_v41 = vld [vmem:[#allocation32 + $0x30] sm:$0xff] }
 0xb4f   :  { %5985 = vmatprep.subr.bf16.mxu0 %v5984_v51  ;;  %v6016_v51 = vpack.c.bf16 %v4204_v23, %v4200_v4  ;;  %v4232_v17 = vld [vmem:[#allocation32 + $0x348] sm:$0xff]  ;;  %v8000_v4 = vld [vmem:[#allocation32 + $0x58] sm:$0xff] }
 0xb50   :  { %v4236_v58 = vld [vmem:[#allocation32 + $0x368] sm:$0xff]  ;;  %v8002_v23 = vld [vmem:[#allocation32 + $0x78] sm:$0xff] }
 0xb51   :  { %v4240_v31 = vld [vmem:[#allocation32 + $0x388] sm:$0xff] }
 0xb52   :  { %5987 = vmatpush1.bf16.msra.mxu0 %v5986_v13  ;;  %v6018_v13 = vpack.c.bf16 %v4203_v53, %v4199_v63  ;;  %v8008_v63 = vld [vmem:[#allocation32 + $0x98] sm:$0xff]  ;;  %v8339_v39 = vld [vmem:[#allocation59_spill] sm:$0xff] }
 0xb53   :  { %5989 = vmatprep.subr.bf16.mxu0 %v5988_v48  ;;  %v6020_v48 = vpack.c.bf16 %v4212_v60, %v4208_v1  ;;  %v8010_v53 = vld [vmem:[#allocation32 + $0xb8] sm:$0xff]  ;;  %v8012_v1 = vld [vmem:[#allocation32 + $0x90] sm:$0xff] }
 0xb54   :  { %v8014_v60 = vld [vmem:[#allocation32 + $0xb0] sm:$0xff] }
 0xb56   :  { %5991 = vmatpush1.bf16.msra.mxu0 %v5990_v8  ;;  %v6022_v8 = vpack.c.bf16 %v4211_v22, %v4207_v10  ;;  %v8332_v22 = vld [vmem:[#allocation47_spill] sm:$0xff] }
 0xb57   :  { %5993 = vmatprep.subr.bf16.mxu0 %v5992_v46  ;;  %v6024_v46 = vpack.c.bf16 %v4220_v35, %v4216_v12 }
 0xb5a   :  { %5995 = vmatpush1.bf16.msra.mxu0 %v5994_v25  ;;  %v6026_v25 = vpack.c.bf16 %v4219_v32, %v4215_v33 }
 0xb5b   :  { %5997 = vmatprep.subr.bf16.mxu0 %v5996_v6  ;;  %v6028_v6 = vpack.c.bf16 %v4228_v27, %v4224_v34  ;;  %v6052_v34 = vpack.c.bf16 %v8010_v53, %v8008_v63  ;;  %v6054_v27 = vpack.c.bf16 %v8014_v60, %v8012_v1  ;;  %v4169_v60 = vld [vmem:[#allocation32 + $0x150] sm:$0xff] }
 0xb5e   :  { %5999 = vmatpush1.bf16.msra.mxu0 %v5998_v37  ;;  %v6030_v37 = vpack.c.bf16 %v4227_v11, %v4223_v7  ;;  %v8334_v11 = vld [vmem:[#allocation48_spill] sm:$0xff] }
 0xb5f   :  { %6001 = vmatprep.subr.bf16.mxu0 %v6000_v40  ;;  %v6032_v40 = vpack.c.bf16 %v4236_v58, %v4232_v17  ;;  %v8335_v58 = vld [vmem:[#allocation58_spill] sm:$0xff] }
 0xb62   :  { %6003 = vmatpush1.bf16.msra.mxu0 %v6002_v24  ;;  %v4244_v24 = vld [vmem:[#allocation32 + $0x3a8] sm:$0xff] }
 0xb63   :  { %6005 = vmatprep.subr.bf16.mxu0 %v6004_v29  ;;  %v6036_v29 = vpack.c.bf16 %v4244_v24, %v4240_v31  ;;  %v8338_v24 = vld [vmem:[#allocation50_spill] sm:$0xff] }
 0xb66   :  { %6007 = vmatpush1.bf16.msra.mxu0 %v6006_v62  ;;  %v4252_v62 = vld [vmem:[#allocation32 + $0x3e8] sm:$0xff] }
 0xb67   :  { %6009 = vmatprep.subr.bf16.mxu0 %v6008_v26  ;;  %v6040_v26 = vpack.c.bf16 %v4252_v62, %v4248_v0 }
 0xb6a   :  { %6011 = vmatpush1.bf16.msra.mxu0 %v6010_v16  ;;  %v4134_v16 = vld [vmem:[#allocation32 + $0x38] sm:$0xff] }
 0xb6b   :  { %6013 = vmatprep.subr.bf16.mxu0 %v6012_v28  ;;  %v6044_v28 = vpack.c.bf16 %v4134_v16, %v4130_v2 }
 0xb6e   :  { %6015 = vmatpush1.bf16.msra.mxu0 %v6014_v49  ;;  %v8004_v49 = vld [vmem:[#allocation32 + $0x50] sm:$0xff] }
 0xb6f   :  { %6017 = vmatprep.subr.bf16.mxu0 %v6016_v51  ;;  %v8006_v51 = vld [vmem:[#allocation32 + $0x70] sm:$0xff] }
 0xb70   :  { %v6050_v33 = vpack.c.bf16 %v8006_v51, %v8004_v49 }
 0xb72   :  { %6019 = vmatpush1.bf16.msra.mxu0 %v6018_v13  ;;  %v8016_v13 = vld [vmem:[#allocation32 + $0xd8] sm:$0xff] }
 0xb73   :  { %6021 = vmatprep.subr.bf16.mxu0 %v6020_v48  ;;  %v8018_v48 = vld [vmem:[#allocation32 + $0xf8] sm:$0xff] }
 0xb76   :  { %6023 = vmatpush1.bf16.msra.mxu0 %v6022_v8  ;;  %v6046_v8 = vpack.c.bf16 %v4133_v41, %v4129_v20 }
 0xb77   :  { %6025 = vmatprep.subr.bf16.mxu0 %v6024_v46  ;;  %v6048_v46 = vpack.c.bf16 %v8002_v23, %v8000_v4 }
 0xb7a   :  { %6027 = vmatpush1.bf16.msra.mxu0 %v6026_v25  ;;  %v6056_v25 = vpack.c.bf16 %v8018_v48, %v8016_v13 }
 0xb7b   :  { %6029 = vmatprep.subr.bf16.mxu0 %v6028_v6  ;;  %v8333_v6 = vld [vmem:[#allocation49_spill] sm:$0xff] }
 0xb7e   :  { %6031 = vmatpush1.bf16.msra.mxu0 %v6030_v37 }
 0xb7f   :  { %6033 = vmatprep.subr.bf16.mxu0 %v6032_v40  ;;  %v8336_v40 = vld [vmem:[#allocation52_spill] sm:$0xff] }
 0xb82   :  { %6035 = vmatpush1.bf16.msra.mxu0 %v6034_v43  ;;  %v8337_v43 = vld [vmem:[#allocation51_spill] sm:$0xff] }
 0xb83   :  { %6037 = vmatprep.subr.bf16.mxu0 %v6036_v29 }
 0xb86   :  { %6039 = vmatpush1.bf16.msra.mxu0 %v6038_v56  ;;  %v8340_v56 = vld [vmem:[#allocation53_spill] sm:$0xff] }
 0xb87   :  { %6041 = vmatprep.subr.bf16.mxu0 %v6040_v26 }
 0xb8a   :  { %6043 = vmatpush1.bf16.msra.mxu0 %v6042_v54  ;;  %v8341_v54 = vld [vmem:[#allocation55_spill] sm:$0xff] }
 0xb8b   :  { %6045 = vmatprep.subr.bf16.mxu0 %v6044_v28  ;;  %v8342_v28 = vld [vmem:[#allocation54_spill] sm:$0xff] }
 0xc1c   :  { %v3976_v10 = vpop.f32.mrb[28].mxu0 }
 0xc1d   :  { %v8021_v12 = vrot.slane %v3976_v10, %v8332_v22  ;;  %v3978_v35 = vpop.f32.mrb[29].mxu0 }
 0xc1e   :  { %v4062_v32 = vrot.slane %v3978_v35, %v8332_v22 }
 0xc1f   :  { %v4063_v7 = vmul.f32 %v8021_v12, %v8333_v6  ;;  %v4065_v17 = vmul.f32 %v8021_v12, %v8334_v11  ;;  %v4067_v37 = vmul.f32 %v8021_v12, %v8335_v58  ;;  %v4069_v21 = vmul.f32 %v8021_v12, %v8336_v40  ;;  %v8343_v40 = vld [vmem:[#allocation56_spill] sm:$0xff] }
 0xc20   :  { %v4050_v30 = vpop.f32.mrb[30].mxu0  ;;  %v4064_v31 = vmul.f32 %v4062_v32, %v8337_v43  ;;  %v4066_v29 = vmul.f32 %v4062_v32, %v8338_v24  ;;  %v4068_v47 = vmul.f32 %v4062_v32, %v8339_v39  ;;  %v4070_v0 = vmul.f32 %v4062_v32, %v8340_v56  ;;  %v8344_v24 = vld [vmem:[#allocation57_spill] sm:$0xff] }
 0xc21   :  { %v4094_v62 = vrot.slane %v4050_v30, %v8332_v22  ;;  %v4052_v26 = vpop.f32.mrb[31].mxu0  ;;  %v4072_v5 = vmul.f32 %v4062_v32, %v7905_v3  ;;  %v4071_v55 = vmul.f32 %v8021_v12, %v7899_v61  ;;  %v4074_v2 = vmul.f32 %v4062_v32, %v8341_v54 }
 0xc22   :  { %v4098_v16 = vrot.slane %v4052_v26, %v8332_v22  ;;  %v4073_v20 = vmul.f32 %v8021_v12, %v8342_v28  ;;  %v4076_v41 = vmul.f32 %v4062_v32, %v7915_v15  ;;  %v4075_v4 = vmul.f32 %v8021_v12, %v7912_v52 }
 0xc23   :  { %v8057_v23 = vadd.f32 %v4094_v62, %v4063_v7  ;;  %v8059_v10 = vadd.f32 %v4094_v62, %v4065_v17  ;;  %v8061_v3 = vadd.f32 %v4094_v62, %v4067_v37  ;;  %v8063_v35 = vadd.f32 %v4094_v62, %v4069_v21 }
 0xc24   :  { %v8065_v61 = vadd.f32 %v4098_v16, %v4064_v31  ;;  %v8067_v6 = vadd.f32 %v4098_v16, %v4066_v29  ;;  %v8069_v22 = vadd.f32 %v4098_v16, %v4068_v47  ;;  %v8071_v11 = vadd.f32 %v4098_v16, %v4070_v0 }
 0xc25   :  { %v8073_v15 = vadd.f32 %v4098_v16, %v4072_v5  ;;  %v8075_v58 = vadd.f32 %v4094_v62, %v4071_v55  ;;  %v8077_v52 = vadd.f32 %v4098_v16, %v4074_v2  ;;  %v8079_v7 = vadd.f32 %v4094_v62, %v4073_v20  ;;  %v4178_v20 = vld [vmem:[#allocation32 + $0x198] sm:$0xff] }
 0xc26   :  { %4319 = vmatprep.mubr.f32.mxu0 %v8065_v61  ;;  %v8082_v17 = vadd.f32 %v4098_v16, %v4076_v41  ;;  %v8084_v37 = vadd.f32 %v4094_v62, %v4075_v4  ;;  %v4078_v21 = vmul.f32 %v4062_v32, %v8343_v40  ;;  %v4077_v30 = vmul.f32 %v8021_v12, %v7850_v42  ;;  %v4182_v41 = vld [vmem:[#allocation32 + $0x1b8] sm:$0xff]  ;;  %v4181_v4 = vld [vmem:[#allocation32 + $0x1b0] sm:$0xff] }
 0xc27   :  { %4320 = vmatmul.mubr.f32.vlgmr.msra.gmra.mrb[32].mxu0 %v8057_v23  ;;  %v4080_v43 = vmul.f32 %v4062_v32, %v7929_v38  ;;  %v4079_v31 = vmul.f32 %v8021_v12, %v7926_v59  ;;  %v4082_v29 = vmul.f32 %v4062_v32, %v8344_v24  ;;  %v4081_v39 = vmul.f32 %v8021_v12, %v7856_v9  ;;  %v4186_v40 = vld [vmem:[#allocation32 + $0x1d8] sm:$0xff]  ;;  %v4189_v24 = vld [vmem:[#allocation32 + $0x1f0] sm:$0xff] }
 0xc28   :  { %6047 = vmatpush1.bf16.msra.mxu0 %v6046_v8  ;;  %4324 = vmatprep.mubr.f32.mxu0 %v8067_v6  ;;  %v8097_v47 = vadd.f32 %v4098_v16, %v4078_v21  ;;  %v8099_v56 = vadd.f32 %v4094_v62, %v4077_v30  ;;  %v4084_v42 = vmul.f32 %v4062_v32, %v7945_v18  ;;  %v4190_v21 = vld [vmem:[#allocation32 + $0x1f8] sm:$0xff] }
 0xc29   :  { %6049 = vmatprep.subr.bf16.mxu0 %v6048_v46  ;;  %v8102_v0 = vadd.f32 %v4098_v16, %v4080_v43  ;;  %v8104_v38 = vadd.f32 %v4094_v62, %v4079_v31  ;;  %v8106_v59 = vadd.f32 %v4098_v16, %v4082_v29  ;;  %v8108_v26 = vadd.f32 %v4094_v62, %v4081_v39  ;;  %v4185_v31 = vld [vmem:[#allocation32 + $0x1d0] sm:$0xff]  ;;  %v4194_v29 = vld [vmem:[#allocation32 + $0x218] sm:$0xff] }
 0xc2a   :  { %v8110_v5 = vadd.f32 %v4098_v16, %v4084_v42  ;;  %v4083_v9 = vmul.f32 %v8021_v12, %v7941_v14  ;;  %v4086_v8 = vmul.f32 %v4062_v32, %v7896_v50  ;;  %v4085_v55 = vmul.f32 %v8021_v12, %v7874_v36  ;;  %v4198_v39 = vld [vmem:[#allocation32 + $0x238] sm:$0xff] }
 0xc2b   :  { %4325 = vmatmul.mubr.f32.gmra.mrb[34].mxu0 %v8059_v10  ;;  %v4088_v18 = vmul.f32 %v4062_v32, %v7961_v57  ;;  %v4087_v46 = vmul.f32 %v8021_v12, %v7957_v19  ;;  %v4090_v54 = vmul.f32 %v4062_v32, %v7947_v45  ;;  %v4089_v2 = vmul.f32 %v8021_v12, %v7955_v44  ;;  %v4153_v45 = vld [vmem:[#allocation32 + $0xd0] sm:$0xff]  ;;  %v4162_v12 = vld [vmem:[#allocation32 + $0x118] sm:$0xff] }
 0xc2c   :  { %6051 = vmatpush1.bf16.msra.mxu0 %v6050_v33  ;;  %4330 = vmatprep.mubr.f32.mxu0 %v8069_v22  ;;  %v8128_v50 = vadd.f32 %v4094_v62, %v4083_v9  ;;  %v8130_v36 = vadd.f32 %v4098_v16, %v4086_v8  ;;  %v8132_v14 = vadd.f32 %v4094_v62, %v4085_v55  ;;  %v4157_v19 = vld [vmem:[#allocation32 + $0xf0] sm:$0xff]  ;;  %v4166_v33 = vld [vmem:[#allocation32 + $0x138] sm:$0xff] }
 0xc2d   :  { %6053 = vmatprep.subr.bf16.mxu0 %v6052_v34  ;;  %v8137_v57 = vadd.f32 %v4098_v16, %v4088_v18  ;;  %v8139_v44 = vadd.f32 %v4094_v62, %v4087_v46  ;;  %v8141_v49 = vadd.f32 %v4098_v16, %v4090_v54  ;;  %v8143_v51 = vadd.f32 %v4094_v62, %v4089_v2  ;;  %v4161_v32 = vld [vmem:[#allocation32 + $0x110] sm:$0xff]  ;;  %v4170_v62 = vld [vmem:[#allocation32 + $0x158] sm:$0xff] }
 0xc2e   :  { %v6058_v63 = vpack.c.bf16 %v4157_v19, %v4153_v45  ;;  %v6060_v53 = vpack.c.bf16 %v4166_v33, %v4162_v12  ;;  %v4165_v34 = vld [vmem:[#allocation32 + $0x130] sm:$0xff]  ;;  %v4174_v16 = vld [vmem:[#allocation32 + $0x178] sm:$0xff]  ;;  %v6068_v48 = vpack.c.bf16 %v4182_v41, %v4178_v20  ;;  %v6072_v43 = vpack.c.bf16 %v4190_v21, %v4186_v40 }
 0xc2f   :  { %4331 = vmatmul.mubr.f32.gmra.mrb[36].mxu0 %v8061_v3  ;;  %v6062_v28 = vpack.c.bf16 %v4165_v34, %v4161_v32  ;;  %v6064_v1 = vpack.c.bf16 %v4174_v16, %v4170_v62  ;;  %v6074_v42 = vpack.c.bf16 %v4189_v24, %v4185_v31  ;;  %v6076_v9 = vpack.c.bf16 %v4198_v39, %v4194_v29  ;;  %v4193_v8 = vld [vmem:[#allocation32 + $0x210] sm:$0xff]  ;;  %v4202_v18 = vld [vmem:[#allocation32 + $0x258] sm:$0xff] }
 0xc30   :  { %6055 = vmatpush1.bf16.msra.mxu0 %v6054_v27  ;;  %4336 = vmatprep.mubr.f32.mxu0 %v8071_v11  ;;  %v4173_v27 = vld [vmem:[#allocation32 + $0x170] sm:$0xff]  ;;  %v4206_v46 = vld [vmem:[#allocation32 + $0x278] sm:$0xff] }
 0xc31   :  { %6057 = vmatprep.subr.bf16.mxu0 %v6056_v25  ;;  %v6066_v13 = vpack.c.bf16 %v4173_v27, %v4169_v60  ;;  %v4177_v25 = vld [vmem:[#allocation32 + $0x190] sm:$0xff]  ;;  %v6080_v2 = vpack.c.bf16 %v4206_v46, %v4202_v18  ;;  %v4210_v12 = vld [vmem:[#allocation32 + $0x298] sm:$0xff] }
 0xc32   :  { %v6070_v30 = vpack.c.bf16 %v4181_v4, %v4177_v25  ;;  %v4197_v55 = vld [vmem:[#allocation32 + $0x230] sm:$0xff]  ;;  %v4214_v33 = vld [vmem:[#allocation32 + $0x2b8] sm:$0xff] }
 0xc33   :  { %4337 = vmatmul.mubr.f32.gmra.mrb[38].mxu0 %v8063_v35  ;;  %v6078_v54 = vpack.c.bf16 %v4197_v55, %v4193_v8  ;;  %v4201_v45 = vld [vmem:[#allocation32 + $0x250] sm:$0xff]  ;;  %v4218_v62 = vld [vmem:[#allocation32 + $0x2d8] sm:$0xff] }
 0xc34   :  { %6059 = vmatpush1.bf16.msra.mxu0 %v6058_v63  ;;  %4342 = vmatprep.mubr.f32.mxu0 %v8073_v15  ;;  %v4205_v19 = vld [vmem:[#allocation32 + $0x270] sm:$0xff]  ;;  %v4222_v16 = vld [vmem:[#allocation32 + $0x2f8] sm:$0xff] }
 0xc35   :  { %6061 = vmatprep.subr.bf16.mxu0 %v6060_v53  ;;  %v6082_v63 = vpack.c.bf16 %v4205_v19, %v4201_v45  ;;  %v6084_v53 = vpack.c.bf16 %v4214_v33, %v4210_v12  ;;  %v4209_v32 = vld [vmem:[#allocation32 + $0x290] sm:$0xff]  ;;  %v4226_v20 = vld [vmem:[#allocation32 + $0x318] sm:$0xff] }
 0xc36   :  { %v4213_v34 = vld [vmem:[#allocation32 + $0x2b0] sm:$0xff]  ;;  %v4230_v41 = vld [vmem:[#allocation32 + $0x338] sm:$0xff] }
 0xc37   :  { %4343 = vmatmul.mubr.f32.gmra.mrb[40].mxu0 %v8075_v58  ;;  %v4217_v60 = vld [vmem:[#allocation32 + $0x2d0] sm:$0xff]  ;;  %v4234_v40 = vld [vmem:[#allocation32 + $0x358] sm:$0xff] }
 0xc38   :  { %6063 = vmatpush1.bf16.msra.mxu0 %v6062_v28  ;;  %4348 = vmatprep.mubr.f32.mxu0 %v8077_v52  ;;  %v6086_v28 = vpack.c.bf16 %v4213_v34, %v4209_v32  ;;  %v4221_v27 = vld [vmem:[#allocation32 + $0x2f0] sm:$0xff]  ;;  %v4238_v21 = vld [vmem:[#allocation32 + $0x378] sm:$0xff] }
 0xc39   :  { %6065 = vmatprep.subr.bf16.mxu0 %v6064_v1  ;;  %v6088_v1 = vpack.c.bf16 %v4222_v16, %v4218_v62  ;;  %v4225_v25 = vld [vmem:[#allocation32 + $0x310] sm:$0xff]  ;;  %v4242_v29 = vld [vmem:[#allocation32 + $0x398] sm:$0xff] }
 0xc3a   :  { %v4229_v4 = vld [vmem:[#allocation32 + $0x330] sm:$0xff]  ;;  %v4246_v39 = vld [vmem:[#allocation32 + $0x3b8] sm:$0xff] }
 0xc3b   :  { %4349 = vmatmul.mubr.f32.gmra.mrb[42].mxu0 %v8079_v7  ;;  %v4233_v31 = vld [vmem:[#allocation32 + $0x350] sm:$0xff]  ;;  %v4250_v18 = vld [vmem:[#allocation32 + $0x3d8] sm:$0xff] }
 0xc3c   :  { %6067 = vmatpush1.bf16.msra.mxu0 %v6066_v13  ;;  %4354 = vmatprep.mubr.f32.mxu0 %v8082_v17  ;;  %v6090_v13 = vpack.c.bf16 %v4221_v27, %v4217_v60  ;;  %v4237_v24 = vld [vmem:[#allocation32 + $0x370] sm:$0xff]  ;;  %v4254_v46 = vld [vmem:[#allocation32 + $0x3f8] sm:$0xff] }
 0xc3d   :  { %6069 = vmatprep.subr.bf16.mxu0 %v6068_v48  ;;  %v6092_v48 = vpack.c.bf16 %v4230_v41, %v4226_v20  ;;  %v4241_v8 = vld [vmem:[#allocation32 + $0x390] sm:$0xff] }
 0xc3e   :  { %v4245_v55 = vld [vmem:[#allocation32 + $0x3b0] sm:$0xff] }
 0xc3f   :  { %4355 = vmatmul.mubr.f32.gmra.mrb[44].mxu0 %v8084_v37  ;;  %v4249_v45 = vld [vmem:[#allocation32 + $0x3d0] sm:$0xff] }
 0xc40   :  { %6071 = vmatpush1.bf16.msra.mxu0 %v6070_v30  ;;  %4360 = vmatprep.mubr.f32.mxu0 %v8097_v47  ;;  %v6094_v30 = vpack.c.bf16 %v4229_v4, %v4225_v25  ;;  %v4253_v19 = vld [vmem:[#allocation32 + $0x3f0] sm:$0xff] }
 0xc41   :  { %6073 = vmatprep.subr.bf16.mxu0 %v6072_v43  ;;  %v6096_v43 = vpack.c.bf16 %v4238_v21, %v4234_v40  ;;  %v6106_v12 = vpack.c.bf16 %v4253_v19, %v4249_v45 }
 0xc43   :  { %4361 = vmatmul.mubr.f32.gmra.mrb[46].mxu0 %v8099_v56 }
 0xc44   :  { %6075 = vmatpush1.bf16.msra.mxu0 %v6074_v42  ;;  %4366 = vmatprep.mubr.f32.mxu0 %v8102_v0  ;;  %v6098_v42 = vpack.c.bf16 %v4237_v24, %v4233_v31 }
 0xc45   :  { %6077 = vmatprep.subr.bf16.mxu0 %v6076_v9  ;;  %v6100_v9 = vpack.c.bf16 %v4246_v39, %v4242_v29 }
 0xc47   :  { %4367 = vmatmul.mubr.f32.gmra.mrb[48].mxu0 %v8104_v38 }
 0xc48   :  { %6079 = vmatpush1.bf16.msra.mxu0 %v6078_v54  ;;  %4372 = vmatprep.mubr.f32.mxu0 %v8106_v59  ;;  %v6102_v54 = vpack.c.bf16 %v4245_v55, %v4241_v8 }
 0xc49   :  { %6081 = vmatprep.subr.bf16.mxu0 %v6080_v2  ;;  %v6104_v2 = vpack.c.bf16 %v4254_v46, %v4250_v18 }
 0xc4b   :  { %4373 = vmatmul.mubr.f32.gmra.mrb[50].mxu0 %v8108_v26 }
 0xc4c   :  { %6083 = vmatpush1.bf16.msra.mxu0 %v6082_v63  ;;  %4378 = vmatprep.mubr.f32.mxu0 %v8110_v5 }
 0xc4d   :  { %6085 = vmatprep.subr.bf16.mxu0 %v6084_v53 }
 0xc4f   :  { %4379 = vmatmul.mubr.f32.gmra.mrb[52].mxu0 %v8128_v50 }
 0xc50   :  { %6087 = vmatpush1.bf16.msra.mxu0 %v6086_v28  ;;  %4384 = vmatprep.mubr.f32.mxu0 %v8130_v36 }
 0xc51   :  { %6089 = vmatprep.subr.bf16.mxu0 %v6088_v1 }
 0xc53   :  { %4385 = vmatmul.mubr.f32.gmra.mrb[54].mxu0 %v8132_v14 }
 0xc54   :  { %6091 = vmatpush1.bf16.msra.mxu0 %v6090_v13  ;;  %4390 = vmatprep.mubr.f32.mxu0 %v8137_v57 }
 0xc55   :  { %6093 = vmatprep.subr.bf16.mxu0 %v6092_v48 }
 0xc57   :  { %4391 = vmatmul.mubr.f32.gmra.mrb[56].mxu0 %v8139_v44 }
 0xc58   :  { %6095 = vmatpush1.bf16.msra.mxu0 %v6094_v30  ;;  %4396 = vmatprep.mubr.f32.mxu0 %v8141_v49 }
 0xc59   :  { %6097 = vmatprep.subr.bf16.mxu0 %v6096_v43 }
 0xc5b   :  { %4397 = vmatmul.mubr.f32.gmra.mrb[58].mxu0 %v8143_v51 }
 0xc5c   :  { %6099 = vmatpush1.bf16.msra.mxu0 %v6098_v42  ;;  %4467 = vmatprep.mubr.f32.mxu0 %v8065_v61 }
 0xc5d   :  { %6101 = vmatprep.subr.bf16.mxu0 %v6100_v9 }
 0xc60   :  { %6103 = vmatpush1.bf16.msra.mxu0 %v6102_v54 }
 0xc61   :  { %6105 = vmatprep.subr.bf16.mxu0 %v6104_v2 }
 0xc64   :  { %6107 = vmatpush1.bf16.msra.mxu0 %v6106_v12 }
 0xc67   :  { %4468 = vmatmul.mubr.f32.vlgmr.msra.gmra.mrb[34].mxu0 %v8057_v23  ;;  %v8202_v23 = vld [vmem:[#allocation34] ss:$0 sm:$0xff] }
 0xc68   :  { %4473 = vmatprep.mubr.f32.mxu0 %v8067_v6 }
 0xc6b   :  { %4474 = vmatmul.mubr.f32.gmra.mrb[36].mxu0 %v8059_v10 }
 0xc6c   :  { %4479 = vmatprep.mubr.f32.mxu0 %v8069_v22 }
 0xc6f   :  { %4480 = vmatmul.mubr.f32.gmra.mrb[38].mxu0 %v8061_v3 }
 0xc70   :  { %4485 = vmatprep.mubr.f32.mxu0 %v8071_v11 }
 0xc73   :  { %4486 = vmatmul.mubr.f32.gmra.mrb[40].mxu0 %v8063_v35 }
 0xc74   :  { %4491 = vmatprep.mubr.f32.mxu0 %v8073_v15 }
 0xc77   :  { %4492 = vmatmul.mubr.f32.gmra.mrb[42].mxu0 %v8075_v58 }
 0xc78   :  { %4497 = vmatprep.mubr.f32.mxu0 %v8077_v52 }
 0xc7b   :  { %4498 = vmatmul.mubr.f32.gmra.mrb[44].mxu0 %v8079_v7 }
 0xc7c   :  { %4503 = vmatprep.mubr.f32.mxu0 %v8082_v17 }
 0xc7f   :  { %4504 = vmatmul.mubr.f32.gmra.mrb[46].mxu0 %v8084_v37 }
 0xc80   :  { %4509 = vmatprep.mubr.f32.mxu0 %v8097_v47 }
 0xc83   :  { %4510 = vmatmul.mubr.f32.gmra.mrb[48].mxu0 %v8099_v56 }
 0xc84   :  { %4515 = vmatprep.mubr.f32.mxu0 %v8102_v0 }
 0xc87   :  { %4516 = vmatmul.mubr.f32.gmra.mrb[50].mxu0 %v8104_v38 }
 0xc88   :  { %4521 = vmatprep.mubr.f32.mxu0 %v8106_v59 }
 0xc8b   :  { %4522 = vmatmul.mubr.f32.gmra.mrb[52].mxu0 %v8108_v26 }
 0xc8c   :  { %4527 = vmatprep.mubr.f32.mxu0 %v8110_v5 }
 0xc8f   :  { %4528 = vmatmul.mubr.f32.gmra.mrb[54].mxu0 %v8128_v50 }
 0xc90   :  { %4533 = vmatprep.mubr.f32.mxu0 %v8130_v36 }
 0xc93   :  { %4534 = vmatmul.mubr.f32.gmra.mrb[56].mxu0 %v8132_v14 }
 0xc94   :  { %4539 = vmatprep.mubr.f32.mxu0 %v8137_v57 }
 0xc97   :  { %4540 = vmatmul.mubr.f32.gmra.mrb[58].mxu0 %v8139_v44 }
 0xc98   :  { %4545 = vmatprep.mubr.f32.mxu0 %v8141_v49 }
 0xc9b   :  { %4546 = vmatmul.mubr.f32.gmra.mrb[60].mxu0 %v8143_v51 }
 0xcfa   :  { %v4321_v10 = vpop.f32.mrb[32].mxu0 }
 0xcfb   :  { %v4322_v3 = vpop.f32.mrb[33].mxu0 }
 0xcfc   :  { %v4584_v35 = vadd.f32 %v8202_v23, %v4322_v3 }
 0xcfe   :  { %6227 = vtanh.f32 %v4584_v35 }
 0xd08   :  { %v6228_v61 = vpop.eup %6227 }
 0xd09   :  { %4586 = vst [vmem:[#allocation35] sm:$0xff] %v6228_v61 }
 0xd3a   :  { %v4469_v6 = vpop.f32.mrb[34].mxu0 }
 0xd3b   :  { %v4587_v22 = vadd.f32 %v8202_v23, %v4469_v6  ;;  %v4471_v11 = vpop.f32.mrb[35].mxu0 }
 0xd3c   :  { %v4590_v15 = vadd.f32 %v8202_v23, %v4471_v11 }
 0xd3d   :  { %6229 = vtanh.f32 %v4587_v22 }
 0xd3e   :  { %6231 = vtanh.f32 %v4590_v15  ;;  %v4475_v58 = vpop.f32.mrb[36].mxu0 }
 0xd3f   :  { %v4593_v52 = vadd.f32 %v8202_v23, %v4475_v58  ;;  %v4477_v7 = vpop.f32.mrb[37].mxu0 }
 0xd40   :  { %v4596_v17 = vadd.f32 %v8202_v23, %v4477_v7 }
 0xd41   :  { %6233 = vtanh.f32 %v4593_v52 }
 0xd42   :  { %6235 = vtanh.f32 %v4596_v17  ;;  %v4481_v37 = vpop.f32.mrb[38].mxu0 }
 0xd43   :  { %v4599_v47 = vadd.f32 %v8202_v23, %v4481_v37  ;;  %v4483_v56 = vpop.f32.mrb[39].mxu0 }
 0xd44   :  { %v4602_v0 = vadd.f32 %v8202_v23, %v4483_v56 }
 0xd45   :  { %6237 = vtanh.f32 %v4599_v47 }
 0xd46   :  { %6239 = vtanh.f32 %v4602_v0  ;;  %v4487_v38 = vpop.f32.mrb[40].mxu0 }
 0xd47   :  { %v6230_v59 = vpop.eup %6229  ;;  %v4605_v26 = vadd.f32 %v8202_v23, %v4487_v38  ;;  %v4489_v5 = vpop.f32.mrb[41].mxu0 }
 0xd48   :  { %v6232_v50 = vpop.eup %6231  ;;  %4589 = vst [vmem:[#allocation35 + $0x8] sm:$0xff] %v6230_v59  ;;  %v4608_v36 = vadd.f32 %v8202_v23, %v4489_v5 }
 0xd49   :  { %4592 = vst [vmem:[#allocation35 + $0x10] sm:$0xff] %v6232_v50  ;;  %6241 = vtanh.f32 %v4605_v26 }
 0xd4a   :  { %6243 = vtanh.f32 %v4608_v36  ;;  %v4493_v14 = vpop.f32.mrb[42].mxu0 }
 0xd4b   :  { %v6234_v57 = vpop.eup %6233  ;;  %v4611_v44 = vadd.f32 %v8202_v23, %v4493_v14  ;;  %v4495_v49 = vpop.f32.mrb[43].mxu0 }
 0xd4c   :  { %v6236_v51 = vpop.eup %6235  ;;  %4595 = vst [vmem:[#allocation35 + $0x18] sm:$0xff] %v6234_v57  ;;  %v4614_v33 = vadd.f32 %v8202_v23, %v4495_v49 }
 0xd4d   :  { %4598 = vst [vmem:[#allocation35 + $0x20] sm:$0xff] %v6236_v51  ;;  %6245 = vtanh.f32 %v4611_v44 }
 0xd4e   :  { %6247 = vtanh.f32 %v4614_v33  ;;  %v4499_v63 = vpop.f32.mrb[44].mxu0 }
 0xd4f   :  { %v6238_v53 = vpop.eup %6237  ;;  %v4617_v32 = vadd.f32 %v8202_v23, %v4499_v63  ;;  %v4501_v34 = vpop.f32.mrb[45].mxu0 }
 0xd50   :  { %v6240_v62 = vpop.eup %6239  ;;  %4601 = vst [vmem:[#allocation35 + $0x28] sm:$0xff] %v6238_v53  ;;  %v4620_v16 = vadd.f32 %v8202_v23, %v4501_v34 }
 0xd51   :  { %4604 = vst [vmem:[#allocation35 + $0x30] sm:$0xff] %v6240_v62  ;;  %6249 = vtanh.f32 %v4617_v32 }
 0xd52   :  { %6251 = vtanh.f32 %v4620_v16  ;;  %v4505_v28 = vpop.f32.mrb[46].mxu0 }
 0xd53   :  { %v6242_v1 = vpop.eup %6241  ;;  %v4623_v60 = vadd.f32 %v8202_v23, %v4505_v28  ;;  %v4507_v27 = vpop.f32.mrb[47].mxu0 }
 0xd54   :  { %v6244_v20 = vpop.eup %6243  ;;  %4607 = vst [vmem:[#allocation35 + $0x38] sm:$0xff] %v6242_v1  ;;  %v4626_v41 = vadd.f32 %v8202_v23, %v4507_v27 }
 0xd55   :  { %4610 = vst [vmem:[#allocation35 + $0x40] sm:$0xff] %v6244_v20  ;;  %6253 = vtanh.f32 %v4623_v60 }
 0xd56   :  { %6255 = vtanh.f32 %v4626_v41  ;;  %v4511_v13 = vpop.f32.mrb[48].mxu0 }
 0xd57   :  { %v6246_v48 = vpop.eup %6245  ;;  %v4629_v25 = vadd.f32 %v8202_v23, %v4511_v13  ;;  %v4513_v4 = vpop.f32.mrb[49].mxu0 }
 0xd58   :  { %v6248_v40 = vpop.eup %6247  ;;  %4613 = vst [vmem:[#allocation35 + $0x48] sm:$0xff] %v6246_v48  ;;  %v4632_v21 = vadd.f32 %v8202_v23, %v4513_v4 }
 0xd59   :  { %4616 = vst [vmem:[#allocation35 + $0x50] sm:$0xff] %v6248_v40  ;;  %6257 = vtanh.f32 %v4629_v25 }
 0xd5a   :  { %6259 = vtanh.f32 %v4632_v21  ;;  %v4517_v30 = vpop.f32.mrb[50].mxu0 }
 0xd5b   :  { %v6250_v43 = vpop.eup %6249  ;;  %v4635_v31 = vadd.f32 %v8202_v23, %v4517_v30  ;;  %v4519_v24 = vpop.f32.mrb[51].mxu0 }
 0xd5c   :  { %v6252_v29 = vpop.eup %6251  ;;  %4619 = vst [vmem:[#allocation35 + $0x58] sm:$0xff] %v6250_v43  ;;  %v4638_v39 = vadd.f32 %v8202_v23, %v4519_v24 }
 0xd5d   :  { %4622 = vst [vmem:[#allocation35 + $0x60] sm:$0xff] %v6252_v29  ;;  %6261 = vtanh.f32 %v4635_v31 }
 0xd5e   :  { %6263 = vtanh.f32 %v4638_v39  ;;  %v4523_v42 = vpop.f32.mrb[52].mxu0 }
 0xd5f   :  { %v6254_v9 = vpop.eup %6253  ;;  %v4641_v8 = vadd.f32 %v8202_v23, %v4523_v42  ;;  %v4525_v55 = vpop.f32.mrb[53].mxu0 }
 0xd60   :  { %v6256_v18 = vpop.eup %6255  ;;  %4625 = vst [vmem:[#allocation35 + $0x68] sm:$0xff] %v6254_v9  ;;  %v4644_v46 = vadd.f32 %v8202_v23, %v4525_v55 }
 0xd61   :  { %4628 = vst [vmem:[#allocation35 + $0x70] sm:$0xff] %v6256_v18  ;;  %6265 = vtanh.f32 %v4641_v8 }
 0xd62   :  { %6267 = vtanh.f32 %v4644_v46  ;;  %v4529_v54 = vpop.f32.mrb[54].mxu0 }
 0xd63   :  { %v6258_v2 = vpop.eup %6257  ;;  %v4647_v45 = vadd.f32 %v8202_v23, %v4529_v54  ;;  %v4531_v19 = vpop.f32.mrb[55].mxu0 }
 0xd64   :  { %v6260_v12 = vpop.eup %6259  ;;  %4631 = vst [vmem:[#allocation35 + $0x78] sm:$0xff] %v6258_v2  ;;  %v4650_v10 = vadd.f32 %v8202_v23, %v4531_v19 }
 0xd65   :  { %4634 = vst [vmem:[#allocation35 + $0x80] sm:$0xff] %v6260_v12  ;;  %6269 = vtanh.f32 %v4647_v45 }
 0xd66   :  { %6271 = vtanh.f32 %v4650_v10  ;;  %v4535_v3 = vpop.f32.mrb[56].mxu0 }
 0xd67   :  { %v6262_v35 = vpop.eup %6261  ;;  %v4653_v61 = vadd.f32 %v8202_v23, %v4535_v3  ;;  %v4537_v6 = vpop.f32.mrb[57].mxu0 }
 0xd68   :  { %v6264_v22 = vpop.eup %6263  ;;  %4637 = vst [vmem:[#allocation35 + $0x88] sm:$0xff] %v6262_v35  ;;  %v4656_v11 = vadd.f32 %v8202_v23, %v4537_v6 }
 0xd69   :  { %4640 = vst [vmem:[#allocation35 + $0x90] sm:$0xff] %v6264_v22  ;;  %6273 = vtanh.f32 %v4653_v61 }
 0xd6a   :  { %6275 = vtanh.f32 %v4656_v11  ;;  %v4541_v15 = vpop.f32.mrb[58].mxu0 }
 0xd6b   :  { %v6266_v58 = vpop.eup %6265  ;;  %v4659_v52 = vadd.f32 %v8202_v23, %v4541_v15  ;;  %v4543_v7 = vpop.f32.mrb[59].mxu0 }
 0xd6c   :  { %v6268_v17 = vpop.eup %6267  ;;  %4643 = vst [vmem:[#allocation35 + $0x98] sm:$0xff] %v6266_v58  ;;  %v4662_v37 = vadd.f32 %v8202_v23, %v4543_v7 }
 0xd6d   :  { %4646 = vst [vmem:[#allocation35 + $0xa0] sm:$0xff] %v6268_v17  ;;  %6277 = vtanh.f32 %v4659_v52 }
 0xd6e   :  { %6279 = vtanh.f32 %v4662_v37  ;;  %v4547_v47 = vpop.f32.mrb[60].mxu0 }
 0xd6f   :  { %v6270_v56 = vpop.eup %6269  ;;  %v4665_v0 = vadd.f32 %v8202_v23, %v4547_v47  ;;  %v4549_v38 = vpop.f32.mrb[61].mxu0 }
 0xd70   :  { %v6272_v59 = vpop.eup %6271  ;;  %4649 = vst [vmem:[#allocation35 + $0xa8] sm:$0xff] %v6270_v56 }
 0xd71   :  { %4652 = vst [vmem:[#allocation35 + $0xb0] sm:$0xff] %v6272_v59  ;;  %6281 = vtanh.f32 %v4665_v0 }
 0xd73   :  { %v6274_v26 = vpop.eup %6273 }
 0xd74   :  { %v6276_v5 = vpop.eup %6275  ;;  %4655 = vst [vmem:[#allocation35 + $0xb8] sm:$0xff] %v6274_v26 }
 0xd75   :  { %4658 = vst [vmem:[#allocation35 + $0xc0] sm:$0xff] %v6276_v5 }
 0xd77   :  { %v6278_v50 = vpop.eup %6277 }
 0xd78   :  { %v6280_v36 = vpop.eup %6279  ;;  %4661 = vst [vmem:[#allocation35 + $0xc8] sm:$0xff] %v6278_v50 }
 0xd79   :  { %4664 = vst [vmem:[#allocation35 + $0xd0] sm:$0xff] %v6280_v36 }
 0xd7b   :  { %v6282_v14 = vpop.eup %6281 }
 0xd7c   :  { %4667 = vst [vmem:[#allocation35 + $0xd8] sm:$0xff] %v6282_v14 }
 0xd7d   :  { %6712 = shalt.err (!%p6709_p2)
}
 0xd7e   :  { %s8345_s29 = sld [smem:[#allocation69_spill]] }
 0xd84   :  { %s6713_s4 = scalar_lea.hbm %s8345_s29, 3584 }
 0xd85   :  { %p6714_p3 = scmp.ne.s32.totalorder %s8345_s29, %s6713_s4  ;;  %p6717_p4 = scmp.lt.u32.totalorder %s6713_s4, %s8345_s29 }
 0xd87   :  { %p6719_p5 = pnand %p6717_p4, %p6714_p3 }
 0xd89   :  { %6722 = shalt.err (!%p6719_p5)
}
 0xd8a   :  { %s8346_s14 = smov 8   ;;  %s8347_s15 = smov 128  }
 0xd8b   :  { %4679 = dma.vmem_to_hbm [thread:$0]  %s4674_s26, 3584, %s8345_s29, [#allocation7], %s8347_s15, %s8347_s15, %s8346_s14  }
 0xd8c   :  { %6743 = dma.done.wait [#allocation7], 3584  }
 0xd8d   :  { %6744 = vsyncadd [#allocation7], 4294963712 }
 0xd8e   :  { %4683 = vsyncpa [#allocation6], 1 }
 0xd8f   :  { %4684 = vsyncpa [#allocation9], 1 }
 0xd90   :  { %4685 = vsyncpa [#allocation12], 1 }
 0xd91   :  { %4686 = vsyncpa [#allocation15], 1 }
 0xd92   :  { %4687 = vsyncpa [#allocation18], 1 }
 0xd93   :  { %4688 = vsyncpa [#allocation21], 1 }
 0xd94   :  { %4689 = vsyncpa [#allocation24], 1 }
 0xd95   :  { %4690 = vsyncpa [#allocation27], 1 }
 0xd96   :  { %4691 = vsyncpa [#allocation30], 1 }
 0xd97   :  { %4692 = vsyncpa [#allocation33], 1 }
 0xd98   :  { %4693 = vsyncpa [#allocation7], 1 }

</bundles_post_ra>
